<compile_context>
chip_gen: v6e
topology: v6e:2x2x1
jax: 0.10.0
libtpu: 0.0.40
codegen_flags: <defaults>
</compile_context>

<pallas_src>
import functools
import math

import jax
import jax.numpy as jnp
from jax.experimental import pallas as pl
from jax.experimental.pallas import tpu as pltpu

EPS = 1e-5  # BatchNorm eps (PyTorch default)


# ---------------------------------------------------------------------------
# Small static helpers
# ---------------------------------------------------------------------------
def _pick_qb(khq):
    """Number of kernel-height taps processed per grid step."""
    if khq <= 12:
        return khq
    for qb in range(12, 7, -1):
        if khq % qb == 0:
            return qb
    return 8


def _row_tiles(hout, wout, cout, kpad):
    """Split Hout into T tiles of TH rows so the per-step working set
    (f32 accumulator + bf16 width-im2col staging tile) stays ~<= 64 KiB."""
    budget = 64 * 1024
    cap = max(1, budget // (wout * max(cout * 4, kpad * 2)))
    if hout <= cap:
        return 1, hout
    for th in range(min(cap, hout), 0, -1):
        if hout % th == 0 and (th * wout) % 8 == 0:
            return hout // th, th
    return 1, hout


# ---------------------------------------------------------------------------
# Fused conv + BN-affine + residual + ReLU Pallas kernel
# ---------------------------------------------------------------------------
@functools.lru_cache(maxsize=None)
def _build_conv_call(N, T, TH, Hph, Wp, Wout, Cin, Cout, KW, S, QB, QBLKS,
                     Kf, Kpad, has_res):
    """relu( conv(x) * scale + shift [+ res] ), (phase, KH-block) on the grid.

    Inputs:
      x     : (S, N, Hph, Wp, Cin)    bf16  H-phase-decomposed padded input
      w     : (S*KHQP, Kpad, Cout)    bf16  folded (kw,cin)->K weight slab
      scale : (1, Cout)               f32   folded BN scale
      shift : (1, Cout)               f32   folded BN shift (incl. conv bias)
      res   : (N, T*TH*Wout, Cout)    bf16  (only if has_res)
    Output : (N, T*TH*Wout, Cout)     bf16
    """
    M_blk = TH * Wout
    KHQP = QB * QBLKS

    def kernel(*refs):
        if has_res:
            x_ref, w_ref, sc_ref, sh_ref, res_ref, o_ref, acc_ref, stg_ref = refs
        else:
            x_ref, w_ref, sc_ref, sh_ref, o_ref, acc_ref, stg_ref = refs
            res_ref = None

        t = pl.program_id(1)
        r = pl.program_id(2)
        qb = pl.program_id(3)
        row0 = t * TH

        if Kpad > Kf:  # static: zero the K-padding columns of the staging tile
            stg_ref[:, Kf:] = jnp.zeros((M_blk, Kpad - Kf), jnp.bfloat16)

        acc = jnp.zeros((M_blk, Cout), jnp.float32)
        for j in range(QB):                       # unrolled KH taps (per phase)
            q = qb * QB + j
            start = row0 + q
            # Width-only micro-im2col: gather the KW taps of this row window
            # into a lane-dense (M_blk, KW*Cin) staging tile (VMEM), then do a
            # single MXU dot over the full folded contraction.
            for kw in range(KW):
                a = x_ref[pl.ds(start, TH), pl.ds(kw, Wout), :]
                stg_ref[:, kw * Cin:(kw + 1) * Cin] = a.reshape(M_blk, Cin)
            w_tap = w_ref[r * KHQP + q]           # (Kpad, Cout), resident slab
            acc = acc + jnp.dot(stg_ref[...], w_tap,
                                preferred_element_type=jnp.float32)

        first = jnp.logical_and(r == 0, qb == 0)
        last = jnp.logical_and(r == S - 1, qb == QBLKS - 1)

        @pl.when(first)
        def _():
            acc_ref[...] = acc                    # no separate zero-init pass

        @pl.when(jnp.logical_not(first))
        def _():
            acc_ref[...] += acc

        @pl.when(last)
        def _():
            y = acc_ref[...] * sc_ref[...] + sh_ref[...]
            if has_res:
                y = y + res_ref[...].astype(jnp.float32)
            o_ref[...] = jnp.maximum(y, 0.0).astype(o_ref.dtype)

    in_specs = [
        pl.BlockSpec((None, None, Hph, Wp, Cin),
                     lambda n, t, r, q: (r, n, 0, 0, 0)),
        # Full weight slab, constant index map -> fetched once, VMEM-resident.
        pl.BlockSpec((S * KHQP, Kpad, Cout), lambda n, t, r, q: (0, 0, 0)),
        pl.BlockSpec((1, Cout), lambda n, t, r, q: (0, 0)),
        pl.BlockSpec((1, Cout), lambda n, t, r, q: (0, 0)),
    ]
    if has_res:
        in_specs.append(
            pl.BlockSpec((None, M_blk, Cout), lambda n, t, r, q: (n, t, 0)))

    return pl.pallas_call(
        kernel,
        out_shape=jax.ShapeDtypeStruct((N, T * M_blk, Cout), jnp.bfloat16),
        grid_spec=pltpu.PrefetchScalarGridSpec(
            num_scalar_prefetch=0,
            grid=(N, T, S, QBLKS),
            in_specs=in_specs,
            out_specs=pl.BlockSpec((None, M_blk, Cout),
                                   lambda n, t, r, q: (n, t, 0)),
            scratch_shapes=[pltpu.VMEM((M_blk, Cout), jnp.float32),
                            pltpu.VMEM((M_blk, Kpad), jnp.bfloat16)],
        ),
        compiler_params=pltpu.CompilerParams(
            dimension_semantics=("parallel", "parallel",
                                 "arbitrary", "arbitrary"),
            vmem_limit_bytes=48 * 1024 * 1024),
    )


@functools.partial(jax.jit, static_argnums=(5,))
def _conv_bn_act_impl(x, w_k, scale, shift, residual, cfg):
    """Conv2d(stride=[S,1], padding=[ph,pw]) + folded-BN affine + res + ReLU."""
    KH, KW, S, ph, pw, QB, KHQP, Kf, Kpad, Cout = cfg
    N, H, W, Cin = x.shape
    QBLKS = KHQP // QB

    Hp, Wp = H + 2 * ph, W + 2 * pw
    Hout = (Hp - KH) // S + 1
    Wout = Wp - KW + 1
    T, TH = _row_tiles(Hout, Wout, Cout, Kpad)
    Hph = Hout + KHQP - 1

    # Zero-pad spatially (bf16 activations).
    xp = jnp.pad(x, ((0, 0), (ph, ph), (pw, pw), (0, 0)))

    # Decompose the (possibly strided) H axis into S phases so the KH
    # reduction becomes a stride-1 row offset within every phase.
    if S == 1:
        if Hp < Hph:
            xp = jnp.pad(xp, ((0, 0), (0, Hph - Hp), (0, 0), (0, 0)))
        xph = xp[:, :Hph][None]                       # (1, N, Hph, Wp, Cin)
    else:
        phases = []
        for r in range(S):
            p_r = xp[:, r::S]
            nrows = p_r.shape[1]
            if nrows < Hph:
                p_r = jnp.pad(p_r, ((0, 0), (0, Hph - nrows), (0, 0), (0, 0)))
            elif nrows > Hph:
                p_r = p_r[:, :Hph]
            phases.append(p_r)
        xph = jnp.stack(phases, axis=0)               # (S, N, Hph, Wp, Cin)

    args = [xph, w_k, scale, shift]
    if residual is not None:
        args.append(residual.reshape(N, Hout * Wout, Cout))

    fn = _build_conv_call(N, T, TH, Hph, Wp, Wout, Cin, Cout, KW, S, QB,
                          QBLKS, Kf, Kpad, residual is not None)
    out = fn(*args)                                   # (N, Hout*Wout, Cout)
    return out.reshape(N, Hout, Wout, Cout)


def _conv_bn_act(x, cp, residual):
    cfg = (cp["KH"], cp["KW"], cp["S"], cp["ph"], cp["pw"],
           cp["QB"], cp["KHQP"], cp["Kf"], cp["Kpad"], cp["Cout"])
    return _conv_bn_act_impl(x, cp["w_k"], cp["scale"], cp["shift"],
                             residual, cfg)


# ---------------------------------------------------------------------------
# Head kernel: MaxPool2d([6,4]) + NCHW flatten + Linear(256,1) + sigmoid
# ---------------------------------------------------------------------------
@functools.lru_cache(maxsize=None)
def _build_head_call(N, P, Q, C):
    """xh: (P, Q, N, C) pooling windows (bf16); wh: (P, C, 1); bh: (1, 1)."""

    def kernel(xh_ref, w_ref, b_ref, o_ref):
        y = b_ref[...]                                   # (1, 1)
        for p in range(P):
            pooled = jnp.max(xh_ref[p], axis=0).astype(jnp.float32)  # (N, C)
            y = y + jnp.dot(pooled, w_ref[p],
                            preferred_element_type=jnp.float32)
        o_ref[...] = 1.0 / (1.0 + jnp.exp(-y))           # sigmoid

    return pl.pallas_call(
        kernel, out_shape=jax.ShapeDtypeStruct((N, 1), jnp.float32))


def _head(x, wl, bl, pool_h, pool_w):
    N, H, W, C = x.shape
    HO, WO = H // pool_h, W // pool_w
    P, Q = HO * WO, pool_h * pool_w
    assert C * HO * WO == wl.shape[1], "linear in_features mismatch"

    xh = x[:, :HO * pool_h, :WO * pool_w, :]
    xh = xh.reshape(N, HO, pool_h, WO, pool_w, C)
    xh = jnp.transpose(xh, (1, 3, 2, 4, 0, 5)).reshape(P, Q, N, C)

    # Reorder the linear weight to NCHW-flatten order f = c*(HO*WO) + i*WO + j.
    wh = jnp.transpose(wl.reshape(C, HO, WO), (1, 2, 0)).reshape(P, C)[:, :, None]
    bh = bl.reshape(1, 1)
    return _build_head_call(N, P, Q, C)(xh, wh, bh)


# ---------------------------------------------------------------------------
# Parameter initialization (deterministic, synthetic) + weight preprocessing
# ---------------------------------------------------------------------------
def _bn_init(key, c):
    k1, k2, k3, k4 = jax.random.split(key, 4)
    gamma = 1.0 + 0.1 * jax.random.normal(k1, (c,), jnp.float32)
    beta = 0.1 * jax.random.normal(k2, (c,), jnp.float32)
    mean = 0.1 * jax.random.normal(k3, (c,), jnp.float32)
    var = 1.0 + 0.1 * jax.random.uniform(k4, (c,), jnp.float32)
    return gamma, beta, mean, var


def _make_conv(key, kh, kw, cin, cout, stride, ph, pw):
    k1, k2, k3 = jax.random.split(key, 3)
    fan_in = cin * kh * kw
    w = jax.random.normal(k1, (kh, kw, cin, cout), jnp.float32) / math.sqrt(fan_in)
    b = 0.01 * jax.random.normal(k2, (cout,), jnp.float32)
    gamma, beta, mean, var = _bn_init(k3, cout)
    scale = gamma / jnp.sqrt(var + EPS)       # inference-mode folded BN
    shift = beta - mean * scale + scale * b   # includes the conv bias

    khq = -(-kh // stride)
    qb = _pick_qb(khq)
    khqp = -(-khq // qb) * qb
    kf = kw * cin                              # folded contraction (kw, cin)
    kpad = -(-kf // 8) * 8                     # pad K AFTER folding
    # Rearrange (KH, KW, Cin, Cout) with kh = q*S + r into a resident slab
    # (S*KHQP, Kpad, Cout); extra taps / K columns are zero; bf16 for the MXU.
    wp = jnp.pad(w, ((0, khqp * stride - kh), (0, 0), (0, 0), (0, 0)))
    wp = wp.reshape(khqp, stride, kf, cout)
    wp = jnp.pad(wp, ((0, 0), (0, 0), (0, kpad - kf), (0, 0)))
    w_k = jnp.transpose(wp, (1, 0, 2, 3)).reshape(stride * khqp, kpad, cout)
    w_k = w_k.astype(jnp.bfloat16)

    return dict(w_k=w_k, scale=scale.reshape(1, cout),
                shift=shift.reshape(1, cout),
                KH=kh, KW=kw, S=stride, ph=ph, pw=pw,
                QB=qb, KHQP=khqp, Kf=kf, Kpad=kpad, Cin=cin, Cout=cout)


def _make_block(key, cin, cout, kh, kw, stride, ph, pw):
    k1, k2 = jax.random.split(key)
    return dict(conv1=_make_conv(k1, kh, kw, cin, cout, stride, ph, pw),
                conv2=_make_conv(k2, kh, kw, cout, cout, 1, ph, pw),
                cin=cin, cout=cout, stride=stride)


def _make_layer(key, n, cin, cout, kh, kw, stride, ph, pw):
    keys = jax.random.split(key, n)
    blocks = [_make_block(keys[0], cin, cout, kh, kw, stride, ph, pw)]
    for i in range(1, n):
        blocks.append(_make_block(keys[i], cout, cout, kh, kw, 1, ph, pw))
    return blocks


# ---------------------------------------------------------------------------
# Forward-pass glue (mirrors Block / Layer / Net.forward)
# ---------------------------------------------------------------------------
def _block_forward(x, blk):
    # relu1(bn1(conv1(x)))
    y = _conv_bn_act(x, blk["conv1"], residual=None)
    if blk["cin"] != blk["cout"]:
        # IdentityPadding: MaxPool2d(1, stride=[s,1]) == take every s-th row,
        # then zero-pad the channel dim up to cout.
        old = x[:, ::blk["stride"], :, :]
        old = jnp.pad(old, ((0, 0), (0, 0), (0, 0),
                            (0, blk["cout"] - blk["cin"])))
    else:
        old = x
    # relu2(bn2(conv2(y)) + old)
    return _conv_bn_act(y, blk["conv2"], residual=old)


def _layer_forward(x, blocks):
    for blk in blocks:
        x = _block_forward(x, blk)
    return x


class PallasNet:
    """Pallas/TPU forward pass of the PyTorch `Net` (inference-mode BN)."""

    def __init__(self, key, n=4):
        ks = jax.random.split(key, 7)
        self.pre1 = _make_layer(ks[0], n, 1, 6, 5, 7, 1, 2, 3)
        self.pre2 = _make_layer(ks[1], n, 6, 16, 11, 7, 1, 5, 3)
        self.pre3 = _make_layer(ks[2], n, 16, 32, 45, 7, 1, 22, 3)
        self.conv1 = _make_layer(ks[3], n, 32, 64, 45, 7, 2, 22, 3)
        self.conv2 = _make_layer(ks[4], n, 64, 128, 45, 7, 2, 22, 3)
        # The PyTorch module also builds `conv3`, but forward() never uses it.
        self.wl = jax.random.normal(ks[5], (1, 256), jnp.float32) / math.sqrt(256.0)
        self.bl = 0.01 * jax.random.normal(ks[6], (1,), jnp.float32)

    def __call__(self, x):
        # x: (2, B, 1, H, W) float32 -- stream 0 = guide, stream 1 = target.
        B = x.shape[1]
        # The pre* stems share weights between both streams: run them batched.
        both = jnp.concatenate([x[0], x[1]], axis=0)                # (2B,1,H,W)
        t = jnp.transpose(both, (0, 2, 3, 1)).astype(jnp.bfloat16)  # NCHW->NHWC
        t = _layer_forward(t, self.pre1)   # F.relu after each stem layer is
        t = _layer_forward(t, self.pre2)   # redundant (blocks end in ReLU),
        t = _layer_forward(t, self.pre3)   # so it is dropped.
        guide, target = t[:B], t[B:]
        out = jnp.concatenate([guide, target], axis=1)   # torch.cat(dim=2)==H
        out = _layer_forward(out, self.conv1)
        out = _layer_forward(out, self.conv2)
        return _head(out, self.wl, self.bl, 6, 4)


# ---------------------------------------------------------------------------
if __name__ == "__main__":
    key = jax.random.PRNGKey(0)
    kp, kx = jax.random.split(key)

    net = PallasNet(kp, n=4)

    # Small shapes consistent with the module: after the stems H doubles via
    # the cat, two stride-2 layers halve it twice, pool([6,4]) then gives
    # 128*1*2 = 256 features as Linear(256, 1) requires.
    B, H, W = 2, 12, 8
    x = jax.random.normal(kx, (2, B, 1, H, W), jnp.float32)

    out = jax.block_until_ready(net(x))
    assert out.shape == (B, 1), out.shape
    assert bool(jnp.all(jnp.isfinite(out)))
    print("KERNEL_OK")
</pallas_src>

<mosaic_0001>
module attributes {stable_mosaic.version = 11 : i64} {
  func.func @kernel(%arg0: i32, %arg1: i32, %arg2: i32, %arg3: i32, %arg4: memref<1x1x16x14x1xbf16, #tpu.memory_space<vmem>>, %arg5: memref<5x8x6xbf16, #tpu.memory_space<vmem>>, %arg6: memref<1x6xf32, #tpu.memory_space<vmem>>, %arg7: memref<1x6xf32, #tpu.memory_space<vmem>>, %arg8: memref<1x96x6xbf16, #tpu.memory_space<vmem>>, %arg9: memref<96x6xf32, #tpu.memory_space<vmem>>, %arg10: memref<96x8xbf16, #tpu.memory_space<vmem>>) attributes {dimension_semantics = [#tpu.dimension_semantics<parallel>, #tpu.dimension_semantics<parallel>, #tpu.dimension_semantics<arbitrary>, #tpu.dimension_semantics<arbitrary>], iteration_bounds = array<i64: 4, 1, 1, 1>, scalar_prefetch = 0 : i64, scratch_operands = 2 : i64, tpu.core_type = #tpu.core_type<tc>, window_params = [{transform_indices = @transform_0, window_bounds = array<i64: 1, 1, 16, 14, 1>}, {pipeline_mode = #tpu.pipeline_mode<synchronous>, transform_indices = @transform_1, window_bounds = array<i64: 5, 8, 6>}, {pipeline_mode = #tpu.pipeline_mode<synchronous>, transform_indices = @transform_2, window_bounds = array<i64: 1, 6>}, {pipeline_mode = #tpu.pipeline_mode<synchronous>, transform_indices = @transform_3, window_bounds = array<i64: 1, 6>}, {transform_indices = @transform_4, window_bounds = array<i64: 1, 96, 6>}]} {
    %c12_i32 = arith.constant 12 : i32
    %0 = arith.muli %arg1, %c12_i32 : i32
    %cst = arith.constant 0.000000e+00 : bf16
    %1 = vector.broadcast %cst : bf16 to vector<96x1xbf16>
    %c0 = arith.constant 0 : index
    %c7 = arith.constant 7 : index
    %2 = vector.load %arg10[%c0, %c7] : memref<96x8xbf16, #tpu.memory_space<vmem>>, vector<96x1xbf16>
    tpu.vector_store %arg10[%c0, %c7], %1 {strides = array<i32>} : memref<96x8xbf16, #tpu.memory_space<vmem>>, vector<96x1xbf16>,
    %cst_0 = arith.constant 0.000000e+00 : f32
    %3 = vector.broadcast %cst_0 : f32 to vector<96x6xf32>
    %c5_i32 = arith.constant 5 : i32
    %4 = arith.muli %arg3, %c5_i32 : i32
    %c0_i32 = arith.constant 0 : i32
    %5 = arith.addi %4, %c0_i32 : i32
    %6 = arith.addi %0, %5 : i32
    %c0_1 = arith.constant 0 : index
    %c0_2 = arith.constant 0 : index
    %7 = arith.index_cast %6 : i32 to index
    %c0_3 = arith.constant 0 : index
    %c0_4 = arith.constant 0 : index
    %8 = vector.load %arg4[%c0_1, %c0_2, %7, %c0_3, %c0_4] : memref<1x1x16x14x1xbf16, #tpu.memory_space<vmem>>, vector<1x1x12x8x1xbf16>
    %9 = vector.shape_cast %8 : vector<1x1x12x8x1xbf16> to vector<12x8x1xbf16>
    %10 = vector.shape_cast %9 : vector<12x8x1xbf16> to vector<96x1xbf16>
    %c0_5 = arith.constant 0 : index
    %c0_6 = arith.constant 0 : index
    %11 = vector.load %arg10[%c0_5, %c0_6] : memref<96x8xbf16, #tpu.memory_space<vmem>>, vector<96x1xbf16>
    tpu.vector_store %arg10[%c0_5, %c0_6], %10 {strides = array<i32>} : memref<96x8xbf16, #tpu.memory_space<vmem>>, vector<96x1xbf16>,
    %c0_7 = arith.constant 0 : index
    %c0_8 = arith.constant 0 : index
    %12 = arith.index_cast %6 : i32 to index
    %c1 = arith.constant 1 : index
    %c0_9 = arith.constant 0 : index
    %13 = vector.load %arg4[%c0_7, %c0_8, %12, %c1, %c0_9] : memref<1x1x16x14x1xbf16, #tpu.memory_space<vmem>>, vector<1x1x12x8x1xbf16>
    %14 = vector.shape_cast %13 : vector<1x1x12x8x1xbf16> to vector<12x8x1xbf16>
    %15 = vector.shape_cast %14 : vector<12x8x1xbf16> to vector<96x1xbf16>
    %c0_10 = arith.constant 0 : index
    %c1_11 = arith.constant 1 : index
    %16 = vector.load %arg10[%c0_10, %c1_11] : memref<96x8xbf16, #tpu.memory_space<vmem>>, vector<96x1xbf16>
    tpu.vector_store %arg10[%c0_10, %c1_11], %15 {strides = array<i32>} : memref<96x8xbf16, #tpu.memory_space<vmem>>, vector<96x1xbf16>,
    %c0_12 = arith.constant 0 : index
    %c0_13 = arith.constant 0 : index
    %17 = arith.index_cast %6 : i32 to index
    %c2 = arith.constant 2 : index
    %c0_14 = arith.constant 0 : index
    %18 = vector.load %arg4[%c0_12, %c0_13, %17, %c2, %c0_14] : memref<1x1x16x14x1xbf16, #tpu.memory_space<vmem>>, vector<1x1x12x8x1xbf16>
    %19 = vector.shape_cast %18 : vector<1x1x12x8x1xbf16> to vector<12x8x1xbf16>
    %20 = vector.shape_cast %19 : vector<12x8x1xbf16> to vector<96x1xbf16>
    %c0_15 = arith.constant 0 : index
    %c2_16 = arith.constant 2 : index
    %21 = vector.load %arg10[%c0_15, %c2_16] : memref<96x8xbf16, #tpu.memory_space<vmem>>, vector<96x1xbf16>
    tpu.vector_store %arg10[%c0_15, %c2_16], %20 {strides = array<i32>} : memref<96x8xbf16, #tpu.memory_space<vmem>>, vector<96x1xbf16>,
    %c0_17 = arith.constant 0 : index
    %c0_18 = arith.constant 0 : index
    %22 = arith.index_cast %6 : i32 to index
    %c3 = arith.constant 3 : index
    %c0_19 = arith.constant 0 : index
    %23 = vector.load %arg4[%c0_17, %c0_18, %22, %c3, %c0_19] : memref<1x1x16x14x1xbf16, #tpu.memory_space<vmem>>, vector<1x1x12x8x1xbf16>
    %24 = vector.shape_cast %23 : vector<1x1x12x8x1xbf16> to vector<12x8x1xbf16>
    %25 = vector.shape_cast %24 : vector<12x8x1xbf16> to vector<96x1xbf16>
    %c0_20 = arith.constant 0 : index
    %c3_21 = arith.constant 3 : index
    %26 = vector.load %arg10[%c0_20, %c3_21] : memref<96x8xbf16, #tpu.memory_space<vmem>>, vector<96x1xbf16>
    tpu.vector_store %arg10[%c0_20, %c3_21], %25 {strides = array<i32>} : memref<96x8xbf16, #tpu.memory_space<vmem>>, vector<96x1xbf16>,
    %c0_22 = arith.constant 0 : index
    %c0_23 = arith.constant 0 : index
    %27 = arith.index_cast %6 : i32 to index
    %c4 = arith.constant 4 : index
    %c0_24 = arith.constant 0 : index
    %28 = vector.load %arg4[%c0_22, %c0_23, %27, %c4, %c0_24] : memref<1x1x16x14x1xbf16, #tpu.memory_space<vmem>>, vector<1x1x12x8x1xbf16>
    %29 = vector.shape_cast %28 : vector<1x1x12x8x1xbf16> to vector<12x8x1xbf16>
    %30 = vector.shape_cast %29 : vector<12x8x1xbf16> to vector<96x1xbf16>
    %c0_25 = arith.constant 0 : index
    %c4_26 = arith.constant 4 : index
    %31 = vector.load %arg10[%c0_25, %c4_26] : memref<96x8xbf16, #tpu.memory_space<vmem>>, vector<96x1xbf16>
    tpu.vector_store %arg10[%c0_25, %c4_26], %30 {strides = array<i32>} : memref<96x8xbf16, #tpu.memory_space<vmem>>, vector<96x1xbf16>,
    %c0_27 = arith.constant 0 : index
    %c0_28 = arith.constant 0 : index
    %32 = arith.index_cast %6 : i32 to index
    %c5 = arith.constant 5 : index
    %c0_29 = arith.constant 0 : index
    %33 = vector.load %arg4[%c0_27, %c0_28, %32, %c5, %c0_29] : memref<1x1x16x14x1xbf16, #tpu.memory_space<vmem>>, vector<1x1x12x8x1xbf16>
    %34 = vector.shape_cast %33 : vector<1x1x12x8x1xbf16> to vector<12x8x1xbf16>
    %35 = vector.shape_cast %34 : vector<12x8x1xbf16> to vector<96x1xbf16>
    %c0_30 = arith.constant 0 : index
    %c5_31 = arith.constant 5 : index
    %36 = vector.load %arg10[%c0_30, %c5_31] : memref<96x8xbf16, #tpu.memory_space<vmem>>, vector<96x1xbf16>
    tpu.vector_store %arg10[%c0_30, %c5_31], %35 {strides = array<i32>} : memref<96x8xbf16, #tpu.memory_space<vmem>>, vector<96x1xbf16>,
    %c0_32 = arith.constant 0 : index
    %c0_33 = arith.constant 0 : index
    %37 = arith.index_cast %6 : i32 to index
    %c6 = arith.constant 6 : index
    %c0_34 = arith.constant 0 : index
    %38 = vector.load %arg4[%c0_32, %c0_33, %37, %c6, %c0_34] : memref<1x1x16x14x1xbf16, #tpu.memory_space<vmem>>, vector<1x1x12x8x1xbf16>
    %39 = vector.shape_cast %38 : vector<1x1x12x8x1xbf16> to vector<12x8x1xbf16>
    %40 = vector.shape_cast %39 : vector<12x8x1xbf16> to vector<96x1xbf16>
    %c0_35 = arith.constant 0 : index
    %c6_36 = arith.constant 6 : index
    %41 = vector.load %arg10[%c0_35, %c6_36] : memref<96x8xbf16, #tpu.memory_space<vmem>>, vector<96x1xbf16>
    tpu.vector_store %arg10[%c0_35, %c6_36], %40 {strides = array<i32>} : memref<96x8xbf16, #tpu.memory_space<vmem>>, vector<96x1xbf16>,
    %c5_i32_37 = arith.constant 5 : i32
    %42 = arith.muli %arg2, %c5_i32_37 : i32
    %43 = arith.addi %42, %5 : i32
    %44 = arith.index_cast %43 : i32 to index
    %c0_38 = arith.constant 0 : index
    %c0_39 = arith.constant 0 : index
    %45 = vector.load %arg5[%44, %c0_38, %c0_39] : memref<5x8x6xbf16, #tpu.memory_space<vmem>>, vector<1x8x6xbf16>
    %46 = vector.shape_cast %45 : vector<1x8x6xbf16> to vector<8x6xbf16>
    %c0_40 = arith.constant 0 : index
    %c0_41 = arith.constant 0 : index
    %47 = vector.load %arg10[%c0_40, %c0_41] : memref<96x8xbf16, #tpu.memory_space<vmem>>, vector<96x8xbf16>
    %cst_42 = arith.constant dense<0.000000e+00> : vector<96x6xf32>
    %48 = tpu.matmul %47, %46, %cst_42 {dimension_numbers = #tpu.dot_dimension_numbers<[1], [0], [0], [1], [0, 0, 1, 1], [], []>} : vector<96x8xbf16>, vector<8x6xbf16>, vector<96x6xf32> -> vector<96x6xf32>
    %49 = arith.addf %3, %48 : vector<96x6xf32>
    %c5_i32_43 = arith.constant 5 : i32
    %50 = arith.muli %arg3, %c5_i32_43 : i32
    %c1_i32 = arith.constant 1 : i32
    %51 = arith.addi %50, %c1_i32 : i32
    %52 = arith.addi %0, %51 : i32
    %c0_44 = arith.constant 0 : index
    %c0_45 = arith.constant 0 : index
    %53 = arith.index_cast %52 : i32 to index
    %c0_46 = arith.constant 0 : index
    %c0_47 = arith.constant 0 : index
    %54 = vector.load %arg4[%c0_44, %c0_45, %53, %c0_46, %c0_47] : memref<1x1x16x14x1xbf16, #tpu.memory_space<vmem>>, vector<1x1x12x8x1xbf16>
    %55 = vector.shape_cast %54 : vector<1x1x12x8x1xbf16> to vector<12x8x1xbf16>
    %56 = vector.shape_cast %55 : vector<12x8x1xbf16> to vector<96x1xbf16>
    %c0_48 = arith.constant 0 : index
    %c0_49 = arith.constant 0 : index
    %57 = vector.load %arg10[%c0_48, %c0_49] : memref<96x8xbf16, #tpu.memory_space<vmem>>, vector<96x1xbf16>
    tpu.vector_store %arg10[%c0_48, %c0_49], %56 {strides = array<i32>} : memref<96x8xbf16, #tpu.memory_space<vmem>>, vector<96x1xbf16>,
    %c0_50 = arith.constant 0 : index
    %c0_51 = arith.constant 0 : index
    %58 = arith.index_cast %52 : i32 to index
    %c1_52 = arith.constant 1 : index
    %c0_53 = arith.constant 0 : index
    %59 = vector.load %arg4[%c0_50, %c0_51, %58, %c1_52, %c0_53] : memref<1x1x16x14x1xbf16, #tpu.memory_space<vmem>>, vector<1x1x12x8x1xbf16>
    %60 = vector.shape_cast %59 : vector<1x1x12x8x1xbf16> to vector<12x8x1xbf16>
    %61 = vector.shape_cast %60 : vector<12x8x1xbf16> to vector<96x1xbf16>
    %c0_54 = arith.constant 0 : index
    %c1_55 = arith.constant 1 : index
    %62 = vector.load %arg10[%c0_54, %c1_55] : memref<96x8xbf16, #tpu.memory_space<vmem>>, vector<96x1xbf16>
    tpu.vector_store %arg10[%c0_54, %c1_55], %61 {strides = array<i32>} : memref<96x8xbf16, #tpu.memory_space<vmem>>, vector<96x1xbf16>,
    %c0_56 = arith.constant 0 : index
    %c0_57 = arith.constant 0 : index
    %63 = arith.index_cast %52 : i32 to index
    %c2_58 = arith.constant 2 : index
    %c0_59 = arith.constant 0 : index
    %64 = vector.load %arg4[%c0_56, %c0_57, %63, %c2_58, %c0_59] : memref<1x1x16x14x1xbf16, #tpu.memory_space<vmem>>, vector<1x1x12x8x1xbf16>
    %65 = vector.shape_cast %64 : vector<1x1x12x8x1xbf16> to vector<12x8x1xbf16>
    %66 = vector.shape_cast %65 : vector<12x8x1xbf16> to vector<96x1xbf16>
    %c0_60 = arith.constant 0 : index
    %c2_61 = arith.constant 2 : index
    %67 = vector.load %arg10[%c0_60, %c2_61] : memref<96x8xbf16, #tpu.memory_space<vmem>>, vector<96x1xbf16>
    tpu.vector_store %arg10[%c0_60, %c2_61], %66 {strides = array<i32>} : memref<96x8xbf16, #tpu.memory_space<vmem>>, vector<96x1xbf16>,
    %c0_62 = arith.constant 0 : index
    %c0_63 = arith.constant 0 : index
    %68 = arith.index_cast %52 : i32 to index
    %c3_64 = arith.constant 3 : index
    %c0_65 = arith.constant 0 : index
    %69 = vector.load %arg4[%c0_62, %c0_63, %68, %c3_64, %c0_65] : memref<1x1x16x14x1xbf16, #tpu.memory_space<vmem>>, vector<1x1x12x8x1xbf16>
    %70 = vector.shape_cast %69 : vector<1x1x12x8x1xbf16> to vector<12x8x1xbf16>
    %71 = vector.shape_cast %70 : vector<12x8x1xbf16> to vector<96x1xbf16>
    %c0_66 = arith.constant 0 : index
    %c3_67 = arith.constant 3 : index
    %72 = vector.load %arg10[%c0_66, %c3_67] : memref<96x8xbf16, #tpu.memory_space<vmem>>, vector<96x1xbf16>
    tpu.vector_store %arg10[%c0_66, %c3_67], %71 {strides = array<i32>} : memref<96x8xbf16, #tpu.memory_space<vmem>>, vector<96x1xbf16>,
    %c0_68 = arith.constant 0 : index
    %c0_69 = arith.constant 0 : index
    %73 = arith.index_cast %52 : i32 to index
    %c4_70 = arith.constant 4 : index
    %c0_71 = arith.constant 0 : index
    %74 = vector.load %arg4[%c0_68, %c0_69, %73, %c4_70, %c0_71] : memref<1x1x16x14x1xbf16, #tpu.memory_space<vmem>>, vector<1x1x12x8x1xbf16>
    %75 = vector.shape_cast %74 : vector<1x1x12x8x1xbf16> to vector<12x8x1xbf16>
    %76 = vector.shape_cast %75 : vector<12x8x1xbf16> to vector<96x1xbf16>
    %c0_72 = arith.constant 0 : index
    %c4_73 = arith.constant 4 : index
    %77 = vector.load %arg10[%c0_72, %c4_73] : memref<96x8xbf16, #tpu.memory_space<vmem>>, vector<96x1xbf16>
    tpu.vector_store %arg10[%c0_72, %c4_73], %76 {strides = array<i32>} : memref<96x8xbf16, #tpu.memory_space<vmem>>, vector<96x1xbf16>,
    %c0_74 = arith.constant 0 : index
    %c0_75 = arith.constant 0 : index
    %78 = arith.index_cast %52 : i32 to index
    %c5_76 = arith.constant 5 : index
    %c0_77 = arith.constant 0 : index
    %79 = vector.load %arg4[%c0_74, %c0_75, %78, %c5_76, %c0_77] : memref<1x1x16x14x1xbf16, #tpu.memory_space<vmem>>, vector<1x1x12x8x1xbf16>
    %80 = vector.shape_cast %79 : vector<1x1x12x8x1xbf16> to vector<12x8x1xbf16>
    %81 = vector.shape_cast %80 : vector<12x8x1xbf16> to vector<96x1xbf16>
    %c0_78 = arith.constant 0 : index
    %c5_79 = arith.constant 5 : index
    %82 = vector.load %arg10[%c0_78, %c5_79] : memref<96x8xbf16, #tpu.memory_space<vmem>>, vector<96x1xbf16>
    tpu.vector_store %arg10[%c0_78, %c5_79], %81 {strides = array<i32>} : memref<96x8xbf16, #tpu.memory_space<vmem>>, vector<96x1xbf16>,
    %c0_80 = arith.constant 0 : index
    %c0_81 = arith.constant 0 : index
    %83 = arith.index_cast %52 : i32 to index
    %c6_82 = arith.constant 6 : index
    %c0_83 = arith.constant 0 : index
    %84 = vector.load %arg4[%c0_80, %c0_81, %83, %c6_82, %c0_83] : memref<1x1x16x14x1xbf16, #tpu.memory_space<vmem>>, vector<1x1x12x8x1xbf16>
    %85 = vector.shape_cast %84 : vector<1x1x12x8x1xbf16> to vector<12x8x1xbf16>
    %86 = vector.shape_cast %85 : vector<12x8x1xbf16> to vector<96x1xbf16>
    %c0_84 = arith.constant 0 : index
    %c6_85 = arith.constant 6 : index
    %87 = vector.load %arg10[%c0_84, %c6_85] : memref<96x8xbf16, #tpu.memory_space<vmem>>, vector<96x1xbf16>
    tpu.vector_store %arg10[%c0_84, %c6_85], %86 {strides = array<i32>} : memref<96x8xbf16, #tpu.memory_space<vmem>>, vector<96x1xbf16>,
    %c5_i32_86 = arith.constant 5 : i32
    %88 = arith.muli %arg2, %c5_i32_86 : i32
    %89 = arith.addi %88, %51 : i32
    %90 = arith.index_cast %89 : i32 to index
    %c0_87 = arith.constant 0 : index
    %c0_88 = arith.constant 0 : index
    %91 = vector.load %arg5[%90, %c0_87, %c0_88] : memref<5x8x6xbf16, #tpu.memory_space<vmem>>, vector<1x8x6xbf16>
    %92 = vector.shape_cast %91 : vector<1x8x6xbf16> to vector<8x6xbf16>
    %c0_89 = arith.constant 0 : index
    %c0_90 = arith.constant 0 : index
    %93 = vector.load %arg10[%c0_89, %c0_90] : memref<96x8xbf16, #tpu.memory_space<vmem>>, vector<96x8xbf16>
    %cst_91 = arith.constant dense<0.000000e+00> : vector<96x6xf32>
    %94 = tpu.matmul %93, %92, %cst_91 {dimension_numbers = #tpu.dot_dimension_numbers<[1], [0], [0], [1], [0, 0, 1, 1], [], []>} : vector<96x8xbf16>, vector<8x6xbf16>, vector<96x6xf32> -> vector<96x6xf32>
    %95 = arith.addf %49, %94 : vector<96x6xf32>
    %c5_i32_92 = arith.constant 5 : i32
    %96 = arith.muli %arg3, %c5_i32_92 : i32
    %c2_i32 = arith.constant 2 : i32
    %97 = arith.addi %96, %c2_i32 : i32
    %98 = arith.addi %0, %97 : i32
    %c0_93 = arith.constant 0 : index
    %c0_94 = arith.constant 0 : index
    %99 = arith.index_cast %98 : i32 to index
    %c0_95 = arith.constant 0 : index
    %c0_96 = arith.constant 0 : index
    %100 = vector.load %arg4[%c0_93, %c0_94, %99, %c0_95, %c0_96] : memref<1x1x16x14x1xbf16, #tpu.memory_space<vmem>>, vector<1x1x12x8x1xbf16>
    %101 = vector.shape_cast %100 : vector<1x1x12x8x1xbf16> to vector<12x8x1xbf16>
    %102 = vector.shape_cast %101 : vector<12x8x1xbf16> to vector<96x1xbf16>
    %c0_97 = arith.constant 0 : index
    %c0_98 = arith.constant 0 : index
    %103 = vector.load %arg10[%c0_97, %c0_98] : memref<96x8xbf16, #tpu.memory_space<vmem>>, vector<96x1xbf16>
    tpu.vector_store %arg10[%c0_97, %c0_98], %102 {strides = array<i32>} : memref<96x8xbf16, #tpu.memory_space<vmem>>, vector<96x1xbf16>,
    %c0_99 = arith.constant 0 : index
    %c0_100 = arith.constant 0 : index
    %104 = arith.index_cast %98 : i32 to index
    %c1_101 = arith.constant 1 : index
    %c0_102 = arith.constant 0 : index
    %105 = vector.load %arg4[%c0_99, %c0_100, %104, %c1_101, %c0_102] : memref<1x1x16x14x1xbf16, #tpu.memory_space<vmem>>, vector<1x1x12x8x1xbf16>
    %106 = vector.shape_cast %105 : vector<1x1x12x8x1xbf16> to vector<12x8x1xbf16>
    %107 = vector.shape_cast %106 : vector<12x8x1xbf16> to vector<96x1xbf16>
    %c0_103 = arith.constant 0 : index
    %c1_104 = arith.constant 1 : index
    %108 = vector.load %arg10[%c0_103, %c1_104] : memref<96x8xbf16, #tpu.memory_space<vmem>>, vector<96x1xbf16>
    tpu.vector_store %arg10[%c0_103, %c1_104], %107 {strides = array<i32>} : memref<96x8xbf16, #tpu.memory_space<vmem>>, vector<96x1xbf16>,
    %c0_105 = arith.constant 0 : index
    %c0_106 = arith.constant 0 : index
    %109 = arith.index_cast %98 : i32 to index
    %c2_107 = arith.constant 2 : index
    %c0_108 = arith.constant 0 : index
    %110 = vector.load %arg4[%c0_105, %c0_106, %109, %c2_107, %c0_108] : memref<1x1x16x14x1xbf16, #tpu.memory_space<vmem>>, vector<1x1x12x8x1xbf16>
    %111 = vector.shape_cast %110 : vector<1x1x12x8x1xbf16> to vector<12x8x1xbf16>
    %112 = vector.shape_cast %111 : vector<12x8x1xbf16> to vector<96x1xbf16>
    %c0_109 = arith.constant 0 : index
    %c2_110 = arith.constant 2 : index
    %113 = vector.load %arg10[%c0_109, %c2_110] : memref<96x8xbf16, #tpu.memory_space<vmem>>, vector<96x1xbf16>
    tpu.vector_store %arg10[%c0_109, %c2_110], %112 {strides = array<i32>} : memref<96x8xbf16, #tpu.memory_space<vmem>>, vector<96x1xbf16>,
    %c0_111 = arith.constant 0 : index
    %c0_112 = arith.constant 0 : index
    %114 = arith.index_cast %98 : i32 to index
    %c3_113 = arith.constant 3 : index
    %c0_114 = arith.constant 0 : index
    %115 = vector.load %arg4[%c0_111, %c0_112, %114, %c3_113, %c0_114] : memref<1x1x16x14x1xbf16, #tpu.memory_space<vmem>>, vector<1x1x12x8x1xbf16>
    %116 = vector.shape_cast %115 : vector<1x1x12x8x1xbf16> to vector<12x8x1xbf16>
    %117 = vector.shape_cast %116 : vector<12x8x1xbf16> to vector<96x1xbf16>
    %c0_115 = arith.constant 0 : index
    %c3_116 = arith.constant 3 : index
    %118 = vector.load %arg10[%c0_115, %c3_116] : memref<96x8xbf16, #tpu.memory_space<vmem>>, vector<96x1xbf16>
    tpu.vector_store %arg10[%c0_115, %c3_116], %117 {strides = array<i32>} : memref<96x8xbf16, #tpu.memory_space<vmem>>, vector<96x1xbf16>,
    %c0_117 = arith.constant 0 : index
    %c0_118 = arith.constant 0 : index
    %119 = arith.index_cast %98 : i32 to index
    %c4_119 = arith.constant 4 : index
    %c0_120 = arith.constant 0 : index
    %120 = vector.load %arg4[%c0_117, %c0_118, %119, %c4_119, %c0_120] : memref<1x1x16x14x1xbf16, #tpu.memory_space<vmem>>, vector<1x1x12x8x1xbf16>
    %121 = vector.shape_cast %120 : vector<1x1x12x8x1xbf16> to vector<12x8x1xbf16>
    %122 = vector.shape_cast %121 : vector<12x8x1xbf16> to vector<96x1xbf16>
    %c0_121 = arith.constant 0 : index
    %c4_122 = arith.constant 4 : index
    %123 = vector.load %arg10[%c0_121, %c4_122] : memref<96x8xbf16, #tpu.memory_space<vmem>>, vector<96x1xbf16>
    tpu.vector_store %arg10[%c0_121, %c4_122], %122 {strides = array<i32>} : memref<96x8xbf16, #tpu.memory_space<vmem>>, vector<96x1xbf16>,
    %c0_123 = arith.constant 0 : index
    %c0_124 = arith.constant 0 : index
    %124 = arith.index_cast %98 : i32 to index
    %c5_125 = arith.constant 5 : index
    %c0_126 = arith.constant 0 : index
    %125 = vector.load %arg4[%c0_123, %c0_124, %124, %c5_125, %c0_126] : memref<1x1x16x14x1xbf16, #tpu.memory_space<vmem>>, vector<1x1x12x8x1xbf16>
    %126 = vector.shape_cast %125 : vector<1x1x12x8x1xbf16> to vector<12x8x1xbf16>
    %127 = vector.shape_cast %126 : vector<12x8x1xbf16> to vector<96x1xbf16>
    %c0_127 = arith.constant 0 : index
    %c5_128 = arith.constant 5 : index
    %128 = vector.load %arg10[%c0_127, %c5_128] : memref<96x8xbf16, #tpu.memory_space<vmem>>, vector<96x1xbf16>
    tpu.vector_store %arg10[%c0_127, %c5_128], %127 {strides = array<i32>} : memref<96x8xbf16, #tpu.memory_space<vmem>>, vector<96x1xbf16>,
    %c0_129 = arith.constant 0 : index
    %c0_130 = arith.constant 0 : index
    %129 = arith.index_cast %98 : i32 to index
    %c6_131 = arith.constant 6 : index
    %c0_132 = arith.constant 0 : index
    %130 = vector.load %arg4[%c0_129, %c0_130, %129, %c6_131, %c0_132] : memref<1x1x16x14x1xbf16, #tpu.memory_space<vmem>>, vector<1x1x12x8x1xbf16>
    %131 = vector.shape_cast %130 : vector<1x1x12x8x1xbf16> to vector<12x8x1xbf16>
    %132 = vector.shape_cast %131 : vector<12x8x1xbf16> to vector<96x1xbf16>
    %c0_133 = arith.constant 0 : index
    %c6_134 = arith.constant 6 : index
    %133 = vector.load %arg10[%c0_133, %c6_134] : memref<96x8xbf16, #tpu.memory_space<vmem>>, vector<96x1xbf16>
    tpu.vector_store %arg10[%c0_133, %c6_134], %132 {strides = array<i32>} : memref<96x8xbf16, #tpu.memory_space<vmem>>, vector<96x1xbf16>,
    %c5_i32_135 = arith.constant 5 : i32
    %134 = arith.muli %arg2, %c5_i32_135 : i32
    %135 = arith.addi %134, %97 : i32
    %136 = arith.index_cast %135 : i32 to index
    %c0_136 = arith.constant 0 : index
    %c0_137 = arith.constant 0 : index
    %137 = vector.load %arg5[%136, %c0_136, %c0_137] : memref<5x8x6xbf16, #tpu.memory_space<vmem>>, vector<1x8x6xbf16>
    %138 = vector.shape_cast %137 : vector<1x8x6xbf16> to vector<8x6xbf16>
    %c0_138 = arith.constant 0 : index
    %c0_139 = arith.constant 0 : index
    %139 = vector.load %arg10[%c0_138, %c0_139] : memref<96x8xbf16, #tpu.memory_space<vmem>>, vector<96x8xbf16>
    %cst_140 = arith.constant dense<0.000000e+00> : vector<96x6xf32>
    %140 = tpu.matmul %139, %138, %cst_140 {dimension_numbers = #tpu.dot_dimension_numbers<[1], [0], [0], [1], [0, 0, 1, 1], [], []>} : vector<96x8xbf16>, vector<8x6xbf16>, vector<96x6xf32> -> vector<96x6xf32>
    %141 = arith.addf %95, %140 : vector<96x6xf32>
    %c5_i32_141 = arith.constant 5 : i32
    %142 = arith.muli %arg3, %c5_i32_141 : i32
    %c3_i32 = arith.constant 3 : i32
    %143 = arith.addi %142, %c3_i32 : i32
    %144 = arith.addi %0, %143 : i32
    %c0_142 = arith.constant 0 : index
    %c0_143 = arith.constant 0 : index
    %145 = arith.index_cast %144 : i32 to index
    %c0_144 = arith.constant 0 : index
    %c0_145 = arith.constant 0 : index
    %146 = vector.load %arg4[%c0_142, %c0_143, %145, %c0_144, %c0_145] : memref<1x1x16x14x1xbf16, #tpu.memory_space<vmem>>, vector<1x1x12x8x1xbf16>
    %147 = vector.shape_cast %146 : vector<1x1x12x8x1xbf16> to vector<12x8x1xbf16>
    %148 = vector.shape_cast %147 : vector<12x8x1xbf16> to vector<96x1xbf16>
    %c0_146 = arith.constant 0 : index
    %c0_147 = arith.constant 0 : index
    %149 = vector.load %arg10[%c0_146, %c0_147] : memref<96x8xbf16, #tpu.memory_space<vmem>>, vector<96x1xbf16>
    tpu.vector_store %arg10[%c0_146, %c0_147], %148 {strides = array<i32>} : memref<96x8xbf16, #tpu.memory_space<vmem>>, vector<96x1xbf16>,
    %c0_148 = arith.constant 0 : index
    %c0_149 = arith.constant 0 : index
    %150 = arith.index_cast %144 : i32 to index
    %c1_150 = arith.constant 1 : index
    %c0_151 = arith.constant 0 : index
    %151 = vector.load %arg4[%c0_148, %c0_149, %150, %c1_150, %c0_151] : memref<1x1x16x14x1xbf16, #tpu.memory_space<vmem>>, vector<1x1x12x8x1xbf16>
    %152 = vector.shape_cast %151 : vector<1x1x12x8x1xbf16> to vector<12x8x1xbf16>
    %153 = vector.shape_cast %152 : vector<12x8x1xbf16> to vector<96x1xbf16>
    %c0_152 = arith.constant 0 : index
    %c1_153 = arith.constant 1 : index
    %154 = vector.load %arg10[%c0_152, %c1_153] : memref<96x8xbf16, #tpu.memory_space<vmem>>, vector<96x1xbf16>
    tpu.vector_store %arg10[%c0_152, %c1_153], %153 {strides = array<i32>} : memref<96x8xbf16, #tpu.memory_space<vmem>>, vector<96x1xbf16>,
    %c0_154 = arith.constant 0 : index
    %c0_155 = arith.constant 0 : index
    %155 = arith.index_cast %144 : i32 to index
    %c2_156 = arith.constant 2 : index
    %c0_157 = arith.constant 0 : index
    %156 = vector.load %arg4[%c0_154, %c0_155, %155, %c2_156, %c0_157] : memref<1x1x16x14x1xbf16, #tpu.memory_space<vmem>>, vector<1x1x12x8x1xbf16>
    %157 = vector.shape_cast %156 : vector<1x1x12x8x1xbf16> to vector<12x8x1xbf16>
    %158 = vector.shape_cast %157 : vector<12x8x1xbf16> to vector<96x1xbf16>
    %c0_158 = arith.constant 0 : index
    %c2_159 = arith.constant 2 : index
    %159 = vector.load %arg10[%c0_158, %c2_159] : memref<96x8xbf16, #tpu.memory_space<vmem>>, vector<96x1xbf16>
    tpu.vector_store %arg10[%c0_158, %c2_159], %158 {strides = array<i32>} : memref<96x8xbf16, #tpu.memory_space<vmem>>, vector<96x1xbf16>,
    %c0_160 = arith.constant 0 : index
    %c0_161 = arith.constant 0 : index
    %160 = arith.index_cast %144 : i32 to index
    %c3_162 = arith.constant 3 : index
    %c0_163 = arith.constant 0 : index
    %161 = vector.load %arg4[%c0_160, %c0_161, %160, %c3_162, %c0_163] : memref<1x1x16x14x1xbf16, #tpu.memory_space<vmem>>, vector<1x1x12x8x1xbf16>
    %162 = vector.shape_cast %161 : vector<1x1x12x8x1xbf16> to vector<12x8x1xbf16>
    %163 = vector.shape_cast %162 : vector<12x8x1xbf16> to vector<96x1xbf16>
    %c0_164 = arith.constant 0 : index
    %c3_165 = arith.constant 3 : index
    %164 = vector.load %arg10[%c0_164, %c3_165] : memref<96x8xbf16, #tpu.memory_space<vmem>>, vector<96x1xbf16>
    tpu.vector_store %arg10[%c0_164, %c3_165], %163 {strides = array<i32>} : memref<96x8xbf16, #tpu.memory_space<vmem>>, vector<96x1xbf16>,
    %c0_166 = arith.constant 0 : index
    %c0_167 = arith.constant 0 : index
    %165 = arith.index_cast %144 : i32 to index
    %c4_168 = arith.constant 4 : index
    %c0_169 = arith.constant 0 : index
    %166 = vector.load %arg4[%c0_166, %c0_167, %165, %c4_168, %c0_169] : memref<1x1x16x14x1xbf16, #tpu.memory_space<vmem>>, vector<1x1x12x8x1xbf16>
    %167 = vector.shape_cast %166 : vector<1x1x12x8x1xbf16> to vector<12x8x1xbf16>
    %168 = vector.shape_cast %167 : vector<12x8x1xbf16> to vector<96x1xbf16>
    %c0_170 = arith.constant 0 : index
    %c4_171 = arith.constant 4 : index
    %169 = vector.load %arg10[%c0_170, %c4_171] : memref<96x8xbf16, #tpu.memory_space<vmem>>, vector<96x1xbf16>
    tpu.vector_store %arg10[%c0_170, %c4_171], %168 {strides = array<i32>} : memref<96x8xbf16, #tpu.memory_space<vmem>>, vector<96x1xbf16>,
    %c0_172 = arith.constant 0 : index
    %c0_173 = arith.constant 0 : index
    %170 = arith.index_cast %144 : i32 to index
    %c5_174 = arith.constant 5 : index
    %c0_175 = arith.constant 0 : index
    %171 = vector.load %arg4[%c0_172, %c0_173, %170, %c5_174, %c0_175] : memref<1x1x16x14x1xbf16, #tpu.memory_space<vmem>>, vector<1x1x12x8x1xbf16>
    %172 = vector.shape_cast %171 : vector<1x1x12x8x1xbf16> to vector<12x8x1xbf16>
    %173 = vector.shape_cast %172 : vector<12x8x1xbf16> to vector<96x1xbf16>
    %c0_176 = arith.constant 0 : index
    %c5_177 = arith.constant 5 : index
    %174 = vector.load %arg10[%c0_176, %c5_177] : memref<96x8xbf16, #tpu.memory_space<vmem>>, vector<96x1xbf16>
    tpu.vector_store %arg10[%c0_176, %c5_177], %173 {strides = array<i32>} : memref<96x8xbf16, #tpu.memory_space<vmem>>, vector<96x1xbf16>,
    %c0_178 = arith.constant 0 : index
    %c0_179 = arith.constant 0 : index
    %175 = arith.index_cast %144 : i32 to index
    %c6_180 = arith.constant 6 : index
    %c0_181 = arith.constant 0 : index
    %176 = vector.load %arg4[%c0_178, %c0_179, %175, %c6_180, %c0_181] : memref<1x1x16x14x1xbf16, #tpu.memory_space<vmem>>, vector<1x1x12x8x1xbf16>
    %177 = vector.shape_cast %176 : vector<1x1x12x8x1xbf16> to vector<12x8x1xbf16>
    %178 = vector.shape_cast %177 : vector<12x8x1xbf16> to vector<96x1xbf16>
    %c0_182 = arith.constant 0 : index
    %c6_183 = arith.constant 6 : index
    %179 = vector.load %arg10[%c0_182, %c6_183] : memref<96x8xbf16, #tpu.memory_space<vmem>>, vector<96x1xbf16>
    tpu.vector_store %arg10[%c0_182, %c6_183], %178 {strides = array<i32>} : memref<96x8xbf16, #tpu.memory_space<vmem>>, vector<96x1xbf16>,
    %c5_i32_184 = arith.constant 5 : i32
    %180 = arith.muli %arg2, %c5_i32_184 : i32
    %181 = arith.addi %180, %143 : i32
    %182 = arith.index_cast %181 : i32 to index
    %c0_185 = arith.constant 0 : index
    %c0_186 = arith.constant 0 : index
    %183 = vector.load %arg5[%182, %c0_185, %c0_186] : memref<5x8x6xbf16, #tpu.memory_space<vmem>>, vector<1x8x6xbf16>
    %184 = vector.shape_cast %183 : vector<1x8x6xbf16> to vector<8x6xbf16>
    %c0_187 = arith.constant 0 : index
    %c0_188 = arith.constant 0 : index
    %185 = vector.load %arg10[%c0_187, %c0_188] : memref<96x8xbf16, #tpu.memory_space<vmem>>, vector<96x8xbf16>
    %cst_189 = arith.constant dense<0.000000e+00> : vector<96x6xf32>
    %186 = tpu.matmul %185, %184, %cst_189 {dimension_numbers = #tpu.dot_dimension_numbers<[1], [0], [0], [1], [0, 0, 1, 1], [], []>} : vector<96x8xbf16>, vector<8x6xbf16>, vector<96x6xf32> -> vector<96x6xf32>
    %187 = arith.addf %141, %186 : vector<96x6xf32>
    %c5_i32_190 = arith.constant 5 : i32
    %188 = arith.muli %arg3, %c5_i32_190 : i32
    %c4_i32 = arith.constant 4 : i32
    %189 = arith.addi %188, %c4_i32 : i32
    %190 = arith.addi %0, %189 : i32
    %c0_191 = arith.constant 0 : index
    %c0_192 = arith.constant 0 : index
    %191 = arith.index_cast %190 : i32 to index
    %c0_193 = arith.constant 0 : index
    %c0_194 = arith.constant 0 : index
    %192 = vector.load %arg4[%c0_191, %c0_192, %191, %c0_193, %c0_194] : memref<1x1x16x14x1xbf16, #tpu.memory_space<vmem>>, vector<1x1x12x8x1xbf16>
    %193 = vector.shape_cast %192 : vector<1x1x12x8x1xbf16> to vector<12x8x1xbf16>
    %194 = vector.shape_cast %193 : vector<12x8x1xbf16> to vector<96x1xbf16>
    %c0_195 = arith.constant 0 : index
    %c0_196 = arith.constant 0 : index
    %195 = vector.load %arg10[%c0_195, %c0_196] : memref<96x8xbf16, #tpu.memory_space<vmem>>, vector<96x1xbf16>
    tpu.vector_store %arg10[%c0_195, %c0_196], %194 {strides = array<i32>} : memref<96x8xbf16, #tpu.memory_space<vmem>>, vector<96x1xbf16>,
    %c0_197 = arith.constant 0 : index
    %c0_198 = arith.constant 0 : index
    %196 = arith.index_cast %190 : i32 to index
    %c1_199 = arith.constant 1 : index
    %c0_200 = arith.constant 0 : index
    %197 = vector.load %arg4[%c0_197, %c0_198, %196, %c1_199, %c0_200] : memref<1x1x16x14x1xbf16, #tpu.memory_space<vmem>>, vector<1x1x12x8x1xbf16>
    %198 = vector.shape_cast %197 : vector<1x1x12x8x1xbf16> to vector<12x8x1xbf16>
    %199 = vector.shape_cast %198 : vector<12x8x1xbf16> to vector<96x1xbf16>
    %c0_201 = arith.constant 0 : index
    %c1_202 = arith.constant 1 : index
    %200 = vector.load %arg10[%c0_201, %c1_202] : memref<96x8xbf16, #tpu.memory_space<vmem>>, vector<96x1xbf16>
    tpu.vector_store %arg10[%c0_201, %c1_202], %199 {strides = array<i32>} : memref<96x8xbf16, #tpu.memory_space<vmem>>, vector<96x1xbf16>,
    %c0_203 = arith.constant 0 : index
    %c0_204 = arith.constant 0 : index
    %201 = arith.index_cast %190 : i32 to index
    %c2_205 = arith.constant 2 : index
    %c0_206 = arith.constant 0 : index
    %202 = vector.load %arg4[%c0_203, %c0_204, %201, %c2_205, %c0_206] : memref<1x1x16x14x1xbf16, #tpu.memory_space<vmem>>, vector<1x1x12x8x1xbf16>
    %203 = vector.shape_cast %202 : vector<1x1x12x8x1xbf16> to vector<12x8x1xbf16>
    %204 = vector.shape_cast %203 : vector<12x8x1xbf16> to vector<96x1xbf16>
    %c0_207 = arith.constant 0 : index
    %c2_208 = arith.constant 2 : index
    %205 = vector.load %arg10[%c0_207, %c2_208] : memref<96x8xbf16, #tpu.memory_space<vmem>>, vector<96x1xbf16>
    tpu.vector_store %arg10[%c0_207, %c2_208], %204 {strides = array<i32>} : memref<96x8xbf16, #tpu.memory_space<vmem>>, vector<96x1xbf16>,
    %c0_209 = arith.constant 0 : index
    %c0_210 = arith.constant 0 : index
    %206 = arith.index_cast %190 : i32 to index
    %c3_211 = arith.constant 3 : index
    %c0_212 = arith.constant 0 : index
    %207 = vector.load %arg4[%c0_209, %c0_210, %206, %c3_211, %c0_212] : memref<1x1x16x14x1xbf16, #tpu.memory_space<vmem>>, vector<1x1x12x8x1xbf16>
    %208 = vector.shape_cast %207 : vector<1x1x12x8x1xbf16> to vector<12x8x1xbf16>
    %209 = vector.shape_cast %208 : vector<12x8x1xbf16> to vector<96x1xbf16>
    %c0_213 = arith.constant 0 : index
    %c3_214 = arith.constant 3 : index
    %210 = vector.load %arg10[%c0_213, %c3_214] : memref<96x8xbf16, #tpu.memory_space<vmem>>, vector<96x1xbf16>
    tpu.vector_store %arg10[%c0_213, %c3_214], %209 {strides = array<i32>} : memref<96x8xbf16, #tpu.memory_space<vmem>>, vector<96x1xbf16>,
    %c0_215 = arith.constant 0 : index
    %c0_216 = arith.constant 0 : index
    %211 = arith.index_cast %190 : i32 to index
    %c4_217 = arith.constant 4 : index
    %c0_218 = arith.constant 0 : index
    %212 = vector.load %arg4[%c0_215, %c0_216, %211, %c4_217, %c0_218] : memref<1x1x16x14x1xbf16, #tpu.memory_space<vmem>>, vector<1x1x12x8x1xbf16>
    %213 = vector.shape_cast %212 : vector<1x1x12x8x1xbf16> to vector<12x8x1xbf16>
    %214 = vector.shape_cast %213 : vector<12x8x1xbf16> to vector<96x1xbf16>
    %c0_219 = arith.constant 0 : index
    %c4_220 = arith.constant 4 : index
    %215 = vector.load %arg10[%c0_219, %c4_220] : memref<96x8xbf16, #tpu.memory_space<vmem>>, vector<96x1xbf16>
    tpu.vector_store %arg10[%c0_219, %c4_220], %214 {strides = array<i32>} : memref<96x8xbf16, #tpu.memory_space<vmem>>, vector<96x1xbf16>,
    %c0_221 = arith.constant 0 : index
    %c0_222 = arith.constant 0 : index
    %216 = arith.index_cast %190 : i32 to index
    %c5_223 = arith.constant 5 : index
    %c0_224 = arith.constant 0 : index
    %217 = vector.load %arg4[%c0_221, %c0_222, %216, %c5_223, %c0_224] : memref<1x1x16x14x1xbf16, #tpu.memory_space<vmem>>, vector<1x1x12x8x1xbf16>
    %218 = vector.shape_cast %217 : vector<1x1x12x8x1xbf16> to vector<12x8x1xbf16>
    %219 = vector.shape_cast %218 : vector<12x8x1xbf16> to vector<96x1xbf16>
    %c0_225 = arith.constant 0 : index
    %c5_226 = arith.constant 5 : index
    %220 = vector.load %arg10[%c0_225, %c5_226] : memref<96x8xbf16, #tpu.memory_space<vmem>>, vector<96x1xbf16>
    tpu.vector_store %arg10[%c0_225, %c5_226], %219 {strides = array<i32>} : memref<96x8xbf16, #tpu.memory_space<vmem>>, vector<96x1xbf16>,
    %c0_227 = arith.constant 0 : index
    %c0_228 = arith.constant 0 : index
    %221 = arith.index_cast %190 : i32 to index
    %c6_229 = arith.constant 6 : index
    %c0_230 = arith.constant 0 : index
    %222 = vector.load %arg4[%c0_227, %c0_228, %221, %c6_229, %c0_230] : memref<1x1x16x14x1xbf16, #tpu.memory_space<vmem>>, vector<1x1x12x8x1xbf16>
    %223 = vector.shape_cast %222 : vector<1x1x12x8x1xbf16> to vector<12x8x1xbf16>
    %224 = vector.shape_cast %223 : vector<12x8x1xbf16> to vector<96x1xbf16>
    %c0_231 = arith.constant 0 : index
    %c6_232 = arith.constant 6 : index
    %225 = vector.load %arg10[%c0_231, %c6_232] : memref<96x8xbf16, #tpu.memory_space<vmem>>, vector<96x1xbf16>
    tpu.vector_store %arg10[%c0_231, %c6_232], %224 {strides = array<i32>} : memref<96x8xbf16, #tpu.memory_space<vmem>>, vector<96x1xbf16>,
    %c5_i32_233 = arith.constant 5 : i32
    %226 = arith.muli %arg2, %c5_i32_233 : i32
    %227 = arith.addi %226, %189 : i32
    %228 = arith.index_cast %227 : i32 to index
    %c0_234 = arith.constant 0 : index
    %c0_235 = arith.constant 0 : index
    %229 = vector.load %arg5[%228, %c0_234, %c0_235] : memref<5x8x6xbf16, #tpu.memory_space<vmem>>, vector<1x8x6xbf16>
    %230 = vector.shape_cast %229 : vector<1x8x6xbf16> to vector<8x6xbf16>
    %c0_236 = arith.constant 0 : index
    %c0_237 = arith.constant 0 : index
    %231 = vector.load %arg10[%c0_236, %c0_237] : memref<96x8xbf16, #tpu.memory_space<vmem>>, vector<96x8xbf16>
    %cst_238 = arith.constant dense<0.000000e+00> : vector<96x6xf32>
    %232 = tpu.matmul %231, %230, %cst_238 {dimension_numbers = #tpu.dot_dimension_numbers<[1], [0], [0], [1], [0, 0, 1, 1], [], []>} : vector<96x8xbf16>, vector<8x6xbf16>, vector<96x6xf32> -> vector<96x6xf32>
    %233 = arith.addf %187, %232 : vector<96x6xf32>
    %c0_i32_239 = arith.constant 0 : i32
    %234 = arith.cmpi eq, %arg2, %c0_i32_239 : i32
    %c0_i32_240 = arith.constant 0 : i32
    %235 = arith.cmpi eq, %arg3, %c0_i32_240 : i32
    %236 = arith.andi %234, %235 : i1
    %c0_i32_241 = arith.constant 0 : i32
    %237 = arith.cmpi eq, %arg2, %c0_i32_241 : i32
    %c0_i32_242 = arith.constant 0 : i32
    %238 = arith.cmpi eq, %arg3, %c0_i32_242 : i32
    %239 = arith.andi %237, %238 : i1
    %240 = arith.extui %236 : i1 to i32
    %c0_i32_243 = arith.constant 0 : i32
    %241 = arith.cmpi ne, %240, %c0_i32_243 : i32
    scf.if %241 {
      %c0_246 = arith.constant 0 : index
      %c0_247 = arith.constant 0 : index
      %247 = vector.load %arg9[%c0_246, %c0_247] : memref<96x6xf32, #tpu.memory_space<vmem>>, vector<96x6xf32>
      tpu.vector_store %arg9[%c0_246, %c0_247], %233 {strides = array<i32>} : memref<96x6xf32, #tpu.memory_space<vmem>>, vector<96x6xf32>,
    } else {
    }
    %true = arith.constant true
    %242 = arith.xori %236, %true : i1
    %243 = arith.extui %242 : i1 to i32
    %c0_i32_244 = arith.constant 0 : i32
    %244 = arith.cmpi ne, %243, %c0_i32_244 : i32
    scf.if %244 {
      %c0_246 = arith.constant 0 : index
      %c0_247 = arith.constant 0 : index
      %247 = vector.load %arg9[%c0_246, %c0_247] : memref<96x6xf32, #tpu.memory_space<vmem>>, vector<96x6xf32>
      %248 = arith.addf %247, %233 : vector<96x6xf32>
      %c0_248 = arith.constant 0 : index
      %c0_249 = arith.constant 0 : index
      %249 = vector.load %arg9[%c0_248, %c0_249] : memref<96x6xf32, #tpu.memory_space<vmem>>, vector<96x6xf32>
      tpu.vector_store %arg9[%c0_248, %c0_249], %248 {strides = array<i32>} : memref<96x6xf32, #tpu.memory_space<vmem>>, vector<96x6xf32>,
    } else {
    }
    %245 = arith.extui %239 : i1 to i32
    %c0_i32_245 = arith.constant 0 : i32
    %246 = arith.cmpi ne, %245, %c0_i32_245 : i32
    scf.if %246 {
      %c0_246 = arith.constant 0 : index
      %c0_247 = arith.constant 0 : index
      %247 = vector.load %arg9[%c0_246, %c0_247] : memref<96x6xf32, #tpu.memory_space<vmem>>, vector<96x6xf32>
      %c0_248 = arith.constant 0 : index
      %c0_249 = arith.constant 0 : index
      %248 = vector.load %arg6[%c0_248, %c0_249] : memref<1x6xf32, #tpu.memory_space<vmem>>, vector<1x6xf32>
      %249 = vector.broadcast %248 : vector<1x6xf32> to vector<96x6xf32>
      %250 = arith.mulf %247, %249 : vector<96x6xf32>
      %c0_250 = arith.constant 0 : index
      %c0_251 = arith.constant 0 : index
      %251 = vector.load %arg7[%c0_250, %c0_251] : memref<1x6xf32, #tpu.memory_space<vmem>>, vector<1x6xf32>
      %252 = vector.broadcast %251 : vector<1x6xf32> to vector<96x6xf32>
      %253 = arith.addf %250, %252 : vector<96x6xf32>
      %cst_252 = arith.constant 0.000000e+00 : f32
      %254 = vector.broadcast %cst_252 : f32 to vector<96x6xf32>
      %255 = arith.maximumf %253, %254 : vector<96x6xf32>
      %256 = arith.truncf %255 : vector<96x6xf32> to vector<96x6xbf16>
      %c0_253 = arith.constant 0 : index
      %c0_254 = arith.constant 0 : index
      %c0_255 = arith.constant 0 : index
      %257 = vector.load %arg8[%c0_253, %c0_254, %c0_255] : memref<1x96x6xbf16, #tpu.memory_space<vmem>>, vector<1x96x6xbf16>
      %258 = vector.shape_cast %257 : vector<1x96x6xbf16> to vector<96x6xbf16>
      %259 = vector.shape_cast %256 : vector<96x6xbf16> to vector<1x96x6xbf16>
      tpu.vector_store %arg8[%c0_253, %c0_254, %c0_255], %259 {strides = array<i32>} : memref<1x96x6xbf16, #tpu.memory_space<vmem>>, vector<1x96x6xbf16>,
    } else {
    }
    return
  }
  func.func @transform_0(%arg0: i32, %arg1: i32, %arg2: i32, %arg3: i32) -> (i32, i32, i32, i32, i32) {
    %c0_i32 = arith.constant 0 : i32
    %c0_i32_0 = arith.constant 0 : i32
    %c0_i32_1 = arith.constant 0 : i32
    %c0_i32_2 = arith.constant 0 : i32
    return %arg2, %arg0, %c0_i32, %c0_i32_0, %c0_i32_1 : i32, i32, i32, i32, i32
  }
  func.func @transform_1(%arg0: i32, %arg1: i32, %arg2: i32, %arg3: i32) -> (i32, i32, i32) {
    %c0_i32 = arith.constant 0 : i32
    %c0_i32_0 = arith.constant 0 : i32
    %c0_i32_1 = arith.constant 0 : i32
    %c0_i32_2 = arith.constant 0 : i32
    return %c0_i32, %c0_i32_0, %c0_i32_1 : i32, i32, i32
  }
  func.func @transform_2(%arg0: i32, %arg1: i32, %arg2: i32, %arg3: i32) -> (i32, i32) {
    %c0_i32 = arith.constant 0 : i32
    %c0_i32_0 = arith.constant 0 : i32
    %c0_i32_1 = arith.constant 0 : i32
    return %c0_i32, %c0_i32_0 : i32, i32
  }
  func.func @transform_3(%arg0: i32, %arg1: i32, %arg2: i32, %arg3: i32) -> (i32, i32) {
    %c0_i32 = arith.constant 0 : i32
    %c0_i32_0 = arith.constant 0 : i32
    %c0_i32_1 = arith.constant 0 : i32
    return %c0_i32, %c0_i32_0 : i32, i32
  }
  func.func @transform_4(%arg0: i32, %arg1: i32, %arg2: i32, %arg3: i32) -> (i32, i32, i32) {
    %c0_i32 = arith.constant 0 : i32
    %c0_i32_0 = arith.constant 0 : i32
    return %arg0, %arg1, %c0_i32 : i32, i32, i32
  }
}

</mosaic_0001>

<bundles_post_ra>
// kernel: _conv_bn_act_impl.1
= control target key start
LH: loop header
LB: loop body
LE: loop exit
PB: predicated region body
PF: predicated region fallthrough
CT: control target
= control target key end

     0   :  { %s8901_s15 = smov 0   ;;  %s8903_s16 = smov 0   ;;  %s12247_s0 = inlined_call_operand.vmem [shape: bf16[1,4,16,14,1], index: 0, kind: input, shape index: {}]   ;;  %s12248_s1 = inlined_call_operand.vmem [shape: bf16[5,8,6], index: 1, kind: input, shape index: {}]   ;;  %s12249_s2 = inlined_call_operand.vmem [shape: f32[1,6], index: 2, kind: input, shape index: {}]   ;;  %s12250_s3 = inlined_call_operand.vmem [shape: f32[1,6], index: 3, kind: input, shape index: {}]   ;;  %s12251_s4 = inlined_call_operand.vmem [shape: bf16[4,96,6], index: 4, kind: output, shape index: {}]  }
   0x1   :  { %s8905_s17 = smov 0  }
   0x2 LB: > { %s40_s18 = sadd.s32 1, %s8863_s16  ;;  %p7793_p0 = scmp.ge.s32.totalorder %s8867_s17, 1  ;;  %s8867_s17 = sphi %s8905_s17, %s14_s17   ;;  %s8863_s16 = sphi %s8903_s16, %s12265_s16   ;;  %s8859_s15 = sphi %s8901_s15, %s12264_s15  }
   0x3   : > { %p42_p1 = scmp.ge.s32.totalorder %s40_s18, 4  ;;  %p196_p2 = scmp.lt.s32.totalorder %s8867_s17, 5 }
   0x5   : > { %s12267_s18 = smov (%p42_p1, %s40_s18), 0  ;;  %p197_p3 = pnand %p7793_p0, %p196_p2 }
   0x6   : > { %p232_p4 = scmp.lt.s32.totalorder (!%p197_p3), %s8859_s15, 3  ;;  %s8870_s23 = smov (!%p197_p3), 1  }
   0x7   : > { %200 = sbr.rel (%p197_p3) target bundleno = 1104 (0x450), region = 36  ;;  %s8871_s24 = smov (!%p197_p3), 2  }
   0x8   : > { %s8872_s25 = smov (!%p197_p3), 3   ;;  %s8873_s26 = smov (!%p197_p3), 4  }
   0x9   : > { %s8874_s27 = smov (!%p197_p3), 5   ;;  %s8875_s28 = smov (!%p197_p3), 6  }
   0xc   : > { %s12269_s15 = smov (!%p232_p4, %s8859_s15), 3  ;;  %vm251_vm0 = vcmask 60472   ;;  %vm318_vm1 = vsmask.f32 3328  ;;  %vm319_vm2 = vsmask.f32 7440 }
   0xd   : > { %s8681_s19 = sshll.u32 %s12269_s15, 7  ;;  %v8869_v0 = vmov 0   ;;  %vm8950_vm3 = vmor %vm318_vm1, %vm319_vm2  ;;  %vm586_vm4 = vcmask 1042432   ;;  %vm587_vm5 = vcmask 1046532   ;;  %vm710_vm7 = vsmask.f32 2304 }
   0xe   : > { %s8925_s22 = scalar_lea.vmem %s12247_s0, %s8681_s19  ;;  %254 = vst.msk [vmem:[#allocation3 + $0x8] sm:$0xf] %vm251_vm0, %v8869_v0  ;;  %252 = vst.msk [vmem:[#allocation3] sm:$0xf] %vm251_vm0, %v8869_v0  ;;  %vm711_vm8 = vsmask.f32 6416 }
   0xf   : > { %253 = vst.msk [vmem:[#allocation3 + $0x4] sm:$0xf] %vm251_vm0, %v8869_v0  ;;  %255 = vst.msk [vmem:[#allocation3 + $0xc] sm:$0xf] %vm251_vm0, %v8869_v0  ;;  %v298_v1 = vld [vmem:[%s8925_s22 + $0x10] sm:$0xf] }
  0x10   : > { %256 = vst.msk [vmem:[#allocation3 + $0x10] sm:$0xf] %vm251_vm0, %v8869_v0  ;;  %257 = vst.msk [vmem:[#allocation3 + $0x14] sm:$0xf] %vm251_vm0, %v8869_v0  ;;  %v299_v2 = vld [vmem:[%s8925_s22 + $0x14] sm:$0x1] }
  0x11   : > { %258 = vst.msk [vmem:[#allocation3 + $0x18] sm:$0xf] %vm251_vm0, %v8869_v0  ;;  %259 = vst.msk [vmem:[#allocation3 + $0x1c] sm:$0xf] %vm251_vm0, %v8869_v0  ;;  %v294_v3 = vld [vmem:[%s8925_s22] sm:$0xf] }
  0x12   : > { %260 = vst.msk [vmem:[#allocation3 + $0x20] sm:$0xf] %vm251_vm0, %v8869_v0  ;;  %261 = vst.msk [vmem:[#allocation3 + $0x24] sm:$0xf] %vm251_vm0, %v8869_v0  ;;  %v350_v4 = vshrl.u32 %v298_v1, 16  ;;  %v353_v5 = vshll.u32 %v298_v1, 16 }
  0x13   : > { %262 = vst.msk [vmem:[#allocation3 + $0x28] sm:$0xf] %vm251_vm0, %v8869_v0  ;;  %263 = vst.msk [vmem:[#allocation3 + $0x2c] sm:$0xf] %vm251_vm0, %v8869_v0  ;;  %v359_v6 = vshll.u32 %v299_v2, 16  ;;  %v322_v8 = vshrl.u32 %v294_v3, 16 }
  0x14   : > { %v295_v7 = vld [vmem:[%s8925_s22 + $0x4] sm:$0x1]  ;;  %v325_v9 = vshll.u32 %v294_v3, 16  ;;  %v300_v11 = vld [vmem:[%s8925_s22 + $0x18] sm:$0xf]  ;;  %v352_v13 = vrot.slane %v350_v4, 4  ;;  %vm9012_vm6 = vmor %vm586_vm4, %vm587_vm5 }
  0x15   : > { %v331_v10 = vshll.u32 %v295_v7, 16  ;;  %v301_v12 = vld [vmem:[%s8925_s22 + $0x1c] sm:$0x1]  ;;  %v355_v14 = vrot.slane %v353_v5, 5  ;;  %v361_v15 = vrot.slane %v359_v6, 5  ;;  %v324_v16 = vrot.slane %v322_v8, 4  ;;  %vm9084_vm9 = vmor %vm710_vm7, %vm711_vm8 }
  0x16   : > { %v296_v17 = vld [vmem:[%s8925_s22 + $0x8] sm:$0xf]  ;;  %v327_v18 = vrot.slane %v325_v9, 5  ;;  %v364_v20 = vshrl.u32 %v300_v11, 16  ;;  %v367_v21 = vshll.u32 %v300_v11, 16  ;;  %v373_v24 = vshll.u32 %v301_v12, 16 }
  0x17   : > { %v333_v19 = vrot.slane %v331_v10, 5  ;;  %v297_v22 = vld [vmem:[%s8925_s22 + $0xc] sm:$0x1]  ;;  %v356_v23 = vor.u32 %v355_v14, %v352_v13  ;;  %v336_v25 = vshrl.u32 %v296_v17, 16  ;;  %v339_v26 = vshll.u32 %v296_v17, 16  ;;  %s8807_s21 = smul.u32 48, %s12269_s15 }
  0x18   : > { %v304_v27 = vld [vmem:[%s8925_s22 + $0x28] sm:$0xf]  ;;  %v328_v29 = vor.u32 %v327_v18, %v324_v16  ;;  %v366_v30 = vrot.slane %v364_v20, 4  ;;  %v369_v31 = vrot.slane %v367_v21, 5  ;;  %v345_v32 = vshll.u32 %v297_v22, 16 }
  0x19   : > { %v305_v33 = vld [vmem:[%s8925_s22 + $0x2c] sm:$0x1]  ;;  %v357_v34 = vrot.slane %v356_v23, 4  ;;  %v375_v35 = vrot.slane %v373_v24, 5  ;;  %v338_v36 = vrot.slane %v336_v25, 4  ;;  %v341_v37 = vrot.slane %v339_v26, 5 }
  0x1a   : > { %v302_v38 = vld [vmem:[%s8925_s22 + $0x20] sm:$0xf]  ;;  %v329_v39 = vrot.slane %v328_v29, 4  ;;  %v370_v40 = vor.u32 %v369_v31, %v366_v30  ;;  %v347_v41 = vrot.slane %v345_v32, 5  ;;  %v392_v42 = vshrl.u32 %v304_v27, 16 }
  0x1b   : > { %v362_v43 = vsel %vm8950_vm3, %v357_v34, %v361_v15  ;;  %v342_v44 = vor.u32 %v341_v37, %v338_v36  ;;  %v395_v45 = vshll.u32 %v304_v27, 16  ;;  %v401_v46 = vshll.u32 %v305_v33, 16  ;;  %v303_v47 = vld [vmem:[%s8925_s22 + $0x24] sm:$0x1]  ;;  %v308_v48 = vld [vmem:[%s8925_s22 + $0x38] sm:$0xf] }
  0x1c   : > { %493 = vrot.lane.b32.xlu1 %v362_v43, %s8870_s23  ;;  %v334_v49 = vsel %vm8950_vm3, %v329_v39, %v333_v19  ;;  %v371_v50 = vrot.slane %v370_v40, 4  ;;  %v394_v51 = vrot.slane %v392_v42, 4  ;;  %v378_v52 = vshrl.u32 %v302_v38, 16  ;;  %v309_v53 = vld [vmem:[%s8925_s22 + $0x3c] sm:$0x1] }
  0x1d   : > { %489 = vrot.lane.b32.xlu0 %v334_v49, %s8870_s23  ;;  %v343_v54 = vrot.slane %v342_v44, 4  ;;  %v397_v55 = vrot.slane %v395_v45, 5  ;;  %v403_v56 = vrot.slane %v401_v46, 5  ;;  %v381_v57 = vshll.u32 %v302_v38, 16  ;;  %v306_v58 = vld [vmem:[%s8925_s22 + $0x30] sm:$0xf] }
  0x1e   : > { %v376_v59 = vsel %vm8950_vm3, %v371_v50, %v375_v35  ;;  %v380_v60 = vrot.slane %v378_v52, 4  ;;  %v387_v61 = vshll.u32 %v303_v47, 16  ;;  %v420_v62 = vshrl.u32 %v308_v48, 16  ;;  %v307_v3 = vld [vmem:[%s8925_s22 + $0x34] sm:$0x1] }
  0x1f   : > { %v348_v63 = vsel %vm8950_vm3, %v343_v54, %v347_v41  ;;  %v398_v0 = vor.u32 %v397_v55, %v394_v51  ;;  %v383_v1 = vrot.slane %v381_v57, 5  ;;  %v423_v2 = vshll.u32 %v308_v48, 16  ;;  %v312_v4 = vld [vmem:[%s8925_s22 + $0x48] sm:$0xf]  ;;  %v313_v13 = vld [vmem:[%s8925_s22 + $0x4c] sm:$0x1] }
  0x20   : > { %495 = vrot.lane.b32.xlu1 %v376_v59, %s8870_s23  ;;  %v389_v5 = vrot.slane %v387_v61, 5  ;;  %v422_v6 = vrot.slane %v420_v62, 4  ;;  %v429_v7 = vshll.u32 %v309_v53, 16  ;;  %v406_v8 = vshrl.u32 %v306_v58, 16  ;;  %v310_v18 = vld [vmem:[%s8925_s22 + $0x40] sm:$0xf] }
  0x21   : > { %491 = vrot.lane.b32.xlu0 %v348_v63, %s8870_s23  ;;  %v399_v9 = vrot.slane %v398_v0, 4  ;;  %v384_v10 = vor.u32 %v383_v1, %v380_v60  ;;  %v425_v11 = vrot.slane %v423_v2, 5  ;;  %v409_v12 = vshll.u32 %v306_v58, 16  ;;  %v311_v23 = vld [vmem:[%s8925_s22 + $0x44] sm:$0x1] }
  0x22   : > { %v431_v14 = vrot.slane %v429_v7, 5  ;;  %v408_v15 = vrot.slane %v406_v8, 4  ;;  %v415_v16 = vshll.u32 %v307_v3, 16  ;;  %v448_v17 = vshrl.u32 %v312_v4, 16  ;;  %v316_v29 = vld [vmem:[%s8925_s22 + $0x58] sm:$0xf] }
  0x23   : > { %v404_v19 = vsel %vm8950_vm3, %v399_v9, %v403_v56  ;;  %v385_v20 = vrot.slane %v384_v10, 4  ;;  %v426_v21 = vor.u32 %v425_v11, %v422_v6  ;;  %v411_v22 = vrot.slane %v409_v12, 5  ;;  %v317_v34 = vld [vmem:[%s8925_s22 + $0x5c] sm:$0x1]  ;;  %v314_v35 = vld [vmem:[%s8925_s22 + $0x50] sm:$0xf] }
  0x24   : > { %499 = vrot.lane.b32.xlu1 %v404_v19, %s8870_s23  ;;  %v417_v24 = vrot.slane %v415_v16, 5  ;;  %v450_v25 = vrot.slane %v448_v17, 4  ;;  %v451_v26 = vshll.u32 %v312_v4, 16  ;;  %v457_v27 = vshll.u32 %v313_v13, 16  ;;  %v315_v40 = vld [vmem:[%s8925_s22 + $0x54] sm:$0x1] }
  0x25   : > { %v390_v30 = vsel %vm8950_vm3, %v385_v20, %v389_v5  ;;  %v427_v31 = vrot.slane %v426_v21, 4  ;;  %v412_v32 = vor.u32 %v411_v22, %v408_v15  ;;  %v434_v33 = vshrl.u32 %v310_v18, 16  ;;  %v540_v45 = vld [vmem:[%s8925_s22 + $0x8] sm:$0xe]  ;;  %v541_v50 = vld [vmem:[%s8925_s22 + $0xc] sm:$0x1] }
  0x26   : > { %497 = vrot.lane.b32.xlu0 %v390_v30, %s8870_s23  ;;  %v453_v36 = vrot.slane %v451_v26, 5  ;;  %v459_v37 = vrot.slane %v457_v27, 5  ;;  %v437_v38 = vshll.u32 %v310_v18, 16  ;;  %v443_v39 = vshll.u32 %v311_v23, 16  ;;  %v538_v51 = vld [vmem:[%s8925_s22] sm:$0xe] }
  0x27   : > { %v432_v41 = vsel %vm8950_vm3, %v427_v31, %v431_v14  ;;  %v413_v42 = vrot.slane %v412_v32, 4  ;;  %v436_v43 = vrot.slane %v434_v33, 4  ;;  %v476_v44 = vshrl.u32 %v316_v29, 16  ;;  %v539_v52 = vld [vmem:[%s8925_s22 + $0x4] sm:$0x1] }
  0x28   : > { %503 = vrot.lane.b32.xlu1 %v432_v41, %s8870_s23  ;;  %v454_v46 = vor.u32 %v453_v36, %v450_v25  ;;  %v439_v47 = vrot.slane %v437_v38, 5  ;;  %v445_v48 = vrot.slane %v443_v39, 5  ;;  %v479_v49 = vshll.u32 %v316_v29, 16  ;;  %v544_v57 = vld [vmem:[%s8925_s22 + $0x18] sm:$0xe] }
  0x29   : > { %v418_v53 = vsel %vm8950_vm3, %v413_v42, %v417_v24  ;;  %v478_v54 = vrot.slane %v476_v44, 4  ;;  %v485_v55 = vshll.u32 %v317_v34, 16  ;;  %v462_v56 = vshrl.u32 %v314_v35, 16  ;;  %v545_v62 = vld [vmem:[%s8925_s22 + $0x1c] sm:$0x1] }
  0x2a   : > { %501 = vrot.lane.b32.xlu0 %v418_v53, %s8870_s23  ;;  %v455_v58 = vrot.slane %v454_v46, 4  ;;  %v440_v59 = vor.u32 %v439_v47, %v436_v43  ;;  %v481_v60 = vrot.slane %v479_v49, 5  ;;  %v465_v61 = vshll.u32 %v314_v35, 16  ;;  %v542_v63 = vld [vmem:[%s8925_s22 + $0x10] sm:$0xe] }
  0x2b   : > { %v487_v0 = vrot.slane %v485_v55, 5  ;;  %v464_v1 = vrot.slane %v462_v56, 4  ;;  %v471_v2 = vshll.u32 %v315_v40, 16  ;;  %v7798_v3 = vrot.slane %v540_v45, 9  ;;  %v543_v4 = vld [vmem:[%s8925_s22 + $0x14] sm:$0x1] }
  0x2c   : > { %v548_v5 = vld [vmem:[%s8925_s22 + $0x28] sm:$0xe]  ;;  %v460_v6 = vsel %vm8950_vm3, %v455_v58, %v459_v37  ;;  %v441_v7 = vrot.slane %v440_v59, 4  ;;  %v482_v8 = vor.u32 %v481_v60, %v478_v54  ;;  %v467_v9 = vrot.slane %v465_v61, 5  ;;  %v549_v10 = vld [vmem:[%s8925_s22 + $0x2c] sm:$0x1] }
  0x2d   : > { %v546_v11 = vld [vmem:[%s8925_s22 + $0x20] sm:$0xe]  ;;  %507 = vrot.lane.b32.xlu1 %v460_v6, %s8870_s23  ;;  %v473_v12 = vrot.slane %v471_v2, 5  ;;  %v595_v13 = vrot.slane %v541_v50, 5  ;;  %v7797_v14 = vrot.slane %v538_v51, 9  ;;  %v591_v15 = vrot.slane %v539_v52, 5 }
  0x2e   : > { %v547_v16 = vld [vmem:[%s8925_s22 + $0x24] sm:$0x1]  ;;  %v446_v17 = vsel %vm8950_vm3, %v441_v7, %v445_v48  ;;  %v483_v18 = vrot.slane %v482_v8, 4  ;;  %v468_v19 = vor.u32 %v467_v9, %v464_v1  ;;  %v7800_v21 = vrot.slane %v544_v57, 9  ;;  %v552_v22 = vld [vmem:[%s8925_s22 + $0x38] sm:$0xe] }
  0x2f   : > { %v553_v23 = vld [vmem:[%s8925_s22 + $0x3c] sm:$0x1]  ;;  %505 = vrot.lane.b32.xlu0 %v446_v17, %s8870_s23  ;;  %v603_v24 = vrot.slane %v545_v62, 5  ;;  %v7799_v25 = vrot.slane %v542_v63, 9  ;;  %v550_v26 = vld [vmem:[%s8925_s22 + $0x30] sm:$0xe]  ;;  %v596_v34 = vsel %vm9012_vm6, %v7798_v3, %v595_v13  ;;  %v592_v40 = vsel %vm9012_vm6, %v7797_v14, %v591_v15 }
  0x30   : > { %v551_v27 = vld [vmem:[%s8925_s22 + $0x34] sm:$0x1]  ;;  %v488_v29 = vsel %vm8950_vm3, %v483_v18, %v487_v0  ;;  %v469_v30 = vrot.slane %v468_v19, 4  ;;  %v599_v31 = vrot.slane %v543_v4, 5  ;;  %v7802_v32 = vrot.slane %v548_v5, 9 }
  0x31   : > { %v556_v33 = vld [vmem:[%s8925_s22 + $0x48] sm:$0xe]  ;;  %511 = vrot.lane.b32.xlu1 %v488_v29, %s8870_s23  ;;  %v611_v35 = vrot.slane %v549_v10, 5  ;;  %v7801_v36 = vrot.slane %v546_v11, 9  ;;  %v607_v37 = vrot.slane %v547_v16, 5  ;;  %v7804_v41 = vrot.slane %v552_v22, 9 }
  0x32   : > { %v557_v38 = vld [vmem:[%s8925_s22 + $0x4c] sm:$0x1]  ;;  %v474_v39 = vsel %vm8950_vm3, %v469_v30, %v473_v12  ;;  %v619_v42 = vrot.slane %v553_v23, 5  ;;  %v554_v43 = vld [vmem:[%s8925_s22 + $0x40] sm:$0xe]  ;;  %v604_v45 = vsel %vm9012_vm6, %v7800_v21, %v603_v24  ;;  %v600_v46 = vsel %vm9012_vm6, %v7799_v25, %v599_v31 }
  0x33   : > { %v555_v44 = vld [vmem:[%s8925_s22 + $0x44] sm:$0x1]  ;;  %509 = vrot.lane.b32.xlu0 %v474_v39, %s8870_s23  ;;  %v7803_v47 = vrot.slane %v550_v26, 9  ;;  %v615_v48 = vrot.slane %v551_v27, 5  ;;  %v560_v49 = vld [vmem:[%s8925_s22 + $0x58] sm:$0xe]  ;;  %v612_v51 = vsel %vm9012_vm6, %v7802_v32, %v611_v35  ;;  %v608_v56 = vsel %vm9012_vm6, %v7801_v36, %v607_v37 }
  0x34   : > { %v561_v50 = vld [vmem:[%s8925_s22 + $0x5c] sm:$0x1]  ;;  %v7806_v52 = vrot.slane %v556_v33, 9  ;;  %v627_v53 = vrot.slane %v557_v38, 5  ;;  %v7805_v54 = vrot.slane %v554_v43, 9  ;;  %v623_v57 = vrot.slane %v555_v44, 5 }
  0x35   : > { %v558_v55 = vld [vmem:[%s8925_s22 + $0x50] sm:$0xe]  ;;  %639 = vrot.lane.b32.xlu1 %v596_v34, %s8871_s24  ;;  %v7808_v58 = vrot.slane %v560_v49, 9  ;;  %v635_v59 = vrot.slane %v561_v50, 5  ;;  %v559_v60 = vld [vmem:[%s8925_s22 + $0x54] sm:$0x1]  ;;  %v620_v61 = vsel %vm9012_vm6, %v7804_v41, %v619_v42  ;;  %v9052_v62 = vsel %vm9012_vm6, %v7803_v47, %v615_v48 }
  0x36   : > { %v7807_v63 = vrot.slane %v558_v55, 9  ;;  %v631_v0 = vrot.slane %v559_v60, 5  ;;  %v688_v1 = vld [vmem:[%s8925_s22 + $0x8] sm:$0xe]  ;;  %v689_v2 = vld [vmem:[%s8925_s22 + $0xc] sm:$0x3]  ;;  %v9059_v3 = vsel %vm9012_vm6, %v7806_v52, %v627_v53  ;;  %v9063_v4 = vsel %vm9012_vm6, %v7805_v54, %v623_v57 }
  0x37   : > { %637 = vrot.lane.b32.xlu0 %v592_v40, %s8871_s24  ;;  %v732_v5 = vshrl.u32 %v688_v1, 16  ;;  %v735_v6 = vshll.u32 %v688_v1, 16  ;;  %v686_v7 = vld [vmem:[%s8925_s22] sm:$0xe]  ;;  %v687_v8 = vld [vmem:[%s8925_s22 + $0x4] sm:$0x3]  ;;  %v9069_v9 = vsel %vm9012_vm6, %v7808_v58, %v635_v59 }
  0x38   : > { %v741_v10 = vshrl.u32 %v689_v2, 16  ;;  %v744_v11 = vshll.u32 %v689_v2, 16  ;;  %v714_v12 = vshrl.u32 %v686_v7, 16  ;;  %v692_v13 = vld [vmem:[%s8925_s22 + $0x18] sm:$0xe]  ;;  %v717_v16 = vshll.u32 %v686_v7, 16 }
  0x39   : > { %643 = vrot.lane.b32.xlu1 %v604_v45, %s8871_s24  ;;  %v734_v14 = vrot.slane %v732_v5, 5  ;;  %v737_v15 = vrot.slane %v735_v6, 6  ;;  %v723_v17 = vshrl.u32 %v687_v8, 16  ;;  %v693_v18 = vld [vmem:[%s8925_s22 + $0x1c] sm:$0x3]  ;;  %v726_v23 = vshll.u32 %v687_v8, 16 }
  0x3a   : > { %v743_v19 = vrot.slane %v741_v10, 5  ;;  %v746_v21 = vrot.slane %v744_v11, 6  ;;  %v716_v22 = vrot.slane %v714_v12, 5  ;;  %v719_v25 = vrot.slane %v717_v16, 6  ;;  %v690_v29 = vld [vmem:[%s8925_s22 + $0x10] sm:$0xe] }
  0x3b   : > { %641 = vrot.lane.b32.xlu0 %v600_v46, %s8871_s24  ;;  %v738_v24 = vor.u32 %v737_v15, %v734_v14  ;;  %v725_v26 = vrot.slane %v723_v17, 5  ;;  %v768_v27 = vshrl.u32 %v692_v13, 16  ;;  %v728_v31 = vrot.slane %v726_v23, 6  ;;  %v691_v38 = vld [vmem:[%s8925_s22 + $0x14] sm:$0x3] }
  0x3c   : > { %v747_v30 = vor.u32 %v746_v21, %v743_v19  ;;  %v771_v32 = vshll.u32 %v692_v13, 16  ;;  %v777_v33 = vshrl.u32 %v693_v18, 16  ;;  %v720_v35 = vor.u32 %v719_v25, %v716_v22  ;;  %v696_v44 = vld [vmem:[%s8925_s22 + $0x28] sm:$0xe]  ;;  %v697_v53 = vld [vmem:[%s8925_s22 + $0x2c] sm:$0x3] }
  0x3d   : > { %647 = vrot.lane.b32.xlu1 %v612_v51, %s8871_s24  ;;  %v739_v34 = vrot.slane %v738_v24, 4  ;;  %v770_v36 = vrot.slane %v768_v27, 5  ;;  %v780_v37 = vshll.u32 %v693_v18, 16  ;;  %v9080_v39 = vsel %vm9012_vm6, %v7807_v63, %v631_v0  ;;  %v700_v12 = vld [vmem:[%s8925_s22 + $0x38] sm:$0xe] }
  0x3e   : > { %v773_v41 = vrot.slane %v771_v32, 6  ;;  %v779_v42 = vrot.slane %v777_v33, 5  ;;  %v750_v43 = vshrl.u32 %v690_v29, 16  ;;  %v721_v45 = vrot.slane %v720_v35, 4  ;;  %v701_v21 = vld [vmem:[%s8925_s22 + $0x3c] sm:$0x3] }
  0x3f   : > { %645 = vrot.lane.b32.xlu0 %v608_v56, %s8871_s24  ;;  %v729_v46 = vor.u32 %v728_v31, %v725_v26  ;;  %v782_v47 = vrot.slane %v780_v37, 6  ;;  %v753_v48 = vshll.u32 %v690_v29, 16  ;;  %v759_v51 = vshrl.u32 %v691_v38, 16  ;;  %v694_v56 = vld [vmem:[%s8925_s22 + $0x20] sm:$0xe] }
  0x40   : > { %v774_v49 = vor.u32 %v773_v41, %v770_v36  ;;  %v752_v50 = vrot.slane %v750_v43, 5  ;;  %v762_v52 = vshll.u32 %v691_v38, 16  ;;  %v748_v54 = vsel %vm9084_vm9, %v739_v34, %v747_v30  ;;  %v704_v41 = vld [vmem:[%s8925_s22 + $0x48] sm:$0xe] }
  0x41   : > { %651 = vrot.lane.b32.xlu1 %v620_v61, %s8871_s24  ;;  %v783_v55 = vor.u32 %v782_v47, %v779_v42  ;;  %v755_v57 = vrot.slane %v753_v48, 6  ;;  %v804_v58 = vshrl.u32 %v696_v44, 16  ;;  %v761_v60 = vrot.slane %v759_v51, 5  ;;  %v695_v61 = vld [vmem:[%s8925_s22 + $0x24] sm:$0x3] }
  0x42   : > { %v775_v59 = vrot.slane %v774_v49, 4  ;;  %v764_v63 = vrot.slane %v762_v52, 6  ;;  %v807_v0 = vshll.u32 %v696_v44, 16  ;;  %v813_v5 = vshrl.u32 %v697_v53, 16  ;;  %v705_v49 = vld [vmem:[%s8925_s22 + $0x4c] sm:$0x3] }
  0x43   : > { %649 = vrot.lane.b32.xlu0 %v9052_v62, %s8871_s24  ;;  %v756_v1 = vor.u32 %v755_v57, %v752_v50  ;;  %v806_v2 = vrot.slane %v804_v58, 5  ;;  %v816_v6 = vshll.u32 %v697_v53, 16  ;;  %v730_v7 = vsel %vm9084_vm9, %v721_v45, %v729_v46  ;;  %v702_v53 = vld [vmem:[%s8925_s22 + $0x40] sm:$0xe] }
  0x44   : > { %v765_v8 = vor.u32 %v764_v63, %v761_v60  ;;  %v809_v10 = vrot.slane %v807_v0, 6  ;;  %v786_v11 = vshrl.u32 %v694_v56, 16  ;;  %v815_v14 = vrot.slane %v813_v5, 5 }
  0x45   : > { %655 = vrot.lane.b32.xlu1 %v9059_v3, %s8871_s24  ;;  %v757_v13 = vrot.slane %v756_v1, 4  ;;  %v818_v62 = vrot.slane %v816_v6, 6  ;;  %v789_v15 = vshll.u32 %v694_v56, 16  ;;  %v795_v18 = vshrl.u32 %v695_v61, 16  ;;  %v698_v3 = vld [vmem:[%s8925_s22 + $0x30] sm:$0xe] }
  0x46   : > { %v810_v16 = vor.u32 %v809_v10, %v806_v2  ;;  %v788_v17 = vrot.slane %v786_v11, 5  ;;  %v798_v19 = vshll.u32 %v695_v61, 16  ;;  %v784_v22 = vsel %vm9084_vm9, %v775_v59, %v783_v55  ;;  %v708_v61 = vld [vmem:[%s8925_s22 + $0x58] sm:$0xe] }
  0x47   : > { %653 = vrot.lane.b32.xlu0 %v9063_v4, %s8871_s24  ;;  %v819_v23 = vor.u32 %v818_v62, %v815_v14  ;;  %v791_v24 = vrot.slane %v789_v15, 6  ;;  %v840_v25 = vshrl.u32 %v700_v12, 16  ;;  %v797_v27 = vrot.slane %v795_v18, 5  ;;  %v699_v4 = vld [vmem:[%s8925_s22 + $0x34] sm:$0x3] }
  0x48   : > { %v811_v26 = vrot.slane %v810_v16, 4  ;;  %v800_v29 = vrot.slane %v798_v19, 6  ;;  %v843_v30 = vshll.u32 %v700_v12, 16  ;;  %v849_v33 = vshrl.u32 %v701_v21, 16  ;;  %v709_v15 = vld [vmem:[%s8925_s22 + $0x5c] sm:$0x3] }
  0x49   : > { %659 = vrot.lane.b32.xlu1 %v9069_v9, %s8871_s24  ;;  %v792_v31 = vor.u32 %v791_v24, %v788_v17  ;;  %v842_v32 = vrot.slane %v840_v25, 5  ;;  %v852_v34 = vshll.u32 %v701_v21, 16  ;;  %v766_v35 = vsel %vm9084_vm9, %v757_v13, %v765_v8  ;;  %v706_v21 = vld [vmem:[%s8925_s22 + $0x50] sm:$0xe] }
  0x4a   : > { %v801_v36 = vor.u32 %v800_v29, %v797_v27  ;;  %v845_v37 = vrot.slane %v843_v30, 6  ;;  %v822_v38 = vshrl.u32 %v698_v3, 16  ;;  %v851_v43 = vrot.slane %v849_v33, 5  ;;  %v707_v30 = vld [vmem:[%s8925_s22 + $0x54] sm:$0x3] }
  0x4b   : > { %657 = vrot.lane.b32.xlu0 %v9080_v39, %s8871_s24  ;;  %v793_v42 = vrot.slane %v792_v31, 4  ;;  %v854_v9 = vrot.slane %v852_v34, 6  ;;  %v825_v44 = vshll.u32 %v698_v3, 16  ;;  %v831_v47 = vshrl.u32 %v699_v4, 16 }
  0x4c   : > { %v846_v45 = vor.u32 %v845_v37, %v842_v32  ;;  %v824_v46 = vrot.slane %v822_v38, 5  ;;  %v834_v48 = vshll.u32 %v699_v4, 16  ;;  %v820_v50 = vsel %vm9084_vm9, %v811_v26, %v819_v23  ;;  %v9138_v4 = vld [vmem:[%s8925_s22 + $0x8] sm:$0xc] }
  0x4d   : > { %931 = vrot.lane.b32.xlu1 %v748_v54, %s8872_s25  ;;  %v855_v51 = vor.u32 %v854_v9, %v851_v43  ;;  %v827_v52 = vrot.slane %v825_v44, 6  ;;  %v876_v39 = vshrl.u32 %v704_v41, 16  ;;  %v833_v57 = vrot.slane %v831_v47, 5  ;;  %v703_v54 = vld [vmem:[%s8925_s22 + $0x44] sm:$0x3] }
  0x4e   : > { %v847_v55 = vrot.slane %v846_v45, 4  ;;  %v836_v58 = vrot.slane %v834_v48, 6  ;;  %v879_v56 = vshll.u32 %v704_v41, 16  ;;  %v885_v63 = vshrl.u32 %v705_v49, 16  ;;  %v979_v43 = vld [vmem:[%s8925_s22 + $0x4] sm:$0x3] }
  0x4f   : > { %929 = vrot.lane.b32.xlu0 %v730_v7, %s8872_s25  ;;  %v828_v59 = vor.u32 %v827_v52, %v824_v46  ;;  %v878_v60 = vrot.slane %v876_v39, 5  ;;  %v888_v0 = vshll.u32 %v705_v49, 16  ;;  %v802_v1 = vsel %vm9084_vm9, %v793_v42, %v801_v36  ;;  %v978_v42 = vld [vmem:[%s8925_s22] sm:$0xc]  ;;  %v984_v9 = vld [vmem:[%s8925_s22 + $0x18] sm:$0xc] }
  0x50   : > { %v837_v2 = vor.u32 %v836_v58, %v833_v57  ;;  %v881_v5 = vrot.slane %v879_v56, 6  ;;  %v858_v6 = vshrl.u32 %v702_v53, 16  ;;  %v887_v10 = vrot.slane %v885_v63, 5  ;;  %v985_v48 = vld [vmem:[%s8925_s22 + $0x1c] sm:$0x3] }
  0x51   : > { %935 = vrot.lane.b32.xlu1 %v784_v22, %s8872_s25  ;;  %v829_v8 = vrot.slane %v828_v59, 4  ;;  %v890_v11 = vrot.slane %v888_v0, 6  ;;  %v861_v7 = vshll.u32 %v702_v53, 16  ;;  %v867_v14 = vshrl.u32 %v703_v54, 16  ;;  %v982_v49 = vld [vmem:[%s8925_s22 + $0x10] sm:$0xc] }
  0x52   : > { %v882_v12 = vor.u32 %v881_v5, %v878_v60  ;;  %v860_v13 = vrot.slane %v858_v6, 5  ;;  %v870_v62 = vshll.u32 %v703_v54, 16  ;;  %v856_v16 = vsel %vm9084_vm9, %v847_v55, %v855_v51  ;;  %v983_v52 = vld [vmem:[%s8925_s22 + $0x14] sm:$0x3]  ;;  %v988_v39 = vld [vmem:[%s8925_s22 + $0x28] sm:$0xc] }
  0x53   : > { %933 = vrot.lane.b32.xlu0 %v766_v35, %s8872_s25  ;;  %v838_v17 = vsel %vm9084_vm9, %v829_v8, %v837_v2  ;;  %v863_v18 = vrot.slane %v861_v7, 6  ;;  %v912_v19 = vshrl.u32 %v708_v61, 16  ;;  %vm1026_vm10 = vcmask 1041408   ;;  %v9141_v35 = vld [vmem:[%s8925_s22 + $0xc] sm:$0x3] }
  0x54   : > { %v891_v22 = vor.u32 %v890_v11, %v887_v10  ;;  %v869_v23 = vrot.slane %v867_v14, 5  ;;  %v872_v24 = vrot.slane %v870_v62, 6  ;;  %v915_v25 = vshll.u32 %v708_v61, 16  ;;  %v989_v53 = vld [vmem:[%s8925_s22 + $0x2c] sm:$0x3] }
  0x55   : > { %939 = vrot.lane.b32.xlu1 %v820_v50, %s8872_s25  ;;  %v864_v3 = vor.u32 %v863_v18, %v860_v13  ;;  %v914_v26 = vrot.slane %v912_v19, 5  ;;  %v921_v27 = vshrl.u32 %v709_v15, 16  ;;  %v924_v29 = vshll.u32 %v709_v15, 16  ;;  %v986_v55 = vld [vmem:[%s8925_s22 + $0x20] sm:$0xc] }
  0x56   : > { %v883_v31 = vrot.slane %v882_v12, 4  ;;  %v873_v32 = vor.u32 %v872_v24, %v869_v23  ;;  %v917_v33 = vrot.slane %v915_v25, 6  ;;  %v894_v34 = vshrl.u32 %v706_v21, 16  ;;  %v987_v60 = vld [vmem:[%s8925_s22 + $0x24] sm:$0x3] }
  0x57   : > { %937 = vrot.lane.b32.xlu0 %v802_v1, %s8872_s25  ;;  %v865_v36 = vrot.slane %v864_v3, 4  ;;  %v923_v37 = vrot.slane %v921_v27, 5  ;;  %v926_v38 = vrot.slane %v924_v29, 6  ;;  %v897_v41 = vshll.u32 %v706_v21, 16  ;;  %v992_v2 = vld [vmem:[%s8925_s22 + $0x38] sm:$0xc] }
  0x58   : > { %v918_v44 = vor.u32 %v917_v33, %v914_v26  ;;  %v896_v45 = vrot.slane %v894_v34, 5  ;;  %v903_v46 = vshrl.u32 %v707_v30, 16  ;;  %v906_v47 = vshll.u32 %v707_v30, 16  ;;  %v993_v5 = vld [vmem:[%s8925_s22 + $0x3c] sm:$0x3] }
  0x59   : > { %943 = vrot.lane.b32.xlu1 %v856_v16, %s8872_s25  ;;  %v927_v50 = vor.u32 %v926_v38, %v923_v37  ;;  %v899_v51 = vrot.slane %v897_v41, 6  ;;  %vm1027_vm11 = vcmask 1045508   ;;  %v892_v57 = vsel %vm9084_vm9, %v883_v31, %v891_v22  ;;  %v990_v11 = vld [vmem:[%s8925_s22 + $0x30] sm:$0xc]  ;;  %v991_v62 = vld [vmem:[%s8925_s22 + $0x34] sm:$0x3] }
  0x5a   : > { %v919_v58 = vrot.slane %v918_v44, 4  ;;  %v905_v56 = vrot.slane %v903_v46, 5  ;;  %v908_v59 = vrot.slane %v906_v47, 6  ;;  %v874_v63 = vsel %vm9084_vm9, %v865_v36, %v873_v32  ;;  %vm9171_vm12 = vmor %vm1026_vm10, %vm1027_vm11  ;;  %v996_v23 = vld [vmem:[%s8925_s22 + $0x48] sm:$0xc] }
  0x5b   : > { %941 = vrot.lane.b32.xlu0 %v838_v17, %s8872_s25  ;;  %v900_v0 = vor.u32 %v899_v51, %v896_v45  ;;  %v7810_v54 = vrot.slane %v9138_v4, 10  ;;  %v1035_v1 = vrot.slane %v9141_v35, 6  ;;  %v7809_v61 = vrot.slane %v978_v42, 10  ;;  %v997_v24 = vld [vmem:[%s8925_s22 + $0x4c] sm:$0x3] }
  0x5c   : > { %v909_v6 = vor.u32 %v908_v59, %v905_v56  ;;  %v1031_v8 = vrot.slane %v979_v43, 6  ;;  %v7812_v10 = vrot.slane %v984_v9, 10  ;;  %v928_v7 = vsel %vm9084_vm9, %v919_v58, %v927_v50  ;;  %v9181_v29 = vld [vmem:[%s8925_s22 + $0x40] sm:$0xc]  ;;  %v1128_v32 = vld [vmem:[%s8925_s22 + $0x8] sm:$0xc] }
  0x5d   : > { %947 = vrot.lane.b32.xlu1 %v892_v57, %s8872_s25  ;;  %v901_v12 = vrot.slane %v900_v0, 4  ;;  %v1043_v13 = vrot.slane %v985_v48, 6  ;;  %v7811_v14 = vrot.slane %v982_v49, 10  ;;  %v1039_v16 = vrot.slane %v983_v52, 6  ;;  %v1129_v33 = vld [vmem:[%s8925_s22 + $0xc] sm:$0x7] }
  0x5e   : > { %v7814_v17 = vrot.slane %v988_v39, 10  ;;  %v1051_v18 = vrot.slane %v989_v53, 6  ;;  %v7813_v19 = vrot.slane %v986_v55, 10  ;;  %v1047_v21 = vrot.slane %v987_v60, 6  ;;  %v995_v37 = vld [vmem:[%s8925_s22 + $0x44] sm:$0x3] }
  0x5f   : > { %945 = vrot.lane.b32.xlu0 %v874_v63, %s8872_s25  ;;  %v7816_v22 = vrot.slane %v992_v2, 10  ;;  %v910_v25 = vsel %vm9084_vm9, %v901_v12, %v909_v6  ;;  %v1059_v3 = vrot.slane %v993_v5, 6  ;;  %v7815_v26 = vrot.slane %v990_v11, 10  ;;  %v9204_v38 = vld [vmem:[%s8925_s22 + $0x58] sm:$0xc] }
  0x60   : > { %v1055_v27 = vrot.slane %v991_v62, 6  ;;  %v1036_v30 = vsel %vm9171_vm12, %v7810_v54, %v1035_v1  ;;  %v1032_v31 = vsel %vm9171_vm12, %v7809_v61, %v1031_v8  ;;  %vm281_vm13 = vcmask 3072   ;;  %v1126_v41 = vld [vmem:[%s8925_s22] sm:$0xc]  ;;  %v1001_v46 = vld [vmem:[%s8925_s22 + $0x5c] sm:$0x3] }
  0x61   : > { %951 = vrot.lane.b32.xlu1 %v928_v7, %s8872_s25  ;;  %v1044_v34 = vsel %vm9171_vm12, %v7812_v10, %v1043_v13  ;;  %v1040_v4 = vsel %vm9171_vm12, %v7811_v14, %v1039_v16  ;;  %v9196_v35 = vsel %vm9171_vm12, %v7814_v17, %v1051_v18  ;;  %v9200_v36 = vsel %vm9171_vm12, %v7813_v19, %v1047_v21  ;;  %v9219_v47 = vld [vmem:[%s8925_s22 + $0x50] sm:$0xc]  ;;  %v1127_v51 = vld [vmem:[%s8925_s22 + $0x4] sm:$0x7]  ;;  %v1132_v57 = vld [vmem:[%s8925_s22 + $0x18] sm:$0xc] }
  0x62   : > { %vm1150_vm14 = vsmask.f32 1280  ;;  %vm1151_vm15 = vsmask.f32 5392  ;;  %v9210_v42 = vsel %vm9171_vm12, %v7816_v22, %v1059_v3  ;;  %v7818_v43 = vrot.slane %v996_v23, 10 }
  0x63   : > { %949 = vrot.lane.b32.xlu0 %v910_v25, %s8872_s25  ;;  %v1067_v9 = vrot.slane %v997_v24, 6  ;;  %v7817_v44 = vrot.slane %v9181_v29, 10  ;;  %v9215_v45 = vsel %vm9171_vm12, %v7815_v26, %v1055_v27  ;;  %v1172_v48 = vshrl.u32 %v1128_v32, 16  ;;  %v999_v58 = vld [vmem:[%s8925_s22 + $0x54] sm:$0x3]  ;;  %vm9253_vm0 = vmor %vm1150_vm14, %vm1151_vm15 }
  0x64   : > { %v1175_v49 = vshll.u32 %v1128_v32, 16  ;;  %v1181_v50 = vshrl.u32 %v1129_v33, 16  ;;  %v1063_v52 = vrot.slane %v995_v37, 6  ;;  %v7820_v39 = vrot.slane %v9204_v38, 10  ;;  %v1133_v5 = vld [vmem:[%s8925_s22 + $0x1c] sm:$0x7] }
  0x65   : > { %1079 = vrot.lane.b32.xlu1 %v1036_v30, %s8873_s26  ;;  %v1184_v53 = vshll.u32 %v1129_v33, 16  ;;  %v1154_v55 = vshrl.u32 %v1126_v41, 16  ;;  %v1174_v56 = vrot.slane %v1172_v48, 6  ;;  %v1157_v63 = vshll.u32 %v1126_v41, 16  ;;  %v1130_v11 = vld [vmem:[%s8925_s22 + $0x10] sm:$0xc] }
  0x66   : > { %v1177_v59 = vrot.slane %v1175_v49, 7  ;;  %v1183_v60 = vrot.slane %v1181_v50, 6  ;;  %v1163_v1 = vshrl.u32 %v1127_v51, 16  ;;  %v1166_v2 = vshll.u32 %v1127_v51, 16  ;;  %v1131_v62 = vld [vmem:[%s8925_s22 + $0x14] sm:$0x7] }
  0x67   : > { %1077 = vrot.lane.b32.xlu0 %v1032_v31, %s8873_s26  ;;  %v1186_v0 = vrot.slane %v1184_v53, 7  ;;  %v1156_v54 = vrot.slane %v1154_v55, 6  ;;  %v1159_v61 = vrot.slane %v1157_v63, 7  ;;  %v1208_v8 = vshrl.u32 %v1132_v57, 16  ;;  %v1136_v21 = vld [vmem:[%s8925_s22 + $0x28] sm:$0xc] }
  0x68   : > { %v1178_v6 = vor.u32 %v1177_v59, %v1174_v56  ;;  %v1211_v10 = vshll.u32 %v1132_v57, 16  ;;  %v9232_v7 = vsel %vm9171_vm12, %v7818_v43, %v1067_v9  ;;  %v1075_v12 = vrot.slane %v1001_v46, 6  ;;  %v271_v3 = vld [vmem:[%s8925_s22 + $0x10] sm:$0xf]  ;;  %v269_v31 = vld [vmem:[%s8925_s22] sm:$0xf] }
  0x69   : > { %1083 = vrot.lane.b32.xlu1 %v1044_v34, %s8873_s26  ;;  %v7819_v13 = vrot.slane %v9219_v47, 10  ;;  %v1071_v14 = vrot.slane %v999_v58, 6  ;;  %v1160_v16 = vor.u32 %v1159_v61, %v1156_v54  ;;  %v1165_v17 = vrot.slane %v1163_v1, 6  ;;  %284 = vst.msk [vmem:[#allocation3 + $0x8] sm:$0xf] %vm281_vm13, %v271_v3 }
  0x6a   : > { %v1168_v18 = vrot.slane %v1166_v2, 7  ;;  %v1217_v19 = vshrl.u32 %v1133_v5, 16  ;;  %v1210_v22 = vrot.slane %v1208_v8, 6  ;;  %v1213_v23 = vrot.slane %v1211_v10, 7  ;;  %v1137_v38 = vld [vmem:[%s8925_s22 + $0x2c] sm:$0x7] }
  0x6b   : > { %1081 = vrot.lane.b32.xlu0 %v1040_v4, %s8873_s26  ;;  %v1220_v24 = vshll.u32 %v1133_v5, 16  ;;  %v1190_v25 = vshrl.u32 %v1130_v11, 16  ;;  %v9241_v26 = vsel %vm9171_vm12, %v7817_v44, %v1063_v52  ;;  %v1179_v27 = vrot.slane %v1178_v6, 4  ;;  %282 = vst.msk [vmem:[#allocation3] sm:$0xf] %vm281_vm13, %v269_v31 }
  0x6c   : > { %v1187_v29 = vor.u32 %v1186_v0, %v1183_v60  ;;  %v1193_v30 = vshll.u32 %v1130_v11, 16  ;;  %v9249_v32 = vsel %vm9171_vm12, %v7820_v39, %v1075_v12  ;;  %v1199_v4 = vshrl.u32 %v1131_v62, 16  ;;  %v1134_v44 = vld [vmem:[%s8925_s22 + $0x20] sm:$0xc]  ;;  %v1135_v50 = vld [vmem:[%s8925_s22 + $0x24] sm:$0x7] }
  0x6d   : > { %1087 = vrot.lane.b32.xlu1 %v9196_v35, %s8873_s26  ;;  %v1192_v34 = vrot.slane %v1190_v25, 6  ;;  %v1202_v37 = vshll.u32 %v1131_v62, 16  ;;  %v1161_v41 = vrot.slane %v1160_v16, 4  ;;  %v1169_v35 = vor.u32 %v1168_v18, %v1165_v17  ;;  %v1140_v55 = vld [vmem:[%s8925_s22 + $0x38] sm:$0xc] }
  0x6e   : > { %v1195_v43 = vrot.slane %v1193_v30, 7  ;;  %v1244_v9 = vshrl.u32 %v1136_v21, 16  ;;  %v1214_v46 = vor.u32 %v1213_v23, %v1210_v22  ;;  %v1219_v47 = vrot.slane %v1217_v19, 6  ;;  %v272_v57 = vld [vmem:[%s8925_s22 + $0x18] sm:$0xf] }
  0x6f   : > { %1085 = vrot.lane.b32.xlu0 %v9200_v36, %s8873_s26  ;;  %v1222_v48 = vrot.slane %v1220_v24, 7  ;;  %v1247_v49 = vshll.u32 %v1136_v21, 16  ;;  %v9265_v51 = vsel %vm9171_vm12, %v7819_v13, %v1071_v14  ;;  %v9269_v52 = vsel %vm9253_vm0, %v1179_v27, %v1187_v29  ;;  %285 = vst.msk [vmem:[#allocation3 + $0xc] sm:$0xf] %vm281_vm13, %v272_v57  ;;  %v270_v60 = vld [vmem:[%s8925_s22 + $0x8] sm:$0xf] }
  0x70   : > { %v1201_v39 = vrot.slane %v1199_v4, 6  ;;  %v1204_v53 = vrot.slane %v1202_v37, 7  ;;  %v1196_v36 = vor.u32 %v1195_v43, %v1192_v34  ;;  %v1253_v58 = vshrl.u32 %v1137_v38, 16  ;;  %v1141_v2 = vld [vmem:[%s8925_s22 + $0x3c] sm:$0x7] }
  0x71   : > { %1091 = vrot.lane.b32.xlu1 %v9210_v42, %s8873_s26  ;;  %v1256_v56 = vshll.u32 %v1137_v38, 16  ;;  %v1226_v59 = vshrl.u32 %v1134_v44, 16  ;;  %v9279_v63 = vsel %vm9253_vm0, %v1161_v41, %v1169_v35  ;;  %v1246_v0 = vrot.slane %v1244_v9, 6  ;;  %283 = vst.msk [vmem:[#allocation3 + $0x4] sm:$0xf] %vm281_vm13, %v270_v60 }
  0x72   : > { %v1249_v54 = vrot.slane %v1247_v49, 7  ;;  %v1229_v1 = vshll.u32 %v1134_v44, 16  ;;  %v1215_v42 = vrot.slane %v1214_v46, 4  ;;  %v1223_v5 = vor.u32 %v1222_v48, %v1219_v47  ;;  %v1138_v8 = vld [vmem:[%s8925_s22 + $0x30] sm:$0xc] }
  0x73   : > { %1089 = vrot.lane.b32.xlu0 %v9215_v45, %s8873_s26  ;;  %v1235_v6 = vshrl.u32 %v1135_v50, 16  ;;  %v1238_v61 = vshll.u32 %v1135_v50, 16  ;;  %v1205_v10 = vor.u32 %v1204_v53, %v1201_v39  ;;  %v1228_v11 = vrot.slane %v1226_v59, 6  ;;  %v274_v14 = vld [vmem:[%s8925_s22 + $0x28] sm:$0xf] }
  0x74   : > { %v1231_v12 = vrot.slane %v1229_v1, 7  ;;  %v1280_v13 = vshrl.u32 %v1140_v55, 16  ;;  %v1197_v62 = vrot.slane %v1196_v36, 4  ;;  %v1255_v16 = vrot.slane %v1253_v58, 6  ;;  %287 = vst.msk [vmem:[#allocation3 + $0x14] sm:$0xf] %vm281_vm13, %v274_v14 }
  0x75   : > { %1095 = vrot.lane.b32.xlu1 %v9232_v7, %s8873_s26  ;;  %v1258_v17 = vrot.slane %v1256_v56, 7  ;;  %v1283_v45 = vshll.u32 %v1140_v55, 16  ;;  %v273_v18 = vld [vmem:[%s8925_s22 + $0x20] sm:$0xf]  ;;  %v1250_v19 = vor.u32 %v1249_v54, %v1246_v0  ;;  %v1289_v22 = vshrl.u32 %v1141_v2, 16 }
  0x76   : > { %v1282_v21 = vrot.slane %v1280_v13, 6  ;;  %v1292_v23 = vshll.u32 %v1141_v2, 16  ;;  %v1139_v24 = vld [vmem:[%s8925_s22 + $0x34] sm:$0x7]  ;;  %286 = vst.msk [vmem:[#allocation3 + $0x10] sm:$0xf] %vm281_vm13, %v273_v18  ;;  %v1232_v30 = vor.u32 %v1231_v12, %v1228_v11  ;;  %v1224_v37 = vsel %vm9253_vm0, %v1215_v42, %v1223_v5 }
  0x77   : > { %1093 = vrot.lane.b32.xlu0 %v9241_v26, %s8873_s26  ;;  %v9295_v7 = vrot.slane %v1235_v6, 6  ;;  %v1240_v25 = vrot.slane %v1238_v61, 7  ;;  %v1285_v3 = vrot.slane %v1283_v45, 7  ;;  %v1262_v27 = vshrl.u32 %v1138_v8, 16  ;;  %v1144_v29 = vld [vmem:[%s8925_s22 + $0x48] sm:$0xc] }
  0x78   : > { %v1291_v31 = vrot.slane %v1289_v22, 6  ;;  %v1294_v34 = vrot.slane %v1292_v23, 7  ;;  %v1265_v4 = vshll.u32 %v1138_v8, 16  ;;  %v1206_v26 = vsel %vm9253_vm0, %v1197_v62, %v1205_v10  ;;  %v1145_v35 = vld [vmem:[%s8925_s22 + $0x4c] sm:$0x7] }
  0x79   : > { %1099 = vrot.lane.b32.xlu1 %v9249_v32, %s8873_s26  ;;  %v1259_v38 = vor.u32 %v1258_v17, %v1255_v16  ;;  %v1286_v41 = vor.u32 %v1285_v3, %v1282_v21  ;;  %v1142_v43 = vld [vmem:[%s8925_s22 + $0x40] sm:$0xc]  ;;  %v276_v9 = vld [vmem:[%s8925_s22 + $0x38] sm:$0xf]  ;;  %v1251_v44 = vrot.slane %v1250_v19, 4  ;;  %v1271_v46 = vshrl.u32 %v1139_v24, 16 }
  0x7a   : > { %v1274_v47 = vshll.u32 %v1139_v24, 16  ;;  %v1316_v48 = vshrl.u32 %v1144_v29, 16  ;;  %289 = vst.msk [vmem:[#allocation3 + $0x1c] sm:$0xf] %vm281_vm13, %v276_v9  ;;  %v275_v32 = vld [vmem:[%s8925_s22 + $0x30] sm:$0xf]  ;;  %v1241_v49 = vor.u32 %v1240_v25, %v9295_v7  ;;  %v1295_v36 = vor.u32 %v1294_v34, %v1291_v31 }
  0x7b   : > { %1097 = vrot.lane.b32.xlu0 %v9265_v51, %s8873_s26  ;;  %v1264_v50 = vrot.slane %v1262_v27, 6  ;;  %v1267_v39 = vrot.slane %v1265_v4, 7  ;;  %v1319_v53 = vshll.u32 %v1144_v29, 16  ;;  %v1143_v55 = vld [vmem:[%s8925_s22 + $0x44] sm:$0x7]  ;;  %v1233_v57 = vrot.slane %v1232_v30, 4 }
  0x7c   : > { %288 = vst.msk [vmem:[#allocation3 + $0x18] sm:$0xf] %vm281_vm13, %v275_v32  ;;  %v1325_v58 = vshrl.u32 %v1145_v35, 16  ;;  %v1328_v56 = vshll.u32 %v1145_v35, 16  ;;  %v1148_v59 = vld [vmem:[%s8925_s22 + $0x58] sm:$0xc]  ;;  %v1260_v2 = vsel %vm9253_vm0, %v1251_v44, %v1259_v38 }
  0x7d   : > { %1371 = vrot.lane.b32.xlu1 %v9269_v52, %s8874_s27  ;;  %v1287_v51 = vrot.slane %v1286_v41, 4  ;;  %v1318_v60 = vrot.slane %v1316_v48, 6  ;;  %v1321_v0 = vrot.slane %v1319_v53, 7  ;;  %v1298_v54 = vshrl.u32 %v1142_v43, 16  ;;  %v278_v1 = vld [vmem:[%s8925_s22 + $0x48] sm:$0xf] }
  0x7e   : > { %v1273_v42 = vrot.slane %v1271_v46, 6  ;;  %v1276_v5 = vrot.slane %v1274_v47, 7  ;;  %v1301_v6 = vshll.u32 %v1142_v43, 16  ;;  %291 = vst.msk [vmem:[#allocation3 + $0x24] sm:$0xf] %vm281_vm13, %v278_v1  ;;  %v1268_v52 = vor.u32 %v1267_v39, %v1264_v50 }
  0x7f   : > { %v277_v61 = vld [vmem:[%s8925_s22 + $0x40] sm:$0xf]  ;;  %1369 = vrot.lane.b32.xlu0 %v9279_v63, %s8874_s27  ;;  %v1300_v8 = vrot.slane %v1298_v54, 6  ;;  %v1307_v10 = vshrl.u32 %v1143_v55, 16  ;;  %v1310_v11 = vshll.u32 %v1143_v55, 16  ;;  %v1327_v13 = vrot.slane %v1325_v58, 6 }
  0x80   : > { %v1149_v12 = vld [vmem:[%s8925_s22 + $0x5c] sm:$0x7]  ;;  %290 = vst.msk [vmem:[#allocation3 + $0x20] sm:$0xf] %vm281_vm13, %v277_v61  ;;  %v1330_v14 = vrot.slane %v1328_v56, 7  ;;  %v1303_v62 = vrot.slane %v1301_v6, 7  ;;  %v1242_v45 = vsel %vm9253_vm0, %v1233_v57, %v1241_v49  ;;  %v1296_v63 = vsel %vm9253_vm0, %v1287_v51, %v1295_v36 }
  0x81   : > { %v1352_v16 = vshrl.u32 %v1148_v59, 16  ;;  %v1146_v17 = vld [vmem:[%s8925_s22 + $0x50] sm:$0xc]  ;;  %1375 = vrot.lane.b32.xlu1 %v1224_v37, %s8874_s27  ;;  %v1322_v18 = vor.u32 %v1321_v0, %v1318_v60  ;;  %v1355_v19 = vshll.u32 %v1148_v59, 16  ;;  %v1147_v21 = vld [vmem:[%s8925_s22 + $0x54] sm:$0x7]  ;;  %v1277_v4 = vor.u32 %v1276_v5, %v1273_v42 }
  0x82   : > { %v1309_v22 = vrot.slane %v1307_v10, 6  ;;  %v1361_v24 = vshrl.u32 %v1149_v12, 16  ;;  %v1364_v7 = vshll.u32 %v1149_v12, 16  ;;  %v280_v25 = vld [vmem:[%s8925_s22 + $0x58] sm:$0xf]  ;;  %v1304_v3 = vor.u32 %v1303_v62, %v1300_v8 }
  0x83   : > { %v1354_v23 = vrot.slane %v1352_v16, 6  ;;  %1373 = vrot.lane.b32.xlu0 %v1206_v26, %s8874_s27  ;;  %v1312_v27 = vrot.slane %v1310_v11, 7  ;;  %v1357_v29 = vrot.slane %v1355_v19, 7  ;;  %v1334_v30 = vshrl.u32 %v1146_v17, 16  ;;  %293 = vst.msk [vmem:[#allocation3 + $0x2c] sm:$0xf] %vm281_vm13, %v280_v25 }
  0x84   : > { %v279_v31 = vld [vmem:[%s8925_s22 + $0x50] sm:$0xf]  ;;  %v1269_v34 = vrot.slane %v1268_v52, 4  ;;  %v1331_v37 = vor.u32 %v1330_v14, %v1327_v13  ;;  %v1337_v38 = vshll.u32 %v1146_v17, 16  ;;  %v1323_v41 = vrot.slane %v1322_v18, 4 }
  0x85   : > { %292 = vst.msk [vmem:[#allocation3 + $0x28] sm:$0xf] %vm281_vm13, %v279_v31  ;;  %1379 = vrot.lane.b32.xlu1 %v1260_v2, %s8874_s27  ;;  %v1336_v35 = vrot.slane %v1334_v30, 6  ;;  %v1343_v43 = vshrl.u32 %v1147_v21, 16  ;;  %v1346_v9 = vshll.u32 %v1147_v21, 16  ;;  %v1358_v26 = vor.u32 %v1357_v29, %v1354_v23 }
  0x86   : > { %v1363_v44 = vrot.slane %v1361_v24, 6  ;;  %v1366_v46 = vrot.slane %v1364_v7, 7  ;;  %v1339_v47 = vrot.slane %v1337_v38, 7  ;;  %v1305_v48 = vrot.slane %v1304_v3, 4  ;;  %v1420_v56 = vld [vmem:[%s8925_s22 + $0x8] sm:$0x8] }
  0x87   : > { %1377 = vrot.lane.b32.xlu0 %v1242_v45, %s8874_s27  ;;  %v1313_v32 = vor.u32 %v1312_v27, %v1309_v22  ;;  %v1278_v49 = vsel %vm9253_vm0, %v1269_v34, %v1277_v4  ;;  %v1345_v39 = vrot.slane %v1343_v43, 6  ;;  %v1348_v53 = vrot.slane %v1346_v9, 7  ;;  %v1421_v59 = vld [vmem:[%s8925_s22 + $0xc] sm:$0x7]  ;;  %v1418_v0 = vld [vmem:[%s8925_s22] sm:$0x8] }
  0x88   : > { %v1340_v50 = vor.u32 %v1339_v47, %v1336_v35  ;;  %v1332_v55 = vsel %vm9253_vm0, %v1323_v41, %v1331_v37  ;;  %v1359_v57 = vrot.slane %v1358_v26, 4  ;;  %v1367_v36 = vor.u32 %v1366_v46, %v1363_v44  ;;  %v1419_v54 = vld [vmem:[%s8925_s22 + $0x4] sm:$0x7]  ;;  %v1424_v52 = vld [vmem:[%s8925_s22 + $0x18] sm:$0x8] }
  0x89   : > { %1383 = vrot.lane.b32.xlu1 %v1296_v63, %s8874_s27  ;;  %v1314_v58 = vsel %vm9253_vm0, %v1305_v48, %v1313_v32  ;;  %vm525_vm1 = vcmask 11272   ;;  %v1349_v60 = vor.u32 %v1348_v53, %v1345_v39  ;;  %vm1466_vm2 = vcmask 1040384   ;;  %v1425_v8 = vld [vmem:[%s8925_s22 + $0x1c] sm:$0x7]  ;;  %v1422_v13 = vld [vmem:[%s8925_s22 + $0x10] sm:$0x8] }
  0x8a   : > { %v1341_v51 = vrot.slane %v1340_v50, 4  ;;  %vm1467_vm4 = vcmask 1044484   ;;  %v1368_v2 = vsel %vm9253_vm0, %v1359_v57, %v1367_v36  ;;  %v7822_v42 = vrot.slane %v1420_v56, 11  ;;  %v1423_v14 = vld [vmem:[%s8925_s22 + $0x14] sm:$0x7] }
  0x8b   : > { %1381 = vrot.lane.b32.xlu0 %v1278_v49, %s8874_s27  ;;  %v1475_v5 = vrot.slane %v1421_v59, 7  ;;  %vm9357_vm5 = vmor %vm1466_vm2, %vm1467_vm4  ;;  %v7821_v11 = vrot.slane %v1418_v0, 11  ;;  %v1471_v12 = vrot.slane %v1419_v54, 7  ;;  %v7824_v17 = vrot.slane %v1424_v52, 11  ;;  %v1428_v63 = vld [vmem:[%s8925_s22 + $0x28] sm:$0x8] }
  0x8c   : > { %v1350_v10 = vsel %vm9253_vm0, %v1341_v51, %v1349_v60  ;;  %v1483_v45 = vrot.slane %v1425_v8, 7  ;;  %v1429_v19 = vld [vmem:[%s8925_s22 + $0x2c] sm:$0x7]  ;;  %v1426_v21 = vld [vmem:[%s8925_s22 + $0x20] sm:$0x8]  ;;  %v7823_v24 = vrot.slane %v1422_v13, 11 }
  0x8d   : > { %1387 = vrot.lane.b32.xlu1 %v1332_v55, %s8874_s27  ;;  %v1476_v16 = vsel %vm9357_vm5, %v7822_v42, %v1475_v5  ;;  %v1427_v22 = vld [vmem:[%s8925_s22 + $0x24] sm:$0x7]  ;;  %v1472_v23 = vsel %vm9357_vm5, %v7821_v11, %v1471_v12  ;;  %v1479_v7 = vrot.slane %v1423_v14, 7  ;;  %v1432_v25 = vld [vmem:[%s8925_s22 + $0x38] sm:$0x8]  ;;  %v7826_v34 = vrot.slane %v1428_v63, 11 }
  0x8e   : > { %v494_v1 = vpop.permute.xlu1 %493  ;;  %v1433_v3 = vld [vmem:[%s8925_s22 + $0x3c] sm:$0x7]  ;;  %v1430_v27 = vld [vmem:[%s8925_s22 + $0x30] sm:$0x8]  ;;  %v1431_v29 = vld [vmem:[%s8925_s22 + $0x34] sm:$0x7]  ;;  %v1484_v31 = vsel %vm9357_vm5, %v7824_v17, %v1483_v45 }
  0x8f   : > { %1385 = vrot.lane.b32.xlu0 %v1314_v58, %s8874_s27  ;;  %528 = vst.msk [vmem:[#allocation3 + $0x8] sm:$0xf] %vm525_vm1, %v494_v1  ;;  %v490_v6 = vpop.permute.xlu0 %489  ;;  %v1491_v4 = vrot.slane %v1429_v19, 7  ;;  %v7847_v37 = vld [vmem:[%s8925_s22 + $0x10] sm:$0xf]  ;;  %v7825_v41 = vrot.slane %v1426_v21, 11  ;;  %v1480_v46 = vsel %vm9357_vm5, %v7823_v24, %v1479_v7 }
  0x90   : > { %526 = vst.msk [vmem:[#allocation3] sm:$0xf] %vm525_vm1, %v490_v6  ;;  %v7845_v38 = vld [vmem:[%s8925_s22 + $0x8] sm:$0xf]  ;;  %v1487_v35 = vrot.slane %v1427_v22, 7  ;;  %v7828_v43 = vrot.slane %v1432_v25, 11 }
  0x91   : > { %1391 = vrot.lane.b32.xlu1 %v1368_v2, %s8874_s27  ;;  %v1499_v9 = vrot.slane %v1433_v3, 7  ;;  %v1436_v26 = vld [vmem:[%s8925_s22 + $0x48] sm:$0x8]  ;;  %v1437_v47 = vld [vmem:[%s8925_s22 + $0x4c] sm:$0x7]  ;;  %v1651_v49 = vshrl.u32 %v7847_v37, 16  ;;  %v1492_v36 = vsel %vm9357_vm5, %v7826_v34, %v1491_v4 }
  0x92   : > { %v496_v62 = vpop.permute.xlu1 %495  ;;  %v9396_v48 = vld [vmem:[%s8925_s22 + $0x40] sm:$0x8]  ;;  %v9399_v32 = vld [vmem:[%s8925_s22 + $0x44] sm:$0x7]  ;;  %v1654_v50 = vshll.u32 %v7847_v37, 16  ;;  %v1637_v39 = vshrl.u32 %v7845_v38, 16  ;;  %v1488_v0 = vsel %vm9357_vm5, %v7825_v41, %v1487_v35 }
  0x93   : > { %1389 = vrot.lane.b32.xlu0 %v1350_v10, %s8874_s27  ;;  %529 = vst.msk [vmem:[#allocation3 + $0xc] sm:$0xf] %vm525_vm1, %v496_v62  ;;  %v492_v18 = vpop.permute.xlu0 %491  ;;  %v1640_v53 = vshll.u32 %v7845_v38, 16  ;;  %v7851_v55 = vld [vmem:[%s8925_s22 + $0x20] sm:$0xf]  ;;  %v7827_v58 = vrot.slane %v1430_v27, 11  ;;  %v1500_v54 = vsel %vm9357_vm5, %v7828_v43, %v1499_v9 }
  0x94   : > { %527 = vst.msk [vmem:[#allocation3 + $0x4] sm:$0xf] %vm525_vm1, %v492_v18  ;;  %v1495_v56 = vrot.slane %v1431_v29, 7  ;;  %v1440_v59 = vld [vmem:[%s8925_s22 + $0x58] sm:$0x8]  ;;  %v7830_v1 = vrot.slane %v1436_v26, 11 }
  0x95   : > { %1519 = vrot.lane.b32.xlu1 %v1476_v16, %s8875_s28  ;;  %v1441_v51 = vld [vmem:[%s8925_s22 + $0x5c] sm:$0x7]  ;;  %v1438_v60 = vld [vmem:[%s8925_s22 + $0x50] sm:$0x8]  ;;  %v1507_v2 = vrot.slane %v1437_v47, 7  ;;  %v7829_v52 = vrot.slane %v9396_v48, 11 }
  0x96   : > { %v500_v30 = vpop.permute.xlu1 %499  ;;  %v1439_v42 = vld [vmem:[%s8925_s22 + $0x54] sm:$0x7]  ;;  %v7849_v5 = vld [vmem:[%s8925_s22 + $0x18] sm:$0xf]  ;;  %v1503_v8 = vrot.slane %v9399_v32, 7  ;;  %v1679_v11 = vshrl.u32 %v7851_v55, 16  ;;  %v1496_v45 = vsel %vm9357_vm5, %v7827_v58, %v1495_v56 }
  0x97   : > { %1517 = vrot.lane.b32.xlu0 %v1472_v23, %s8875_s28  ;;  %531 = vst.msk [vmem:[#allocation3 + $0x14] sm:$0xf] %vm525_vm1, %v500_v30  ;;  %v7848_v10 = vld [vmem:[%s8925_s22 + $0x14] sm:$0x1]  ;;  %v1682_v12 = vshll.u32 %v7851_v55, 16  ;;  %v1653_v13 = vrot.slane %v1651_v49, 4  ;;  %v1508_v25 = vsel %vm9357_vm5, %v7830_v1, %v1507_v2 }
  0x98   : > { %v498_v44 = vpop.permute.xlu0 %497  ;;  %v1656_v14 = vrot.slane %v1654_v50, 5  ;;  %v7846_v62 = vld [vmem:[%s8925_s22 + $0xc] sm:$0x1]  ;;  %v1639_v16 = vrot.slane %v1637_v39, 4  ;;  %v1642_v17 = vrot.slane %v1640_v53, 5  ;;  %vm673_vm7 = vcmask 19472  }
  0x99   : > { %530 = vst.msk [vmem:[#allocation3 + $0x10] sm:$0xf] %vm525_vm1, %v498_v44  ;;  %1523 = vrot.lane.b32.xlu1 %v1484_v31, %s8875_s28  ;;  %v1665_v63 = vshrl.u32 %v7849_v5, 16  ;;  %v1668_v18 = vshll.u32 %v7849_v5, 16  ;;  %v7855_v19 = vld [vmem:[%s8925_s22 + $0x30] sm:$0xf]  ;;  %v1504_v43 = vsel %vm9357_vm5, %v7829_v52, %v1503_v8 }
  0x9a   : > { %v504_v57 = vpop.permute.xlu1 %503  ;;  %v7832_v22 = vrot.slane %v1440_v59, 11  ;;  %v1515_v23 = vrot.slane %v1441_v51, 7  ;;  %v7831_v24 = vrot.slane %v1438_v60, 11  ;;  %v1511_v7 = vrot.slane %v1439_v42, 7  ;;  %v7853_v30 = vld [vmem:[%s8925_s22 + $0x28] sm:$0xf] }
  0x9b   : > { %1521 = vrot.lane.b32.xlu0 %v1480_v46, %s8875_s28  ;;  %533 = vst.msk [vmem:[#allocation3 + $0x1c] sm:$0xf] %vm525_vm1, %v504_v57  ;;  %v1660_v3 = vshll.u32 %v7848_v10, 16  ;;  %v1681_v27 = vrot.slane %v1679_v11, 4  ;;  %v1684_v29 = vrot.slane %v1682_v12, 5  ;;  %v1657_v34 = vor.u32 %v1656_v14, %v1653_v13 }
  0x9c   : > { %v502_v6 = vpop.permute.xlu0 %501  ;;  %v1643_v4 = vor.u32 %v1642_v17, %v1639_v16  ;;  %v1646_v37 = vshll.u32 %v7846_v62, 16  ;;  %v7852_v38 = vld [vmem:[%s8925_s22 + $0x24] sm:$0x1]  ;;  %v7850_v41 = vld [vmem:[%s8925_s22 + $0x1c] sm:$0x1]  ;;  %v1707_v35 = vshrl.u32 %v7855_v19, 16  ;;  %v1516_v47 = vsel %vm9357_vm5, %v7832_v22, %v1515_v23 }
  0x9d   : > { %532 = vst.msk [vmem:[#allocation3 + $0x18] sm:$0xf] %vm525_vm1, %v502_v6  ;;  %1527 = vrot.lane.b32.xlu1 %v1492_v36, %s8875_s28  ;;  %v1667_v9 = vrot.slane %v1665_v63, 4  ;;  %v1670_v26 = vrot.slane %v1668_v18, 5  ;;  %v1710_v44 = vshll.u32 %v7855_v19, 16  ;;  %v1512_v48 = vsel %vm9357_vm5, %v7831_v24, %v1511_v7 }
  0x9e   : > { %v7856_v32 = vld [vmem:[%s8925_s22 + $0x34] sm:$0x1]  ;;  %v1693_v49 = vshrl.u32 %v7853_v30, 16  ;;  %v1696_v50 = vshll.u32 %v7853_v30, 16  ;;  %v7859_v39 = vld [vmem:[%s8925_s22 + $0x40] sm:$0xf]  ;;  %v1685_v55 = vor.u32 %v1684_v29, %v1681_v27 }
  0x9f   : > { %1525 = vrot.lane.b32.xlu0 %v1488_v0, %s8875_s28  ;;  %v508_v21 = vpop.permute.xlu1 %507  ;;  %v1662_v53 = vrot.slane %v1660_v3, 5  ;;  %v1688_v57 = vshll.u32 %v7852_v38, 16  ;;  %v1674_v36 = vshll.u32 %v7850_v41, 16  ;;  %v7857_v58 = vld [vmem:[%s8925_s22 + $0x38] sm:$0xf]  ;;  %v1658_v59 = vrot.slane %v1657_v34, 4 }
  0xa0   : > { %535 = vst.msk [vmem:[#allocation3 + $0x24] sm:$0xf] %vm525_vm1, %v508_v21  ;;  %v1644_v51 = vrot.slane %v1643_v4, 4  ;;  %v1648_v60 = vrot.slane %v1646_v37, 5  ;;  %v1709_v0 = vrot.slane %v1707_v35, 4  ;;  %v1671_v1 = vor.u32 %v1670_v26, %v1667_v9 }
  0xa1   : > { %v506_v31 = vpop.permute.xlu0 %505  ;;  %1531 = vrot.lane.b32.xlu1 %v1500_v54, %s8875_s28  ;;  %v7854_v54 = vld [vmem:[%s8925_s22 + $0x2c] sm:$0x1]  ;;  %v1712_v2 = vrot.slane %v1710_v44, 5  ;;  %v1735_v42 = vshrl.u32 %v7859_v39, 16  ;;  %v1738_v5 = vshll.u32 %v7859_v39, 16  ;;  %v1695_v8 = vrot.slane %v1693_v49, 4 }
  0xa2   : > { %534 = vst.msk [vmem:[#allocation3 + $0x20] sm:$0xf] %vm525_vm1, %v506_v31  ;;  %v7863_v6 = vld [vmem:[%s8925_s22 + $0x50] sm:$0xf]  ;;  %v1698_v10 = vrot.slane %v1696_v50, 5  ;;  %v1721_v11 = vshrl.u32 %v7857_v58, 16  ;;  %v1649_v22 = vsel %vm8950_vm3, %v1644_v51, %v1648_v60 }
  0xa3   : > { %1529 = vrot.lane.b32.xlu0 %v1496_v45, %s8875_s28  ;;  %v512_v46 = vpop.permute.xlu1 %511  ;;  %v1724_v12 = vshll.u32 %v7857_v58, 16  ;;  %v1686_v13 = vrot.slane %v1685_v55, 4  ;;  %v1690_v14 = vrot.slane %v1688_v57, 5  ;;  %v9452_v62 = vrot.slane %v1674_v36, 5  ;;  %v7861_v21 = vld [vmem:[%s8925_s22 + $0x48] sm:$0xf] }
  0xa4   : > { %537 = vst.msk [vmem:[#allocation3 + $0x2c] sm:$0xf] %vm525_vm1, %v512_v46  ;;  %v1716_v16 = vshll.u32 %v7856_v32, 16  ;;  %v1663_v45 = vsel %vm8950_vm3, %v1658_v59, %v1662_v53  ;;  %v1702_v63 = vshll.u32 %v7854_v54, 16  ;;  %v1763_v18 = vshrl.u32 %v7863_v6, 16 }
  0xa5   : > { %v510_v56 = vpop.permute.xlu0 %509  ;;  %1535 = vrot.lane.b32.xlu1 %v1508_v25, %s8875_s28  ;;  %v1766_v19 = vshll.u32 %v7863_v6, 16  ;;  %v1713_v23 = vor.u32 %v1712_v2, %v1709_v0  ;;  %v7860_v24 = vld [vmem:[%s8925_s22 + $0x44] sm:$0x1]  ;;  %v1737_v7 = vrot.slane %v1735_v42, 4  ;;  %v1740_v25 = vrot.slane %v1738_v5, 5 }
  0xa6   : > { %536 = vst.msk [vmem:[#allocation3 + $0x28] sm:$0xf] %vm525_vm1, %v510_v56  ;;  %v1672_v27 = vrot.slane %v1671_v1, 4  ;;  %v1699_v29 = vor.u32 %v1698_v10, %v1695_v8  ;;  %v1723_v30 = vrot.slane %v1721_v11, 4  ;;  %v1726_v31 = vrot.slane %v1724_v12, 5 }
  0xa7   : > { %1533 = vrot.lane.b32.xlu0 %v1504_v43, %s8875_s28  ;;  %v640_v52 = vpop.permute.xlu1 %639  ;;  %v7867_v34 = vld [vmem:[%s8925_s22 + $0x60] sm:$0xf]  ;;  %v1691_v4 = vsel %vm8950_vm3, %v1686_v13, %v1690_v14  ;;  %v1718_v37 = vrot.slane %v1716_v16, 5  ;;  %v7858_v38 = vld [vmem:[%s8925_s22 + $0x3c] sm:$0x1]  ;;  %v1749_v41 = vshrl.u32 %v7861_v21, 16  ;;  %v1741_v32 = vor.u32 %v1740_v25, %v1737_v7 }
  0xa8   : > { %675 = vst.msk [vmem:[#allocation3 + $0x4] sm:$0xf] %vm673_vm7, %v640_v52  ;;  %v1752_v35 = vshll.u32 %v7861_v21, 16  ;;  %v1704_v9 = vrot.slane %v1702_v63, 5  ;;  %v1744_v26 = vshll.u32 %v7860_v24, 16  ;;  %v1765_v44 = vrot.slane %v1763_v18, 4 }
  0xa9   : > { %v638_v17 = vpop.permute.xlu0 %637  ;;  %1539 = vrot.lane.b32.xlu1 %v1516_v47, %s8875_s28  ;;  %v1768_v46 = vrot.slane %v1766_v19, 5  ;;  %v7865_v47 = vld [vmem:[%s8925_s22 + $0x58] sm:$0xf]  ;;  %v7864_v49 = vld [vmem:[%s8925_s22 + $0x54] sm:$0x1]  ;;  %v1791_v50 = vshrl.u32 %v7867_v34, 16  ;;  %v1677_v55 = vsel %vm8950_vm3, %v1672_v27, %v9452_v62  ;;  %v1727_v36 = vor.u32 %v1726_v31, %v1723_v30 }
  0xaa   : > { %674 = vst.msk [vmem:[#allocation3] sm:$0xf] %vm673_vm7, %v638_v17  ;;  %v1794_v39 = vshll.u32 %v7867_v34, 16  ;;  %v1700_v57 = vrot.slane %v1699_v29, 4  ;;  %v1730_v58 = vshll.u32 %v7858_v38, 16  ;;  %v1751_v59 = vrot.slane %v1749_v41, 4 }
  0xab   : > { %1537 = vrot.lane.b32.xlu0 %v1512_v48, %s8875_s28  ;;  %v644_v3 = vpop.permute.xlu1 %643  ;;  %v1714_v48 = vrot.slane %v1713_v23, 4  ;;  %v7862_v56 = vld [vmem:[%s8925_s22 + $0x4c] sm:$0x1]  ;;  %v1754_v51 = vrot.slane %v1752_v35, 5  ;;  %v1777_v60 = vshrl.u32 %v7865_v47, 16  ;;  %v1780_v0 = vshll.u32 %v7865_v47, 16 }
  0xac   : > { %677 = vst.msk [vmem:[#allocation3 + $0xc] sm:$0xf] %vm673_vm7, %v644_v3  ;;  %v1746_v1 = vrot.slane %v1744_v26, 5  ;;  %v1769_v2 = vor.u32 %v1768_v46, %v1765_v44  ;;  %v1772_v42 = vshll.u32 %v7864_v49, 16  ;;  %v1742_v6 = vrot.slane %v1741_v32, 4 }
  0xad   : > { %v642_v43 = vpop.permute.xlu0 %641  ;;  %1806 = vrot.lane.b32.xlu1 %v1663_v45, %s8870_s23  ;;  %v1719_v5 = vsel %vm8950_vm3, %v1714_v48, %v1718_v37  ;;  %v7868_v52 = vld [vmem:[%s8925_s22 + $0x64] sm:$0x1]  ;;  %v1793_v8 = vrot.slane %v1791_v50, 4  ;;  %v1796_v10 = vrot.slane %v1794_v39, 5  ;;  %v1705_v12 = vsel %vm8950_vm3, %v1700_v57, %v1704_v9  ;;  %v7866_v62 = vld [vmem:[%s8925_s22 + $0x5c] sm:$0x1] }
  0xae   : > { %676 = vst.msk [vmem:[#allocation3 + $0x8] sm:$0xf] %vm673_vm7, %v642_v43  ;;  %v1732_v13 = vrot.slane %v1730_v58, 5  ;;  %v1758_v14 = vshll.u32 %v7862_v56, 16  ;;  %v1728_v16 = vrot.slane %v1727_v36, 4  ;;  %v1755_v17 = vor.u32 %v1754_v51, %v1751_v59 }
  0xaf   : > { %1804 = vrot.lane.b32.xlu0 %v1649_v22, %s8870_s23  ;;  %v648_v53 = vpop.permute.xlu1 %647  ;;  %v1779_v45 = vrot.slane %v1777_v60, 4  ;;  %v1782_v63 = vrot.slane %v1780_v0, 5  ;;  %v1770_v19 = vrot.slane %v1769_v2, 4  ;;  %v1774_v21 = vrot.slane %v1772_v42, 5  ;;  %v7871_v25 = vld [vmem:[%s8925_s22 + $0x10] sm:$0xe] }
  0xb0   : > { %679 = vst.msk [vmem:[#allocation3 + $0x14] sm:$0xf] %vm673_vm7, %v648_v53  ;;  %v1800_v22 = vshll.u32 %v7868_v52, 16  ;;  %v1747_v23 = vsel %vm8950_vm3, %v1742_v6, %v1746_v1  ;;  %v1797_v24 = vor.u32 %v1796_v10, %v1793_v8  ;;  %v1786_v7 = vshll.u32 %v7866_v62, 16  ;;  %v7872_v27 = vld [vmem:[%s8925_s22 + $0x14] sm:$0x1] }
  0xb1   : > { %v646_v54 = vpop.permute.xlu0 %645  ;;  %1810 = vrot.lane.b32.xlu1 %v1691_v4, %s8870_s23  ;;  %v7869_v29 = vld [vmem:[%s8925_s22 + $0x8] sm:$0xe]  ;;  %v7870_v30 = vld [vmem:[%s8925_s22 + $0xc] sm:$0x1]  ;;  %v1733_v31 = vsel %vm8950_vm3, %v1728_v16, %v1732_v13  ;;  %v1756_v34 = vrot.slane %v1755_v17, 4  ;;  %v1760_v4 = vrot.slane %v1758_v14, 5  ;;  %v1783_v37 = vor.u32 %v1782_v63, %v1779_v45 }
  0xb2   : > { %678 = vst.msk [vmem:[#allocation3 + $0x10] sm:$0xf] %vm673_vm7, %v646_v54  ;;  %v7875_v38 = vld [vmem:[%s8925_s22 + $0x20] sm:$0xe]  ;;  %v7876_v41 = vld [vmem:[%s8925_s22 + $0x24] sm:$0x1]  ;;  %v1775_v43 = vsel %vm8950_vm3, %v1770_v19, %v1774_v21 }
  0xb3   : > { %1808 = vrot.lane.b32.xlu0 %v1677_v55, %s8870_s23  ;;  %v652_v11 = vpop.permute.xlu1 %651  ;;  %vm965_vm8 = vcmask 27672   ;;  %v1802_v9 = vrot.slane %v1800_v22, 5  ;;  %v7873_v26 = vld [vmem:[%s8925_s22 + $0x18] sm:$0xe]  ;;  %v7874_v44 = vld [vmem:[%s8925_s22 + $0x1c] sm:$0x1]  ;;  %v1761_v59 = vsel %vm8950_vm3, %v1756_v34, %v1760_v4 }
  0xb4   : > { %681 = vst.msk [vmem:[#allocation3 + $0x1c] sm:$0xf] %vm673_vm7, %v652_v11  ;;  %v1798_v46 = vrot.slane %v1797_v24, 4  ;;  %v1788_v47 = vrot.slane %v1786_v7, 5  ;;  %v7894_v48 = vrot.slane %v7871_v25, 9  ;;  %v1906_v32 = vrot.slane %v7872_v27, 5 }
  0xb5   : > { %v650_v18 = vpop.permute.xlu0 %649  ;;  %1814 = vrot.lane.b32.xlu1 %v1719_v5, %s8870_s23  ;;  %v9509_v49 = vld [vmem:[%s8925_s22 + $0x30] sm:$0xe]  ;;  %v9512_v50 = vld [vmem:[%s8925_s22 + $0x34] sm:$0x1]  ;;  %v7893_v53 = vrot.slane %v7869_v29, 9  ;;  %v1902_v55 = vrot.slane %v7870_v30, 5 }
  0xb6   : > { %680 = vst.msk [vmem:[#allocation3 + $0x18] sm:$0xf] %vm673_vm7, %v650_v18  ;;  %v7896_v57 = vrot.slane %v7875_v38, 9  ;;  %v1914_v36 = vrot.slane %v7876_v41, 5  ;;  %v9516_v58 = vld [vmem:[%s8925_s22 + $0x28] sm:$0xe]  ;;  %v1803_v52 = vsel %vm8950_vm3, %v1798_v46, %v1802_v9  ;;  %v1907_v8 = vsel %vm9012_vm6, %v7894_v48, %v1906_v32 }
  0xb7   : > { %1812 = vrot.lane.b32.xlu0 %v1705_v12, %s8870_s23  ;;  %v656_v3 = vpop.permute.xlu1 %655  ;;  %v9519_v56 = vld [vmem:[%s8925_s22 + $0x2c] sm:$0x1]  ;;  %v1784_v51 = vrot.slane %v1783_v37, 4  ;;  %v7895_v60 = vrot.slane %v7873_v26, 9  ;;  %v1910_v0 = vrot.slane %v7874_v44, 5  ;;  %v1903_v14 = vsel %vm9012_vm6, %v7893_v53, %v1902_v55 }
  0xb8   : > { %683 = vst.msk [vmem:[#allocation3 + $0x24] sm:$0xf] %vm673_vm7, %v656_v3  ;;  %v7883_v54 = vld [vmem:[%s8925_s22 + $0x40] sm:$0xe]  ;;  %v7884_v1 = vld [vmem:[%s8925_s22 + $0x44] sm:$0x1]  ;;  %v9549_v62 = vsel %vm9012_vm6, %v7896_v57, %v1914_v36 }
  0xb9   : > { %v654_v35 = vpop.permute.xlu0 %653  ;;  %1818 = vrot.lane.b32.xlu1 %v1747_v23, %s8870_s23  ;;  %v7881_v42 = vld [vmem:[%s8925_s22 + $0x38] sm:$0xe]  ;;  %v7882_v5 = vld [vmem:[%s8925_s22 + $0x3c] sm:$0x1]  ;;  %v9530_v6 = vld [vmem:[%s8925_s22 + $0x50] sm:$0xe]  ;;  %v1789_v19 = vsel %vm8950_vm3, %v1784_v51, %v1788_v47  ;;  %v9561_v21 = vsel %vm9012_vm6, %v7895_v60, %v1910_v0 }
  0xba   : > { %682 = vst.msk [vmem:[#allocation3 + $0x20] sm:$0xf] %vm673_vm7, %v654_v35  ;;  %v7888_v10 = vld [vmem:[%s8925_s22 + $0x54] sm:$0x1]  ;;  %v9539_v11 = vld [vmem:[%s8925_s22 + $0x48] sm:$0xe] }
  0xbb   : > { %1816 = vrot.lane.b32.xlu0 %v1733_v31, %s8870_s23  ;;  %v660_v39 = vpop.permute.xlu1 %659  ;;  %v9542_v12 = vld [vmem:[%s8925_s22 + $0x4c] sm:$0x1]  ;;  %v7898_v16 = vrot.slane %v9509_v49, 9  ;;  %v1922_v17 = vrot.slane %v9512_v50, 5  ;;  %v7891_v45 = vld [vmem:[%s8925_s22 + $0x60] sm:$0xe] }
  0xbc   : > { %685 = vst.msk [vmem:[#allocation3 + $0x2c] sm:$0xf] %vm673_vm7, %v660_v39  ;;  %v7892_v63 = vld [vmem:[%s8925_s22 + $0x64] sm:$0x1]  ;;  %v7907_v18 = vld [vmem:[%s8925_s22 + $0x10] sm:$0xe] }
  0xbd   : > { %v658_v2 = vpop.permute.xlu0 %657  ;;  %1822 = vrot.lane.b32.xlu1 %v1775_v43, %s8870_s23  ;;  %v7897_v22 = vrot.slane %v9516_v58, 9  ;;  %v1918_v23 = vrot.slane %v9519_v56, 5  ;;  %v7889_v24 = vld [vmem:[%s8925_s22 + $0x58] sm:$0xe]  ;;  %v7908_v7 = vld [vmem:[%s8925_s22 + $0x14] sm:$0x3]  ;;  %v1923_v39 = vsel %vm9012_vm6, %v7898_v16, %v1922_v17 }
  0xbe   : > { %684 = vst.msk [vmem:[#allocation3 + $0x28] sm:$0xf] %vm673_vm7, %v658_v2  ;;  %v7900_v3 = vrot.slane %v7883_v54, 9  ;;  %v1930_v27 = vrot.slane %v7884_v1, 5  ;;  %v7899_v29 = vrot.slane %v7881_v42, 9  ;;  %v1926_v30 = vrot.slane %v7882_v5, 5 }
  0xbf   : > { %1820 = vrot.lane.b32.xlu0 %v1761_v59, %s8870_s23  ;;  %v932_v13 = vpop.permute.xlu1 %931  ;;  %v7890_v31 = vld [vmem:[%s8925_s22 + $0x5c] sm:$0x1]  ;;  %v7902_v34 = vrot.slane %v9530_v6, 9  ;;  %v1938_v4 = vrot.slane %v7888_v10, 5  ;;  %v2039_v37 = vshrl.u32 %v7907_v18, 16  ;;  %v2042_v38 = vshll.u32 %v7907_v18, 16 }
  0xc0   : > { %967 = vst.msk [vmem:[#allocation3 + $0x4] sm:$0xf] %vm965_vm8, %v932_v13  ;;  %v7905_v41 = vld [vmem:[%s8925_s22 + $0x8] sm:$0xe]  ;;  %v7901_v43 = vrot.slane %v9539_v11, 9  ;;  %v1934_v9 = vrot.slane %v9542_v12, 5  ;;  %v1919_v53 = vsel %vm9012_vm6, %v7897_v22, %v1918_v23  ;;  %v9584_v55 = vsel %vm9012_vm6, %v7900_v3, %v1930_v27 }
  0xc1   : > { %v930_v25 = vpop.permute.xlu0 %929  ;;  %1826 = vrot.lane.b32.xlu1 %v1803_v52, %s8870_s23  ;;  %v2048_v26 = vshrl.u32 %v7908_v7, 16  ;;  %v2051_v44 = vshll.u32 %v7908_v7, 16  ;;  %v7904_v46 = vrot.slane %v7891_v45, 9  ;;  %v1946_v47 = vrot.slane %v7892_v63, 5  ;;  %v7911_v49 = vld [vmem:[%s8925_s22 + $0x20] sm:$0xe] }
  0xc2   : > { %966 = vst.msk [vmem:[#allocation3] sm:$0xf] %vm965_vm8, %v930_v25  ;;  %v7903_v48 = vrot.slane %v7889_v24, 9  ;;  %v1942_v32 = vrot.slane %v7890_v31, 5  ;;  %v9587_v57 = vld [vmem:[%s8925_s22 + $0xc] sm:$0x3]  ;;  %v9592_v58 = vsel %vm9012_vm6, %v7899_v29, %v1926_v30  ;;  %v9602_v54 = vsel %vm9012_vm6, %v7902_v34, %v1938_v4 }
  0xc3   : > { %1824 = vrot.lane.b32.xlu0 %v1789_v19, %s8870_s23  ;;  %v936_v35 = vpop.permute.xlu1 %935  ;;  %v2021_v36 = vshrl.u32 %v7905_v41, 16  ;;  %v9594_v56 = vrot.slane %v2039_v37, 5  ;;  %v9596_v59 = vrot.slane %v2042_v38, 6  ;;  %v2024_v51 = vshll.u32 %v7905_v41, 16  ;;  %v7909_v60 = vld [vmem:[%s8925_s22 + $0x18] sm:$0xe] }
  0xc4   : > { %969 = vst.msk [vmem:[#allocation3 + $0xc] sm:$0xf] %vm965_vm8, %v936_v35  ;;  %v9604_v1 = vrot.slane %v2048_v26, 5  ;;  %v9606_v2 = vrot.slane %v2051_v44, 6  ;;  %v2075_v42 = vshrl.u32 %v7911_v49, 16  ;;  %v9612_v6 = vsel %vm9012_vm6, %v7901_v43, %v1934_v9 }
  0xc5   : > { %v934_v50 = vpop.permute.xlu0 %933  ;;  %1950 = vrot.lane.b32.xlu1 %v1907_v8, %s8871_s24  ;;  %v7915_v5 = vld [vmem:[%s8925_s22 + $0x30] sm:$0xe]  ;;  %v9616_v52 = vsel %vm9012_vm6, %v7904_v46, %v1946_v47  ;;  %v9620_v8 = vsel %vm9012_vm6, %v7903_v48, %v1942_v32  ;;  %v7912_v10 = vld [vmem:[%s8925_s22 + $0x24] sm:$0x3]  ;;  %v2078_v11 = vshll.u32 %v7911_v49, 16  ;;  %v9625_v13 = vrot.slane %v2021_v36, 5 }
  0xc6   : > { %968 = vst.msk [vmem:[#allocation3 + $0x8] sm:$0xf] %vm965_vm8, %v934_v50  ;;  %v2057_v16 = vshrl.u32 %v7909_v60, 16  ;;  %v2060_v17 = vshll.u32 %v7909_v60, 16  ;;  %v7913_v45 = vld [vmem:[%s8925_s22 + $0x28] sm:$0xe]  ;;  %v2045_v63 = vor.u32 %v9596_v59, %v9594_v56  ;;  %v2054_v24 = vor.u32 %v9606_v2, %v9604_v1 }
  0xc7   : > { %1948 = vrot.lane.b32.xlu0 %v1903_v14, %s8871_s24  ;;  %v940_v0 = vpop.permute.xlu1 %939  ;;  %v2030_v14 = vshrl.u32 %v9587_v57, 16  ;;  %v9632_v18 = vrot.slane %v2024_v51, 6  ;;  %v7910_v19 = vld [vmem:[%s8925_s22 + $0x1c] sm:$0x3]  ;;  %v2111_v22 = vshrl.u32 %v7915_v5, 16  ;;  %v2114_v23 = vshll.u32 %v7915_v5, 16 }
  0xc8   : > { %971 = vst.msk [vmem:[#allocation3 + $0x14] sm:$0xf] %vm965_vm8, %v940_v0  ;;  %v2033_v7 = vshll.u32 %v9587_v57, 16  ;;  %v2077_v25 = vrot.slane %v2075_v42, 5  ;;  %v2084_v3 = vshrl.u32 %v7912_v10, 16  ;;  %v2080_v29 = vrot.slane %v2078_v11, 6 }
  0xc9   : > { %v938_v12 = vpop.permute.xlu0 %937  ;;  %1954 = vrot.lane.b32.xlu1 %v9549_v62, %s8871_s24  ;;  %v7916_v27 = vld [vmem:[%s8925_s22 + $0x34] sm:$0x3]  ;;  %v2087_v30 = vshll.u32 %v7912_v10, 16  ;;  %v7914_v31 = vld [vmem:[%s8925_s22 + $0x2c] sm:$0x3]  ;;  %v2093_v34 = vshrl.u32 %v7913_v45, 16  ;;  %v2027_v47 = vor.u32 %v9632_v18, %v9625_v13 }
  0xca   : > { %970 = vst.msk [vmem:[#allocation3 + $0x10] sm:$0xf] %vm965_vm8, %v938_v12  ;;  %v2096_v4 = vshll.u32 %v7913_v45, 16  ;;  %vm1113_vm10 = vcmask 35872   ;;  %v2062_v38 = vrot.slane %v2060_v17, 6  ;;  %v2066_v41 = vshrl.u32 %v7910_v19, 16 }
  0xcb   : > { %1952 = vrot.lane.b32.xlu0 %v9561_v21, %s8871_s24  ;;  %v944_v62 = vpop.permute.xlu1 %943  ;;  %v2059_v21 = vrot.slane %v2057_v16, 5  ;;  %v2069_v35 = vshll.u32 %v7910_v19, 16  ;;  %v2113_v43 = vrot.slane %v2111_v22, 5  ;;  %v2116_v9 = vrot.slane %v2114_v23, 6  ;;  %v7919_v56 = vld [vmem:[%s8925_s22 + $0x40] sm:$0xe] }
  0xcc   : > { %973 = vst.msk [vmem:[#allocation3 + $0x1c] sm:$0xf] %vm965_vm8, %v944_v62  ;;  %v2120_v26 = vshrl.u32 %v7916_v27, 16  ;;  %v2123_v44 = vshll.u32 %v7916_v27, 16  ;;  %v9648_v48 = vrot.slane %v2030_v14, 5  ;;  %v2035_v32 = vrot.slane %v2033_v7, 6 }
  0xcd   : > { %v942_v37 = vpop.permute.xlu0 %941  ;;  %1958 = vrot.lane.b32.xlu1 %v1923_v39, %s8871_s24  ;;  %v2102_v49 = vshrl.u32 %v7914_v31, 16  ;;  %v9651_v50 = vrot.slane %v2084_v3, 5  ;;  %v2095_v39 = vrot.slane %v2093_v34, 5  ;;  %v2098_v57 = vrot.slane %v2096_v4, 6  ;;  %v7917_v42 = vld [vmem:[%s8925_s22 + $0x38] sm:$0xe] }
  0xce   : > { %972 = vst.msk [vmem:[#allocation3 + $0x18] sm:$0xf] %vm965_vm8, %v942_v37  ;;  %v2105_v36 = vshll.u32 %v7914_v31, 16  ;;  %v2089_v51 = vrot.slane %v2087_v30, 6  ;;  %v2063_v60 = vor.u32 %v2062_v38, %v2059_v21  ;;  %v2068_v0 = vrot.slane %v2066_v41, 5 }
  0xcf   : > { %1956 = vrot.lane.b32.xlu0 %v1919_v53, %s8871_s24  ;;  %v948_v46 = vpop.permute.xlu1 %947  ;;  %v2081_v53 = vor.u32 %v2080_v29, %v2077_v25  ;;  %v2071_v5 = vrot.slane %v2069_v35, 6  ;;  %v2117_v10 = vor.u32 %v2116_v9, %v2113_v43  ;;  %v2122_v11 = vrot.slane %v2120_v26, 5  ;;  %v7920_v19 = vld [vmem:[%s8925_s22 + $0x44] sm:$0x3]  ;;  %v7923_v31 = vld [vmem:[%s8925_s22 + $0x50] sm:$0xe] }
  0xd0   : > { %975 = vst.msk [vmem:[#allocation3 + $0x24] sm:$0xf] %vm965_vm8, %v948_v46  ;;  %v2125_v12 = vrot.slane %v2123_v44, 6  ;;  %v2046_v14 = vrot.slane %v2045_v63, 4  ;;  %v2104_v16 = vrot.slane %v2102_v49, 5  ;;  %v2147_v17 = vshrl.u32 %v7919_v56, 16 }
  0xd1   : > { %v946_v59 = vpop.permute.xlu0 %945  ;;  %1962 = vrot.lane.b32.xlu1 %v9584_v55, %s8871_s24  ;;  %v2150_v55 = vshll.u32 %v7919_v56, 16  ;;  %v2099_v45 = vor.u32 %v2098_v57, %v2095_v39  ;;  %v2107_v18 = vrot.slane %v2105_v36, 6  ;;  %v2129_v22 = vshrl.u32 %v7917_v42, 16  ;;  %v7918_v38 = vld [vmem:[%s8925_s22 + $0x3c] sm:$0x3] }
  0xd2   : > { %974 = vst.msk [vmem:[#allocation3 + $0x20] sm:$0xf] %vm965_vm8, %v946_v59  ;;  %v2132_v23 = vshll.u32 %v7917_v42, 16  ;;  %v2028_v7 = vrot.slane %v2027_v47, 4  ;;  %v2082_v63 = vrot.slane %v2081_v53, 4  ;;  %v2090_v25 = vor.u32 %v2089_v51, %v9651_v50 }
  0xd3   : > { %1960 = vrot.lane.b32.xlu0 %v9592_v58, %s8871_s24  ;;  %v952_v13 = vpop.permute.xlu1 %951  ;;  %v2036_v58 = vor.u32 %v2035_v32, %v9648_v48  ;;  %v2064_v3 = vrot.slane %v2063_v60, 4  ;;  %v2072_v27 = vor.u32 %v2071_v5, %v2068_v0  ;;  %v2118_v29 = vrot.slane %v2117_v10, 4  ;;  %v7921_v26 = vld [vmem:[%s8925_s22 + $0x48] sm:$0xe]  ;;  %v7924_v2 = vld [vmem:[%s8925_s22 + $0x54] sm:$0x3] }
  0xd4   : > { %977 = vst.msk [vmem:[#allocation3 + $0x2c] sm:$0xf] %vm965_vm8, %v952_v13  ;;  %v2126_v30 = vor.u32 %v2125_v12, %v2122_v11  ;;  %v2152_v4 = vrot.slane %v2150_v55, 6  ;;  %v2156_v37 = vshrl.u32 %v7920_v19, 16  ;;  %v2159_v21 = vshll.u32 %v7920_v19, 16 }
  0xd5   : > { %v950_v62 = vpop.permute.xlu0 %949  ;;  %1966 = vrot.lane.b32.xlu1 %v9602_v54, %s8871_s24  ;;  %v2149_v54 = vrot.slane %v2147_v17, 5  ;;  %v2100_v41 = vrot.slane %v2099_v45, 4  ;;  %v2108_v35 = vor.u32 %v2107_v18, %v2104_v16  ;;  %v2131_v43 = vrot.slane %v2129_v22, 5  ;;  %v7927_v56 = vld [vmem:[%s8925_s22 + $0x60] sm:$0xe] }
  0xd6   : > { %976 = vst.msk [vmem:[#allocation3 + $0x28] sm:$0xf] %vm965_vm8, %v950_v62  ;;  %v2134_v9 = vrot.slane %v2132_v23, 6  ;;  %v2037_v46 = vsel %vm9084_vm9, %v2028_v7, %v2036_v58  ;;  %v2183_v47 = vshrl.u32 %v7923_v31, 16  ;;  %v2186_v48 = vshll.u32 %v7923_v31, 16 }
  0xd7   : > { %1964 = vrot.lane.b32.xlu0 %v9612_v6, %s8871_s24  ;;  %v1080_v34 = vpop.permute.xlu1 %1079  ;;  %v2055_v6 = vsel %vm9084_vm9, %v2046_v14, %v2054_v24  ;;  %v2091_v32 = vsel %vm9084_vm9, %v2082_v63, %v2090_v25  ;;  %v2138_v49 = vshrl.u32 %v7918_v38, 16  ;;  %v2141_v1 = vshll.u32 %v7918_v38, 16  ;;  %v7922_v0 = vld [vmem:[%s8925_s22 + $0x4c] sm:$0x3]  ;;  %v7925_v12 = vld [vmem:[%s8925_s22 + $0x58] sm:$0xe] }
  0xd8   : > { %1115 = vst.msk [vmem:[#allocation3 + $0x4] sm:$0xf] %vm1113_vm10, %v1080_v34  ;;  %v2127_v50 = vsel %vm9084_vm9, %v2118_v29, %v2126_v30  ;;  %v9692_v39 = vrot.slane %v2156_v37, 5  ;;  %v2165_v57 = vshrl.u32 %v7921_v26, 16  ;;  %v2168_v36 = vshll.u32 %v7921_v26, 16 }
  0xd9   : > { %v1078_v44 = vpop.permute.xlu0 %1077  ;;  %1970 = vrot.lane.b32.xlu1 %v9616_v52, %s8871_s24  ;;  %v2073_v52 = vsel %vm9084_vm9, %v2064_v3, %v2072_v27  ;;  %v2109_v59 = vsel %vm9084_vm9, %v2100_v41, %v2108_v35  ;;  %v2153_v53 = vor.u32 %v2152_v4, %v2149_v54  ;;  %v2161_v51 = vrot.slane %v2159_v21, 6  ;;  %v7928_v23 = vld [vmem:[%s8925_s22 + $0x64] sm:$0x3]  ;;  %v7926_v31 = vld [vmem:[%s8925_s22 + $0x5c] sm:$0x3] }
  0xda   : > { %1114 = vst.msk [vmem:[#allocation3] sm:$0xf] %vm1113_vm10, %v1078_v44  ;;  %v2135_v60 = vor.u32 %v2134_v9, %v2131_v43  ;;  %v2185_v42 = vrot.slane %v2183_v47, 5  ;;  %v2188_v5 = vrot.slane %v2186_v48, 6  ;;  %v2192_v10 = vshrl.u32 %v7924_v2, 16 }
  0xdb   : > { %1968 = vrot.lane.b32.xlu0 %v9620_v8, %s8871_s24  ;;  %v1084_v24 = vpop.permute.xlu1 %1083  ;;  %v2195_v11 = vshll.u32 %v7924_v2, 16  ;;  %v2140_v13 = vrot.slane %v2138_v49, 5  ;;  %v2143_v14 = vrot.slane %v2141_v1, 6  ;;  %v2219_v16 = vshrl.u32 %v7927_v56, 16  ;;  %v7931_v2 = vld [vmem:[%s8925_s22 + $0x10] sm:$0xc] }
  0xdc   : > { %1117 = vst.msk [vmem:[#allocation3 + $0xc] sm:$0xf] %vm1113_vm10, %v1084_v24  ;;  %v2222_v17 = vshll.u32 %v7927_v56, 16  ;;  %v2167_v45 = vrot.slane %v2165_v57, 5  ;;  %v2170_v18 = vrot.slane %v2168_v36, 6  ;;  %v2174_v19 = vshrl.u32 %v7922_v0, 16 }
  0xdd   : > { %v1082_v8 = vpop.permute.xlu0 %1081  ;;  %2238 = vrot.lane.b32.xlu1 %v2055_v6, %s8872_s25  ;;  %v2177_v22 = vshll.u32 %v7922_v0, 16  ;;  %v2154_v62 = vrot.slane %v2153_v53, 4  ;;  %v2162_v7 = vor.u32 %v2161_v51, %v9692_v39  ;;  %v2201_v58 = vshrl.u32 %v7925_v12, 16  ;;  %v7932_v24 = vld [vmem:[%s8925_s22 + $0x14] sm:$0x3] }
  0xde   : > { %1116 = vst.msk [vmem:[#allocation3 + $0x8] sm:$0xf] %vm1113_vm10, %v1082_v8  ;;  %v2204_v63 = vshll.u32 %v7925_v12, 16  ;;  %v2136_v3 = vrot.slane %v2135_v60, 4  ;;  %v2189_v27 = vor.u32 %v2188_v5, %v2185_v42  ;;  %v2194_v29 = vrot.slane %v2192_v10, 5 }
  0xdf   : > { %2236 = vrot.lane.b32.xlu0 %v2037_v46, %s8872_s25  ;;  %v1088_v55 = vpop.permute.xlu1 %1087  ;;  %v2197_v30 = vrot.slane %v2195_v11, 6  ;;  %v2221_v34 = vrot.slane %v2219_v16, 5  ;;  %v2224_v54 = vrot.slane %v2222_v17, 6  ;;  %v2228_v4 = vshrl.u32 %v7928_v23, 16  ;;  %v7929_v36 = vld [vmem:[%s8925_s22 + $0x8] sm:$0xc] }
  0xe0   : > { %1119 = vst.msk [vmem:[#allocation3 + $0x14] sm:$0xf] %vm1113_vm10, %v1088_v55  ;;  %v2231_v37 = vshll.u32 %v7928_v23, 16  ;;  %v2144_v38 = vor.u32 %v2143_v14, %v2140_v13  ;;  %v2171_v41 = vor.u32 %v2170_v18, %v2167_v45  ;;  %v2176_v35 = vrot.slane %v2174_v19, 5  ;;  %v7930_v56 = vld [vmem:[%s8925_s22 + $0xc] sm:$0x3] }
  0xe1   : > { %v1086_v25 = vpop.permute.xlu0 %1085  ;;  %2242 = vrot.lane.b32.xlu1 %v2091_v32, %s8872_s25  ;;  %v2179_v43 = vrot.slane %v2177_v22, 6  ;;  %v2203_v9 = vrot.slane %v2201_v58, 5  ;;  %v2206_v26 = vrot.slane %v2204_v63, 6  ;;  %v2210_v44 = vshrl.u32 %v7926_v31, 16  ;;  %v7935_v8 = vld [vmem:[%s8925_s22 + $0x20] sm:$0xc] }
  0xe2   : > { %1118 = vst.msk [vmem:[#allocation3 + $0x10] sm:$0xf] %vm1113_vm10, %v1086_v25  ;;  %v2213_v6 = vshll.u32 %v7926_v31, 16  ;;  %v2190_v47 = vrot.slane %v2189_v27, 4  ;;  %v2198_v48 = vor.u32 %v2197_v30, %v2194_v29  ;;  %v2163_v32 = vsel %vm9084_vm9, %v2154_v62, %v2162_v7  ;;  %v7936_v42 = vld [vmem:[%s8925_s22 + $0x24] sm:$0x3] }
  0xe3   : > { %2240 = vrot.lane.b32.xlu0 %v2073_v52, %s8872_s25  ;;  %v1092_v21 = vpop.permute.xlu1 %1091  ;;  %v2225_v52 = vor.u32 %v2224_v54, %v2221_v34  ;;  %v2230_v49 = vrot.slane %v2228_v4, 5  ;;  %v2233_v1 = vrot.slane %v2231_v37, 6  ;;  %v2172_v57 = vrot.slane %v2171_v41, 4  ;;  %v7933_v10 = vld [vmem:[%s8925_s22 + $0x18] sm:$0xc] }
  0xe4   : > { %1121 = vst.msk [vmem:[#allocation3 + $0x1c] sm:$0xf] %vm1113_vm10, %v1092_v21  ;;  %v2180_v53 = vor.u32 %v2179_v43, %v2176_v35  ;;  %v2207_v51 = vor.u32 %v2206_v26, %v2203_v9  ;;  %v2212_v60 = vrot.slane %v2210_v44, 5  ;;  %v2215_v0 = vrot.slane %v2213_v6, 6  ;;  %v7934_v11 = vld [vmem:[%s8925_s22 + $0x1c] sm:$0x3] }
  0xe5   : > { %v1090_v46 = vpop.permute.xlu0 %1089  ;;  %2246 = vrot.lane.b32.xlu1 %v2127_v50, %s8872_s25  ;;  %v2145_v50 = vsel %vm9084_vm9, %v2136_v3, %v2144_v38  ;;  %v2199_v5 = vsel %vm9084_vm9, %v2190_v47, %v2198_v48  ;;  %v2226_v12 = vrot.slane %v2225_v52, 4  ;;  %v2234_v13 = vor.u32 %v2233_v1, %v2230_v49  ;;  %v9732_v17 = vld [vmem:[%s8925_s22 + $0x30] sm:$0xc]  ;;  %v7940_v55 = vld [vmem:[%s8925_s22 + $0x34] sm:$0x3] }
  0xe6   : > { %1120 = vst.msk [vmem:[#allocation3 + $0x18] sm:$0xf] %vm1113_vm10, %v1090_v46  ;;  %v7954_v14 = vrot.slane %v7931_v2, 10  ;;  %v2338_v16 = vrot.slane %v7932_v24, 6  ;;  %v7953_v18 = vrot.slane %v7929_v36, 10  ;;  %v2334_v19 = vrot.slane %v7930_v56, 6 }
  0xe7   : > { %2244 = vrot.lane.b32.xlu0 %v2109_v59, %s8872_s25  ;;  %v1096_v39 = vpop.permute.xlu1 %1095  ;;  %v7956_v22 = vrot.slane %v7935_v8, 10  ;;  %v2346_v23 = vrot.slane %v7936_v42, 6  ;;  %v9737_v62 = vld [vmem:[%s8925_s22 + $0x28] sm:$0xc]  ;;  %v9740_v7 = vld [vmem:[%s8925_s22 + $0x2c] sm:$0x3]  ;;  %v2181_v63 = vsel %vm9084_vm9, %v2172_v57, %v2180_v53  ;;  %v2216_v3 = vor.u32 %v2215_v0, %v2212_v60 }
  0xe8   : > { %1123 = vst.msk [vmem:[#allocation3 + $0x24] sm:$0xf] %vm1113_vm10, %v1096_v39  ;;  %v9743_v58 = vld [vmem:[%s8925_s22 + $0x40] sm:$0xc]  ;;  %vm1405_vm11 = vcmask 44072   ;;  %v2208_v25 = vrot.slane %v2207_v51, 4  ;;  %v2235_v21 = vsel %vm9084_vm9, %v2226_v12, %v2234_v13  ;;  %v2339_v38 = vsel %vm9171_vm12, %v7954_v14, %v2338_v16 }
  0xe9   : > { %v1094_v59 = vpop.permute.xlu0 %1093  ;;  %2250 = vrot.lane.b32.xlu1 %v2163_v32, %s8872_s25  ;;  %v7944_v27 = vld [vmem:[%s8925_s22 + $0x44] sm:$0x3]  ;;  %v9750_v29 = vld [vmem:[%s8925_s22 + $0x38] sm:$0xc]  ;;  %v9753_v30 = vld [vmem:[%s8925_s22 + $0x3c] sm:$0x3]  ;;  %v2335_v26 = vsel %vm9171_vm12, %v7953_v18, %v2334_v19  ;;  %v9773_v44 = vsel %vm9171_vm12, %v7956_v22, %v2346_v23 }
  0xea   : > { %1122 = vst.msk [vmem:[#allocation3 + $0x20] sm:$0xf] %vm1113_vm10, %v1094_v59  ;;  %v7955_v34 = vrot.slane %v7933_v10, 10  ;;  %v2342_v54 = vrot.slane %v7934_v11, 6  ;;  %v7947_v4 = vld [vmem:[%s8925_s22 + $0x50] sm:$0xc]  ;;  %v2217_v52 = vsel %vm9084_vm9, %v2208_v25, %v2216_v3 }
  0xeb   : > { %2248 = vrot.lane.b32.xlu0 %v2145_v50, %s8872_s25  ;;  %v1100_v45 = vpop.permute.xlu1 %1099  ;;  %v7948_v37 = vld [vmem:[%s8925_s22 + $0x54] sm:$0x3]  ;;  %v7945_v41 = vld [vmem:[%s8925_s22 + $0x48] sm:$0xc]  ;;  %v7946_v35 = vld [vmem:[%s8925_s22 + $0x4c] sm:$0x3] }
  0xec   : > { %1125 = vst.msk [vmem:[#allocation3 + $0x2c] sm:$0xf] %vm1113_vm10, %v1100_v45  ;;  %v9766_v43 = vld [vmem:[%s8925_s22 + $0x60] sm:$0xc]  ;;  %v7958_v6 = vrot.slane %v9732_v17, 10  ;;  %v2354_v46 = vrot.slane %v7940_v55, 6  ;;  %v2343_v50 = vsel %vm9171_vm12, %v7955_v34, %v2342_v54 }
  0xed   : > { %v1098_v31 = vpop.permute.xlu0 %1097  ;;  %2254 = vrot.lane.b32.xlu1 %v2199_v5, %s8872_s25  ;;  %v7952_v47 = vld [vmem:[%s8925_s22 + $0x64] sm:$0x3]  ;;  %v7949_v48 = vld [vmem:[%s8925_s22 + $0x58] sm:$0xc]  ;;  %v7950_v32 = vld [vmem:[%s8925_s22 + $0x5c] sm:$0x3] }
  0xee   : > { %1124 = vst.msk [vmem:[#allocation3 + $0x28] sm:$0xf] %vm1113_vm10, %v1098_v31  ;;  %v7957_v49 = vrot.slane %v9737_v62, 10  ;;  %v2350_v1 = vrot.slane %v9740_v7, 6  ;;  %v7960_v2 = vrot.slane %v9743_v58, 10  ;;  %v2362_v57 = vrot.slane %v7944_v27, 6 }
  0xef   : > { %2252 = vrot.lane.b32.xlu0 %v2181_v63, %s8872_s25  ;;  %v1372_v9 = vpop.permute.xlu1 %1371  ;;  %v7967_v24 = vld [vmem:[%s8925_s22 + $0x10] sm:$0xc]  ;;  %v7959_v36 = vrot.slane %v9750_v29, 10  ;;  %v2358_v56 = vrot.slane %v9753_v30, 6  ;;  %v7968_v53 = vld [vmem:[%s8925_s22 + $0x14] sm:$0x7]  ;;  %v2355_v5 = vsel %vm9171_vm12, %v7958_v6, %v2354_v46 }
  0xf0   : > { %1407 = vst.msk [vmem:[#allocation3 + $0x4] sm:$0xf] %vm1405_vm11, %v1372_v9  ;;  %v7962_v51 = vrot.slane %v7947_v4, 10  ;;  %v2370_v60 = vrot.slane %v7948_v37, 6  ;;  %v7961_v0 = vrot.slane %v7945_v41, 10  ;;  %v2366_v8 = vrot.slane %v7946_v35, 6 }
  0xf1   : > { %v1370_v39 = vpop.permute.xlu0 %1369  ;;  %2258 = vrot.lane.b32.xlu1 %v2235_v21, %s8872_s25  ;;  %v7965_v42 = vld [vmem:[%s8925_s22 + $0x8] sm:$0xc]  ;;  %v7964_v10 = vrot.slane %v9766_v43, 10  ;;  %v2471_v11 = vshrl.u32 %v7967_v24, 16  ;;  %v2474_v12 = vshll.u32 %v7967_v24, 16  ;;  %v2378_v14 = vrot.slane %v7952_v47, 6 }
  0xf2   : > { %1406 = vst.msk [vmem:[#allocation3] sm:$0xf] %vm1405_vm11, %v1370_v39  ;;  %v9799_v13 = vld [vmem:[%s8925_s22 + $0xc] sm:$0x7]  ;;  %v7963_v16 = vrot.slane %v7949_v48, 10  ;;  %v2374_v17 = vrot.slane %v7950_v32, 6  ;;  %v2351_v19 = vsel %vm9171_vm12, %v7957_v49, %v2350_v1  ;;  %v9808_v22 = vsel %vm9171_vm12, %v7960_v2, %v2362_v57 }
  0xf3   : > { %2256 = vrot.lane.b32.xlu0 %v2217_v52, %s8872_s25  ;;  %v1376_v59 = vpop.permute.xlu1 %1375  ;;  %v2480_v55 = vshrl.u32 %v7968_v53, 16  ;;  %v7971_v45 = vld [vmem:[%s8925_s22 + $0x20] sm:$0xc]  ;;  %v2483_v23 = vshll.u32 %v7968_v53, 16  ;;  %v2453_v62 = vshrl.u32 %v7965_v42, 16  ;;  %v9813_v7 = vsel %vm9171_vm12, %v7959_v36, %v2358_v56 }
  0xf4   : > { %1409 = vst.msk [vmem:[#allocation3 + $0xc] sm:$0xf] %vm1405_vm11, %v1376_v59  ;;  %v9817_v58 = vsel %vm9171_vm12, %v7962_v51, %v2370_v60  ;;  %v9821_v63 = vsel %vm9171_vm12, %v7961_v0, %v2366_v8  ;;  %v2456_v25 = vshll.u32 %v7965_v42, 16  ;;  %v7969_v3 = vld [vmem:[%s8925_s22 + $0x18] sm:$0xc]  ;;  %v9825_v29 = vrot.slane %v2471_v11, 6 }
  0xf5   : > { %v1374_v18 = vpop.permute.xlu0 %1373  ;;  %2382 = vrot.lane.b32.xlu1 %v2339_v38, %s8873_s26  ;;  %v9827_v30 = vrot.slane %v2474_v12, 7  ;;  %v2462_v31 = vshrl.u32 %v9799_v13, 16  ;;  %v2507_v34 = vshrl.u32 %v7971_v45, 16  ;;  %v7975_v54 = vld [vmem:[%s8925_s22 + $0x30] sm:$0xc]  ;;  %v9834_v4 = vsel %vm9171_vm12, %v7964_v10, %v2378_v14 }
  0xf6   : > { %1408 = vst.msk [vmem:[#allocation3 + $0x8] sm:$0xf] %vm1405_vm11, %v1374_v18  ;;  %v9838_v37 = vsel %vm9171_vm12, %v7963_v16, %v2374_v17  ;;  %v9840_v21 = vrot.slane %v2480_v55, 6  ;;  %v7972_v38 = vld [vmem:[%s8925_s22 + $0x24] sm:$0x7]  ;;  %v2510_v41 = vshll.u32 %v7971_v45, 16 }
  0xf7   : > { %2380 = vrot.lane.b32.xlu0 %v2335_v26, %s8873_s26  ;;  %v1380_v27 = vpop.permute.xlu1 %1379  ;;  %v9845_v43 = vrot.slane %v2483_v23, 7  ;;  %v9847_v9 = vrot.slane %v2453_v62, 6  ;;  %v2489_v26 = vshrl.u32 %v7969_v3, 16  ;;  %v2492_v6 = vshll.u32 %v7969_v3, 16  ;;  %v7973_v46 = vld [vmem:[%s8925_s22 + $0x28] sm:$0xc] }
  0xf8   : > { %1411 = vst.msk [vmem:[#allocation3 + $0x14] sm:$0xf] %vm1405_vm11, %v1380_v27  ;;  %v9851_v47 = vrot.slane %v2456_v25, 7  ;;  %v2465_v48 = vshll.u32 %v9799_v13, 16  ;;  %v7970_v32 = vld [vmem:[%s8925_s22 + $0x1c] sm:$0x7]  ;;  %v2477_v1 = vor.u32 %v9827_v30, %v9825_v29 }
  0xf9   : > { %v1378_v35 = vpop.permute.xlu0 %1377  ;;  %2386 = vrot.lane.b32.xlu1 %v9773_v44, %s8873_s26  ;;  %v2543_v52 = vshrl.u32 %v7975_v54, 16  ;;  %v2546_v49 = vshll.u32 %v7975_v54, 16  ;;  %v9858_v2 = vrot.slane %v2462_v31, 6  ;;  %v2509_v24 = vrot.slane %v2507_v34, 6  ;;  %v7976_v57 = vld [vmem:[%s8925_s22 + $0x34] sm:$0x7] }
  0xfa   : > { %1410 = vst.msk [vmem:[#allocation3 + $0x10] sm:$0xf] %vm1405_vm11, %v1378_v35  ;;  %v2516_v39 = vshrl.u32 %v7972_v38, 16  ;;  %v2512_v36 = vrot.slane %v2510_v41, 7  ;;  %v2519_v56 = vshll.u32 %v7972_v38, 16  ;;  %v2525_v51 = vshrl.u32 %v7973_v46, 16 }
  0xfb   : > { %2384 = vrot.lane.b32.xlu0 %v2343_v50, %s8873_s26  ;;  %v1384_v44 = vpop.permute.xlu1 %1383  ;;  %v7974_v53 = vld [vmem:[%s8925_s22 + $0x2c] sm:$0x7]  ;;  %v2528_v60 = vshll.u32 %v7973_v46, 16  ;;  %vm1553_vm14 = vcmask 52272   ;;  %v2491_v50 = vrot.slane %v2489_v26, 6  ;;  %v2494_v8 = vrot.slane %v2492_v6, 7 }
  0xfc   : > { %1413 = vst.msk [vmem:[#allocation3 + $0x1c] sm:$0xf] %vm1405_vm11, %v1384_v44  ;;  %v2498_v42 = vshrl.u32 %v7970_v32, 16  ;;  %v2501_v59 = vshll.u32 %v7970_v32, 16  ;;  %v2545_v10 = vrot.slane %v2543_v52, 6  ;;  %v2548_v11 = vrot.slane %v2546_v49, 7 }
  0xfd   : > { %v1382_v0 = vpop.permute.xlu0 %1381  ;;  %2390 = vrot.lane.b32.xlu1 %v2355_v5, %s8873_s26  ;;  %v2552_v12 = vshrl.u32 %v7976_v57, 16  ;;  %v2555_v13 = vshll.u32 %v7976_v57, 16  ;;  %v2486_v16 = vor.u32 %v9845_v43, %v9840_v21  ;;  %v2459_v5 = vor.u32 %v9851_v47, %v9847_v9  ;;  %v7979_v25 = vld [vmem:[%s8925_s22 + $0x40] sm:$0xc]  ;;  %v7977_v31 = vld [vmem:[%s8925_s22 + $0x38] sm:$0xc] }
  0xfe   : > { %1412 = vst.msk [vmem:[#allocation3 + $0x18] sm:$0xf] %vm1405_vm11, %v1382_v0  ;;  %v2534_v17 = vshrl.u32 %v7974_v53, 16  ;;  %v2537_v55 = vshll.u32 %v7974_v53, 16  ;;  %v2467_v45 = vrot.slane %v2465_v48, 7  ;;  %v2518_v18 = vrot.slane %v2516_v39, 6 }
  0xff   : > { %2388 = vrot.lane.b32.xlu0 %v2351_v19, %s8873_s26  ;;  %v1388_v14 = vpop.permute.xlu1 %1387  ;;  %v2527_v23 = vrot.slane %v2525_v51, 6  ;;  %v2530_v62 = vrot.slane %v2528_v60, 7  ;;  %v2513_v19 = vor.u32 %v2512_v36, %v2509_v24  ;;  %v2521_v27 = vrot.slane %v2519_v56, 7  ;;  %v7980_v6 = vld [vmem:[%s8925_s22 + $0x44] sm:$0x7] }
 0x100   : > { %1415 = vst.msk [vmem:[#allocation3 + $0x24] sm:$0xf] %vm1405_vm11, %v1388_v14  ;;  %v2500_v29 = vrot.slane %v2498_v42, 6  ;;  %v2503_v30 = vrot.slane %v2501_v59, 7  ;;  %v2495_v34 = vor.u32 %v2494_v8, %v2491_v50  ;;  %v2549_v54 = vor.u32 %v2548_v11, %v2545_v10  ;;  %v7983_v36 = vld [vmem:[%s8925_s22 + $0x50] sm:$0xc] }
 0x101   : > { %v1386_v3 = vpop.permute.xlu0 %1385  ;;  %2394 = vrot.lane.b32.xlu1 %v9808_v22, %s8873_s26  ;;  %v2554_v21 = vrot.slane %v2552_v12, 6  ;;  %v2557_v38 = vrot.slane %v2555_v13, 7  ;;  %v2478_v35 = vrot.slane %v2477_v1, 4  ;;  %v2536_v43 = vrot.slane %v2534_v17, 6  ;;  %v7978_v0 = vld [vmem:[%s8925_s22 + $0x3c] sm:$0x7] }
 0x102   : > { %1414 = vst.msk [vmem:[#allocation3 + $0x20] sm:$0xf] %vm1405_vm11, %v1386_v3  ;;  %v2539_v9 = vrot.slane %v2537_v55, 7  ;;  %v2579_v22 = vshrl.u32 %v7979_v25, 16  ;;  %v2531_v26 = vor.u32 %v2530_v62, %v2527_v23  ;;  %v2582_v46 = vshll.u32 %v7979_v25, 16 }
 0x103   : > { %2392 = vrot.lane.b32.xlu0 %v9813_v7, %s8873_s26  ;;  %v1392_v41 = vpop.permute.xlu1 %1391  ;;  %v2561_v47 = vshrl.u32 %v7977_v31, 16  ;;  %v2564_v48 = vshll.u32 %v7977_v31, 16  ;;  %v2460_v52 = vrot.slane %v2459_v5, 4  ;;  %v2468_v7 = vor.u32 %v2467_v45, %v9858_v2  ;;  %v7981_v59 = vld [vmem:[%s8925_s22 + $0x48] sm:$0xc] }
 0x104   : > { %1417 = vst.msk [vmem:[#allocation3 + $0x2c] sm:$0xf] %vm1405_vm11, %v1392_v41  ;;  %v2514_v49 = vrot.slane %v2513_v19, 4  ;;  %v2522_v44 = vor.u32 %v2521_v27, %v2518_v18  ;;  %v2496_v1 = vrot.slane %v2495_v34, 4  ;;  %v2504_v24 = vor.u32 %v2503_v30, %v2500_v29  ;;  %v7987_v25 = vld [vmem:[%s8925_s22 + $0x60] sm:$0xc] }
 0x105   : > { %v1390_v32 = vpop.permute.xlu0 %1389  ;;  %2398 = vrot.lane.b32.xlu1 %v9817_v58, %s8873_s26  ;;  %v2550_v39 = vrot.slane %v2549_v54, 4  ;;  %v2558_v57 = vor.u32 %v2557_v38, %v2554_v21  ;;  %v2540_v53 = vor.u32 %v2539_v9, %v2536_v43  ;;  %v2581_v58 = vrot.slane %v2579_v22, 6  ;;  %v7834_v3 = vld [vmem:[%s8925_s22 + $0x10] sm:$0xf]  ;;  %v7982_v30 = vld [vmem:[%s8925_s22 + $0x4c] sm:$0x7] }
 0x106   : > { %1416 = vst.msk [vmem:[#allocation3 + $0x28] sm:$0xf] %vm1405_vm11, %v1390_v32  ;;  %v2588_v51 = vshrl.u32 %v7980_v6, 16  ;;  %v2591_v60 = vshll.u32 %v7980_v6, 16  ;;  %v2532_v2 = vrot.slane %v2531_v26, 4  ;;  %v2584_v50 = vrot.slane %v2582_v46, 7 }
 0x107   : > { %2396 = vrot.lane.b32.xlu0 %v9821_v63, %s8873_s26  ;;  %v1520_v56 = vpop.permute.xlu1 %1519  ;;  %v2563_v8 = vrot.slane %v2561_v47, 6  ;;  %v2566_v42 = vrot.slane %v2564_v48, 7  ;;  %v2487_v63 = vsel %vm9253_vm0, %v2478_v35, %v2486_v16  ;;  %v2469_v11 = vsel %vm9253_vm0, %v2460_v52, %v2468_v7  ;;  %v7984_v16 = vld [vmem:[%s8925_s22 + $0x54] sm:$0x7]  ;;  %v7833_v31 = vld [vmem:[%s8925_s22 + $0x8] sm:$0xf] }
 0x108   : > { %1555 = vst.msk [vmem:[#allocation3 + $0x4] sm:$0xf] %vm1553_vm14, %v1520_v56  ;;  %v2615_v12 = vshrl.u32 %v7983_v36, 16  ;;  %v2618_v13 = vshll.u32 %v7983_v36, 16  ;;  %v2523_v14 = vsel %vm9253_vm0, %v2514_v49, %v2522_v44  ;;  %v2505_v5 = vsel %vm9253_vm0, %v2496_v1, %v2504_v24  ;;  %v7985_v35 = vld [vmem:[%s8925_s22 + $0x58] sm:$0xc] }
 0x109   : > { %v1518_v10 = vpop.permute.xlu0 %1517  ;;  %2402 = vrot.lane.b32.xlu1 %v9834_v4, %s8873_s26  ;;  %v2570_v17 = vshrl.u32 %v7978_v0, 16  ;;  %v2573_v4 = vshll.u32 %v7978_v0, 16  ;;  %v9906_v45 = vsel %vm9253_vm0, %v2550_v39, %v2558_v57  ;;  %v9908_v18 = vrot.slane %v2588_v51, 6  ;;  %v7988_v22 = vld [vmem:[%s8925_s22 + $0x64] sm:$0x7] }
 0x10a   : > { %1554 = vst.msk [vmem:[#allocation3] sm:$0xf] %vm1553_vm14, %v1518_v10  ;;  %v2597_v23 = vshrl.u32 %v7981_v59, 16  ;;  %v2600_v62 = vshll.u32 %v7981_v59, 16  ;;  %v9915_v19 = vsel %vm9253_vm0, %v2532_v2, %v2540_v53  ;;  %v9917_v27 = vrot.slane %v2591_v60, 7 }
 0x10b   : > { %2400 = vrot.lane.b32.xlu0 %v9838_v37, %s8873_s26  ;;  %v1524_v55 = vpop.permute.xlu1 %1523  ;;  %v2585_v37 = vor.u32 %v2584_v50, %v2581_v58  ;;  %v2567_v29 = vor.u32 %v2566_v42, %v2563_v8  ;;  %v2617_v54 = vrot.slane %v2615_v12, 6  ;;  %v2620_v21 = vrot.slane %v2618_v13, 7  ;;  %v7836_v47 = vld [vmem:[%s8925_s22 + $0x20] sm:$0xf]  ;;  %v7986_v24 = vld [vmem:[%s8925_s22 + $0x5c] sm:$0x7] }
 0x10c   : > { %1557 = vst.msk [vmem:[#allocation3 + $0xc] sm:$0xf] %vm1553_vm14, %v1524_v55  ;;  %v2624_v38 = vshrl.u32 %v7984_v16, 16  ;;  %v2627_v41 = vshll.u32 %v7984_v16, 16  ;;  %v9924_v43 = vrot.slane %v2570_v17, 6  ;;  %v9926_v9 = vrot.slane %v2573_v4, 7 }
 0x10d   : > { %v1522_v34 = vpop.permute.xlu0 %1521  ;;  %2670 = vrot.lane.b32.xlu1 %v2487_v63, %s8874_s27  ;;  %v2651_v26 = vshrl.u32 %v7987_v25, 16  ;;  %v2654_v6 = vshll.u32 %v7987_v25, 16  ;;  %v2599_v32 = vrot.slane %v2597_v23, 6  ;;  %v2602_v52 = vrot.slane %v2600_v62, 7  ;;  %v7835_v59 = vld [vmem:[%s8925_s22 + $0x18] sm:$0xf] }
 0x10e   : > { %1556 = vst.msk [vmem:[#allocation3 + $0x8] sm:$0xf] %vm1553_vm14, %v1522_v34  ;;  %v2606_v7 = vshrl.u32 %v7982_v30, 16  ;;  %v2609_v49 = vshll.u32 %v7982_v30, 16  ;;  %v2586_v44 = vrot.slane %v2585_v37, 4  ;;  %v2594_v1 = vor.u32 %v9917_v27, %v9908_v18 }
 0x10f   : > { %v9929_v46 = vld [vmem:[#allocation3 + $0x4] sm:$0xf]  ;;  %2668 = vrot.lane.b32.xlu0 %v2469_v11, %s8874_s27  ;;  %v1528_v48 = vpop.permute.xlu1 %1527  ;;  %v2633_v39 = vshrl.u32 %v7985_v35, 16  ;;  %v2636_v57 = vshll.u32 %v7985_v35, 16  ;;  %v2568_v53 = vrot.slane %v2567_v29, 4  ;;  %v2621_v58 = vor.u32 %v2620_v21, %v2617_v54 }
 0x110   : > { %1601 = vst.msk [vmem:[#allocation3 + $0x4] sm:$0xf] %vm281_vm13, %v7834_v3  ;;  %v2626_v51 = vrot.slane %v2624_v38, 6  ;;  %v2629_v60 = vrot.slane %v2627_v41, 7  ;;  %v2653_v0 = vrot.slane %v2651_v26, 6  ;;  %v2656_v2 = vrot.slane %v2654_v6, 7 }
 0x111   : > { %1559 = vst.msk [vmem:[#allocation3 + $0x14] sm:$0xf] %vm1553_vm14, %v1528_v48  ;;  %v9938_v36 = vld [vmem:[#allocation3] sm:$0xf]  ;;  %v1526_v56 = vpop.permute.xlu0 %1525  ;;  %2674 = vrot.lane.b32.xlu1 %v2523_v14, %s8874_s27  ;;  %v2660_v50 = vshrl.u32 %v7988_v22, 16  ;;  %v2663_v8 = vshll.u32 %v7988_v22, 16  ;;  %v2576_v63 = vor.u32 %v9926_v9, %v9924_v43  ;;  %v2603_v11 = vor.u32 %v2602_v52, %v2599_v32 }
 0x112   : > { %1600 = vst.msk [vmem:[#allocation3] sm:$0xf] %vm281_vm13, %v7833_v31  ;;  %v2608_v12 = vrot.slane %v2606_v7, 6  ;;  %v2611_v13 = vrot.slane %v2609_v49, 7  ;;  %v2635_v14 = vrot.slane %v2633_v39, 6  ;;  %v2638_v17 = vrot.slane %v2636_v57, 7 }
 0x113   : > { %1558 = vst.msk [vmem:[#allocation3 + $0x10] sm:$0xf] %vm1553_vm14, %v1526_v56  ;;  %v9943_v42 = vld [vmem:[#allocation3 + $0xc] sm:$0xf]  ;;  %2672 = vrot.lane.b32.xlu0 %v2505_v5, %s8874_s27  ;;  %v1532_v10 = vpop.permute.xlu1 %1531  ;;  %v2642_v4 = vshrl.u32 %v7986_v24, 16  ;;  %v2645_v16 = vshll.u32 %v7986_v24, 16  ;;  %v2595_v23 = vsel %vm9253_vm0, %v2586_v44, %v2594_v1  ;;  %v2630_v25 = vor.u32 %v2629_v60, %v2626_v51 }
 0x114   : > { %1603 = vst.msk [vmem:[#allocation3 + $0xc] sm:$0xf] %vm281_vm13, %v7836_v47  ;;  %v7838_v18 = vld [vmem:[%s8925_s22 + $0x30] sm:$0xf]  ;;  %v2622_v62 = vrot.slane %v2621_v58, 4  ;;  %v2657_v3 = vor.u32 %v2656_v2, %v2653_v0  ;;  %v2662_v37 = vrot.slane %v2660_v50, 6  ;;  %v2577_v31 = vsel %vm9253_vm0, %v2568_v53, %v2576_v63 }
 0x115   : > { %1561 = vst.msk [vmem:[#allocation3 + $0x1c] sm:$0xf] %vm1553_vm14, %v1532_v10  ;;  %v9951_v55 = vld [vmem:[#allocation3 + $0x8] sm:$0xf]  ;;  %v1530_v5 = vpop.permute.xlu0 %1529  ;;  %2678 = vrot.lane.b32.xlu1 %v9906_v45, %s8874_s27  ;;  %v2665_v27 = vrot.slane %v2663_v8, 7  ;;  %v2612_v34 = vor.u32 %v2611_v13, %v2608_v12  ;;  %v2604_v54 = vrot.slane %v2603_v11, 4  ;;  %v2639_v21 = vor.u32 %v2638_v17, %v2635_v14 }
 0x116   : > { %1602 = vst.msk [vmem:[#allocation3 + $0x8] sm:$0xf] %vm281_vm13, %v7835_v59  ;;  %v7837_v30 = vld [vmem:[%s8925_s22 + $0x28] sm:$0xf]  ;;  %v2644_v38 = vrot.slane %v2642_v4, 6  ;;  %v2647_v41 = vrot.slane %v2645_v16, 7  ;;  %v2631_v22 = vsel %vm9253_vm0, %v2622_v62, %v2630_v25 }
 0x117   : > { %1560 = vst.msk [vmem:[#allocation3 + $0x18] sm:$0xf] %vm1553_vm14, %v1530_v5  ;;  %2676 = vrot.lane.b32.xlu0 %v9915_v19, %s8874_s27  ;;  %v1536_v45 = vpop.permute.xlu1 %1535  ;;  %v7840_v43 = vld [vmem:[%s8925_s22 + $0x40] sm:$0xf]  ;;  %v7839_v9 = vld [vmem:[%s8925_s22 + $0x38] sm:$0xf]  ;;  %v2666_v6 = vor.u32 %v2665_v27, %v2662_v37  ;;  %v2613_v49 = vsel %vm9253_vm0, %v2604_v54, %v2612_v34 }
 0x118   : > { %v9960_v29 = vld [vmem:[#allocation3 + $0x14] sm:$0xf]  ;;  %1563 = vst.msk [vmem:[#allocation3 + $0x24] sm:$0xf] %vm1553_vm14, %v1536_v45  ;;  %v2658_v26 = vrot.slane %v2657_v3, 4  ;;  %v2640_v44 = vrot.slane %v2639_v21, 4  ;;  %v2648_v1 = vor.u32 %v2647_v41, %v2644_v38 }
 0x119   : > { %1605 = vst.msk [vmem:[#allocation3 + $0x14] sm:$0xf] %vm281_vm13, %v7838_v18  ;;  %v1534_v19 = vpop.permute.xlu0 %1533  ;;  %2682 = vrot.lane.b32.xlu1 %v2595_v23, %s8874_s27  ;;  %v7991_v32 = vld [vmem:[%s8925_s22 + $0x10] sm:$0x8]  ;;  %v7992_v52 = vld [vmem:[%s8925_s22 + $0x14] sm:$0x7] }
 0x11a   : > { %v9969_v35 = vld [vmem:[#allocation3 + $0x10] sm:$0xf]  ;;  %1562 = vst.msk [vmem:[#allocation3 + $0x20] sm:$0xf] %vm1553_vm14, %v1534_v19  ;;  %v7989_v57 = vld [vmem:[%s8925_s22 + $0x8] sm:$0x8]  ;;  %v2667_v53 = vsel %vm9253_vm0, %v2658_v26, %v2666_v6  ;;  %v2649_v10 = vsel %vm9253_vm0, %v2640_v44, %v2648_v1 }
 0x11b   : > { %1604 = vst.msk [vmem:[#allocation3 + $0x10] sm:$0xf] %vm281_vm13, %v7837_v30  ;;  %2680 = vrot.lane.b32.xlu0 %v2577_v31, %s8874_s27  ;;  %v1540_v48 = vpop.permute.xlu1 %1539  ;;  %v7842_v7 = vld [vmem:[%s8925_s22 + $0x50] sm:$0xf]  ;;  %v7990_v56 = vld [vmem:[%s8925_s22 + $0xc] sm:$0x7] }
 0x11c   : > { %v9978_v47 = vld [vmem:[#allocation3 + $0x1c] sm:$0xf]  ;;  %1565 = vst.msk [vmem:[#allocation3 + $0x2c] sm:$0xf] %vm1553_vm14, %v1540_v48  ;;  %v8014_v58 = vrot.slane %v7991_v32, 11  ;;  %v2770_v51 = vrot.slane %v7992_v52, 7 }
 0x11d   : > { %1607 = vst.msk [vmem:[#allocation3 + $0x1c] sm:$0xf] %vm281_vm13, %v7840_v43  ;;  %v1538_v39 = vpop.permute.xlu0 %1537  ;;  %2686 = vrot.lane.b32.xlu1 %v2631_v22, %s8874_s27  ;;  %v7995_v60 = vld [vmem:[%s8925_s22 + $0x20] sm:$0x8]  ;;  %v7996_v0 = vld [vmem:[%s8925_s22 + $0x24] sm:$0x7] }
 0x11e   : > { %v9988_v24 = vld [vmem:[#allocation3 + $0x18] sm:$0xf]  ;;  %1564 = vst.msk [vmem:[#allocation3 + $0x28] sm:$0xf] %vm1553_vm14, %v1538_v39  ;;  %v7841_v50 = vld [vmem:[%s8925_s22 + $0x48] sm:$0xf]  ;;  %v2771_v5 = vsel %vm9357_vm5, %v8014_v58, %v2770_v51 }
 0x11f   : > { %1606 = vst.msk [vmem:[#allocation3 + $0x18] sm:$0xf] %vm281_vm13, %v7839_v9  ;;  %v9999_v2 = vld [vmem:[#allocation3 + $0x24] sm:$0xf]  ;;  %2684 = vrot.lane.b32.xlu0 %v2613_v49, %s8874_s27  ;;  %v1807_v8 = vpop.permute.xlu1 %1806  ;;  %v7844_v59 = vld [vmem:[%s8925_s22 + $0x60] sm:$0xf] }
 0x120   : > { %1609 = vst.msk [vmem:[#allocation3 + $0x24] sm:$0xf] %vm281_vm13, %v7842_v7  ;;  %v8013_v63 = vrot.slane %v7989_v57, 11  ;;  %v2766_v11 = vrot.slane %v7990_v56, 7  ;;  %v7993_v12 = vld [vmem:[%s8925_s22 + $0x18] sm:$0x8] }
 0x121   : > { %1841 = vst.msk [vmem:[#allocation3 + $0x4] sm:$0xf] %vm525_vm1, %v1807_v8  ;;  %v10009_v13 = vld [vmem:[#allocation3 + $0x20] sm:$0xf]  ;;  %v7843_v14 = vld [vmem:[%s8925_s22 + $0x58] sm:$0xf]  ;;  %v1805_v17 = vpop.permute.xlu0 %1804  ;;  %2690 = vrot.lane.b32.xlu1 %v2667_v53, %s8874_s27 }
 0x122   : > { %v8016_v4 = vrot.slane %v7995_v60, 11  ;;  %v2778_v16 = vrot.slane %v7996_v0, 7  ;;  %v7994_v18 = vld [vmem:[%s8925_s22 + $0x1c] sm:$0x7]  ;;  %1608 = vst.msk [vmem:[#allocation3 + $0x20] sm:$0xf] %vm281_vm13, %v7841_v50  ;;  %v2767_v45 = vsel %vm9357_vm5, %v8013_v63, %v2766_v11 }
 0x123   : > { %1840 = vst.msk [vmem:[#allocation3] sm:$0xf] %vm525_vm1, %v1805_v17  ;;  %v7999_v23 = vld [vmem:[%s8925_s22 + $0x30] sm:$0x8]  ;;  %v8000_v62 = vld [vmem:[%s8925_s22 + $0x34] sm:$0x7]  ;;  %2688 = vrot.lane.b32.xlu0 %v2649_v10, %s8874_s27  ;;  %v1811_v37 = vpop.permute.xlu1 %1810 }
 0x124   : > { %v7997_v25 = vld [vmem:[%s8925_s22 + $0x28] sm:$0x8]  ;;  %v10021_v3 = vld [vmem:[#allocation3 + $0x2c] sm:$0xf]  ;;  %v8003_v30 = vld [vmem:[%s8925_s22 + $0x40] sm:$0x8]  ;;  %v2779_v43 = vsel %vm9357_vm5, %v8016_v4, %v2778_v16 }
 0x125   : > { %v7998_v27 = vld [vmem:[%s8925_s22 + $0x2c] sm:$0x7]  ;;  %1611 = vst.msk [vmem:[#allocation3 + $0x2c] sm:$0xf] %vm281_vm13, %v7844_v59  ;;  %v8015_v31 = vrot.slane %v7993_v12, 11  ;;  %v2774_v34 = vrot.slane %v7994_v18, 7  ;;  %v1809_v41 = vpop.permute.xlu0 %1808  ;;  %2814 = vrot.lane.b32.xlu1 %v2771_v5, %s8875_s28 }
 0x126   : > { %1843 = vst.msk [vmem:[#allocation3 + $0xc] sm:$0xf] %vm525_vm1, %v1811_v37  ;;  %v8004_v54 = vld [vmem:[%s8925_s22 + $0x44] sm:$0x7]  ;;  %v8064_v21 = vld [vmem:[%s8925_s22 + $0x18] sm:$0xf] }
 0x127   : > { %v10032_v38 = vld [vmem:[#allocation3 + $0x28] sm:$0xf]  ;;  %v8001_v19 = vld [vmem:[%s8925_s22 + $0x38] sm:$0x8]  ;;  %v8062_v9 = vld [vmem:[%s8925_s22 + $0x10] sm:$0xf]  ;;  %2812 = vrot.lane.b32.xlu0 %v2767_v45, %s8875_s28  ;;  %v1815_v52 = vpop.permute.xlu1 %1814  ;;  %v2775_v57 = vsel %vm9357_vm5, %v8015_v31, %v2774_v34 }
 0x128   : > { %1610 = vst.msk [vmem:[#allocation3 + $0x28] sm:$0xf] %vm281_vm13, %v7843_v14  ;;  %v8018_v22 = vrot.slane %v7999_v23, 11  ;;  %v2786_v26 = vrot.slane %v8000_v62, 7  ;;  %v8017_v6 = vrot.slane %v7997_v25, 11  ;;  %v2782_v48 = vrot.slane %v7998_v27, 7 }
 0x129   : > { %1842 = vst.msk [vmem:[#allocation3 + $0x8] sm:$0xf] %vm525_vm1, %v1809_v41  ;;  %v8002_v32 = vld [vmem:[%s8925_s22 + $0x3c] sm:$0x7]  ;;  %v8020_v7 = vrot.slane %v8003_v30, 11  ;;  %v2794_v49 = vrot.slane %v8004_v54, 7  ;;  %v1813_v60 = vpop.permute.xlu0 %1812  ;;  %2818 = vrot.lane.b32.xlu1 %v2779_v43, %s8875_s28 }
 0x12a   : > { %v10044_v44 = vld [vmem:[%s8925_s22 + $0x50] sm:$0x8]  ;;  %v3210_v1 = vshrl.u32 %v8064_v21, 16  ;;  %v3213_v39 = vshll.u32 %v8064_v21, 16  ;;  %1845 = vst.msk [vmem:[#allocation3 + $0x14] sm:$0xf] %vm525_vm1, %v1815_v52  ;;  %v2787_v10 = vsel %vm9357_vm5, %v8018_v22, %v2786_v26  ;;  %v2783_v63 = vsel %vm9357_vm5, %v8017_v6, %v2782_v48 }
 0x12b   : > { %v10050_v56 = vld [vmem:[%s8925_s22 + $0x54] sm:$0x7]  ;;  %v10053_v53 = vld [vmem:[%s8925_s22 + $0x48] sm:$0x8]  ;;  %v3196_v58 = vshrl.u32 %v8062_v9, 16  ;;  %v3199_v51 = vshll.u32 %v8062_v9, 16  ;;  %2816 = vrot.lane.b32.xlu0 %v2775_v57, %s8875_s28  ;;  %v1819_v4 = vpop.permute.xlu1 %1818  ;;  %v2795_v16 = vsel %vm9357_vm5, %v8020_v7, %v2794_v49 }
 0x12c   : > { %v8006_v0 = vld [vmem:[%s8925_s22 + $0x4c] sm:$0x7]  ;;  %v10058_v50 = vld [vmem:[%s8925_s22 + $0x60] sm:$0x8]  ;;  %v10061_v8 = vld [vmem:[%s8925_s22 + $0x64] sm:$0x7] }
 0x12d   : > { %v8068_v59 = vld [vmem:[%s8925_s22 + $0x28] sm:$0xf]  ;;  %1844 = vst.msk [vmem:[#allocation3 + $0x10] sm:$0xf] %vm525_vm1, %v1813_v60  ;;  %v8019_v11 = vrot.slane %v8001_v19, 11  ;;  %v2790_v12 = vrot.slane %v8002_v32, 7  ;;  %v1817_v31 = vpop.permute.xlu0 %1816  ;;  %2822 = vrot.lane.b32.xlu1 %v2787_v10, %s8875_s28 }
 0x12e   : > { %v10070_v14 = vld [vmem:[%s8925_s22 + $0x58] sm:$0x8]  ;;  %v8066_v17 = vld [vmem:[%s8925_s22 + $0x20] sm:$0xf]  ;;  %v8022_v18 = vrot.slane %v10044_v44, 11  ;;  %v3212_v23 = vrot.slane %v3210_v1, 4 }
 0x12f   : > { %v10078_v5 = vld [vmem:[%s8925_s22 + $0x5c] sm:$0x7]  ;;  %v3215_v62 = vrot.slane %v3213_v39, 5  ;;  %1847 = vst.msk [vmem:[#allocation3 + $0x1c] sm:$0xf] %vm525_vm1, %v1819_v4  ;;  %v3198_v37 = vrot.slane %v3196_v58, 4  ;;  %v2791_v19 = vsel %vm9357_vm5, %v8019_v11, %v2790_v12  ;;  %2820 = vrot.lane.b32.xlu0 %v2783_v63, %s8875_s28  ;;  %v1823_v48 = vpop.permute.xlu1 %1822 }
 0x130   : > { %v8065_v25 = vld [vmem:[%s8925_s22 + $0x1c] sm:$0x1]  ;;  %v3201_v27 = vrot.slane %v3199_v51, 5  ;;  %v3238_v30 = vshrl.u32 %v8068_v59, 16  ;;  %v3241_v45 = vshll.u32 %v8068_v59, 16  ;;  %v2802_v34 = vrot.slane %v10050_v56, 7 }
 0x131   : > { %v8021_v54 = vrot.slane %v10053_v53, 11  ;;  %v8063_v21 = vld [vmem:[%s8925_s22 + $0x14] sm:$0x1]  ;;  %v3224_v41 = vshrl.u32 %v8066_v17, 16  ;;  %v3227_v43 = vshll.u32 %v8066_v17, 16  ;;  %v2798_v9 = vrot.slane %v8006_v0, 7  ;;  %v1821_v58 = vpop.permute.xlu0 %1820  ;;  %2826 = vrot.lane.b32.xlu1 %v2795_v16, %s8875_s28 }
 0x132   : > { %1846 = vst.msk [vmem:[#allocation3 + $0x18] sm:$0xf] %vm525_vm1, %v1817_v31  ;;  %v8024_v22 = vrot.slane %v10058_v50, 11  ;;  %v2810_v26 = vrot.slane %v10061_v8, 7  ;;  %v8072_v6 = vld [vmem:[%s8925_s22 + $0x38] sm:$0xf]  ;;  %v3216_v7 = vor.u32 %v3215_v62, %v3212_v23  ;;  %v3202_v1 = vor.u32 %v3201_v27, %v3198_v37 }
 0x133   : > { %v8023_v32 = vrot.slane %v10070_v14, 11  ;;  %v2806_v52 = vrot.slane %v10078_v5, 7  ;;  %v3219_v49 = vshll.u32 %v8065_v25, 16  ;;  %v8070_v44 = vld [vmem:[%s8925_s22 + $0x30] sm:$0xf]  ;;  %v3205_v39 = vshll.u32 %v8063_v21, 16  ;;  %2824 = vrot.lane.b32.xlu0 %v2791_v19, %s8875_s28  ;;  %v1827_v12 = vpop.permute.xlu1 %1826 }
 0x134   : > { %1849 = vst.msk [vmem:[#allocation3 + $0x24] sm:$0xf] %vm525_vm1, %v1823_v48  ;;  %v8069_v57 = vld [vmem:[%s8925_s22 + $0x2c] sm:$0x1]  ;;  %v3240_v56 = vrot.slane %v3238_v30, 4  ;;  %v3243_v53 = vrot.slane %v3241_v45, 5  ;;  %v2803_v59 = vsel %vm9357_vm5, %v8022_v18, %v2802_v34  ;;  %v2799_v10 = vsel %vm9357_vm5, %v8021_v54, %v2798_v9 }
 0x135   : > { %v8067_v51 = vld [vmem:[%s8925_s22 + $0x24] sm:$0x1]  ;;  %v3226_v60 = vrot.slane %v3224_v41, 4  ;;  %v3229_v0 = vrot.slane %v3227_v43, 5  ;;  %v3266_v50 = vshrl.u32 %v8072_v6, 16  ;;  %v3269_v8 = vshll.u32 %v8072_v6, 16  ;;  %v1825_v27 = vpop.permute.xlu0 %1824  ;;  %2830 = vrot.lane.b32.xlu1 %v2803_v59, %s8875_s28 }
 0x136   : > { %1848 = vst.msk [vmem:[#allocation3 + $0x20] sm:$0xf] %vm525_vm1, %v1821_v58  ;;  %v3252_v63 = vshrl.u32 %v8070_v44, 16  ;;  %v3255_v11 = vshll.u32 %v8070_v44, 16  ;;  %v2811_v14 = vsel %vm9357_vm5, %v8024_v22, %v2810_v26  ;;  %v10108_v17 = vrot.slane %v3216_v7, 4 }
 0x137   : > { %v3221_v4 = vrot.slane %v3219_v49, 5  ;;  %v3247_v16 = vshll.u32 %v8069_v57, 16  ;;  %v8076_v5 = vld [vmem:[%s8925_s22 + $0x48] sm:$0xf]  ;;  %1851 = vst.msk [vmem:[#allocation3 + $0x2c] sm:$0xf] %vm525_vm1, %v1827_v12  ;;  %v3244_v62 = vor.u32 %v3243_v53, %v3240_v56  ;;  %v2807_v30 = vsel %vm9357_vm5, %v8023_v32, %v2806_v52  ;;  %2828 = vrot.lane.b32.xlu0 %v2799_v10, %s8875_s28  ;;  %v1951_v26 = vpop.permute.xlu1 %1950 }
 0x138   : > { %v10112_v18 = vrot.slane %v3202_v1, 4  ;;  %v10114_v23 = vrot.slane %v3205_v39, 5  ;;  %v3233_v25 = vshll.u32 %v8067_v51, 16  ;;  %v8074_v37 = vld [vmem:[%s8925_s22 + $0x40] sm:$0xf]  ;;  %v3230_v45 = vor.u32 %v3229_v0, %v3226_v60 }
 0x139   : > { %v8073_v31 = vld [vmem:[%s8925_s22 + $0x3c] sm:$0x1]  ;;  %v3268_v34 = vrot.slane %v3266_v50, 4  ;;  %v3271_v54 = vrot.slane %v3269_v8, 5  ;;  %v8071_v21 = vld [vmem:[%s8925_s22 + $0x34] sm:$0x1]  ;;  %v3222_v6 = vsel %vm8950_vm3, %v10108_v17, %v3221_v4  ;;  %v1949_v57 = vpop.permute.xlu0 %1948  ;;  %2834 = vrot.lane.b32.xlu1 %v2811_v14, %s8875_s28 }
 0x13a   : > { %1850 = vst.msk [vmem:[#allocation3 + $0x28] sm:$0xf] %vm525_vm1, %v1825_v27  ;;  %v3254_v41 = vrot.slane %v3252_v63, 4  ;;  %v3257_v43 = vrot.slane %v3255_v11, 5  ;;  %v3294_v19 = vshrl.u32 %v8076_v5, 16  ;;  %v3297_v9 = vshll.u32 %v8076_v5, 16 }
 0x13b   : > { %v8080_v22 = vld [vmem:[%s8925_s22 + $0x58] sm:$0xf]  ;;  %v3249_v48 = vrot.slane %v3247_v16, 5  ;;  %v3280_v32 = vshrl.u32 %v8074_v37, 16  ;;  %v3283_v52 = vshll.u32 %v8074_v37, 16  ;;  %v3208_v7 = vsel %vm8950_vm3, %v10112_v18, %v10114_v23  ;;  %2832 = vrot.lane.b32.xlu0 %v2807_v30, %s8875_s28  ;;  %v1955_v63 = vpop.permute.xlu1 %1954 }
 0x13c   : > { %1985 = vst.msk [vmem:[#allocation3 + $0x4] sm:$0xf] %vm673_vm7, %v1951_v26  ;;  %v3245_v49 = vrot.slane %v3244_v62, 4  ;;  %v10133_v44 = vrot.slane %v3233_v25, 5  ;;  %v3275_v1 = vshll.u32 %v8073_v31, 16  ;;  %v3231_v56 = vrot.slane %v3230_v45, 4 }
 0x13d   : > { %v8078_v39 = vld [vmem:[%s8925_s22 + $0x50] sm:$0xf]  ;;  %v3261_v53 = vshll.u32 %v8071_v21, 16  ;;  %v3322_v58 = vshrl.u32 %v8080_v22, 16  ;;  %v3325_v51 = vshll.u32 %v8080_v22, 16  ;;  %v3272_v0 = vor.u32 %v3271_v54, %v3268_v34  ;;  %v1953_v25 = vpop.permute.xlu0 %1952  ;;  %3365 = vrot.lane.b32.xlu1 %v3222_v6, %s8870_s23 }
 0x13e   : > { %v8084_v60 = vld [vmem:[%s8925_s22 + $0x68] sm:$0xf]  ;;  %1984 = vst.msk [vmem:[#allocation3] sm:$0xf] %vm673_vm7, %v1949_v57  ;;  %v3258_v50 = vor.u32 %v3257_v43, %v3254_v41  ;;  %v8077_v8 = vld [vmem:[%s8925_s22 + $0x4c] sm:$0x1]  ;;  %v3250_v16 = vsel %vm8950_vm3, %v3245_v49, %v3249_v48  ;;  %v3236_v37 = vsel %vm8950_vm3, %v3231_v56, %v10133_v44 }
 0x13f   : > { %v3296_v59 = vrot.slane %v3294_v19, 4  ;;  %v3299_v10 = vrot.slane %v3297_v9, 5  ;;  %v8075_v11 = vld [vmem:[%s8925_s22 + $0x44] sm:$0x1]  ;;  %v3282_v12 = vrot.slane %v3280_v32, 4  ;;  %v3285_v14 = vrot.slane %v3283_v52, 5  ;;  %3363 = vrot.lane.b32.xlu0 %v3208_v7, %s8870_s23  ;;  %v1959_v19 = vpop.permute.xlu1 %1958 }
 0x140   : > { %v3308_v17 = vshrl.u32 %v8078_v39, 16  ;;  %v3311_v4 = vshll.u32 %v8078_v39, 16  ;;  %1987 = vst.msk [vmem:[#allocation3 + $0xc] sm:$0xf] %vm673_vm7, %v1955_v63  ;;  %v3277_v5 = vrot.slane %v3275_v1, 5  ;;  %v3350_v23 = vshrl.u32 %v8084_v60, 16 }
 0x141   : > { %v8081_v18 = vld [vmem:[%s8925_s22 + $0x5c] sm:$0x1]  ;;  %v3353_v62 = vshll.u32 %v8084_v60, 16  ;;  %v3263_v27 = vrot.slane %v3261_v53, 5  ;;  %v3324_v30 = vrot.slane %v3322_v58, 4  ;;  %v3327_v45 = vrot.slane %v3325_v51, 5  ;;  %v1957_v39 = vpop.permute.xlu0 %1956  ;;  %3369 = vrot.lane.b32.xlu1 %v3250_v16, %s8870_s23 }
 0x142   : > { %v8082_v31 = vld [vmem:[%s8925_s22 + $0x60] sm:$0xf]  ;;  %1986 = vst.msk [vmem:[#allocation3 + $0x8] sm:$0xf] %vm673_vm7, %v1953_v25  ;;  %v3273_v34 = vrot.slane %v3272_v0, 4  ;;  %v3300_v54 = vor.u32 %v3299_v10, %v3296_v59  ;;  %v3303_v21 = vshll.u32 %v8077_v8, 16  ;;  %v3286_v22 = vor.u32 %v3285_v14, %v3282_v12 }
 0x143   : > { %v3289_v41 = vshll.u32 %v8075_v11, 16  ;;  %v8079_v43 = vld [vmem:[%s8925_s22 + $0x54] sm:$0x1]  ;;  %v3259_v9 = vrot.slane %v3258_v50, 4  ;;  %v3310_v26 = vrot.slane %v3308_v17, 4  ;;  %v3313_v6 = vrot.slane %v3311_v4, 5  ;;  %3367 = vrot.lane.b32.xlu0 %v3236_v37, %s8870_s23  ;;  %v1963_v0 = vpop.permute.xlu1 %1962 }
 0x144   : > { %v8085_v48 = vld [vmem:[%s8925_s22 + $0x6c] sm:$0x1]  ;;  %1989 = vst.msk [vmem:[#allocation3 + $0x14] sm:$0xf] %vm673_vm7, %v1959_v19  ;;  %v3352_v32 = vrot.slane %v3350_v23, 4  ;;  %v3355_v52 = vrot.slane %v3353_v62, 5  ;;  %v3328_v57 = vor.u32 %v3327_v45, %v3324_v30  ;;  %v3278_v53 = vsel %vm8950_vm3, %v3273_v34, %v3277_v5 }
 0x145   : > { %v8083_v49 = vld [vmem:[%s8925_s22 + $0x64] sm:$0x1]  ;;  %v3336_v44 = vshrl.u32 %v8082_v31, 16  ;;  %v3339_v1 = vshll.u32 %v8082_v31, 16  ;;  %v3331_v56 = vshll.u32 %v8081_v18, 16  ;;  %v3317_v7 = vshll.u32 %v8079_v43, 16  ;;  %v1961_v5 = vpop.permute.xlu0 %1960  ;;  %3373 = vrot.lane.b32.xlu1 %v3278_v53, %s8870_s23 }
 0x146   : > { %1988 = vst.msk [vmem:[#allocation3 + $0x10] sm:$0xf] %vm673_vm7, %v1957_v39  ;;  %v3301_v58 = vrot.slane %v3300_v54, 4  ;;  %v3305_v51 = vrot.slane %v3303_v21, 5  ;;  %v3359_v60 = vshll.u32 %v8085_v48, 16  ;;  %v3287_v50 = vrot.slane %v3286_v22, 4 }
 0x147   : > { %v3291_v8 = vrot.slane %v3289_v41, 5  ;;  %v3314_v59 = vor.u32 %v3313_v6, %v3310_v26  ;;  %v3345_v10 = vshll.u32 %v8083_v49, 16  ;;  %v10163_v63 = vld [vmem:[%s8925_s22 + $0x18] sm:$0xe]  ;;  %1991 = vst.msk [vmem:[#allocation3 + $0x1c] sm:$0xf] %vm673_vm7, %v1963_v0  ;;  %v3264_v11 = vsel %vm8950_vm3, %v3259_v9, %v3263_v27  ;;  %v1967_v34 = vpop.permute.xlu1 %1966 }
 0x148   : > { %v3356_v12 = vor.u32 %v3355_v52, %v3352_v32  ;;  %v3338_v14 = vrot.slane %v3336_v44, 4  ;;  %v3341_v17 = vrot.slane %v3339_v1, 5  ;;  %v10169_v4 = vld [vmem:[%s8925_s22 + $0x1c] sm:$0x1]  ;;  %v10172_v16 = vld [vmem:[%s8925_s22 + $0x10] sm:$0xe]  ;;  %v3306_v37 = vsel %vm8950_vm3, %v3301_v58, %v3305_v51  ;;  %3371 = vrot.lane.b32.xlu0 %v3264_v11, %s8870_s23 }
 0x149   : > { %v3329_v18 = vrot.slane %v3328_v57, 4  ;;  %v3333_v23 = vrot.slane %v3331_v56, 5  ;;  %v3319_v62 = vrot.slane %v3317_v7, 5  ;;  %v10176_v25 = vld [vmem:[%s8925_s22 + $0x14] sm:$0x1]  ;;  %v10181_v27 = vrot.slane %v3359_v60, 5  ;;  %v1965_v32 = vpop.permute.xlu0 %1964  ;;  %3377 = vrot.lane.b32.xlu1 %v3306_v37, %s8870_s23 }
 0x14a   : > { %1990 = vst.msk [vmem:[#allocation3 + $0x18] sm:$0xf] %vm673_vm7, %v1961_v5  ;;  %v8111_v30 = vrot.slane %v10163_v63, 9  ;;  %v10185_v45 = vld [vmem:[%s8925_s22 + $0x28] sm:$0xe]  ;;  %v3315_v54 = vrot.slane %v3314_v59, 4  ;;  %v3292_v19 = vsel %vm8950_vm3, %v3287_v50, %v3291_v8  ;;  %v3342_v22 = vor.u32 %v3341_v17, %v3338_v14 }
 0x14b   : > { %v10188_v31 = vld [vmem:[%s8925_s22 + $0x2c] sm:$0x1]  ;;  %v10191_v21 = vrot.slane %v3345_v10, 5  ;;  %v3465_v41 = vrot.slane %v10169_v4, 5  ;;  %v8110_v43 = vrot.slane %v10172_v16, 9  ;;  %v3357_v9 = vrot.slane %v3356_v12, 4  ;;  %v1971_v53 = vpop.permute.xlu1 %1970 }
 0x14c   : > { %1993 = vst.msk [vmem:[#allocation3 + $0x24] sm:$0xf] %vm673_vm7, %v1967_v34  ;;  %v3461_v26 = vrot.slane %v10176_v25, 5  ;;  %v8090_v6 = vld [vmem:[%s8925_s22 + $0x20] sm:$0xe]  ;;  %v8113_v52 = vrot.slane %v10185_v45, 9  ;;  %v3334_v39 = vsel %vm8950_vm3, %v3329_v18, %v3333_v23  ;;  %3375 = vrot.lane.b32.xlu0 %v3292_v19, %s8870_s23  ;;  %v3320_v58 = vsel %vm8950_vm3, %v3315_v54, %v3319_v62 }
 0x14d   : > { %v8091_v48 = vld [vmem:[%s8925_s22 + $0x24] sm:$0x1]  ;;  %v3473_v49 = vrot.slane %v10188_v31, 5  ;;  %v10205_v44 = vld [vmem:[%s8925_s22 + $0x38] sm:$0xe]  ;;  %v3362_v50 = vsel %vm8950_vm3, %v3357_v9, %v10181_v27  ;;  %v3343_v8 = vrot.slane %v3342_v22, 4  ;;  %v1969_v12 = vpop.permute.xlu0 %1968  ;;  %3381 = vrot.lane.b32.xlu1 %v3334_v39, %s8870_s23 }
 0x14e   : > { %v10208_v1 = vld [vmem:[%s8925_s22 + $0x3c] sm:$0x1]  ;;  %1992 = vst.msk [vmem:[#allocation3 + $0x20] sm:$0xf] %vm673_vm7, %v1965_v32  ;;  %v10214_v57 = vld [vmem:[%s8925_s22 + $0x30] sm:$0xe]  ;;  %v3462_v32 = vsel %vm9012_vm6, %v8110_v43, %v3461_v26 }
 0x14f   : > { %v10217_v56 = vld [vmem:[%s8925_s22 + $0x34] sm:$0x1]  ;;  %v10220_v7 = vld [vmem:[%s8925_s22 + $0x48] sm:$0xe]  ;;  %v10226_v51 = vld [vmem:[%s8925_s22 + $0x4c] sm:$0x1]  ;;  %v2239_v37 = vpop.permute.xlu1 %2238  ;;  %v3348_v54 = vsel %vm8950_vm3, %v3343_v8, %v10191_v21 }
 0x150   : > { %v10229_v60 = vld [vmem:[%s8925_s22 + $0x40] sm:$0xe]  ;;  %v10232_v0 = vld [vmem:[%s8925_s22 + $0x44] sm:$0x1]  ;;  %1995 = vst.msk [vmem:[#allocation3 + $0x2c] sm:$0xf] %vm673_vm7, %v1971_v53  ;;  %3379 = vrot.lane.b32.xlu0 %v3320_v58, %s8870_s23 }
 0x151   : > { %v8112_v59 = vrot.slane %v8090_v6, 9  ;;  %v3469_v10 = vrot.slane %v8091_v48, 5  ;;  %v8124_v11 = vld [vmem:[%s8925_s22 + $0x18] sm:$0xe]  ;;  %v8115_v14 = vrot.slane %v10205_v44, 9  ;;  %v3481_v17 = vrot.slane %v10208_v1, 5  ;;  %v2237_v6 = vpop.permute.xlu0 %2236  ;;  %3385 = vrot.lane.b32.xlu1 %v3362_v50, %s8870_s23 }
 0x152   : > { %v8114_v4 = vrot.slane %v10214_v57, 9  ;;  %v3477_v16 = vrot.slane %v10217_v56, 5  ;;  %1994 = vst.msk [vmem:[#allocation3 + $0x28] sm:$0xf] %vm673_vm7, %v1969_v12  ;;  %v8117_v5 = vrot.slane %v10220_v7, 9  ;;  %v3489_v18 = vrot.slane %v10226_v51, 5 }
 0x153   : > { %v8116_v23 = vrot.slane %v10229_v60, 9  ;;  %v3485_v62 = vrot.slane %v10232_v0, 5  ;;  %v8104_v25 = vld [vmem:[%s8925_s22 + $0x58] sm:$0xe]  ;;  %v8105_v27 = vld [vmem:[%s8925_s22 + $0x5c] sm:$0x1]  ;;  %v3466_v48 = vsel %vm9012_vm6, %v8111_v30, %v3465_v41  ;;  %v3474_v44 = vsel %vm9012_vm6, %v8113_v52, %v3473_v49  ;;  %v2243_v41 = vpop.permute.xlu1 %2242 }
 0x154   : > { %v8125_v45 = vld [vmem:[%s8925_s22 + $0x1c] sm:$0x3]  ;;  %v3598_v31 = vshrl.u32 %v8124_v11, 16  ;;  %v3601_v34 = vshll.u32 %v8124_v11, 16  ;;  %2273 = vst.msk [vmem:[#allocation3 + $0x4] sm:$0xf] %vm965_vm8, %v2239_v37  ;;  %v3470_v21 = vsel %vm9012_vm6, %v8112_v59, %v3469_v10  ;;  %3383 = vrot.lane.b32.xlu0 %v3348_v54, %s8870_s23  ;;  %v3482_v59 = vsel %vm9012_vm6, %v8115_v14, %v3481_v17 }
 0x155   : > { %v8102_v19 = vld [vmem:[%s8925_s22 + $0x50] sm:$0xe]  ;;  %v8103_v9 = vld [vmem:[%s8925_s22 + $0x54] sm:$0x1]  ;;  %v8108_v22 = vld [vmem:[%s8925_s22 + $0x68] sm:$0xe]  ;;  %v2241_v8 = vpop.permute.xlu0 %2240  ;;  %3509 = vrot.lane.b32.xlu1 %v3466_v48, %s8871_s24  ;;  %v3478_v10 = vsel %vm9012_vm6, %v8114_v4, %v3477_v16  ;;  %v10288_v11 = vsel %vm9012_vm6, %v8117_v5, %v3489_v18  ;;  %v10294_v37 = vsel %vm9012_vm6, %v8116_v23, %v3485_v62 }
 0x156   : > { %v8109_v1 = vld [vmem:[%s8925_s22 + $0x6c] sm:$0x1]  ;;  %v8106_v39 = vld [vmem:[%s8925_s22 + $0x60] sm:$0xe]  ;;  %v8107_v57 = vld [vmem:[%s8925_s22 + $0x64] sm:$0x1] }
 0x157   : > { %2272 = vst.msk [vmem:[#allocation3] sm:$0xf] %vm965_vm8, %v2237_v6  ;;  %v8119_v56 = vrot.slane %v8104_v25, 9  ;;  %v3497_v63 = vrot.slane %v8105_v27, 5  ;;  %v3607_v7 = vshrl.u32 %v8125_v45, 16  ;;  %v3610_v53 = vshll.u32 %v8125_v45, 16  ;;  %v2247_v4 = vpop.permute.xlu1 %2246 }
 0x158   : > { %v8122_v30 = vld [vmem:[%s8925_s22 + $0x10] sm:$0xe]  ;;  %v8118_v43 = vrot.slane %v8102_v19, 9  ;;  %v3493_v26 = vrot.slane %v8103_v9, 5  ;;  %v3600_v52 = vrot.slane %v3598_v31, 5  ;;  %v3603_v49 = vrot.slane %v3601_v34, 6  ;;  %3507 = vrot.lane.b32.xlu0 %v3462_v32, %s8871_s24 }
 0x159   : > { %2275 = vst.msk [vmem:[#allocation3 + $0xc] sm:$0xf] %vm965_vm8, %v2243_v41  ;;  %v8121_v58 = vrot.slane %v8108_v22, 9  ;;  %v3505_v51 = vrot.slane %v8109_v1, 5  ;;  %v8120_v60 = vrot.slane %v8106_v39, 9  ;;  %v3501_v0 = vrot.slane %v8107_v57, 5  ;;  %v2245_v22 = vpop.permute.xlu0 %2244  ;;  %3513 = vrot.lane.b32.xlu1 %v3474_v44, %s8871_s24 }
 0x15a   : > { %v10279_v50 = vld [vmem:[%s8925_s22 + $0x14] sm:$0x3]  ;;  %v3580_v12 = vshrl.u32 %v8122_v30, 16  ;;  %v8128_v25 = vld [vmem:[%s8925_s22 + $0x28] sm:$0xe]  ;;  %v10296_v27 = vrot.slane %v3607_v7, 5  ;;  %v10302_v16 = vsel %vm9012_vm6, %v8119_v56, %v3497_v63  ;;  %v10306_v5 = vsel %vm9012_vm6, %v8118_v43, %v3493_v26 }
 0x15b   : > { %2274 = vst.msk [vmem:[#allocation3 + $0x8] sm:$0xf] %vm965_vm8, %v2241_v8  ;;  %v3612_v14 = vrot.slane %v3610_v53, 6  ;;  %v3583_v17 = vshll.u32 %v8122_v30, 16  ;;  %v8126_v45 = vld [vmem:[%s8925_s22 + $0x20] sm:$0xe]  ;;  %v3604_v18 = vor.u32 %v3603_v49, %v3600_v52  ;;  %v10313_v31 = vsel %vm9012_vm6, %v8121_v58, %v3505_v51  ;;  %v2251_v44 = vpop.permute.xlu1 %2250 }
 0x15c   : > { %v3589_v23 = vshrl.u32 %v10279_v50, 16  ;;  %v8132_v62 = vld [vmem:[%s8925_s22 + $0x38] sm:$0xe]  ;;  %2277 = vst.msk [vmem:[#allocation3 + $0x14] sm:$0xf] %vm965_vm8, %v2247_v4  ;;  %v10317_v34 = vsel %vm9012_vm6, %v8120_v60, %v3501_v0  ;;  %v3634_v54 = vshrl.u32 %v8128_v25, 16  ;;  %3511 = vrot.lane.b32.xlu0 %v3470_v21, %s8871_s24 }
 0x15d   : > { %v3637_v19 = vshll.u32 %v8128_v25, 16  ;;  %v8130_v9 = vld [vmem:[%s8925_s22 + $0x30] sm:$0xe]  ;;  %v10321_v6 = vrot.slane %v3580_v12, 5  ;;  %v3592_v48 = vshll.u32 %v10279_v50, 16  ;;  %v3616_v1 = vshrl.u32 %v8126_v45, 16  ;;  %v2249_v50 = vpop.permute.xlu0 %2248  ;;  %3517 = vrot.lane.b32.xlu1 %v3482_v59, %s8871_s24 }
 0x15e   : > { %v8129_v32 = vld [vmem:[%s8925_s22 + $0x2c] sm:$0x3]  ;;  %v3619_v39 = vshll.u32 %v8126_v45, 16  ;;  %2276 = vst.msk [vmem:[#allocation3 + $0x10] sm:$0xf] %vm965_vm8, %v2245_v22  ;;  %v3613_v57 = vor.u32 %v3612_v14, %v10296_v27  ;;  %v3585_v56 = vrot.slane %v3583_v17, 6 }
 0x15f   : > { %v8127_v63 = vld [vmem:[%s8925_s22 + $0x24] sm:$0x3]  ;;  %v3670_v7 = vshrl.u32 %v8132_v62, 16  ;;  %v3673_v53 = vshll.u32 %v8132_v62, 16  ;;  %v3605_v30 = vrot.slane %v3604_v18, 4  ;;  %v10329_v41 = vrot.slane %v3589_v23, 5  ;;  %v2255_v4 = vpop.permute.xlu1 %2254 }
 0x160   : > { %v8133_v43 = vld [vmem:[%s8925_s22 + $0x3c] sm:$0x3]  ;;  %v3652_v26 = vshrl.u32 %v8130_v9, 16  ;;  %v3655_v52 = vshll.u32 %v8130_v9, 16  ;;  %2279 = vst.msk [vmem:[#allocation3 + $0x1c] sm:$0xf] %vm965_vm8, %v2251_v44  ;;  %3515 = vrot.lane.b32.xlu0 %v3478_v10, %s8871_s24 }
 0x161   : > { %v3636_v49 = vrot.slane %v3634_v54, 5  ;;  %v3639_v58 = vrot.slane %v3637_v19, 6  ;;  %v3643_v51 = vshrl.u32 %v8129_v32, 16  ;;  %v3646_v60 = vshll.u32 %v8129_v32, 16  ;;  %v8131_v0 = vld [vmem:[%s8925_s22 + $0x34] sm:$0x3]  ;;  %3521 = vrot.lane.b32.xlu1 %v10288_v11, %s8871_s24 }
 0x162   : > { %v3618_v8 = vrot.slane %v3616_v1, 5  ;;  %v3621_v12 = vrot.slane %v3619_v39, 6  ;;  %v3625_v21 = vshrl.u32 %v8127_v63, 16  ;;  %v3628_v25 = vshll.u32 %v8127_v63, 16  ;;  %2278 = vst.msk [vmem:[#allocation3 + $0x18] sm:$0xf] %vm965_vm8, %v2249_v50  ;;  %v2253_v1 = vpop.permute.xlu0 %2252 }
 0x163   : > { %v3672_v27 = vrot.slane %v3670_v7, 5  ;;  %v3675_v14 = vrot.slane %v3673_v53, 6  ;;  %v3679_v17 = vshrl.u32 %v8133_v43, 16  ;;  %v3682_v45 = vshll.u32 %v8133_v43, 16  ;;  %2281 = vst.msk [vmem:[#allocation3 + $0x24] sm:$0xf] %vm965_vm8, %v2255_v4 }
 0x164   : > { %v3654_v18 = vrot.slane %v3652_v26, 5  ;;  %v3657_v23 = vrot.slane %v3655_v52, 6  ;;  %v3661_v62 = vshrl.u32 %v8131_v0, 16  ;;  %v3664_v54 = vshll.u32 %v8131_v0, 16  ;;  %v8136_v32 = vld [vmem:[%s8925_s22 + $0x48] sm:$0xe]  ;;  %3519 = vrot.lane.b32.xlu0 %v10294_v37, %s8871_s24 }
 0x165   : > { %v10340_v59 = vsel %vm9084_vm9, %v3605_v30, %v3613_v57  ;;  %v3586_v19 = vor.u32 %v3585_v56, %v10321_v6  ;;  %v3594_v9 = vrot.slane %v3592_v48, 6  ;;  %v3640_v22 = vor.u32 %v3639_v58, %v3636_v49  ;;  %2280 = vst.msk [vmem:[#allocation3 + $0x20] sm:$0xf] %vm965_vm8, %v2253_v1  ;;  %v8134_v6 = vld [vmem:[%s8925_s22 + $0x40] sm:$0xe]  ;;  %v2259_v48 = vpop.permute.xlu1 %2258  ;;  %3525 = vrot.lane.b32.xlu1 %v10302_v16, %s8871_s24 }
 0x166   : > { %v3645_v10 = vrot.slane %v3643_v51, 5  ;;  %v3648_v39 = vrot.slane %v3646_v60, 6  ;;  %v3622_v63 = vor.u32 %v3621_v12, %v3618_v8  ;;  %v3627_v7 = vrot.slane %v3625_v21, 5  ;;  %v8137_v26 = vld [vmem:[%s8925_s22 + $0x4c] sm:$0x3]  ;;  %v2257_v50 = vpop.permute.xlu0 %2256 }
 0x167   : > { %v3630_v53 = vrot.slane %v3628_v25, 6  ;;  %v3676_v57 = vor.u32 %v3675_v14, %v3672_v27  ;;  %v3681_v44 = vrot.slane %v3679_v17, 5  ;;  %v3684_v30 = vrot.slane %v3682_v45, 6  ;;  %2283 = vst.msk [vmem:[#allocation3 + $0x2c] sm:$0xf] %vm965_vm8, %v2259_v48 }
 0x168   : > { %v3658_v56 = vor.u32 %v3657_v23, %v3654_v18  ;;  %v3663_v43 = vrot.slane %v3661_v62, 5  ;;  %v3666_v11 = vrot.slane %v3664_v54, 6  ;;  %v3706_v52 = vshrl.u32 %v8136_v32, 16  ;;  %v8135_v0 = vld [vmem:[%s8925_s22 + $0x44] sm:$0x3]  ;;  %3523 = vrot.lane.b32.xlu0 %v10306_v5, %s8871_s24 }
 0x169   : > { %v3587_v49 = vrot.slane %v3586_v19, 4  ;;  %v3595_v58 = vor.u32 %v3594_v9, %v10329_v41  ;;  %v3641_v51 = vrot.slane %v3640_v22, 4  ;;  %v3709_v60 = vshll.u32 %v8136_v32, 16  ;;  %v8140_v25 = vld [vmem:[%s8925_s22 + $0x58] sm:$0xe]  ;;  %v2383_v41 = vpop.permute.xlu1 %2382  ;;  %3529 = vrot.lane.b32.xlu1 %v10313_v31, %s8871_s24 }
 0x16a   : > { %v3649_v37 = vor.u32 %v3648_v39, %v3645_v10  ;;  %v3623_v8 = vrot.slane %v3622_v63, 4  ;;  %v3688_v12 = vshrl.u32 %v8134_v6, 16  ;;  %v3691_v21 = vshll.u32 %v8134_v6, 16  ;;  %2282 = vst.msk [vmem:[#allocation3 + $0x28] sm:$0xf] %vm965_vm8, %v2257_v50  ;;  %v2381_v32 = vpop.permute.xlu0 %2380 }
 0x16b   : > { %v3631_v27 = vor.u32 %v3630_v53, %v3627_v7  ;;  %v3677_v14 = vrot.slane %v3676_v57, 4  ;;  %v3685_v17 = vor.u32 %v3684_v30, %v3681_v44  ;;  %v3715_v45 = vshrl.u32 %v8137_v26, 16  ;;  %v8138_v62 = vld [vmem:[%s8925_s22 + $0x50] sm:$0xe]  ;;  %2417 = vst.msk [vmem:[#allocation3 + $0x4] sm:$0xf] %vm1113_vm10, %v2383_v41 }
 0x16c   : > { %v3659_v4 = vrot.slane %v3658_v56, 4  ;;  %v3667_v18 = vor.u32 %v3666_v11, %v3663_v43  ;;  %v3708_v23 = vrot.slane %v3706_v52, 5  ;;  %v3718_v16 = vshll.u32 %v8137_v26, 16  ;;  %2416 = vst.msk [vmem:[#allocation3] sm:$0xf] %vm1113_vm10, %v2381_v32  ;;  %3527 = vrot.lane.b32.xlu0 %v10317_v34, %s8871_s24 }
 0x16d   : > { %v3711_v54 = vrot.slane %v3709_v60, 6  ;;  %v3697_v19 = vshrl.u32 %v8135_v0, 16  ;;  %v3700_v9 = vshll.u32 %v8135_v0, 16  ;;  %v3742_v22 = vshrl.u32 %v8140_v25, 16  ;;  %v8141_v53 = vld [vmem:[%s8925_s22 + $0x5c] sm:$0x3]  ;;  %v2387_v30 = vpop.permute.xlu1 %2386  ;;  %3797 = vrot.lane.b32.xlu1 %v10340_v59, %s8872_s25 }
 0x16e   : > { %v3596_v5 = vsel %vm9084_vm9, %v3587_v49, %v3595_v58  ;;  %v10366_v1 = vrot.slane %v3688_v12, 5  ;;  %v10368_v10 = vrot.slane %v3691_v21, 6  ;;  %v3745_v39 = vshll.u32 %v8140_v25, 16  ;;  %v8139_v57 = vld [vmem:[%s8925_s22 + $0x54] sm:$0x3] }
 0x16f   : > { %v3650_v63 = vsel %vm9084_vm9, %v3641_v51, %v3649_v37  ;;  %v3632_v7 = vsel %vm9084_vm9, %v3623_v8, %v3631_v27  ;;  %v10377_v31 = vsel %vm9084_vm9, %v3677_v14, %v3685_v17  ;;  %v3724_v44 = vshrl.u32 %v8138_v62, 16  ;;  %v8144_v11 = vld [vmem:[%s8925_s22 + $0x68] sm:$0xe]  ;;  %2419 = vst.msk [vmem:[#allocation3 + $0xc] sm:$0xf] %vm1113_vm10, %v2387_v30  ;;  %v2385_v51 = vpop.permute.xlu0 %2384 }
 0x170   : > { %v10385_v6 = vsel %vm9084_vm9, %v3659_v4, %v3667_v18  ;;  %v10387_v48 = vrot.slane %v3715_v45, 5  ;;  %v10389_v56 = vrot.slane %v3718_v16, 6  ;;  %v3727_v43 = vshll.u32 %v8138_v62, 16  ;;  %v8025_v58 = vld [vmem:[%s12248_s1 + $0x4] sm:$0xf]  ;;  %3795 = vrot.lane.b32.xlu0 %v3596_v5, %s8872_s25 }
 0x171   : > { %v3712_v26 = vor.u32 %v3711_v54, %v3708_v23  ;;  %v10393_v52 = vrot.slane %v3697_v19, 5  ;;  %v10395_v49 = vrot.slane %v3700_v9, 6  ;;  %v3744_v34 = vrot.slane %v3742_v22, 5  ;;  %v8142_v8 = vld [vmem:[%s8925_s22 + $0x60] sm:$0xe]  ;;  %v2391_v27 = vpop.permute.xlu1 %2390  ;;  %3801 = vrot.lane.b32.xlu1 %v3650_v63, %s8872_s25 }
 0x172   : > { %v3694_v60 = vor.u32 %v10368_v10, %v10366_v1  ;;  %v3747_v0 = vrot.slane %v3745_v39, 6  ;;  %v3751_v50 = vshrl.u32 %v8141_v53, 16  ;;  %v3754_v37 = vshll.u32 %v8141_v53, 16  ;;  %2418 = vst.msk [vmem:[#allocation3 + $0x8] sm:$0xf] %vm1113_vm10, %v2385_v51 }
 0x173   : > { %v3726_v12 = vrot.slane %v3724_v44, 5  ;;  %v3778_v21 = vshrl.u32 %v8144_v11, 16  ;;  %v3781_v25 = vshll.u32 %v8144_v11, 16  ;;  %vm2925_vm15 = vcmask 1043456   ;;  %v8145_v45 = vld [vmem:[%s8925_s22 + $0x6c] sm:$0x3]  ;;  %v2389_v62 = vpop.permute.xlu0 %2388 }
 0x174   : > { %v3729_v14 = vrot.slane %v3727_v43, 6  ;;  %v3733_v17 = vshrl.u32 %v8139_v57, 16  ;;  %v3736_v59 = vshll.u32 %v8139_v57, 16  ;;  %8801 = vmatprep.subr.msk.bf16.mxu0 %vm2925_vm15, %v8025_v58  ;;  %v2927_v41 = vsel %vm2925_vm15, %v8025_v58, 0  ;;  %2421 = vst.msk [vmem:[#allocation3 + $0x14] sm:$0xf] %vm1113_vm10, %v2391_v27  ;;  %8802 = vmatprep.subr.msk.bf16.mxu1 %vm2925_vm15, %v8025_v58 }
 0x175   : > { %v3713_v4 = vrot.slane %v3712_v26, 4  ;;  %v3721_v18 = vor.u32 %v10389_v56, %v10387_v48  ;;  %v3760_v23 = vshrl.u32 %v8142_v8, 16  ;;  %v3763_v16 = vshll.u32 %v8142_v8, 16  ;;  %8730 = vmatpush3.bf16.msra.mxu0 %v2927_v41  ;;  %v8143_v32 = vld [vmem:[%s8925_s22 + $0x64] sm:$0x3]  ;;  %8800 = vmatpush3.bf16.msra.mxu1 %v2927_v41  ;;  %v2395_v53 = vpop.permute.xlu1 %2394 }
 0x176   : > { %v3703_v54 = vor.u32 %v10395_v49, %v10393_v52  ;;  %v3748_v19 = vor.u32 %v3747_v0, %v3744_v34  ;;  %v3753_v9 = vrot.slane %v3751_v50, 5  ;;  %v3756_v22 = vrot.slane %v3754_v37, 6  ;;  %2420 = vst.msk [vmem:[#allocation3 + $0x10] sm:$0xf] %vm1113_vm10, %v2389_v62  ;;  %3799 = vrot.lane.b32.xlu0 %v3632_v7, %s8872_s25  ;;  %2423 = vst.msk [vmem:[#allocation3 + $0x1c] sm:$0xf] %vm1113_vm10, %v2395_v53 }
 0x177   : > { %v3780_v5 = vrot.slane %v3778_v21, 5  ;;  %v3783_v1 = vrot.slane %v3781_v25, 6  ;;  %v3787_v10 = vshrl.u32 %v8145_v45, 16  ;;  %v3790_v39 = vshll.u32 %v8145_v45, 16  ;;  %v2393_v26 = vpop.permute.xlu0 %2392  ;;  %3805 = vrot.lane.b32.xlu1 %v10377_v31, %s8872_s25 }
 0x178   : > { %v3695_v57 = vrot.slane %v3694_v60, 4  ;;  %v3730_v44 = vor.u32 %v3729_v14, %v3726_v12  ;;  %v3735_v63 = vrot.slane %v3733_v17, 5  ;;  %v3738_v30 = vrot.slane %v3736_v59, 6  ;;  %2422 = vst.msk [vmem:[#allocation3 + $0x18] sm:$0xf] %vm1113_vm10, %v2393_v26 }
 0x179   : > { %v3762_v48 = vrot.slane %v3760_v23, 5  ;;  %v3765_v56 = vrot.slane %v3763_v16, 6  ;;  %v3769_v43 = vshrl.u32 %v8143_v32, 16  ;;  %v3772_v11 = vshll.u32 %v8143_v32, 16  ;;  %v2399_v60 = vpop.permute.xlu1 %2398  ;;  %v8148_v17 = vld [vmem:[%s8925_s22 + $0x18] sm:$0xc] }
 0x17a   : > { %v3722_v52 = vsel %vm9084_vm9, %v3713_v4, %v3721_v18  ;;  %v3749_v49 = vrot.slane %v3748_v19, 4  ;;  %v3757_v7 = vor.u32 %v3756_v22, %v3753_v9  ;;  %v3784_v34 = vor.u32 %v3783_v1, %v3780_v5  ;;  %3803 = vrot.lane.b32.xlu0 %v10385_v6, %s8872_s25  ;;  %2425 = vst.msk [vmem:[#allocation3 + $0x24] sm:$0xf] %vm1113_vm10, %v2399_v60  ;;  %v8149_v59 = vld [vmem:[%s8925_s22 + $0x1c] sm:$0x3] }
 0x17b   : > { %v3789_v58 = vrot.slane %v3787_v10, 5  ;;  %v3792_v51 = vrot.slane %v3790_v39, 6  ;;  %v3704_v0 = vsel %vm9084_vm9, %v3695_v57, %v3703_v54  ;;  %v3731_v31 = vrot.slane %v3730_v44, 4  ;;  %v2397_v21 = vpop.permute.xlu0 %2396  ;;  %3809 = vrot.lane.b32.xlu1 %v3722_v52, %s8872_s25  ;;  %v8146_v23 = vld [vmem:[%s8925_s22 + $0x10] sm:$0xc] }
 0x17c   : > { %v3739_v50 = vor.u32 %v3738_v30, %v3735_v63  ;;  %v3766_v37 = vor.u32 %v3765_v56, %v3762_v48  ;;  %v3771_v8 = vrot.slane %v3769_v43, 5  ;;  %v3774_v12 = vrot.slane %v3772_v11, 6  ;;  %2424 = vst.msk [vmem:[#allocation3 + $0x20] sm:$0xf] %vm1113_vm10, %v2397_v21  ;;  %v8147_v16 = vld [vmem:[%s8925_s22 + $0x14] sm:$0x3] }
 0x17d   : > { %v3758_v6 = vsel %vm9084_vm9, %v3749_v49, %v3757_v7  ;;  %v3785_v25 = vrot.slane %v3784_v34, 4  ;;  %v3793_v27 = vor.u32 %v3792_v51, %v3789_v58  ;;  %v2403_v14 = vpop.permute.xlu1 %2402  ;;  %v8171_v54 = vrot.slane %v8148_v17, 10  ;;  %v8152_v22 = vld [vmem:[%s8925_s22 + $0x28] sm:$0xc]  ;;  %v8153_v32 = vld [vmem:[%s8925_s22 + $0x2c] sm:$0x3] }
 0x17e   : > { %3807 = vrot.lane.b32.xlu0 %v3704_v0, %s8872_s25  ;;  %2427 = vst.msk [vmem:[#allocation3 + $0x2c] sm:$0xf] %vm1113_vm10, %v2403_v14  ;;  %v3740_v45 = vsel %vm9084_vm9, %v3731_v31, %v3739_v50  ;;  %v3767_v41 = vrot.slane %v3766_v37, 4  ;;  %v3775_v4 = vor.u32 %v3774_v12, %v3771_v8  ;;  %v3897_v19 = vrot.slane %v8149_v59, 6  ;;  %v10453_v5 = vld [vmem:[%s12248_s1] sm:$0xf] }
 0x17f   : > { %v2401_v18 = vpop.permute.xlu0 %2400  ;;  %3813 = vrot.lane.b32.xlu1 %v3758_v6, %s8872_s25  ;;  %v3794_v62 = vsel %vm9084_vm9, %v3785_v25, %v3793_v27  ;;  %v8170_v10 = vrot.slane %v8146_v23, 10  ;;  %v3893_v39 = vrot.slane %v8147_v16, 6  ;;  %8803 = vmatprep.subr.msk.bf16.mxu1 %vm2925_vm15, %v10453_v5  ;;  %v8150_v57 = vld [vmem:[%s8925_s22 + $0x20] sm:$0xc]  ;;  %v8151_v44 = vld [vmem:[%s8925_s22 + $0x24] sm:$0x3] }
 0x180   : > { %2426 = vst.msk [vmem:[#allocation3 + $0x28] sm:$0xf] %vm1113_vm10, %v2401_v18  ;;  %v3776_v1 = vsel %vm9084_vm9, %v3767_v41, %v3775_v4  ;;  %v3898_v63 = vsel %vm9171_vm12, %v8171_v54, %v3897_v19  ;;  %v8173_v30 = vrot.slane %v8152_v22, 10  ;;  %v3905_v48 = vrot.slane %v8153_v32, 6  ;;  %v8156_v56 = vld [vmem:[%s8925_s22 + $0x38] sm:$0xc] }
 0x181   : > { %v2671_v9 = vpop.permute.xlu1 %2670  ;;  %v8157_v43 = vld [vmem:[%s8925_s22 + $0x3c] sm:$0x3]  ;;  %v8154_v26 = vld [vmem:[%s8925_s22 + $0x30] sm:$0xc]  ;;  %v8155_v52 = vld [vmem:[%s8925_s22 + $0x34] sm:$0x3]  ;;  %v3894_v49 = vsel %vm9171_vm12, %v8170_v10, %v3893_v39 }
 0x182   : > { %3811 = vrot.lane.b32.xlu0 %v3740_v45, %s8872_s25  ;;  %2705 = vst.msk [vmem:[#allocation3 + $0x4] sm:$0xf] %vm1405_vm11, %v2671_v9  ;;  %v8172_v7 = vrot.slane %v8150_v57, 10  ;;  %v3901_v34 = vrot.slane %v8151_v44, 6  ;;  %v8160_v58 = vld [vmem:[%s8925_s22 + $0x48] sm:$0xc]  ;;  %v3906_v8 = vsel %vm9171_vm12, %v8173_v30, %v3905_v48 }
 0x183   : > { %v2669_v53 = vpop.permute.xlu0 %2668  ;;  %3817 = vrot.lane.b32.xlu1 %v3794_v62, %s8872_s25  ;;  %v8161_v51 = vld [vmem:[%s8925_s22 + $0x4c] sm:$0x3]  ;;  %v8175_v0 = vrot.slane %v8156_v56, 10  ;;  %v3913_v31 = vrot.slane %v8157_v43, 6  ;;  %v10478_v50 = vld [vmem:[%s8925_s22 + $0x40] sm:$0xc] }
 0x184   : > { %2704 = vst.msk [vmem:[#allocation3] sm:$0xf] %vm1405_vm11, %v2669_v53  ;;  %v8184_v37 = vld [vmem:[%s8925_s22 + $0x18] sm:$0xc]  ;;  %v8174_v12 = vrot.slane %v8154_v26, 10  ;;  %v3909_v21 = vrot.slane %v8155_v52, 6  ;;  %v3902_v41 = vsel %vm9171_vm12, %v8172_v7, %v3901_v34 }
 0x185   : > { %v2675_v11 = vpop.permute.xlu1 %2674  ;;  %v8159_v6 = vld [vmem:[%s8925_s22 + $0x44] sm:$0x3]  ;;  %v8182_v25 = vld [vmem:[%s8925_s22 + $0x10] sm:$0xc]  ;;  %v8177_v14 = vrot.slane %v8160_v58, 10  ;;  %v3921_v17 = vrot.slane %v8161_v51, 6  ;;  %v3914_v54 = vsel %vm9171_vm12, %v8175_v0, %v3913_v31 }
 0x186   : > { %3815 = vrot.lane.b32.xlu0 %v3776_v1, %s8872_s25  ;;  %2707 = vst.msk [vmem:[#allocation3 + $0xc] sm:$0xf] %vm1405_vm11, %v2675_v11  ;;  %v8164_v59 = vld [vmem:[%s8925_s22 + $0x58] sm:$0xc]  ;;  %v8188_v45 = vld [vmem:[%s8925_s22 + $0x28] sm:$0xc]  ;;  %v3910_v1 = vsel %vm9171_vm12, %v8174_v12, %v3909_v21 }
 0x187   : > { %v2673_v60 = vpop.permute.xlu0 %2672  ;;  %3941 = vrot.lane.b32.xlu1 %v3898_v63, %s8873_s26  ;;  %v8165_v4 = vld [vmem:[%s8925_s22 + $0x5c] sm:$0x3]  ;;  %v10494_v18 = vld [vmem:[%s8925_s22 + $0x50] sm:$0xc]  ;;  %v4030_v23 = vshrl.u32 %v8184_v37, 16  ;;  %v4033_v16 = vshll.u32 %v8184_v37, 16  ;;  %v3922_v30 = vsel %vm9171_vm12, %v8177_v14, %v3921_v17 }
 0x188   : > { %2706 = vst.msk [vmem:[#allocation3 + $0x8] sm:$0xf] %vm1405_vm11, %v2673_v60  ;;  %v8176_v19 = vrot.slane %v10478_v50, 10  ;;  %v8185_v9 = vld [vmem:[%s8925_s22 + $0x1c] sm:$0x7]  ;;  %v4012_v22 = vshrl.u32 %v8182_v25, 16 }
 0x189   : > { %v2679_v27 = vpop.permute.xlu1 %2678  ;;  %v4015_v32 = vshll.u32 %v8182_v25, 16  ;;  %v3917_v10 = vrot.slane %v8159_v6, 6  ;;  %v10505_v39 = vld [vmem:[%s8925_s22 + $0x54] sm:$0x3]  ;;  %v4066_v57 = vshrl.u32 %v8188_v45, 16  ;;  %v4069_v44 = vshll.u32 %v8188_v45, 16 }
 0x18a   : > { %3939 = vrot.lane.b32.xlu0 %v3894_v49, %s8873_s26  ;;  %2709 = vst.msk [vmem:[#allocation3 + $0x14] sm:$0xf] %vm1405_vm11, %v2679_v27  ;;  %v8183_v53 = vld [vmem:[%s8925_s22 + $0x14] sm:$0x7]  ;;  %v8179_v48 = vrot.slane %v8164_v59, 10  ;;  %v3929_v56 = vrot.slane %v8165_v4, 6 }
 0x18b   : > { %v2677_v62 = vpop.permute.xlu0 %2676  ;;  %3945 = vrot.lane.b32.xlu1 %v3906_v8, %s8873_s26  ;;  %v8178_v43 = vrot.slane %v10494_v18, 10  ;;  %v8168_v11 = vld [vmem:[%s8925_s22 + $0x68] sm:$0xc]  ;;  %v8189_v26 = vld [vmem:[%s8925_s22 + $0x2c] sm:$0x7]  ;;  %v4032_v52 = vrot.slane %v4030_v23, 6  ;;  %v3918_v27 = vsel %vm9171_vm12, %v8176_v19, %v3917_v10 }
 0x18c   : > { %2708 = vst.msk [vmem:[#allocation3 + $0x10] sm:$0xf] %vm1405_vm11, %v2677_v62  ;;  %v4035_v49 = vrot.slane %v4033_v16, 7  ;;  %v4039_v7 = vshrl.u32 %v8185_v9, 16  ;;  %v4042_v34 = vshll.u32 %v8185_v9, 16  ;;  %v4014_v0 = vrot.slane %v4012_v22, 6 }
 0x18d   : > { %v2683_v63 = vpop.permute.xlu1 %2682  ;;  %v8186_v58 = vld [vmem:[%s8925_s22 + $0x20] sm:$0xc]  ;;  %v8169_v60 = vld [vmem:[%s8925_s22 + $0x6c] sm:$0x3]  ;;  %v4017_v31 = vrot.slane %v4015_v32, 7  ;;  %v4021_v50 = vshrl.u32 %v8183_v53, 16  ;;  %v3930_v45 = vsel %vm9171_vm12, %v8179_v48, %v3929_v56 }
 0x18e   : > { %3943 = vrot.lane.b32.xlu0 %v3902_v41, %s8873_s26  ;;  %2711 = vst.msk [vmem:[#allocation3 + $0x1c] sm:$0xf] %vm1405_vm11, %v2683_v63  ;;  %v4024_v37 = vshll.u32 %v8183_v53, 16  ;;  %v4068_v8 = vrot.slane %v4066_v57, 6  ;;  %v4071_v12 = vrot.slane %v4069_v44, 7  ;;  %v4075_v21 = vshrl.u32 %v8189_v26, 16 }
 0x18f   : > { %v2681_v51 = vpop.permute.xlu0 %2680  ;;  %3949 = vrot.lane.b32.xlu1 %v3914_v54, %s8873_s26  ;;  %v4078_v6 = vshll.u32 %v8189_v26, 16  ;;  %v3925_v14 = vrot.slane %v10505_v39, 6  ;;  %v4048_v17 = vshrl.u32 %v8186_v58, 16  ;;  %v4051_v59 = vshll.u32 %v8186_v58, 16  ;;  %v8187_v23 = vld [vmem:[%s8925_s22 + $0x24] sm:$0x7] }
 0x190   : > { %2710 = vst.msk [vmem:[#allocation3 + $0x18] sm:$0xf] %vm1405_vm11, %v2681_v51  ;;  %v8181_v41 = vrot.slane %v8168_v11, 10  ;;  %v3937_v4 = vrot.slane %v8169_v60, 6  ;;  %v4041_v18 = vrot.slane %v4039_v7, 6  ;;  %v4036_v9 = vor.u32 %v4035_v49, %v4032_v52 }
 0x191   : > { %v2687_v25 = vpop.permute.xlu1 %2686  ;;  %v8166_v62 = vld [vmem:[%s8925_s22 + $0x60] sm:$0xc]  ;;  %v8167_v54 = vld [vmem:[%s8925_s22 + $0x64] sm:$0x3]  ;;  %v4044_v19 = vrot.slane %v4042_v34, 7  ;;  %v4018_v22 = vor.u32 %v4017_v31, %v4014_v0  ;;  %v4023_v32 = vrot.slane %v4021_v50, 6  ;;  %v4072_v10 = vor.u32 %v4071_v12, %v4068_v8 }
 0x192   : > { %3947 = vrot.lane.b32.xlu0 %v3910_v1, %s8873_s26  ;;  %2713 = vst.msk [vmem:[#allocation3 + $0x24] sm:$0xf] %vm1405_vm11, %v2687_v25  ;;  %v4026_v1 = vrot.slane %v4024_v37, 7  ;;  %v4077_v39 = vrot.slane %v4075_v21, 6  ;;  %v4080_v53 = vrot.slane %v4078_v6, 7  ;;  %v4050_v44 = vrot.slane %v4048_v17, 6 }
 0x193   : > { %v2685_v16 = vpop.permute.xlu0 %2684  ;;  %3953 = vrot.lane.b32.xlu1 %v3922_v30, %s8873_s26  ;;  %v4053_v63 = vrot.slane %v4051_v59, 7  ;;  %v4057_v48 = vshrl.u32 %v8187_v23, 16  ;;  %v4060_v30 = vshll.u32 %v8187_v23, 16  ;;  %v3926_v56 = vsel %vm9171_vm12, %v8178_v43, %v3925_v14  ;;  %v8192_v58 = vld [vmem:[%s8925_s22 + $0x38] sm:$0xc] }
 0x194   : > { %2712 = vst.msk [vmem:[#allocation3 + $0x20] sm:$0xf] %vm1405_vm11, %v2685_v16  ;;  %v8180_v11 = vrot.slane %v8166_v62, 10  ;;  %v3933_v26 = vrot.slane %v8167_v54, 6  ;;  %v3938_v49 = vsel %vm9171_vm12, %v8181_v41, %v3937_v4  ;;  %v4037_v7 = vrot.slane %v4036_v9, 4 }
 0x195   : > { %v2691_v57 = vpop.permute.xlu1 %2690  ;;  %v4045_v34 = vor.u32 %v4044_v19, %v4041_v18  ;;  %v4019_v51 = vrot.slane %v4018_v22, 4  ;;  %v4027_v60 = vor.u32 %v4026_v1, %v4023_v32  ;;  %v4073_v0 = vrot.slane %v4072_v10, 4  ;;  %v8208_v31 = vld [vmem:[%s8925_s22 + $0x18] sm:$0x8]  ;;  %v8209_v50 = vld [vmem:[%s8925_s22 + $0x1c] sm:$0x7] }
 0x196   : > { %3951 = vrot.lane.b32.xlu0 %v3918_v27, %s8873_s26  ;;  %2715 = vst.msk [vmem:[#allocation3 + $0x2c] sm:$0xf] %vm1405_vm11, %v2691_v57  ;;  %v4081_v43 = vor.u32 %v4080_v53, %v4077_v39  ;;  %v4054_v8 = vor.u32 %v4053_v63, %v4050_v44  ;;  %v10543_v12 = vrot.slane %v4057_v48, 6  ;;  %v4062_v21 = vrot.slane %v4060_v30, 7  ;;  %v8190_v6 = vld [vmem:[%s8925_s22 + $0x30] sm:$0xc] }
 0x197   : > { %v2689_v52 = vpop.permute.xlu0 %2688  ;;  %3957 = vrot.lane.b32.xlu1 %v3930_v45, %s8873_s26  ;;  %v3934_v25 = vsel %vm9171_vm12, %v8180_v11, %v3933_v26  ;;  %v10550_v27 = vld [vmem:[%s8925_s22 + $0x10] sm:$0x8]  ;;  %v10553_v14 = vld [vmem:[%s8925_s22 + $0x14] sm:$0x7]  ;;  %v4102_v17 = vshrl.u32 %v8192_v58, 16  ;;  %v4105_v59 = vshll.u32 %v8192_v58, 16  ;;  %v4046_v41 = vsel %vm9253_vm0, %v4037_v7, %v4045_v34 }
 0x198   : > { %2714 = vst.msk [vmem:[#allocation3 + $0x28] sm:$0xf] %vm1405_vm11, %v2689_v52  ;;  %vm2906_vm2 = vcmask 64512   ;;  %v8231_v4 = vrot.slane %v8208_v31, 11  ;;  %v4329_v18 = vrot.slane %v8209_v50, 7  ;;  %v4028_v62 = vsel %vm9253_vm0, %v4019_v51, %v4027_v60 }
 0x199   : > { %v2815_v37 = vpop.permute.xlu1 %2814  ;;  %v10559_v23 = vld [vmem:[%s8925_s22 + $0x28] sm:$0x8]  ;;  %v8193_v16 = vld [vmem:[%s8925_s22 + $0x3c] sm:$0x7]  ;;  %v4082_v54 = vsel %vm9253_vm0, %v4073_v0, %v4081_v43  ;;  %v10568_v9 = vld [vmem:[%s8925_s22 + $0x2c] sm:$0x7]  ;;  %v4063_v53 = vor.u32 %v4062_v21, %v10543_v12 }
 0x19a   : > { %3955 = vrot.lane.b32.xlu0 %v3926_v56, %s8873_s26  ;;  %2849 = vst.msk [vmem:[#allocation3 + $0x4] sm:$0xf] %vm1553_vm14, %v2815_v37  ;;  %v4084_v19 = vshrl.u32 %v8190_v6, 16  ;;  %v4087_v22 = vshll.u32 %v8190_v6, 16  ;;  %v8196_v32 = vld [vmem:[%s8925_s22 + $0x48] sm:$0xc]  ;;  %v4330_v21 = vsel %vm9357_vm5, %v8231_v4, %v4329_v18 }
 0x19b   : > { %v2813_v45 = vpop.permute.xlu0 %2812  ;;  %3961 = vrot.lane.b32.xlu1 %v3938_v49, %s8873_s26  ;;  %v8051_v1 = vld [vmem:[%s8925_s22 + $0x18] sm:$0xf]  ;;  %v4055_v39 = vrot.slane %v4054_v8, 4  ;;  %v8230_v57 = vrot.slane %v10550_v27, 11  ;;  %v4325_v44 = vrot.slane %v10553_v14, 7  ;;  %v10578_v48 = vrot.slane %v4102_v17, 6 }
 0x19c   : > { %2848 = vst.msk [vmem:[#allocation3] sm:$0xf] %vm1553_vm14, %v2813_v45  ;;  %v8191_v63 = vld [vmem:[%s8925_s22 + $0x34] sm:$0x7]  ;;  %v10580_v30 = vrot.slane %v4105_v59, 7  ;;  %v4111_v56 = vshrl.u32 %v8193_v16, 16 }
 0x19d   : > { %v2819_v10 = vpop.permute.xlu1 %2818  ;;  %v4114_v11 = vshll.u32 %v8193_v16, 16  ;;  %v8194_v26 = vld [vmem:[%s8925_s22 + $0x40] sm:$0xc]  ;;  %v8050_v52 = vld [vmem:[%s8925_s22 + $0x10] sm:$0xf]  ;;  %v8233_v7 = vrot.slane %v10559_v23, 11  ;;  %v4064_v59 = vsel %vm9253_vm0, %v4055_v39, %v4063_v53 }
 0x19e   : > { %3959 = vrot.lane.b32.xlu0 %v3934_v25, %s8873_s26  ;;  %2851 = vst.msk [vmem:[#allocation3 + $0xc] sm:$0xf] %vm1553_vm14, %v2819_v10  ;;  %v4337_v34 = vrot.slane %v10568_v9, 7  ;;  %v4138_v58 = vshrl.u32 %v8196_v32, 16  ;;  %v4141_v51 = vshll.u32 %v8196_v32, 16  ;;  %v10588_v60 = vrot.slane %v4084_v19, 6 }
 0x19f   : > { %v2817_v49 = vpop.permute.xlu0 %2816  ;;  %4229 = vrot.lane.b32.xlu1 %v4046_v41, %s8874_s27  ;;  %v4089_v0 = vrot.slane %v4087_v22, 7  ;;  %v4093_v43 = vshrl.u32 %v8191_v63, 16  ;;  %v4096_v31 = vshll.u32 %v8191_v63, 16  ;;  %v8197_v50 = vld [vmem:[%s8925_s22 + $0x4c] sm:$0x7]  ;;  %v4120_v25 = vshrl.u32 %v8194_v26, 16 }
 0x1a0   : > { %2850 = vst.msk [vmem:[#allocation3 + $0x8] sm:$0xf] %vm1553_vm14, %v2817_v49  ;;  %v8053_v8 = vld [vmem:[%s8925_s22 + $0x28] sm:$0xf]  ;;  %v10596_v6 = vld [vmem:[%s8925_s22 + $0x20] sm:$0x8]  ;;  %v4108_v41 = vor.u32 %v10580_v30, %v10578_v48 }
 0x1a1   : > { %v2865_v37 = vld [vmem:[#allocation3 + $0x4] sm:$0xf]  ;;  %v2823_v12 = vpop.permute.xlu1 %2822  ;;  %v4123_v17 = vshll.u32 %v8194_v26, 16  ;;  %v10605_v16 = vrot.slane %v4111_v56, 6  ;;  %v4140_v22 = vrot.slane %v4138_v58, 6  ;;  %v4143_v32 = vrot.slane %v4141_v51, 7 }
 0x1a2   : > { %4227 = vrot.lane.b32.xlu0 %v4028_v62, %s8874_s27  ;;  %3160 = vst.msk [vmem:[#allocation3 + $0x4] sm:$0xf] %vm281_vm13, %v8051_v1  ;;  %v8211_v45 = vld [vmem:[%s8925_s22 + $0x24] sm:$0x7]  ;;  %v10607_v62 = vrot.slane %v4114_v11, 7  ;;  %v4147_v1 = vshrl.u32 %v8197_v50, 16  ;;  %v4090_v63 = vor.u32 %v4089_v0, %v10588_v60  ;;  %v4326_v51 = vsel %vm9357_vm5, %v8230_v57, %v4325_v44 }
 0x1a3   : > { %2853 = vst.msk [vmem:[#allocation3 + $0x14] sm:$0xf] %vm1553_vm14, %v2823_v12  ;;  %v8195_v4 = vld [vmem:[%s8925_s22 + $0x44] sm:$0x7]  ;;  %v2864_v18 = vld [vmem:[#allocation3] sm:$0xf]  ;;  %v2821_v19 = vpop.permute.xlu0 %2820  ;;  %4233 = vrot.lane.b32.xlu1 %v4082_v54, %s8874_s27  ;;  %v4338_v44 = vsel %vm9357_vm5, %v8233_v7, %v4337_v34 }
 0x1a4   : > { %v4150_v10 = vshll.u32 %v8197_v50, 16  ;;  %3159 = vst.msk [vmem:[#allocation3] sm:$0xf] %vm281_vm13, %v8050_v52  ;;  %v8052_v39 = vld [vmem:[%s8925_s22 + $0x20] sm:$0xf]  ;;  %v8026_v53 = vcombine.low %v2864_v18, %v2865_v37  ;;  %v4095_v48 = vrot.slane %v4093_v43, 6  ;;  %v4117_v43 = vor.u32 %v10607_v62, %v10605_v16 }
 0x1a5   : > { %2852 = vst.msk [vmem:[#allocation3 + $0x10] sm:$0xf] %vm1553_vm14, %v2821_v19  ;;  %v4098_v30 = vrot.slane %v4096_v31, 7  ;;  %v2867_v56 = vld [vmem:[#allocation3 + $0xc] sm:$0xf]  ;;  %v2827_v11 = vpop.permute.xlu1 %2826  ;;  %v4122_v54 = vrot.slane %v4120_v25, 6 }
 0x1a6   : > { %4231 = vrot.lane.b32.xlu0 %v4064_v59, %s8874_s27  ;;  %v4125_v26 = vrot.slane %v4123_v17, 7  ;;  %v4129_v49 = vshrl.u32 %v8195_v4, 16  ;;  %v4132_v58 = vshll.u32 %v8195_v4, 16  ;;  %3162 = vst.msk [vmem:[#allocation3 + $0xc] sm:$0xf] %vm281_vm13, %v8053_v8  ;;  %8731 = vmatprep.mubr.msk.bf16.mxu0 %vm2906_vm2, %v8026_v53  ;;  %v8232_v60 = vrot.slane %v10596_v6, 11 }
 0x1a7   : > { %v8055_v52 = vld [vmem:[%s8925_s22 + $0x38] sm:$0xf]  ;;  %2855 = vst.msk [vmem:[#allocation3 + $0x1c] sm:$0xf] %vm1553_vm14, %v2827_v11  ;;  %v4333_v0 = vrot.slane %v8211_v45, 7  ;;  %v2825_v50 = vpop.permute.xlu0 %2824  ;;  %4373 = vrot.lane.b32.xlu1 %v4330_v21, %s8875_s28  ;;  %v4109_v37 = vrot.slane %v4108_v41, 4  ;;  %v4144_v8 = vor.u32 %v4143_v32, %v4140_v22  ;;  %v4099_v6 = vor.u32 %v4098_v30, %v4095_v48 }
 0x1a8   : > { %v2866_v31 = vld [vmem:[#allocation3 + $0x8] sm:$0xf]  ;;  %v10630_v12 = vrot.slane %v4147_v1, 6  ;;  %v4152_v27 = vrot.slane %v4150_v10, 7  ;;  %v8054_v14 = vld [vmem:[%s8925_s22 + $0x30] sm:$0xf]  ;;  %v4126_v45 = vor.u32 %v4125_v26, %v4122_v54 }
 0x1a9   : > { %3161 = vst.msk [vmem:[#allocation3 + $0x8] sm:$0xf] %vm281_vm13, %v8052_v39  ;;  %v8027_v57 = vcombine.low %v2866_v31, %v2867_v56  ;;  %v4091_v21 = vrot.slane %v4090_v63, 4  ;;  %v8057_v17 = vld [vmem:[%s8925_s22 + $0x48] sm:$0xf]  ;;  %v2831_v59 = vpop.permute.xlu1 %2830  ;;  %v10643_v41 = vrot.slane %v4129_v49, 6  ;;  %v4334_v7 = vsel %vm9357_vm5, %v8232_v60, %v4333_v0 }
 0x1aa   : > { %2854 = vst.msk [vmem:[#allocation3 + $0x18] sm:$0xf] %vm1553_vm14, %v2825_v50  ;;  %v2869_v25 = vld [vmem:[#allocation3 + $0x14] sm:$0xf]  ;;  %4371 = vrot.lane.b32.xlu0 %v4326_v51, %s8875_s28  ;;  %v10645_v9 = vrot.slane %v4132_v58, 7  ;;  %v4118_v22 = vsel %vm9253_vm0, %v4109_v37, %v4117_v43  ;;  %v4145_v32 = vrot.slane %v4144_v8, 4  ;;  %v4153_v1 = vor.u32 %v4152_v27, %v10630_v12 }
 0x1ab   : > { %v8269_v23 = vld [vmem:[%s8925_s22 + $0x20] sm:$0xf]  ;;  %3164 = vst.msk [vmem:[#allocation3 + $0x14] sm:$0xf] %vm281_vm13, %v8055_v52  ;;  %8732 = vmatmul.mubr.msk.bf16.vlgmr.msra.gmra.mxu0 %vm2906_vm2, %v8027_v57  ;;  %v10654_v34 = vld [vmem:[%s8925_s22 + $0x38] sm:$0x8]  ;;  %v2829_v19 = vpop.permute.xlu0 %2828  ;;  %4377 = vrot.lane.b32.xlu1 %v4338_v44, %s8875_s28  ;;  %v4100_v53 = vsel %vm9253_vm0, %v4091_v21, %v4099_v6 }
 0x1ac   : > { %2857 = vst.msk [vmem:[#allocation3 + $0x24] sm:$0xf] %vm1553_vm14, %v2831_v59  ;;  %v10657_v16 = vld [vmem:[%s8925_s22 + $0x3c] sm:$0x7]  ;;  %v8267_v62 = vld [vmem:[%s8925_s22 + $0x18] sm:$0xf]  ;;  %v4135_v58 = vor.u32 %v10645_v9, %v10643_v41 }
 0x1ad   : > { %v2868_v4 = vld [vmem:[#allocation3 + $0x10] sm:$0xf]  ;;  %v8056_v18 = vld [vmem:[%s8925_s22 + $0x40] sm:$0xf]  ;;  %2856 = vst.msk [vmem:[#allocation3 + $0x20] sm:$0xf] %vm1553_vm14, %v2829_v19  ;;  %v2835_v26 = vpop.permute.xlu1 %2834 }
 0x1ae   : > { %v8273_v10 = vld [vmem:[%s8925_s22 + $0x30] sm:$0xf]  ;;  %3163 = vst.msk [vmem:[#allocation3 + $0x10] sm:$0xf] %vm281_vm13, %v8054_v14  ;;  %v8028_v39 = vcombine.low %v2868_v4, %v2869_v25  ;;  %v10674_v48 = vld [vmem:[%s8925_s22 + $0x34] sm:$0x7]  ;;  %4375 = vrot.lane.b32.xlu0 %v4334_v7, %s8875_s28  ;;  %v4154_v14 = vsel %vm9253_vm0, %v4145_v32, %v4153_v1 }
 0x1af   : > { %v10671_v63 = vld [vmem:[%s8925_s22 + $0x30] sm:$0x8]  ;;  %v4647_v30 = vshrl.u32 %v8269_v23, 16  ;;  %v4650_v56 = vshll.u32 %v8269_v23, 16  ;;  %v2871_v11 = vld [vmem:[#allocation3 + $0x1c] sm:$0xf]  ;;  %v2833_v27 = vpop.permute.xlu0 %2832  ;;  %4237 = vrot.lane.b32.xlu1 %v4118_v22, %s8874_s27 }
 0x1b0   : > { %v8059_v54 = vld [vmem:[%s8925_s22 + $0x58] sm:$0xf]  ;;  %v4127_v49 = vrot.slane %v4126_v45, 4  ;;  %v4633_v52 = vshrl.u32 %v8267_v62, 16  ;;  %v4636_v51 = vshll.u32 %v8267_v62, 16  ;;  %8735 = vmatprep.mubr.msk.bf16.mxu1 %vm2906_vm2, %v8028_v39  ;;  %v8235_v60 = vrot.slane %v10654_v34, 11 }
 0x1b1   : > { %3166 = vst.msk [vmem:[#allocation3 + $0x1c] sm:$0xf] %vm281_vm13, %v8057_v17  ;;  %v4345_v0 = vrot.slane %v10657_v16, 7  ;;  %v10686_v43 = vld [vmem:[%s8925_s22 + $0x48] sm:$0x8]  ;;  %v4675_v50 = vshrl.u32 %v8273_v10, 16  ;;  %v3366_v34 = vpop.permute.xlu1 %3365 }
 0x1b2   : > { %2859 = vst.msk [vmem:[#allocation3 + $0x2c] sm:$0xf] %vm1553_vm14, %v2835_v26  ;;  %v10689_v31 = vld [vmem:[%s8925_s22 + $0x4c] sm:$0x7]  ;;  %v4678_v37 = vshll.u32 %v8273_v10, 16  ;;  %v8234_v57 = vrot.slane %v10671_v63, 11  ;;  %4235 = vrot.lane.b32.xlu0 %v4100_v53, %s8874_s27  ;;  %v4136_v16 = vsel %vm9253_vm0, %v4127_v49, %v4135_v58 }
 0x1b3   : > { %v2870_v8 = vld [vmem:[#allocation3 + $0x18] sm:$0xf]  ;;  %v8058_v12 = vld [vmem:[%s8925_s22 + $0x50] sm:$0xf]  ;;  %v4341_v44 = vrot.slane %v10674_v48, 7  ;;  %v3059_v59 = vsel %vm2925_vm15, %v10453_v5, 0  ;;  %v3364_v39 = vpop.permute.xlu0 %3363  ;;  %4241 = vrot.lane.b32.xlu1 %v4154_v14, %s8874_s27 }
 0x1b4   : > { %v8271_v21 = vld [vmem:[%s8925_s22 + $0x28] sm:$0xf]  ;;  %3165 = vst.msk [vmem:[#allocation3 + $0x18] sm:$0xf] %vm281_vm13, %v8056_v18  ;;  %v8029_v6 = vcombine.low %v2870_v8, %v2871_v11  ;;  %v10701_v25 = vld [vmem:[%s8925_s22 + $0x40] sm:$0x8]  ;;  %v4346_v11 = vsel %vm9357_vm5, %v8235_v60, %v4345_v0 }
 0x1b5   : > { %2858 = vst.msk [vmem:[#allocation3 + $0x28] sm:$0xf] %vm1553_vm14, %v2833_v27  ;;  %v10704_v17 = vld [vmem:[%s8925_s22 + $0x44] sm:$0x7]  ;;  %v4649_v41 = vrot.slane %v4647_v30, 4  ;;  %v4652_v9 = vrot.slane %v4650_v56, 5  ;;  %v4342_v60 = vsel %vm9357_vm5, %v8234_v57, %v4341_v44 }
 0x1b6   : > { %v8270_v45 = vld [vmem:[%s8925_s22 + $0x24] sm:$0x1]  ;;  %v8061_v7 = vld [vmem:[%s8925_s22 + $0x68] sm:$0xf]  ;;  %v8268_v62 = vld [vmem:[%s8925_s22 + $0x1c] sm:$0x1]  ;;  %8736 = vmatmul.mubr.msk.bf16.vlgmr.msra.gmra.mxu1 %vm2906_vm2, %v8029_v6  ;;  %4239 = vrot.lane.b32.xlu0 %v4136_v16, %s8874_s27 }
 0x1b7   : > { %v2873_v23 = vld [vmem:[#allocation3 + $0x24] sm:$0xf]  ;;  %v4635_v4 = vrot.slane %v4633_v52, 4  ;;  %v4638_v18 = vrot.slane %v4636_v51, 5  ;;  %3400 = vst.msk [vmem:[#allocation3 + $0x4] sm:$0xf] %vm525_vm1, %v3366_v34  ;;  %8744 = vmatpush3.bf16.msra.mxu1 %v3059_v59  ;;  %v3370_v52 = vpop.permute.xlu1 %3369  ;;  %v3368_v14 = vpop.permute.xlu0 %3367  ;;  %4381 = vrot.lane.b32.xlu1 %v4346_v11, %s8875_s28 }
 0x1b8   : > { %3168 = vst.msk [vmem:[#allocation3 + $0x24] sm:$0xf] %vm281_vm13, %v8059_v54  ;;  %v8274_v5 = vld [vmem:[%s8925_s22 + $0x34] sm:$0x1]  ;;  %v4677_v19 = vrot.slane %v4675_v50, 4  ;;  %v4680_v22 = vrot.slane %v4678_v37, 5  ;;  %v4653_v54 = vor.u32 %v4652_v9, %v4649_v41 }
 0x1b9   : > { %v4661_v32 = vshrl.u32 %v8271_v21, 16  ;;  %v4664_v1 = vshll.u32 %v8271_v21, 16  ;;  %v2872_v10 = vld [vmem:[#allocation3 + $0x20] sm:$0xf]  ;;  %v8237_v53 = vrot.slane %v10686_v43, 11  ;;  %v4353_v63 = vrot.slane %v10689_v31, 7 }
 0x1ba   : > { %v4656_v48 = vshll.u32 %v8270_v45, 16  ;;  %3167 = vst.msk [vmem:[#allocation3 + $0x20] sm:$0xf] %vm281_vm13, %v8058_v12  ;;  %v8060_v30 = vld [vmem:[%s8925_s22 + $0x60] sm:$0xf]  ;;  %v8030_v56 = vcombine.low %v2872_v10, %v2873_v23  ;;  %v4642_v26 = vshll.u32 %v8268_v62, 16  ;;  %v4639_v31 = vor.u32 %v4638_v18, %v4635_v4  ;;  %4379 = vrot.lane.b32.xlu0 %v4342_v60, %s8875_s28 }
 0x1bb   : > { %3399 = vst.msk [vmem:[#allocation3] sm:$0xf] %vm525_vm1, %v3364_v39  ;;  %v8272_v49 = vld [vmem:[%s8925_s22 + $0x2c] sm:$0x1]  ;;  %v8236_v51 = vrot.slane %v10701_v25, 11  ;;  %v4349_v43 = vrot.slane %v10704_v17, 7  ;;  %v4681_v0 = vor.u32 %v4680_v22, %v4677_v19  ;;  %v8038_v21 = vcombine.low %v9938_v36, %v9929_v46  ;;  %v3374_v46 = vpop.permute.xlu1 %3373 }
 0x1bc   : > { %v2875_v58 = vld [vmem:[#allocation3 + $0x2c] sm:$0xf]  ;;  %v4684_v50 = vshll.u32 %v8274_v5, 16  ;;  %8739 = vmatprep.mubr.msk.bf16.mxu1 %vm2906_vm2, %v8030_v56  ;;  %3402 = vst.msk [vmem:[#allocation3 + $0xc] sm:$0xf] %vm525_vm1, %v3370_v52  ;;  %v4663_v37 = vrot.slane %v4661_v32, 4  ;;  %v4354_v44 = vsel %vm9357_vm5, %v8237_v53, %v4353_v63  ;;  %v3372_v32 = vpop.permute.xlu0 %3371 }
 0x1bd   : > { %3170 = vst.msk [vmem:[#allocation3 + $0x2c] sm:$0xf] %vm281_vm13, %v8061_v7  ;;  %v4666_v8 = vrot.slane %v4664_v1, 5  ;;  %v8293_v12 = vld [vmem:[%s8925_s22 + $0x20] sm:$0xe]  ;;  %v4658_v6 = vrot.slane %v4656_v48, 5  ;;  %v4350_v36 = vsel %vm9357_vm5, %v8236_v51, %v4349_v43  ;;  %v8039_v7 = vcombine.low %v9951_v55, %v9943_v42  ;;  %4385 = vrot.lane.b32.xlu1 %v4354_v44, %s8875_s28 }
 0x1be   : > { %v2874_v27 = vld [vmem:[#allocation3 + $0x28] sm:$0xf]  ;;  %v4670_v25 = vshll.u32 %v8272_v49, 16  ;;  %v8294_v17 = vld [vmem:[%s8925_s22 + $0x24] sm:$0x1]  ;;  %v4654_v59 = vrot.slane %v4653_v54, 4  ;;  %v8040_v42 = vcombine.low %v9969_v35, %v9960_v29  ;;  %4383 = vrot.lane.b32.xlu0 %v4350_v36, %s8875_s28 }
 0x1bf   : > { %3169 = vst.msk [vmem:[#allocation3 + $0x28] sm:$0xf] %vm281_vm13, %v8060_v30  ;;  %v8031_v57 = vcombine.low %v2874_v27, %v2875_v58  ;;  %v4644_v45 = vrot.slane %v4642_v26, 5  ;;  %v10745_v41 = vld [vmem:[%s8925_s22 + $0x18] sm:$0xe]  ;;  %v4640_v23 = vrot.slane %v4639_v31, 4  ;;  %v4667_v18 = vor.u32 %v4666_v8, %v4663_v37  ;;  %v3378_v29 = vpop.permute.xlu1 %3377 }
 0x1c0   : > { %3401 = vst.msk [vmem:[#allocation3 + $0x8] sm:$0xf] %vm525_vm1, %v3368_v14  ;;  %v8329_v9 = vld [vmem:[%s8925_s22 + $0x20] sm:$0xe]  ;;  %v10753_v34 = vrot.slane %v4684_v50, 5  ;;  %v4682_v4 = vrot.slane %v4681_v0, 4  ;;  %v4659_v53 = vsel %vm8950_vm3, %v4654_v59, %v4658_v6  ;;  %v3376_v60 = vpop.permute.xlu0 %3375 }
 0x1c1   : > { %v10756_v16 = vld [vmem:[%s8925_s22 + $0x1c] sm:$0x1]  ;;  %v8327_v62 = vld [vmem:[%s8925_s22 + $0x18] sm:$0xe]  ;;  %8740 = vmatmul.mubr.msk.bf16.gmra.mxu1 %vm2906_vm2, %v8031_v57  ;;  %3404 = vst.msk [vmem:[#allocation3 + $0x14] sm:$0xf] %vm525_vm1, %v3374_v46  ;;  %v4645_v35 = vsel %vm8950_vm3, %v4640_v23, %v4644_v45  ;;  %4802 = vrot.lane.b32.xlu1 %v4659_v53, %s8870_s23 }
 0x1c2   : > { %v8316_v5 = vrot.slane %v8293_v12, 9  ;;  %v4902_v19 = vrot.slane %v8294_v17, 5  ;;  %v8333_v22 = vld [vmem:[%s8925_s22 + $0x30] sm:$0xe]  ;;  %8745 = vmatprep.mubr.msk.bf16.mxu1 %vm2906_vm2, %v8038_v21  ;;  %v10766_v55 = vrot.slane %v4670_v25, 5  ;;  %v5035_v10 = vshrl.u32 %v8329_v9, 16  ;;  %4800 = vrot.lane.b32.xlu0 %v4645_v35, %s8870_s23 }
 0x1c3   : > { %v10769_v1 = vld [vmem:[%s8925_s22 + $0x30] sm:$0xe]  ;;  %v5038_v39 = vshll.u32 %v8329_v9, 16  ;;  %3403 = vst.msk [vmem:[#allocation3 + $0x10] sm:$0xf] %vm525_vm1, %v3372_v32  ;;  %v8315_v63 = vrot.slane %v10745_v41, 9  ;;  %v4687_v58 = vsel %vm8950_vm3, %v4682_v4, %v10753_v34  ;;  %v3382_v57 = vpop.permute.xlu1 %3381 }
 0x1c4   : > { %v8330_v48 = vld [vmem:[%s8925_s22 + $0x24] sm:$0x3]  ;;  %v5017_v30 = vshrl.u32 %v8327_v62, 16  ;;  %v5020_v56 = vshll.u32 %v8327_v62, 16  ;;  %v4898_v11 = vrot.slane %v10756_v16, 5  ;;  %v5071_v26 = vshrl.u32 %v8333_v22, 16  ;;  %v3380_v16 = vpop.permute.xlu0 %3379 }
 0x1c5   : > { %v8328_v54 = vld [vmem:[%s8925_s22 + $0x1c] sm:$0x3]  ;;  %v5074_v49 = vshll.u32 %v8333_v22, 16  ;;  %3406 = vst.msk [vmem:[#allocation3 + $0x1c] sm:$0xf] %vm525_vm1, %v3378_v29  ;;  %v4668_v52 = vrot.slane %v4667_v18, 4  ;;  %v4903_v51 = vsel %vm9012_vm6, %v8316_v5, %v4902_v19  ;;  %4806 = vrot.lane.b32.xlu1 %v4687_v58, %s8870_s23 }
 0x1c6   : > { %v8298_v43 = vld [vmem:[%s8925_s22 + $0x34] sm:$0x1]  ;;  %v8318_v31 = vrot.slane %v10769_v1, 9  ;;  %v5037_v0 = vrot.slane %v5035_v10, 5  ;;  %v5040_v37 = vrot.slane %v5038_v39, 6  ;;  %v5044_v8 = vshrl.u32 %v8330_v48, 16 }
 0x1c7   : > { %v8334_v50 = vld [vmem:[%s8925_s22 + $0x34] sm:$0x3]  ;;  %v5047_v12 = vshll.u32 %v8330_v48, 16  ;;  %v8331_v27 = vld [vmem:[%s8925_s22 + $0x28] sm:$0xe]  ;;  %v5019_v21 = vrot.slane %v5017_v30, 5  ;;  %v4673_v9 = vsel %vm8950_vm3, %v4668_v52, %v10766_v55  ;;  %v4899_v19 = vsel %vm9012_vm6, %v8315_v63, %v4898_v11  ;;  %v3386_v1 = vpop.permute.xlu1 %3385 }
 0x1c8   : > { %3405 = vst.msk [vmem:[#allocation3 + $0x18] sm:$0xf] %vm525_vm1, %v3376_v60  ;;  %v10794_v14 = vld [vmem:[%s8925_s22 + $0x28] sm:$0xe]  ;;  %v5022_v6 = vrot.slane %v5020_v56, 6  ;;  %v5026_v25 = vshrl.u32 %v8328_v54, 16  ;;  %v5041_v4 = vor.u32 %v5040_v37, %v5037_v0  ;;  %4804 = vrot.lane.b32.xlu0 %v4673_v9, %s8870_s23  ;;  %v3384_v35 = vpop.permute.xlu0 %3383 }
 0x1c9   : > { %v5029_v17 = vshll.u32 %v8328_v54, 16  ;;  %v5073_v44 = vrot.slane %v5071_v26, 5  ;;  %v5076_v59 = vrot.slane %v5074_v49, 6  ;;  %v5080_v45 = vshrl.u32 %v8334_v50, 16  ;;  %8746 = vmatmul.mubr.msk.bf16.vlgmr.msra.gmra.mxu1 %vm2906_vm2, %v8039_v7  ;;  %3408 = vst.msk [vmem:[#allocation3 + $0x24] sm:$0xf] %vm525_vm1, %v3382_v57  ;;  %4946 = vrot.lane.b32.xlu1 %v4903_v51, %s8871_s24 }
 0x1ca   : > { %v5083_v41 = vshll.u32 %v8334_v50, 16  ;;  %v4910_v46 = vrot.slane %v8298_v43, 5  ;;  %v8296_v36 = vld [vmem:[%s8925_s22 + $0x2c] sm:$0x1]  ;;  %v5053_v23 = vshrl.u32 %v8331_v27, 16  ;;  %v5056_v34 = vshll.u32 %v8331_v27, 16  ;;  %8749 = vmatprep.mubr.msk.bf16.mxu1 %vm2906_vm2, %v8040_v42 }
 0x1cb   : > { %v8317_v62 = vrot.slane %v10794_v14, 9  ;;  %v5046_v18 = vrot.slane %v5044_v8, 5  ;;  %v5049_v7 = vrot.slane %v5047_v12, 6  ;;  %v8332_v5 = vld [vmem:[%s8925_s22 + $0x2c] sm:$0x3]  ;;  %v5023_v22 = vor.u32 %v5022_v6, %v5019_v21  ;;  %v3510_v51 = vpop.permute.xlu1 %3509 }
 0x1cc   : > { %3407 = vst.msk [vmem:[#allocation3 + $0x20] sm:$0xf] %vm525_vm1, %v3380_v16  ;;  %v5028_v32 = vrot.slane %v5026_v25, 5  ;;  %v5031_v55 = vrot.slane %v5029_v17, 6  ;;  %v4906_v42 = vrot.slane %v8296_v36, 5  ;;  %v5077_v10 = vor.u32 %v5076_v59, %v5073_v44  ;;  %4944 = vrot.lane.b32.xlu0 %v4899_v19, %s8871_s24 }
 0x1cd   : > { %v5082_v39 = vrot.slane %v5080_v45, 5  ;;  %v5085_v53 = vrot.slane %v5083_v41, 6  ;;  %3410 = vst.msk [vmem:[#allocation3 + $0x2c] sm:$0xf] %vm525_vm1, %v3386_v1  ;;  %v5055_v48 = vrot.slane %v5053_v23, 5  ;;  %v5058_v30 = vrot.slane %v5056_v34, 6 }
 0x1ce   : > { %v5062_v56 = vshrl.u32 %v8332_v5, 16  ;;  %v5065_v29 = vshll.u32 %v8332_v5, 16  ;;  %v5042_v63 = vrot.slane %v5041_v4, 4  ;;  %v5050_v11 = vor.u32 %v5049_v7, %v5046_v18  ;;  %3409 = vst.msk [vmem:[#allocation3 + $0x28] sm:$0xf] %vm525_vm1, %v3384_v35 }
 0x1cf   : > { %v8041_v54 = vcombine.low %v9988_v24, %v9978_v47  ;;  %v4911_v26 = vsel %vm9012_vm6, %v8318_v31, %v4910_v46  ;;  %v5024_v49 = vrot.slane %v5023_v22, 4  ;;  %v5032_v58 = vor.u32 %v5031_v55, %v5028_v32  ;;  %v8353_v52 = vld [vmem:[%s8925_s22 + $0x20] sm:$0xc]  ;;  %v8354_v37 = vld [vmem:[%s8925_s22 + $0x24] sm:$0x3] }
 0x1d0   : > { %v8389_v43 = vld [vmem:[%s8925_s22 + $0x20] sm:$0xc]  ;;  %v8042_v50 = vcombine.low %v10009_v13, %v9999_v2  ;;  %v5078_v60 = vrot.slane %v5077_v10, 4  ;;  %v5086_v0 = vor.u32 %v5085_v53, %v5082_v39  ;;  %v8387_v47 = vld [vmem:[%s8925_s22 + $0x18] sm:$0xc]  ;;  %v4907_v24 = vsel %vm9012_vm6, %v8317_v62, %v4906_v42  ;;  %v3508_v13 = vpop.permute.xlu0 %3507  ;;  %4950 = vrot.lane.b32.xlu1 %v4911_v26, %s8871_s24 }
 0x1d1   : > { %8750 = vmatmul.mubr.msk.bf16.gmra.mxu1 %vm2906_vm2, %v8041_v54  ;;  %3544 = vst.msk [vmem:[#allocation3 + $0x4] sm:$0xf] %vm673_vm7, %v3510_v51  ;;  %v5059_v31 = vor.u32 %v5058_v30, %v5055_v48  ;;  %v5064_v8 = vrot.slane %v5062_v56, 5  ;;  %v5067_v12 = vrot.slane %v5065_v29, 6  ;;  %v10830_v27 = vld [vmem:[%s8925_s22 + $0x18] sm:$0xc]  ;;  %v5051_v14 = vsel %vm9084_vm9, %v5042_v63, %v5050_v11  ;;  %4948 = vrot.lane.b32.xlu0 %v4907_v24, %s8871_s24 }
 0x1d2   : > { %v10833_v2 = vld [vmem:[%s8925_s22 + $0x1c] sm:$0x3]  ;;  %8753 = vmatprep.mubr.msk.bf16.mxu1 %vm2906_vm2, %v8042_v50  ;;  %v8043_v21 = vcombine.low %v10032_v38, %v10021_v3  ;;  %v8390_v6 = vld [vmem:[%s8925_s22 + $0x24] sm:$0x7]  ;;  %v5467_v25 = vshrl.u32 %v8389_v43, 16  ;;  %v5470_v17 = vshll.u32 %v8389_v43, 16  ;;  %v5033_v57 = vsel %vm9084_vm9, %v5024_v49, %v5032_v58  ;;  %v3514_v3 = vpop.permute.xlu1 %3513 }
 0x1d3   : > { %3543 = vst.msk [vmem:[#allocation3] sm:$0xf] %vm673_vm7, %v3508_v13  ;;  %v8376_v44 = vrot.slane %v8353_v52, 10  ;;  %v10846_v59 = vld [vmem:[%s8925_s22 + $0x30] sm:$0xc]  ;;  %v5449_v41 = vshrl.u32 %v8387_v47, 16  ;;  %v5087_v38 = vsel %vm9084_vm9, %v5078_v60, %v5086_v0  ;;  %v5068_v62 = vor.u32 %v5067_v12, %v5064_v8 }
 0x1d4   : > { %v8388_v45 = vld [vmem:[%s8925_s22 + $0x1c] sm:$0x7]  ;;  %v5452_v9 = vshll.u32 %v8387_v47, 16  ;;  %v5334_v46 = vrot.slane %v8354_v37, 6  ;;  %v8375_v36 = vrot.slane %v10830_v27, 10  ;;  %v5330_v23 = vrot.slane %v10833_v2, 6  ;;  %v3512_v5 = vpop.permute.xlu0 %3511  ;;  %5234 = vrot.lane.b32.xlu1 %v5051_v14, %s8872_s25 }
 0x1d5   : > { %v8393_v34 = vld [vmem:[%s8925_s22 + $0x30] sm:$0xc]  ;;  %3546 = vst.msk [vmem:[#allocation3 + $0xc] sm:$0xf] %vm673_vm7, %v3514_v3  ;;  %v5060_v16 = vrot.slane %v5059_v31, 4  ;;  %v5476_v4 = vshrl.u32 %v8390_v6, 16  ;;  %5232 = vrot.lane.b32.xlu0 %v5033_v57, %s8872_s25 }
 0x1d6   : > { %v5479_v18 = vshll.u32 %v8390_v6, 16  ;;  %v8391_v7 = vld [vmem:[%s8925_s22 + $0x28] sm:$0xc]  ;;  %v8358_v19 = vld [vmem:[%s8925_s22 + $0x34] sm:$0x3]  ;;  %v5469_v22 = vrot.slane %v5467_v25, 6  ;;  %v3518_v30 = vpop.permute.xlu1 %3517  ;;  %v5335_v56 = vsel %vm9171_vm12, %v8376_v44, %v5334_v46  ;;  %v5331_v6 = vsel %vm9171_vm12, %v8375_v36, %v5330_v23 }
 0x1d7   : > { %v5472_v32 = vrot.slane %v5470_v17, 7  ;;  %v5458_v55 = vshrl.u32 %v8388_v45, 16  ;;  %v5461_v1 = vshll.u32 %v8388_v45, 16  ;;  %3545 = vst.msk [vmem:[#allocation3 + $0x8] sm:$0xf] %vm673_vm7, %v3512_v5  ;;  %v5451_v42 = vrot.slane %v5449_v41, 6 }
 0x1d8   : > { %v5454_v10 = vrot.slane %v5452_v9, 7  ;;  %v8394_v39 = vld [vmem:[%s8925_s22 + $0x34] sm:$0x7]  ;;  %v5503_v53 = vshrl.u32 %v8393_v34, 16  ;;  %v5506_v48 = vshll.u32 %v8393_v34, 16  ;;  %v8378_v29 = vrot.slane %v10846_v59, 10  ;;  %v3516_v43 = vpop.permute.xlu0 %3515  ;;  %5238 = vrot.lane.b32.xlu1 %v5087_v38, %s8872_s25 }
 0x1d9   : > { %v8355_v35 = vld [vmem:[%s8925_s22 + $0x28] sm:$0xc]  ;;  %v5485_v63 = vshrl.u32 %v8391_v7, 16  ;;  %v5488_v11 = vshll.u32 %v8391_v7, 16  ;;  %8754 = vmatmul.mubr.msk.bf16.gmra.mxu1 %vm2906_vm2, %v8043_v21  ;;  %3548 = vst.msk [vmem:[#allocation3 + $0x14] sm:$0xf] %vm673_vm7, %v3518_v30  ;;  %v5069_v54 = vsel %vm9084_vm9, %v5060_v16, %v5068_v62  ;;  %v5473_v50 = vor.u32 %v5472_v32, %v5469_v22 }
 0x1da   : > { %v5342_v26 = vrot.slane %v8358_v19, 6  ;;  %v5478_v49 = vrot.slane %v5476_v4, 6  ;;  %v5481_v58 = vrot.slane %v5479_v18, 7  ;;  %v8392_v52 = vld [vmem:[%s8925_s22 + $0x2c] sm:$0x7]  ;;  %v5460_v60 = vrot.slane %v5458_v55, 6  ;;  %5236 = vrot.lane.b32.xlu0 %v5069_v54, %s8872_s25  ;;  %v3522_v27 = vpop.permute.xlu1 %3521 }
 0x1db   : > { %v8356_v51 = vld [vmem:[%s8925_s22 + $0x2c] sm:$0x3]  ;;  %v5463_v0 = vrot.slane %v5461_v1, 7  ;;  %v5512_v37 = vshrl.u32 %v8394_v39, 16  ;;  %3547 = vst.msk [vmem:[#allocation3 + $0x10] sm:$0xf] %vm673_vm7, %v3516_v43  ;;  %v5455_v47 = vor.u32 %v5454_v10, %v5451_v42 }
 0x1dc   : > { %v5505_v24 = vrot.slane %v5503_v53, 6  ;;  %v5508_v31 = vrot.slane %v5506_v48, 7  ;;  %v5515_v8 = vshll.u32 %v8394_v39, 16  ;;  %v8200_v12 = vld [vmem:[%s8925_s22 + $0x58] sm:$0xc]  ;;  %v5487_v2 = vrot.slane %v5485_v63, 6  ;;  %v3520_v44 = vpop.permute.xlu0 %3519  ;;  %5378 = vrot.lane.b32.xlu1 %v5335_v56, %s8873_s26 }
 0x1dd   : > { %v5490_v13 = vrot.slane %v5488_v11, 7  ;;  %v5494_v14 = vshrl.u32 %v8392_v52, 16  ;;  %v5497_v21 = vshll.u32 %v8392_v52, 16  ;;  %3550 = vst.msk [vmem:[#allocation3 + $0x1c] sm:$0xf] %vm673_vm7, %v3522_v27  ;;  %v5343_v25 = vsel %vm9171_vm12, %v8378_v29, %v5342_v26 }
 0x1de   : > { %v8377_v17 = vrot.slane %v8355_v35, 10  ;;  %v5338_v57 = vrot.slane %v8356_v51, 6  ;;  %v5474_v59 = vrot.slane %v5473_v50, 4  ;;  %v5482_v45 = vor.u32 %v5481_v58, %v5478_v49  ;;  %v8198_v3 = vld [vmem:[%s8925_s22 + $0x50] sm:$0xc]  ;;  %5376 = vrot.lane.b32.xlu0 %v5331_v6, %s8873_s26  ;;  %v3526_v16 = vpop.permute.xlu1 %3525 }
 0x1df   : > { %v4174_v41 = vshrl.u32 %v8200_v12, 16  ;;  %v4177_v9 = vshll.u32 %v8200_v12, 16  ;;  %3549 = vst.msk [vmem:[#allocation3 + $0x18] sm:$0xf] %vm673_vm7, %v3520_v44  ;;  %v5464_v38 = vor.u32 %v5463_v0, %v5460_v60  ;;  %v5509_v46 = vor.u32 %v5508_v31, %v5505_v24  ;;  %v8201_v34 = vld [vmem:[%s8925_s22 + $0x5c] sm:$0x7] }
 0x1e0   : > { %v5514_v36 = vrot.slane %v5512_v37, 6  ;;  %v5517_v23 = vrot.slane %v5515_v8, 7  ;;  %v5456_v62 = vrot.slane %v5455_v47, 4  ;;  %v5491_v4 = vor.u32 %v5490_v13, %v5487_v2  ;;  %3552 = vst.msk [vmem:[#allocation3 + $0x24] sm:$0xf] %vm673_vm7, %v3526_v16  ;;  %v3524_v55 = vpop.permute.xlu0 %3523  ;;  %5382 = vrot.lane.b32.xlu1 %v5343_v25, %s8873_s26 }
 0x1e1   : > { %v5496_v18 = vrot.slane %v5494_v14, 6  ;;  %v5499_v7 = vrot.slane %v5497_v21, 7  ;;  %v5339_v5 = vsel %vm9171_vm12, %v8377_v17, %v5338_v57  ;;  %v8413_v19 = vld [vmem:[%s8925_s22 + $0x20] sm:$0x8]  ;;  %v4156_v22 = vshrl.u32 %v8198_v3, 16 }
 0x1e2   : > { %v4159_v32 = vshll.u32 %v8198_v3, 16  ;;  %v4176_v1 = vrot.slane %v4174_v41, 6  ;;  %v4179_v42 = vrot.slane %v4177_v9, 7  ;;  %v4183_v10 = vshrl.u32 %v8201_v34, 16  ;;  %v8199_v53 = vld [vmem:[%s8925_s22 + $0x54] sm:$0x7]  ;;  %5380 = vrot.lane.b32.xlu0 %v5339_v5, %s8873_s26  ;;  %v3530_v63 = vpop.permute.xlu1 %3529 }
 0x1e3   : > { %v4186_v39 = vshll.u32 %v8201_v34, 16  ;;  %3551 = vst.msk [vmem:[#allocation3 + $0x20] sm:$0xf] %vm673_vm7, %v3524_v55  ;;  %v5483_v48 = vsel %vm9253_vm0, %v5474_v59, %v5482_v45  ;;  %v5510_v30 = vrot.slane %v5509_v46, 4  ;;  %v5518_v56 = vor.u32 %v5517_v23, %v5514_v36  ;;  %v8414_v29 = vld [vmem:[%s8925_s22 + $0x24] sm:$0x7] }
 0x1e4   : > { %v8411_v35 = vld [vmem:[%s8925_s22 + $0x18] sm:$0x8]  ;;  %v5465_v11 = vsel %vm9253_vm0, %v5456_v62, %v5464_v38  ;;  %v5492_v54 = vrot.slane %v5491_v4, 4  ;;  %v5500_v26 = vor.u32 %v5499_v7, %v5496_v18  ;;  %v8436_v49 = vrot.slane %v8413_v19, 11  ;;  %v8412_v58 = vld [vmem:[%s8925_s22 + $0x1c] sm:$0x7]  ;;  %v3528_v37 = vpop.permute.xlu0 %3527  ;;  %5666 = vrot.lane.b32.xlu1 %v5483_v48, %s8874_s27 }
 0x1e5   : > { %v8204_v52 = vld [vmem:[%s8925_s22 + $0x68] sm:$0xc]  ;;  %3554 = vst.msk [vmem:[#allocation3 + $0x2c] sm:$0xf] %vm673_vm7, %v3530_v63  ;;  %v4158_v43 = vrot.slane %v4156_v22, 6  ;;  %v4161_v51 = vrot.slane %v4159_v32, 7  ;;  %v4180_v24 = vor.u32 %v4179_v42, %v4176_v1  ;;  %v5519_v27 = vsel %vm9253_vm0, %v5510_v30, %v5518_v56 }
 0x1e6   : > { %v4165_v50 = vshrl.u32 %v8199_v53, 16  ;;  %v4168_v60 = vshll.u32 %v8199_v53, 16  ;;  %v8202_v0 = vld [vmem:[%s8925_s22 + $0x60] sm:$0xc]  ;;  %v5766_v47 = vrot.slane %v8414_v29, 7  ;;  %v4185_v31 = vrot.slane %v4183_v10, 6  ;;  %5664 = vrot.lane.b32.xlu0 %v5465_v11, %s8874_s27  ;;  %v3798_v21 = vpop.permute.xlu1 %3797 }
 0x1e7   : > { %v4188_v8 = vrot.slane %v4186_v39, 7  ;;  %v8242_v12 = vld [vmem:[%s12248_s1 + $0x8] sm:$0xf]  ;;  %3553 = vst.msk [vmem:[#allocation3 + $0x28] sm:$0xf] %vm673_vm7, %v3528_v37  ;;  %v4210_v13 = vshrl.u32 %v8204_v52, 16  ;;  %v5501_v59 = vsel %vm9253_vm0, %v5492_v54, %v5500_v26  ;;  %v4162_v45 = vor.u32 %v4161_v51, %v4158_v43 }
 0x1e8   : > { %v8205_v2 = vld [vmem:[%s8925_s22 + $0x6c] sm:$0x7]  ;;  %v4213_v14 = vshll.u32 %v8204_v52, 16  ;;  %8804 = vmatprep.subr.msk.bf16.mxu0 %vm2925_vm15, %v8242_v12  ;;  %v8435_v6 = vrot.slane %v8411_v35, 11  ;;  %v5762_v25 = vrot.slane %v8412_v58, 7  ;;  %v4192_v57 = vshrl.u32 %v8202_v0, 16  ;;  %v3796_v3 = vpop.permute.xlu0 %3795  ;;  %5670 = vrot.lane.b32.xlu1 %v5519_v27, %s8874_s27 }
 0x1e9   : > { %v8203_v17 = vld [vmem:[%s8925_s22 + $0x64] sm:$0x7]  ;;  %v4195_v44 = vshll.u32 %v8202_v0, 16  ;;  %3832 = vst.msk [vmem:[#allocation3 + $0x4] sm:$0xf] %vm965_vm8, %v3798_v21  ;;  %v4167_v41 = vrot.slane %v4165_v50, 6  ;;  %v5767_v38 = vsel %vm9357_vm5, %v8436_v49, %v5766_v47  ;;  %v4189_v36 = vor.u32 %v4188_v8, %v4185_v31 }
 0x1ea   : > { %v4170_v9 = vrot.slane %v4168_v60, 7  ;;  %v4181_v46 = vrot.slane %v4180_v24, 4  ;;  %v8417_v23 = vld [vmem:[%s8925_s22 + $0x30] sm:$0x8]  ;;  %v4219_v34 = vshrl.u32 %v8205_v2, 16  ;;  %v4212_v62 = vrot.slane %v4210_v13, 6  ;;  %5668 = vrot.lane.b32.xlu0 %v5501_v59, %s8874_s27  ;;  %v3802_v5 = vpop.permute.xlu1 %3801 }
 0x1eb   : > { %3831 = vst.msk [vmem:[#allocation3] sm:$0xf] %vm965_vm8, %v3796_v3  ;;  %v8418_v16 = vld [vmem:[%s8925_s22 + $0x34] sm:$0x7]  ;;  %v4215_v4 = vrot.slane %v4213_v14, 7  ;;  %v4222_v18 = vshll.u32 %v8205_v2, 16  ;;  %v5763_v1 = vsel %vm9357_vm5, %v8435_v6, %v5762_v25 }
 0x1ec   : > { %v4201_v7 = vshrl.u32 %v8203_v17, 16  ;;  %v4194_v19 = vrot.slane %v4192_v57, 6  ;;  %v4197_v22 = vrot.slane %v4195_v44, 7  ;;  %v4204_v32 = vshll.u32 %v8203_v17, 16  ;;  %3834 = vst.msk [vmem:[#allocation3 + $0xc] sm:$0xf] %vm965_vm8, %v3802_v5  ;;  %v3800_v39 = vpop.permute.xlu0 %3799  ;;  %5810 = vrot.lane.b32.xlu1 %v5767_v38, %s8875_s28 }
 0x1ed   : > { %v4484_v55 = vsel %vm2925_vm15, %v8242_v12, 0  ;;  %v4163_v42 = vrot.slane %v4162_v45, 4  ;;  %v4171_v10 = vor.u32 %v4170_v9, %v4167_v41  ;;  %v8438_v53 = vrot.slane %v8417_v23, 11  ;;  %v8415_v30 = vld [vmem:[%s8925_s22 + $0x28] sm:$0x8] }
 0x1ee   : > { %8758 = vmatpush3.bf16.msra.mxu0 %v4484_v55  ;;  %v5774_v48 = vrot.slane %v8418_v16, 7  ;;  %v8416_v56 = vld [vmem:[%s8925_s22 + $0x2c] sm:$0x7]  ;;  %3833 = vst.msk [vmem:[#allocation3 + $0x8] sm:$0xf] %vm965_vm8, %v3800_v39  ;;  %v4190_v29 = vsel %vm9253_vm0, %v4181_v46, %v4189_v36  ;;  %v4216_v35 = vor.u32 %v4215_v4, %v4212_v62  ;;  %v4221_v63 = vrot.slane %v4219_v34, 6  ;;  %5808 = vrot.lane.b32.xlu0 %v5763_v1, %s8875_s28  ;;  %v3806_v26 = vpop.permute.xlu1 %3805 }
 0x1ef   : > { %v4224_v11 = vrot.slane %v4222_v18, 7  ;;  %v8277_v54 = vld [vmem:[%s8925_s22 + $0x40] sm:$0xf]  ;;  %v4198_v49 = vor.u32 %v4197_v22, %v4194_v19  ;;  %v4203_v58 = vrot.slane %v4201_v7, 6  ;;  %v4206_v52 = vrot.slane %v4204_v32, 7 }
 0x1f0   : > { %v8275_v43 = vld [vmem:[%s8925_s22 + $0x38] sm:$0xf]  ;;  %3836 = vst.msk [vmem:[#allocation3 + $0x14] sm:$0xf] %vm965_vm8, %v3806_v26  ;;  %v4172_v51 = vsel %vm9253_vm0, %v4163_v42, %v4171_v10  ;;  %v8437_v50 = vrot.slane %v8415_v30, 11  ;;  %v5770_v60 = vrot.slane %v8416_v56, 7  ;;  %v3804_v0 = vpop.permute.xlu0 %3803  ;;  %4245 = vrot.lane.b32.xlu1 %v4190_v29, %s8874_s27  ;;  %v5775_v37 = vsel %vm9357_vm5, %v8438_v53, %v5774_v48 }
 0x1f1   : > { %v8224_v47 = vld [vmem:[%s8925_s22 + $0x58] sm:$0x8]  ;;  %v4703_v24 = vshrl.u32 %v8277_v54, 16  ;;  %v4706_v31 = vshll.u32 %v8277_v54, 16  ;;  %v8281_v8 = vld [vmem:[%s8925_s22 + $0x50] sm:$0xf]  ;;  %v4225_v27 = vor.u32 %v4224_v11, %v4221_v63  ;;  %v4207_v25 = vor.u32 %v4206_v52, %v4203_v58 }
 0x1f2   : > { %3835 = vst.msk [vmem:[#allocation3 + $0x10] sm:$0xf] %vm965_vm8, %v3804_v0  ;;  %v4217_v12 = vrot.slane %v4216_v35, 4  ;;  %v8225_v2 = vld [vmem:[%s8925_s22 + $0x5c] sm:$0x7]  ;;  %v4689_v13 = vshrl.u32 %v8275_v43, 16  ;;  %4243 = vrot.lane.b32.xlu0 %v4172_v51, %s8874_s27  ;;  %v3810_v21 = vpop.permute.xlu1 %3809  ;;  %v5771_v17 = vsel %vm9357_vm5, %v8437_v50, %v5770_v60 }
 0x1f3   : > { %v4692_v14 = vshll.u32 %v8275_v43, 16  ;;  %v4199_v6 = vrot.slane %v4198_v49, 4  ;;  %3838 = vst.msk [vmem:[#allocation3 + $0x1c] sm:$0xf] %vm965_vm8, %v3810_v21  ;;  %v8222_v57 = vld [vmem:[%s8925_s22 + $0x50] sm:$0x8] }
 0x1f4   : > { %v8223_v44 = vld [vmem:[%s8925_s22 + $0x54] sm:$0x7]  ;;  %v4731_v59 = vshrl.u32 %v8281_v8, 16  ;;  %v4734_v45 = vshll.u32 %v8281_v8, 16  ;;  %v3808_v41 = vpop.permute.xlu0 %3807  ;;  %5814 = vrot.lane.b32.xlu1 %v5775_v37, %s8875_s28  ;;  %v8239_v9 = vrot.slane %v8224_v47, 11  ;;  %v4361_v3 = vrot.slane %v8225_v2, 7 }
 0x1f5   : > { %v8228_v38 = vld [vmem:[%s8925_s22 + $0x68] sm:$0x8]  ;;  %v8229_v46 = vld [vmem:[%s8925_s22 + $0x6c] sm:$0x7]  ;;  %v4705_v36 = vrot.slane %v4703_v24, 4  ;;  %v4708_v23 = vrot.slane %v4706_v31, 5  ;;  %v4226_v16 = vsel %vm9253_vm0, %v4217_v12, %v4225_v27  ;;  %v4208_v19 = vsel %vm9253_vm0, %v4199_v6, %v4207_v25 }
 0x1f6   : > { %v8279_v34 = vld [vmem:[%s8925_s22 + $0x48] sm:$0xf]  ;;  %3837 = vst.msk [vmem:[#allocation3 + $0x18] sm:$0xf] %vm965_vm8, %v3808_v41  ;;  %v8226_v62 = vld [vmem:[%s8925_s22 + $0x60] sm:$0x8]  ;;  %5812 = vrot.lane.b32.xlu0 %v5771_v17, %s8875_s28  ;;  %v3814_v5 = vpop.permute.xlu1 %3813  ;;  %v4362_v56 = vsel %vm9357_vm5, %v8239_v9, %v4361_v3 }
 0x1f7   : > { %v8278_v4 = vld [vmem:[%s8925_s22 + $0x44] sm:$0x1]  ;;  %v4691_v18 = vrot.slane %v4689_v13, 4  ;;  %v4694_v7 = vrot.slane %v4692_v14, 5  ;;  %v8238_v22 = vrot.slane %v8222_v57, 11  ;;  %v4357_v32 = vrot.slane %v8223_v44, 7 }
 0x1f8   : > { %v8227_v55 = vld [vmem:[%s8925_s22 + $0x64] sm:$0x7]  ;;  %v8276_v1 = vld [vmem:[%s8925_s22 + $0x3c] sm:$0x1]  ;;  %3840 = vst.msk [vmem:[#allocation3 + $0x24] sm:$0xf] %vm965_vm8, %v3814_v5  ;;  %v3812_v30 = vpop.permute.xlu0 %3811  ;;  %4249 = vrot.lane.b32.xlu1 %v4226_v16, %s8874_s27  ;;  %v4709_v29 = vor.u32 %v4708_v23, %v4705_v36 }
 0x1f9   : > { %v8282_v42 = vld [vmem:[%s8925_s22 + $0x54] sm:$0x1]  ;;  %v4733_v10 = vrot.slane %v4731_v59, 4  ;;  %v4736_v39 = vrot.slane %v4734_v45, 5  ;;  %v4717_v53 = vshrl.u32 %v8279_v34, 16  ;;  %v4720_v48 = vshll.u32 %v8279_v34, 16 }
 0x1fa   : > { %v4712_v35 = vshll.u32 %v8278_v4, 16  ;;  %3839 = vst.msk [vmem:[#allocation3 + $0x20] sm:$0xf] %vm965_vm8, %v3812_v30  ;;  %v8241_v63 = vrot.slane %v8228_v38, 11  ;;  %v4369_v11 = vrot.slane %v8229_v46, 7  ;;  %v4695_v54 = vor.u32 %v4694_v7, %v4691_v18  ;;  %4247 = vrot.lane.b32.xlu0 %v4208_v19, %s8874_s27  ;;  %v3818_v49 = vpop.permute.xlu1 %3817 }
 0x1fb   : > { %v4698_v26 = vshll.u32 %v8276_v1, 16  ;;  %v8240_v58 = vrot.slane %v8226_v62, 11  ;;  %v4365_v52 = vrot.slane %v8227_v55, 7  ;;  %v4740_v43 = vshll.u32 %v8282_v42, 16  ;;  %v8280_v51 = vld [vmem:[%s8925_s22 + $0x4c] sm:$0x1] }
 0x1fc   : > { %3842 = vst.msk [vmem:[#allocation3 + $0x2c] sm:$0xf] %vm965_vm8, %v3818_v49  ;;  %v4358_v50 = vsel %vm9357_vm5, %v8238_v22, %v4357_v32  ;;  %v4737_v60 = vor.u32 %v4736_v39, %v4733_v10  ;;  %v4719_v0 = vrot.slane %v4717_v53, 4  ;;  %v4722_v37 = vrot.slane %v4720_v48, 5  ;;  %v3816_v47 = vpop.permute.xlu0 %3815  ;;  %4389 = vrot.lane.b32.xlu1 %v4362_v56, %s8875_s28  ;;  %v8301_v8 = vld [vmem:[%s8925_s22 + $0x40] sm:$0xe] }
 0x1fd   : > { %v4710_v24 = vrot.slane %v4709_v29, 4  ;;  %v4714_v31 = vrot.slane %v4712_v35, 5  ;;  %v8302_v12 = vld [vmem:[%s8925_s22 + $0x44] sm:$0x1]  ;;  %3841 = vst.msk [vmem:[#allocation3 + $0x28] sm:$0xf] %vm965_vm8, %v3816_v47  ;;  %v4370_v27 = vsel %vm9357_vm5, %v8241_v63, %v4369_v11  ;;  %v4366_v17 = vsel %vm9357_vm5, %v8240_v58, %v4365_v52 }
 0x1fe   : > { %v4696_v2 = vrot.slane %v4695_v54, 4  ;;  %v4700_v13 = vrot.slane %v4698_v26, 5  ;;  %v4726_v14 = vshll.u32 %v8280_v51, 16  ;;  %v10986_v21 = vld [vmem:[%s8925_s22 + $0x38] sm:$0xe]  ;;  %4387 = vrot.lane.b32.xlu0 %v4358_v50, %s8875_s28  ;;  %v3942_v25 = vpop.permute.xlu1 %3941  ;;  %v4742_v57 = vrot.slane %v4740_v43, 5 }
 0x1ff   : > { %v8337_v6 = vld [vmem:[%s8925_s22 + $0x40] sm:$0xe]  ;;  %v10993_v44 = vld [vmem:[%s8925_s22 + $0x3c] sm:$0x1]  ;;  %v8335_v59 = vld [vmem:[%s8925_s22 + $0x38] sm:$0xe]  ;;  %v4723_v41 = vor.u32 %v4722_v37, %v4719_v0  ;;  %v4715_v36 = vsel %vm8950_vm3, %v4710_v24, %v4714_v31 }
 0x200   : > { %3976 = vst.msk [vmem:[#allocation3 + $0x4] sm:$0xf] %vm1113_vm10, %v3942_v25  ;;  %v4738_v45 = vrot.slane %v4737_v60, 4  ;;  %v8320_v9 = vrot.slane %v8301_v8, 9  ;;  %v4918_v3 = vrot.slane %v8302_v12, 5  ;;  %v3940_v46 = vpop.permute.xlu0 %3939  ;;  %4393 = vrot.lane.b32.xlu1 %v4370_v27, %s8875_s28  ;;  %v5107_v34 = vshrl.u32 %v8337_v6, 16 }
 0x201   : > { %v8341_v38 = vld [vmem:[%s8925_s22 + $0x50] sm:$0xe]  ;;  %v5110_v16 = vshll.u32 %v8337_v6, 16  ;;  %3975 = vst.msk [vmem:[#allocation3] sm:$0xf] %vm1113_vm10, %v3940_v46  ;;  %v4701_v62 = vsel %vm8950_vm3, %v4696_v2, %v4700_v13  ;;  %v4728_v4 = vrot.slane %v4726_v14, 5 }
 0x202   : > { %v11002_v23 = vld [vmem:[%s8925_s22 + $0x50] sm:$0xe]  ;;  %v8338_v18 = vld [vmem:[%s8925_s22 + $0x44] sm:$0x3]  ;;  %v5089_v7 = vshrl.u32 %v8335_v59, 16  ;;  %v5092_v5 = vshll.u32 %v8335_v59, 16  ;;  %4391 = vrot.lane.b32.xlu0 %v4366_v17, %s8875_s28  ;;  %v3946_v19 = vpop.permute.xlu1 %3945  ;;  %v4743_v10 = vsel %vm8950_vm3, %v4738_v45, %v4742_v57  ;;  %v4919_v53 = vsel %vm9012_vm6, %v8320_v9, %v4918_v3 }
 0x203   : > { %v8319_v22 = vrot.slane %v10986_v21, 9  ;;  %v4914_v32 = vrot.slane %v10993_v44, 5  ;;  %v8336_v55 = vld [vmem:[%s8925_s22 + $0x3c] sm:$0x3]  ;;  %v5143_v1 = vshrl.u32 %v8341_v38, 16  ;;  %v5146_v42 = vshll.u32 %v8341_v38, 16 }
 0x204   : > { %3978 = vst.msk [vmem:[#allocation3 + $0xc] sm:$0xf] %vm1113_vm10, %v3946_v19  ;;  %v4724_v39 = vrot.slane %v4723_v41, 4  ;;  %v8306_v48 = vld [vmem:[%s8925_s22 + $0x54] sm:$0x1]  ;;  %v8322_v30 = vrot.slane %v11002_v23, 9  ;;  %v3944_v29 = vpop.permute.xlu0 %3943  ;;  %4810 = vrot.lane.b32.xlu1 %v4715_v36, %s8870_s23 }
 0x205   : > { %v8342_v56 = vld [vmem:[%s8925_s22 + $0x54] sm:$0x3]  ;;  %v5109_v35 = vrot.slane %v5107_v34, 5  ;;  %v5112_v63 = vrot.slane %v5110_v16, 6  ;;  %v5116_v11 = vshrl.u32 %v8338_v18, 16  ;;  %v5119_v54 = vshll.u32 %v8338_v18, 16 }
 0x206   : > { %v8339_v26 = vld [vmem:[%s8925_s22 + $0x48] sm:$0xe]  ;;  %3977 = vst.msk [vmem:[#allocation3 + $0x8] sm:$0xf] %vm1113_vm10, %v3944_v29  ;;  %v5091_v58 = vrot.slane %v5089_v7, 5  ;;  %v5094_v52 = vrot.slane %v5092_v5, 6  ;;  %4808 = vrot.lane.b32.xlu0 %v4701_v62, %s8870_s23  ;;  %v3950_v50 = vpop.permute.xlu1 %3949  ;;  %v4729_v24 = vsel %vm8950_vm3, %v4724_v39, %v4728_v4  ;;  %v4915_v13 = vsel %vm9012_vm6, %v8319_v22, %v4914_v32 }
 0x207   : > { %v8303_v49 = vld [vmem:[%s8925_s22 + $0x48] sm:$0xe]  ;;  %v5098_v43 = vshrl.u32 %v8336_v55, 16  ;;  %v5101_v51 = vshll.u32 %v8336_v55, 16  ;;  %v5145_v60 = vrot.slane %v5143_v1, 5  ;;  %v5148_v0 = vrot.slane %v5146_v42, 6 }
 0x208   : > { %v5152_v37 = vshrl.u32 %v8342_v56, 16  ;;  %v5155_v47 = vshll.u32 %v8342_v56, 16  ;;  %3980 = vst.msk [vmem:[#allocation3 + $0x14] sm:$0xf] %vm1113_vm10, %v3950_v50  ;;  %v4926_v31 = vrot.slane %v8306_v48, 5  ;;  %v5125_v12 = vshrl.u32 %v8339_v26, 16  ;;  %v3948_v2 = vpop.permute.xlu0 %3947  ;;  %4814 = vrot.lane.b32.xlu1 %v4743_v10, %s8870_s23 }
 0x209   : > { %v8304_v8 = vld [vmem:[%s8925_s22 + $0x4c] sm:$0x1]  ;;  %v5128_v27 = vshll.u32 %v8339_v26, 16  ;;  %v8321_v14 = vrot.slane %v8303_v49, 9  ;;  %v5118_v21 = vrot.slane %v5116_v11, 5  ;;  %v5121_v6 = vrot.slane %v5119_v54, 6 }
 0x20a   : > { %v8340_v25 = vld [vmem:[%s8925_s22 + $0x4c] sm:$0x3]  ;;  %3979 = vst.msk [vmem:[#allocation3 + $0x10] sm:$0xf] %vm1113_vm10, %v3948_v2  ;;  %v5113_v17 = vor.u32 %v5112_v63, %v5109_v35  ;;  %v5095_v57 = vor.u32 %v5094_v52, %v5091_v58  ;;  %v5100_v44 = vrot.slane %v5098_v43, 5  ;;  %v5103_v59 = vrot.slane %v5101_v51, 6  ;;  %4812 = vrot.lane.b32.xlu0 %v4729_v24, %s8870_s23  ;;  %v3954_v45 = vpop.permute.xlu1 %3953 }
 0x20b   : > { %v4922_v41 = vrot.slane %v8304_v8, 5  ;;  %v5149_v9 = vor.u32 %v5148_v0, %v5145_v60  ;;  %v5154_v3 = vrot.slane %v5152_v37, 5  ;;  %v5157_v38 = vrot.slane %v5155_v47, 6  ;;  %3982 = vst.msk [vmem:[#allocation3 + $0x1c] sm:$0xf] %vm1113_vm10, %v3954_v45 }
 0x20c   : > { %v5127_v46 = vrot.slane %v5125_v12, 5  ;;  %v5130_v36 = vrot.slane %v5128_v27, 6  ;;  %v5134_v23 = vshrl.u32 %v8340_v25, 16  ;;  %v5137_v34 = vshll.u32 %v8340_v25, 16  ;;  %v8361_v16 = vld [vmem:[%s8925_s22 + $0x40] sm:$0xc]  ;;  %v3952_v62 = vpop.permute.xlu0 %3951  ;;  %4954 = vrot.lane.b32.xlu1 %v4919_v53, %s8871_s24 }
 0x20d   : > { %v4927_v4 = vsel %vm9012_vm6, %v8322_v30, %v4926_v31  ;;  %v8362_v18 = vld [vmem:[%s8925_s22 + $0x44] sm:$0x3]  ;;  %3981 = vst.msk [vmem:[#allocation3 + $0x18] sm:$0xf] %vm1113_vm10, %v3952_v62  ;;  %v5114_v7 = vrot.slane %v5113_v17, 4  ;;  %v5122_v5 = vor.u32 %v5121_v6, %v5118_v21  ;;  %v5096_v19 = vrot.slane %v5095_v57, 4 }
 0x20e   : > { %v5104_v22 = vor.u32 %v5103_v59, %v5100_v44  ;;  %v8359_v32 = vld [vmem:[%s8925_s22 + $0x38] sm:$0xc]  ;;  %4952 = vrot.lane.b32.xlu0 %v4915_v13, %s8871_s24  ;;  %v3958_v55 = vpop.permute.xlu1 %3957  ;;  %v4923_v1 = vsel %vm9012_vm6, %v8321_v14, %v4922_v41  ;;  %v5150_v42 = vrot.slane %v5149_v9, 4  ;;  %v5158_v10 = vor.u32 %v5157_v38, %v5154_v3  ;;  %v8360_v53 = vld [vmem:[%s8925_s22 + $0x3c] sm:$0x3] }
 0x20f   : > { %v8380_v39 = vrot.slane %v8361_v16, 10  ;;  %v8397_v48 = vld [vmem:[%s8925_s22 + $0x40] sm:$0xc]  ;;  %3984 = vst.msk [vmem:[#allocation3 + $0x24] sm:$0xf] %vm1113_vm10, %v3958_v55  ;;  %v5131_v30 = vor.u32 %v5130_v36, %v5127_v46  ;;  %v5136_v56 = vrot.slane %v5134_v23, 5  ;;  %v5123_v26 = vsel %vm9084_vm9, %v5114_v7, %v5122_v5 }
 0x210   : > { %v5139_v29 = vrot.slane %v5137_v34, 6  ;;  %v5350_v35 = vrot.slane %v8362_v18, 6  ;;  %v8395_v63 = vld [vmem:[%s8925_s22 + $0x38] sm:$0xc]  ;;  %v3956_v11 = vpop.permute.xlu0 %3955  ;;  %4958 = vrot.lane.b32.xlu1 %v4927_v4, %s8871_s24  ;;  %v11052_v54 = vld [vmem:[%s8925_s22 + $0x50] sm:$0xc]  ;;  %v5105_v49 = vsel %vm9084_vm9, %v5096_v19, %v5104_v22  ;;  %v5159_v31 = vsel %vm9084_vm9, %v5150_v42, %v5158_v10 }
 0x211   : > { %3983 = vst.msk [vmem:[#allocation3 + $0x20] sm:$0xf] %vm1113_vm10, %v3956_v11  ;;  %v11060_v58 = vld [vmem:[%s8925_s22 + $0x54] sm:$0x3]  ;;  %v5539_v52 = vshrl.u32 %v8397_v48, 16  ;;  %v5542_v43 = vshll.u32 %v8397_v48, 16 }
 0x212   : > { %v8401_v51 = vld [vmem:[%s8925_s22 + $0x50] sm:$0xc]  ;;  %4956 = vrot.lane.b32.xlu0 %v4923_v1, %s8871_s24  ;;  %v3962_v50 = vpop.permute.xlu1 %3961  ;;  %v8379_v60 = vrot.slane %v8359_v32, 10  ;;  %v5346_v0 = vrot.slane %v8360_v53, 6  ;;  %v8398_v37 = vld [vmem:[%s8925_s22 + $0x44] sm:$0x7]  ;;  %v5140_v12 = vor.u32 %v5139_v29, %v5136_v56  ;;  %v5351_v27 = vsel %vm9171_vm12, %v8380_v39, %v5350_v35 }
 0x213   : > { %v5521_v47 = vshrl.u32 %v8395_v63, 16  ;;  %v5524_v24 = vshll.u32 %v8395_v63, 16  ;;  %3986 = vst.msk [vmem:[#allocation3 + $0x2c] sm:$0xf] %vm1113_vm10, %v3962_v50  ;;  %v5132_v8 = vrot.slane %v5131_v30, 4  ;;  %v8382_v14 = vrot.slane %v11052_v54, 10 }
 0x214   : > { %v8396_v2 = vld [vmem:[%s8925_s22 + $0x3c] sm:$0x7]  ;;  %v3960_v13 = vpop.permute.xlu0 %3959  ;;  %5242 = vrot.lane.b32.xlu1 %v5123_v26, %s8872_s25  ;;  %v5358_v21 = vrot.slane %v11060_v58, 6  ;;  %v5575_v6 = vshrl.u32 %v8401_v51, 16  ;;  %v5578_v25 = vshll.u32 %v8401_v51, 16  ;;  %v5541_v57 = vrot.slane %v5539_v52, 6 }
 0x215   : > { %v8399_v17 = vld [vmem:[%s8925_s22 + $0x48] sm:$0xc]  ;;  %3985 = vst.msk [vmem:[#allocation3 + $0x28] sm:$0xf] %vm1113_vm10, %v3960_v13  ;;  %v5544_v44 = vrot.slane %v5542_v43, 7  ;;  %v5548_v59 = vshrl.u32 %v8398_v37, 16  ;;  %v5141_v34 = vsel %vm9084_vm9, %v5132_v8, %v5140_v12  ;;  %v5347_v16 = vsel %vm9171_vm12, %v8379_v60, %v5346_v0 }
 0x216   : > { %v5551_v45 = vshll.u32 %v8398_v37, 16  ;;  %v8402_v41 = vld [vmem:[%s8925_s22 + $0x54] sm:$0x7]  ;;  %5240 = vrot.lane.b32.xlu0 %v5105_v49, %s8872_s25  ;;  %v4230_v9 = vpop.permute.xlu1 %4229  ;;  %v8363_v3 = vld [vmem:[%s8925_s22 + $0x48] sm:$0xc]  ;;  %v5523_v38 = vrot.slane %v5521_v47, 6  ;;  %v5359_v43 = vsel %vm9171_vm12, %v8382_v14, %v5358_v21 }
 0x217   : > { %v5526_v46 = vrot.slane %v5524_v24, 7  ;;  %v5530_v36 = vshrl.u32 %v8396_v2, 16  ;;  %v5533_v23 = vshll.u32 %v8396_v2, 16  ;;  %4264 = vst.msk [vmem:[#allocation3 + $0x4] sm:$0xf] %vm1405_vm11, %v4230_v9  ;;  %v5557_v4 = vshrl.u32 %v8399_v17, 16 }
 0x218   : > { %v8364_v62 = vld [vmem:[%s8925_s22 + $0x4c] sm:$0x3]  ;;  %v5560_v18 = vshll.u32 %v8399_v17, 16  ;;  %v4228_v7 = vpop.permute.xlu0 %4227  ;;  %5246 = vrot.lane.b32.xlu1 %v5159_v31, %s8872_s25  ;;  %v5577_v5 = vrot.slane %v5575_v6, 6  ;;  %v5580_v19 = vrot.slane %v5578_v25, 7  ;;  %v5584_v22 = vshrl.u32 %v8402_v41, 16 }
 0x219   : > { %v5587_v32 = vshll.u32 %v8402_v41, 16  ;;  %v8400_v55 = vld [vmem:[%s8925_s22 + $0x4c] sm:$0x7]  ;;  %4263 = vst.msk [vmem:[#allocation3] sm:$0xf] %vm1405_vm11, %v4228_v7  ;;  %v8381_v1 = vrot.slane %v8363_v3, 10  ;;  %v5545_v42 = vor.u32 %v5544_v44, %v5541_v57  ;;  %v5527_v30 = vor.u32 %v5526_v46, %v5523_v38 }
 0x21a   : > { %v5550_v10 = vrot.slane %v5548_v59, 6  ;;  %v5553_v39 = vrot.slane %v5551_v45, 7  ;;  %5244 = vrot.lane.b32.xlu0 %v5141_v34, %s8872_s25  ;;  %v4234_v53 = vpop.permute.xlu1 %4233  ;;  %v5354_v48 = vrot.slane %v8364_v62, 6  ;;  %v5532_v56 = vrot.slane %v5530_v36, 6  ;;  %v11095_v60 = vld [vmem:[%s8925_s22 + $0x40] sm:$0x8] }
 0x21b   : > { %v5535_v29 = vrot.slane %v5533_v23, 7  ;;  %4266 = vst.msk [vmem:[#allocation3 + $0xc] sm:$0xf] %vm1405_vm11, %v4234_v53  ;;  %v5559_v35 = vrot.slane %v5557_v4, 6  ;;  %v5562_v63 = vrot.slane %v5560_v18, 7  ;;  %v5566_v11 = vshrl.u32 %v8400_v55, 16 }
 0x21c   : > { %v5569_v54 = vshll.u32 %v8400_v55, 16  ;;  %v4232_v26 = vpop.permute.xlu0 %4231  ;;  %5386 = vrot.lane.b32.xlu1 %v5351_v27, %s8873_s26  ;;  %v5581_v49 = vor.u32 %v5580_v19, %v5577_v5  ;;  %v5586_v58 = vrot.slane %v5584_v22, 6  ;;  %v5589_v52 = vrot.slane %v5587_v32, 7  ;;  %v11099_v24 = vld [vmem:[%s8925_s22 + $0x44] sm:$0x7] }
 0x21d   : > { %4265 = vst.msk [vmem:[#allocation3 + $0x8] sm:$0xf] %vm1405_vm11, %v4232_v26  ;;  %v5546_v51 = vrot.slane %v5545_v42, 4  ;;  %v5554_v50 = vor.u32 %v5553_v39, %v5550_v10  ;;  %v5528_v37 = vrot.slane %v5527_v30, 4  ;;  %v5536_v47 = vor.u32 %v5535_v29, %v5532_v56  ;;  %v8474_v31 = vld [vmem:[%s8925_s22 + $0x28] sm:$0xf] }
 0x21e   : > { %5384 = vrot.lane.b32.xlu0 %v5347_v16, %s8873_s26  ;;  %v4374_v0 = vpop.permute.xlu1 %4373  ;;  %v5355_v8 = vsel %vm9171_vm12, %v8381_v1, %v5354_v48  ;;  %v5563_v12 = vor.u32 %v5562_v63, %v5559_v35  ;;  %v5568_v27 = vrot.slane %v5566_v11, 6  ;;  %v5571_v2 = vrot.slane %v5569_v54, 7  ;;  %v11106_v13 = vld [vmem:[%s8925_s22 + $0x38] sm:$0x8]  ;;  %v11109_v14 = vld [vmem:[%s8925_s22 + $0x3c] sm:$0x7] }
 0x21f   : > { %4408 = vst.msk [vmem:[#allocation3 + $0x4] sm:$0xf] %vm1553_vm14, %v4374_v0  ;;  %v5582_v6 = vrot.slane %v5581_v49, 4  ;;  %v5590_v25 = vor.u32 %v5589_v52, %v5586_v58  ;;  %v11113_v17 = vld [vmem:[%s8925_s22 + $0x50] sm:$0x8]  ;;  %v5555_v44 = vsel %vm9253_vm0, %v5546_v51, %v5554_v50  ;;  %v6084_v45 = vshrl.u32 %v8474_v31, 16 }
 0x220   : > { %v4372_v21 = vpop.permute.xlu0 %4371  ;;  %5390 = vrot.lane.b32.xlu1 %v5359_v43, %s8873_s26  ;;  %v8472_v57 = vld [vmem:[%s8925_s22 + $0x20] sm:$0xf]  ;;  %v11120_v59 = vld [vmem:[%s8925_s22 + $0x54] sm:$0x7]  ;;  %v6087_v41 = vshll.u32 %v8474_v31, 16  ;;  %v5537_v46 = vsel %vm9253_vm0, %v5528_v37, %v5536_v47  ;;  %v8440_v36 = vrot.slane %v11095_v60, 11  ;;  %v5572_v4 = vor.u32 %v5571_v2, %v5568_v27 }
 0x221   : > { %4407 = vst.msk [vmem:[#allocation3] sm:$0xf] %vm1553_vm14, %v4372_v21  ;;  %v8447_v9 = vld [vmem:[%s12248_s1 + $0xc] sm:$0xf]  ;;  %v8256_v3 = vld [vmem:[%s8925_s22 + $0x20] sm:$0xf]  ;;  %v5591_v32 = vsel %vm9253_vm0, %v5582_v6, %v5590_v25 }
 0x222   : > { %5388 = vrot.lane.b32.xlu0 %v5355_v8, %s8873_s26  ;;  %v4378_v38 = vpop.permute.xlu1 %4377  ;;  %v5782_v23 = vrot.slane %v11099_v24, 7  ;;  %v11132_v34 = vld [vmem:[%s8925_s22 + $0x48] sm:$0x8]  ;;  %v8478_v16 = vld [vmem:[%s8925_s22 + $0x38] sm:$0xf]  ;;  %8805 = vmatprep.subr.msk.bf16.mxu1 %vm2925_vm15, %v8447_v9  ;;  %v5564_v62 = vrot.slane %v5563_v12, 4 }
 0x223   : > { %4410 = vst.msk [vmem:[#allocation3 + $0xc] sm:$0xf] %vm1553_vm14, %v4378_v38  ;;  %v6070_v18 = vshrl.u32 %v8472_v57, 16  ;;  %v6073_v7 = vshll.u32 %v8472_v57, 16  ;;  %v8476_v5 = vld [vmem:[%s8925_s22 + $0x30] sm:$0xf] }
 0x224   : > { %v8255_v19 = vld [vmem:[%s8925_s22 + $0x18] sm:$0xf]  ;;  %v4376_v22 = vpop.permute.xlu0 %4375  ;;  %5674 = vrot.lane.b32.xlu1 %v5555_v44, %s8874_s27  ;;  %v8439_v55 = vrot.slane %v11106_v13, 11  ;;  %v5778_v1 = vrot.slane %v11109_v14, 7  ;;  %v8442_v42 = vrot.slane %v11113_v17, 11  ;;  %v6086_v53 = vrot.slane %v6084_v45, 4 }
 0x225   : > { %v8424_v10 = vld [vmem:[%s8925_s22 + $0x4c] sm:$0x7]  ;;  %4409 = vst.msk [vmem:[#allocation3 + $0x8] sm:$0xf] %vm1553_vm14, %v4376_v22  ;;  %v6089_v48 = vrot.slane %v6087_v41, 5  ;;  %v6112_v30 = vshrl.u32 %v8478_v16, 16  ;;  %v5573_v58 = vsel %vm9253_vm0, %v5564_v62, %v5572_v4  ;;  %v5783_v37 = vsel %vm9357_vm5, %v8440_v36, %v5782_v23 }
 0x226   : > { %v8475_v39 = vld [vmem:[%s8925_s22 + $0x2c] sm:$0x1]  ;;  %v6115_v56 = vshll.u32 %v8478_v16, 16  ;;  %v4424_v29 = vld [vmem:[#allocation3 + $0x4] sm:$0xf]  ;;  %5672 = vrot.lane.b32.xlu0 %v5537_v46, %s8874_s27  ;;  %v4238_v63 = vpop.permute.xlu1 %4237  ;;  %v5790_v11 = vrot.slane %v11120_v59, 7  ;;  %v5779_v44 = vsel %vm9357_vm5, %v8439_v55, %v5778_v1 }
 0x227   : > { %v8258_v35 = vld [vmem:[%s8925_s22 + $0x30] sm:$0xf]  ;;  %v8441_v54 = vrot.slane %v11132_v34, 11  ;;  %v6098_v26 = vshrl.u32 %v8476_v5, 16  ;;  %v6101_v49 = vshll.u32 %v8476_v5, 16  ;;  %v6072_v43 = vrot.slane %v6070_v18, 4 }
 0x228   : > { %4597 = vst.msk [vmem:[#allocation3 + $0x4] sm:$0xf] %vm281_vm13, %v8256_v3  ;;  %v8473_v52 = vld [vmem:[%s8925_s22 + $0x24] sm:$0x1]  ;;  %v6075_v51 = vrot.slane %v6073_v7, 5  ;;  %v5921_v50 = vsel %vm2925_vm15, %v8447_v9, 0  ;;  %v4236_v0 = vpop.permute.xlu0 %4235  ;;  %5678 = vrot.lane.b32.xlu1 %v5591_v32, %s8874_s27  ;;  %v6090_v27 = vor.u32 %v6089_v48, %v6086_v53  ;;  %v5791_v36 = vsel %vm9357_vm5, %v8442_v42, %v5790_v11 }
 0x229   : > { %4268 = vst.msk [vmem:[#allocation3 + $0x14] sm:$0xf] %vm1405_vm11, %v4238_v63  ;;  %v4423_v60 = vld [vmem:[#allocation3] sm:$0xf]  ;;  %v5786_v47 = vrot.slane %v8424_v10, 7  ;;  %v6093_v24 = vshll.u32 %v8475_v39, 16  ;;  %8772 = vmatpush3.bf16.msra.mxu1 %v5921_v50 }
 0x22a   : > { %v8285_v31 = vld [vmem:[%s8925_s22 + $0x60] sm:$0xf]  ;;  %4596 = vst.msk [vmem:[#allocation3] sm:$0xf] %vm281_vm13, %v8255_v19  ;;  %v8257_v8 = vld [vmem:[%s8925_s22 + $0x28] sm:$0xf]  ;;  %v8243_v12 = vcombine.low %v4423_v60, %v4424_v29  ;;  %5676 = vrot.lane.b32.xlu0 %v5573_v58, %s8874_s27  ;;  %v4242_v6 = vpop.permute.xlu1 %4241  ;;  %v6076_v59 = vor.u32 %v6075_v51, %v6072_v43 }
 0x22b   : > { %4267 = vst.msk [vmem:[#allocation3 + $0x10] sm:$0xf] %vm1405_vm11, %v4236_v0  ;;  %v8479_v2 = vld [vmem:[%s8925_s22 + $0x3c] sm:$0x1]  ;;  %v6114_v13 = vrot.slane %v6112_v30, 4  ;;  %v6117_v14 = vrot.slane %v6115_v56, 5  ;;  %v5787_v23 = vsel %vm9357_vm5, %v8441_v54, %v5786_v47 }
 0x22c   : > { %v4426_v21 = vld [vmem:[#allocation3 + $0xc] sm:$0xf]  ;;  %v6079_v25 = vshll.u32 %v8473_v52, 16  ;;  %v6100_v17 = vrot.slane %v6098_v26, 4  ;;  %v6103_v57 = vrot.slane %v6101_v49, 5  ;;  %8759 = vmatprep.mubr.msk.bf16.mxu0 %vm2906_vm2, %v8243_v12  ;;  %v4759_v41 = vshrl.u32 %v8285_v31, 16  ;;  %v4240_v46 = vpop.permute.xlu0 %4239  ;;  %5818 = vrot.lane.b32.xlu1 %v5783_v37, %s8875_s28 }
 0x22d   : > { %4599 = vst.msk [vmem:[#allocation3 + $0xc] sm:$0xf] %vm281_vm13, %v8258_v35  ;;  %v8477_v45 = vld [vmem:[%s8925_s22 + $0x34] sm:$0x1]  ;;  %v4762_v9 = vshll.u32 %v8285_v31, 16  ;;  %v6121_v34 = vshll.u32 %v8479_v2, 16  ;;  %v6118_v18 = vor.u32 %v6117_v14, %v6114_v13 }
 0x22e   : > { %4270 = vst.msk [vmem:[#allocation3 + $0x1c] sm:$0xf] %vm1405_vm11, %v4242_v6  ;;  %v8283_v3 = vld [vmem:[%s8925_s22 + $0x58] sm:$0xf]  ;;  %v4425_v38 = vld [vmem:[#allocation3 + $0x8] sm:$0xf]  ;;  %5816 = vrot.lane.b32.xlu0 %v5779_v44, %s8875_s28  ;;  %v4382_v5 = vpop.permute.xlu1 %4381  ;;  %v6104_v19 = vor.u32 %v6103_v57, %v6100_v17 }
 0x22f   : > { %4598 = vst.msk [vmem:[#allocation3 + $0x8] sm:$0xf] %vm281_vm13, %v8257_v8  ;;  %v8244_v16 = vcombine.low %v4425_v38, %v4426_v21  ;;  %v6091_v62 = vrot.slane %v6090_v27, 4  ;;  %v6095_v4 = vrot.slane %v6093_v24, 5  ;;  %v11182_v7 = vld [vmem:[%s8925_s22 + $0x28] sm:$0xe] }
 0x230   : > { %4269 = vst.msk [vmem:[#allocation3 + $0x18] sm:$0xf] %vm1405_vm11, %v4240_v46  ;;  %v6107_v22 = vshll.u32 %v8477_v45, 16  ;;  %v8286_v32 = vld [vmem:[%s8925_s22 + $0x64] sm:$0x1]  ;;  %v4745_v55 = vshrl.u32 %v8283_v3, 16  ;;  %v4380_v48 = vpop.permute.xlu0 %4379  ;;  %5822 = vrot.lane.b32.xlu1 %v5791_v36, %s8875_s28 }
 0x231   : > { %v4748_v1 = vshll.u32 %v8283_v3, 16  ;;  %8760 = vmatmul.mubr.msk.bf16.vlgmr.msra.gmra.mxu0 %vm2906_vm2, %v8244_v16  ;;  %4412 = vst.msk [vmem:[#allocation3 + $0x14] sm:$0xf] %vm1553_vm14, %v4382_v5  ;;  %v6077_v42 = vrot.slane %v6076_v59, 4  ;;  %v6081_v10 = vrot.slane %v6079_v25, 5  ;;  %v4761_v39 = vrot.slane %v4759_v41, 4 }
 0x232   : > { %v4764_v53 = vrot.slane %v4762_v9, 5  ;;  %v6123_v30 = vrot.slane %v6121_v34, 5  ;;  %v8499_v56 = vld [vmem:[%s8925_s22 + $0x2c] sm:$0x1]  ;;  %v8521_v29 = vrot.slane %v11182_v7, 9  ;;  %v6096_v63 = vsel %vm8950_vm3, %v6091_v62, %v6095_v4  ;;  %5820 = vrot.lane.b32.xlu0 %v5787_v23, %s8875_s28  ;;  %v4386_v52 = vpop.permute.xlu1 %4385 }
 0x233   : > { %v8496_v35 = vld [vmem:[%s8925_s22 + $0x20] sm:$0xe]  ;;  %4411 = vst.msk [vmem:[#allocation3 + $0x10] sm:$0xf] %vm1553_vm14, %v4380_v48  ;;  %v6119_v11 = vrot.slane %v6118_v18, 4  ;;  %v4768_v26 = vshll.u32 %v8286_v32, 16  ;;  %v6082_v0 = vsel %vm8950_vm3, %v6077_v42, %v6081_v10 }
 0x234   : > { %v8497_v54 = vld [vmem:[%s8925_s22 + $0x24] sm:$0x1]  ;;  %v8534_v49 = vld [vmem:[%s8925_s22 + $0x28] sm:$0xe]  ;;  %v8260_v58 = vld [vmem:[%s8925_s22 + $0x40] sm:$0xf]  ;;  %v4765_v24 = vor.u32 %v4764_v53, %v4761_v39  ;;  %v4384_v12 = vpop.permute.xlu0 %4383  ;;  %6239 = vrot.lane.b32.xlu1 %v6096_v63, %s8870_s23 }
 0x235   : > { %v6105_v43 = vrot.slane %v6104_v19, 4  ;;  %v6109_v51 = vrot.slane %v6107_v22, 5  ;;  %v4747_v50 = vrot.slane %v4745_v55, 4  ;;  %v4750_v60 = vrot.slane %v4748_v1, 5  ;;  %4414 = vst.msk [vmem:[#allocation3 + $0x1c] sm:$0xf] %vm1553_vm14, %v4386_v52 }
 0x236   : > { %v6339_v37 = vrot.slane %v8499_v56, 5  ;;  %v8520_v47 = vrot.slane %v8496_v35, 9  ;;  %v8284_v31 = vld [vmem:[%s8925_s22 + $0x5c] sm:$0x1]  ;;  %v8532_v8 = vld [vmem:[%s8925_s22 + $0x20] sm:$0xe]  ;;  %v6124_v6 = vsel %vm8950_vm3, %v6119_v11, %v6123_v30  ;;  %6237 = vrot.lane.b32.xlu0 %v6082_v0, %s8870_s23  ;;  %v4803_v59 = vpop.permute.xlu1 %4802 }
 0x237   : > { %v6335_v27 = vrot.slane %v8497_v54, 5  ;;  %v11206_v2 = vld [vmem:[%s8925_s22 + $0x38] sm:$0xe]  ;;  %v8535_v13 = vld [vmem:[%s8925_s22 + $0x2c] sm:$0x3]  ;;  %v6472_v14 = vshrl.u32 %v8534_v49, 16  ;;  %v6110_v45 = vsel %vm8950_vm3, %v6105_v43, %v6109_v51  ;;  %v4751_v41 = vor.u32 %v4750_v60, %v4747_v50 }
 0x238   : > { %v8259_v21 = vld [vmem:[%s8925_s22 + $0x38] sm:$0xf]  ;;  %4413 = vst.msk [vmem:[#allocation3 + $0x18] sm:$0xf] %vm1553_vm14, %v4384_v12  ;;  %v11213_v25 = vrot.slane %v4768_v26, 5  ;;  %v6475_v17 = vshll.u32 %v8534_v49, 16  ;;  %v4801_v7 = vpop.permute.xlu0 %4800  ;;  %6243 = vrot.lane.b32.xlu1 %v6124_v6, %s8870_s23  ;;  %v6340_v5 = vsel %vm9012_vm6, %v8521_v29, %v6339_v37 }
 0x239   : > { %v4428_v57 = vld [vmem:[#allocation3 + $0x14] sm:$0xf]  ;;  %v8262_v44 = vld [vmem:[%s8925_s22 + $0x50] sm:$0xf]  ;;  %v4754_v9 = vshll.u32 %v8284_v31, 16  ;;  %v6454_v3 = vshrl.u32 %v8532_v8, 16  ;;  %v6336_v19 = vsel %vm9012_vm6, %v8520_v47, %v6335_v27 }
 0x23a   : > { %v8289_v38 = vld [vmem:[%s8925_s22 + $0x70] sm:$0xf]  ;;  %4601 = vst.msk [vmem:[#allocation3 + $0x14] sm:$0xf] %vm281_vm13, %v8260_v58  ;;  %v11222_v46 = vrot.slane %v4765_v24, 4  ;;  %v8523_v23 = vrot.slane %v11206_v2, 9  ;;  %6241 = vrot.lane.b32.xlu0 %v6110_v45, %s8870_s23  ;;  %v4807_v30 = vpop.permute.xlu1 %4806 }
 0x23b   : > { %4837 = vst.msk [vmem:[#allocation3 + $0x4] sm:$0xf] %vm525_vm1, %v4803_v59  ;;  %v11225_v36 = vld [vmem:[%s8925_s22 + $0x3c] sm:$0x1]  ;;  %v6481_v34 = vshrl.u32 %v8535_v13, 16  ;;  %v6457_v62 = vshll.u32 %v8532_v8, 16 }
 0x23c   : > { %v8533_v16 = vld [vmem:[%s8925_s22 + $0x24] sm:$0x3]  ;;  %v4427_v4 = vld [vmem:[#allocation3 + $0x10] sm:$0xf]  ;;  %v8261_v18 = vld [vmem:[%s8925_s22 + $0x48] sm:$0xf]  ;;  %v4805_v43 = vpop.permute.xlu0 %4804  ;;  %6383 = vrot.lane.b32.xlu1 %v6340_v5, %s8871_s24  ;;  %v4771_v51 = vsel %vm8950_vm3, %v11222_v46, %v11213_v25 }
 0x23d   : > { %v6474_v22 = vrot.slane %v6472_v14, 5  ;;  %v6484_v32 = vshll.u32 %v8535_v13, 16  ;;  %v8287_v55 = vld [vmem:[%s8925_s22 + $0x68] sm:$0xf]  ;;  %4600 = vst.msk [vmem:[#allocation3 + $0x10] sm:$0xf] %vm281_vm13, %v8259_v21  ;;  %v8245_v1 = vcombine.low %v4427_v4, %v4428_v57 }
 0x23e   : > { %4836 = vst.msk [vmem:[#allocation3] sm:$0xf] %vm525_vm1, %v4801_v7  ;;  %v11239_v42 = vld [vmem:[%s8925_s22 + $0x30] sm:$0xe]  ;;  %v6477_v10 = vrot.slane %v6475_v17, 6  ;;  %v4787_v39 = vshrl.u32 %v8289_v38, 16  ;;  %6381 = vrot.lane.b32.xlu0 %v6336_v19, %s8871_s24  ;;  %v4947_v12 = vpop.permute.xlu1 %4946 }
 0x23f   : > { %v4790_v53 = vshll.u32 %v8289_v38, 16  ;;  %v4430_v48 = vld [vmem:[#allocation3 + $0x1c] sm:$0xf]  ;;  %v4752_v56 = vrot.slane %v4751_v41, 4  ;;  %v4756_v29 = vrot.slane %v4754_v9, 5  ;;  %v6456_v35 = vrot.slane %v6454_v3, 5  ;;  %8763 = vmatprep.mubr.msk.bf16.mxu0 %vm2906_vm2, %v8245_v1 }
 0x240   : > { %v6463_v63 = vshrl.u32 %v8533_v16, 16  ;;  %4603 = vst.msk [vmem:[#allocation3 + $0x1c] sm:$0xf] %vm281_vm13, %v8262_v44  ;;  %v8501_v11 = vld [vmem:[%s8925_s22 + $0x34] sm:$0x1]  ;;  %v6459_v54 = vrot.slane %v6457_v62, 6  ;;  %v6478_v47 = vor.u32 %v6477_v10, %v6474_v22  ;;  %v4945_v45 = vpop.permute.xlu0 %4944  ;;  %4818 = vrot.lane.b32.xlu1 %v4771_v51, %s8870_s23 }
 0x241   : > { %4839 = vst.msk [vmem:[#allocation3 + $0xc] sm:$0xf] %vm525_vm1, %v4807_v30  ;;  %v6466_v26 = vshll.u32 %v8533_v16, 16  ;;  %v4773_v49 = vshrl.u32 %v8287_v55, 16  ;;  %v4776_v58 = vshll.u32 %v8287_v55, 16  ;;  %v6347_v50 = vrot.slane %v11225_v36, 5 }
 0x242   : > { %v4429_v52 = vld [vmem:[#allocation3 + $0x18] sm:$0xf]  ;;  %v6483_v60 = vrot.slane %v6481_v34, 5  ;;  %v6486_v0 = vrot.slane %v6484_v32, 6  ;;  %4838 = vst.msk [vmem:[#allocation3 + $0x8] sm:$0xf] %vm525_vm1, %v4805_v43  ;;  %v4757_v27 = vsel %vm8950_vm3, %v4752_v56, %v4756_v29  ;;  %v6460_v25 = vor.u32 %v6459_v54, %v6456_v35  ;;  %v4951_v4 = vpop.permute.xlu1 %4950 }
 0x243   : > { %4602 = vst.msk [vmem:[#allocation3 + $0x18] sm:$0xf] %vm281_vm13, %v8261_v18  ;;  %v8246_v37 = vcombine.low %v4429_v52, %v4430_v48  ;;  %v4789_v24 = vrot.slane %v4787_v39, 4  ;;  %v4792_v31 = vrot.slane %v4790_v53, 5  ;;  %v8538_v8 = vld [vmem:[%s8925_s22 + $0x38] sm:$0xe]  ;;  %v6348_v41 = vsel %vm9012_vm6, %v8523_v23, %v6347_v50  ;;  %4816 = vrot.lane.b32.xlu0 %v4757_v27, %s8870_s23 }
 0x244   : > { %v8522_v13 = vrot.slane %v11239_v42, 9  ;;  %v6343_v14 = vrot.slane %v8501_v11, 5  ;;  %v6465_v21 = vrot.slane %v6463_v63, 5  ;;  %v8290_v6 = vld [vmem:[%s8925_s22 + $0x74] sm:$0x1]  ;;  %v6468_v17 = vrot.slane %v6466_v26, 6  ;;  %v4949_v55 = vpop.permute.xlu0 %4948  ;;  %6387 = vrot.lane.b32.xlu1 %v6348_v41, %s8871_s24 }
 0x245   : > { %8764 = vmatmul.mubr.msk.bf16.gmra.mxu0 %vm2906_vm2, %v8246_v37  ;;  %4981 = vst.msk [vmem:[#allocation3 + $0x4] sm:$0xf] %vm673_vm7, %v4947_v12  ;;  %v4775_v57 = vrot.slane %v4773_v49, 4  ;;  %v4778_v44 = vrot.slane %v4776_v58, 5  ;;  %v8536_v59 = vld [vmem:[%s8925_s22 + $0x30] sm:$0xe]  ;;  %v6487_v36 = vor.u32 %v6486_v0, %v6483_v60  ;;  %v4793_v34 = vor.u32 %v4792_v31, %v4789_v24 }
 0x246   : > { %v8288_v9 = vld [vmem:[%s8925_s22 + $0x6c] sm:$0x1]  ;;  %v6508_v3 = vshrl.u32 %v8538_v8, 16  ;;  %v6511_v38 = vshll.u32 %v8538_v8, 16  ;;  %4980 = vst.msk [vmem:[#allocation3] sm:$0xf] %vm673_vm7, %v4945_v45  ;;  %v6344_v2 = vsel %vm9012_vm6, %v8522_v13, %v6343_v14  ;;  %v6469_v5 = vor.u32 %v6468_v17, %v6465_v21  ;;  %v5235_v63 = vpop.permute.xlu1 %5234 }
 0x247   : > { %v6479_v46 = vrot.slane %v6478_v47, 4  ;;  %v4796_v16 = vshll.u32 %v8290_v6, 16  ;;  %v8539_v62 = vld [vmem:[%s8925_s22 + $0x3c] sm:$0x3]  ;;  %v6490_v18 = vshrl.u32 %v8536_v59, 16  ;;  %v6493_v23 = vshll.u32 %v8536_v59, 16  ;;  %6385 = vrot.lane.b32.xlu0 %v6344_v2, %s8871_s24 }
 0x248   : > { %4983 = vst.msk [vmem:[#allocation3 + $0xc] sm:$0xf] %vm673_vm7, %v4951_v4  ;;  %v6461_v7 = vrot.slane %v6460_v25, 4  ;;  %v4779_v19 = vor.u32 %v4778_v44, %v4775_v57  ;;  %v4782_v22 = vshll.u32 %v8288_v9, 16  ;;  %v8537_v32 = vld [vmem:[%s8925_s22 + $0x34] sm:$0x3]  ;;  %v5233_v50 = vpop.permute.xlu0 %5232 }
 0x249   : > { %v8309_v1 = vld [vmem:[%s8925_s22 + $0x60] sm:$0xe]  ;;  %v6510_v42 = vrot.slane %v6508_v3, 5  ;;  %v6513_v10 = vrot.slane %v6511_v38, 6  ;;  %v6517_v39 = vshrl.u32 %v8539_v62, 16  ;;  %v6520_v53 = vshll.u32 %v8539_v62, 16 }
 0x24a   : > { %4982 = vst.msk [vmem:[#allocation3 + $0x8] sm:$0xf] %vm673_vm7, %v4949_v55  ;;  %v6488_v48 = vsel %vm9084_vm9, %v6479_v46, %v6487_v36  ;;  %v4794_v30 = vrot.slane %v4793_v34, 4  ;;  %v4798_v56 = vrot.slane %v4796_v16, 5  ;;  %v8310_v29 = vld [vmem:[%s8925_s22 + $0x64] sm:$0x1]  ;;  %v6470_v52 = vsel %vm9084_vm9, %v6461_v7, %v6469_v5  ;;  %v5239_v13 = vpop.permute.xlu1 %5238 }
 0x24b   : > { %v8307_v35 = vld [vmem:[%s8925_s22 + $0x58] sm:$0xe]  ;;  %v8308_v11 = vld [vmem:[%s8925_s22 + $0x5c] sm:$0x1]  ;;  %v6492_v54 = vrot.slane %v6490_v18, 5  ;;  %v6495_v26 = vrot.slane %v6493_v23, 6  ;;  %6671 = vrot.lane.b32.xlu1 %v6488_v48, %s8872_s25  ;;  %v6514_v0 = vor.u32 %v6513_v10, %v6510_v42  ;;  %6669 = vrot.lane.b32.xlu0 %v6470_v52, %s8872_s25 }
 0x24c   : > { %v6499_v49 = vshrl.u32 %v8537_v32, 16  ;;  %v6502_v58 = vshll.u32 %v8537_v32, 16  ;;  %5269 = vst.msk [vmem:[#allocation3 + $0x4] sm:$0xf] %vm965_vm8, %v5235_v63  ;;  %v4780_v43 = vrot.slane %v4779_v19, 4  ;;  %v4784_v51 = vrot.slane %v4782_v22, 5  ;;  %v5237_v9 = vpop.permute.xlu0 %5236 }
 0x24d   : > { %v8324_v60 = vrot.slane %v8309_v1, 9  ;;  %v6519_v37 = vrot.slane %v6517_v39, 5  ;;  %v6522_v47 = vrot.slane %v6520_v53, 6  ;;  %v8345_v24 = vld [vmem:[%s8925_s22 + $0x60] sm:$0xe]  ;;  %v4799_v31 = vsel %vm8950_vm3, %v4794_v30, %v4798_v56 }
 0x24e   : > { %5268 = vst.msk [vmem:[#allocation3] sm:$0xf] %vm965_vm8, %v5233_v50  ;;  %v4934_v8 = vrot.slane %v8310_v29, 5  ;;  %v8323_v12 = vrot.slane %v8307_v35, 9  ;;  %v4930_v27 = vrot.slane %v8308_v11, 5  ;;  %v6496_v14 = vor.u32 %v6495_v26, %v6492_v54  ;;  %v5379_v18 = vpop.permute.xlu1 %5378 }
 0x24f   : > { %v6501_v21 = vrot.slane %v6499_v49, 5  ;;  %v6504_v6 = vrot.slane %v6502_v58, 6  ;;  %v8558_v25 = vld [vmem:[%s8925_s22 + $0x28] sm:$0xc]  ;;  %v8343_v17 = vld [vmem:[%s8925_s22 + $0x58] sm:$0xe]  ;;  %v4785_v57 = vsel %vm8950_vm3, %v4780_v43, %v4784_v51  ;;  %4822 = vrot.lane.b32.xlu1 %v4799_v31, %s8870_s23  ;;  %v6523_v38 = vor.u32 %v6522_v47, %v6519_v37 }
 0x250   : > { %5271 = vst.msk [vmem:[#allocation3 + $0xc] sm:$0xf] %vm965_vm8, %v5239_v13  ;;  %v8559_v44 = vld [vmem:[%s8925_s22 + $0x2c] sm:$0x3]  ;;  %v11301_v59 = vld [vmem:[%s8925_s22 + $0x20] sm:$0xc]  ;;  %v4935_v34 = vsel %vm9012_vm6, %v8324_v60, %v4934_v8  ;;  %4820 = vrot.lane.b32.xlu0 %v4785_v57, %s8870_s23  ;;  %v4931_v23 = vsel %vm9012_vm6, %v8323_v12, %v4930_v27  ;;  %v5377_v53 = vpop.permute.xlu0 %5376 }
 0x251   : > { %v5179_v45 = vshrl.u32 %v8345_v24, 16  ;;  %v5182_v41 = vshll.u32 %v8345_v24, 16  ;;  %v6515_v3 = vrot.slane %v6514_v0, 4  ;;  %v8557_v46 = vld [vmem:[%s8925_s22 + $0x24] sm:$0x3]  ;;  %v5161_v4 = vshrl.u32 %v8343_v17, 16 }
 0x252   : > { %v8346_v36 = vld [vmem:[%s8925_s22 + $0x64] sm:$0x3]  ;;  %5270 = vst.msk [vmem:[#allocation3 + $0x8] sm:$0xf] %vm965_vm8, %v5237_v9  ;;  %v8313_v16 = vld [vmem:[%s8925_s22 + $0x70] sm:$0xe]  ;;  %v6505_v5 = vor.u32 %v6504_v6, %v6501_v21  ;;  %v5383_v49 = vpop.permute.xlu1 %5382 }
 0x253   : > { %v8314_v62 = vld [vmem:[%s8925_s22 + $0x74] sm:$0x1]  ;;  %v5164_v2 = vshll.u32 %v8343_v17, 16  ;;  %v6497_v7 = vrot.slane %v6496_v14, 4  ;;  %v8581_v19 = vrot.slane %v8558_v25, 10  ;;  %v5181_v1 = vrot.slane %v5179_v45, 5  ;;  %4962 = vrot.lane.b32.xlu1 %v4935_v34, %s8871_s24 }
 0x254   : > { %v8311_v22 = vld [vmem:[%s8925_s22 + $0x68] sm:$0xe]  ;;  %v8344_v32 = vld [vmem:[%s8925_s22 + $0x5c] sm:$0x3]  ;;  %5413 = vst.msk [vmem:[#allocation3 + $0x4] sm:$0xf] %vm1113_vm10, %v5379_v18  ;;  %v6524_v48 = vsel %vm9084_vm9, %v6515_v3, %v6523_v38  ;;  %4960 = vrot.lane.b32.xlu0 %v4931_v23, %s8871_s24  ;;  %v5381_v24 = vpop.permute.xlu0 %5380 }
 0x255   : > { %v8312_v55 = vld [vmem:[%s8925_s22 + $0x6c] sm:$0x1]  ;;  %v5184_v42 = vrot.slane %v5182_v41, 6  ;;  %v5188_v10 = vshrl.u32 %v8346_v36, 16  ;;  %v5191_v39 = vshll.u32 %v8346_v36, 16  ;;  %v6771_v30 = vrot.slane %v8559_v44, 6 }
 0x256   : > { %v8580_v56 = vrot.slane %v11301_v59, 10  ;;  %v6767_v29 = vrot.slane %v8557_v46, 6  ;;  %5412 = vst.msk [vmem:[#allocation3] sm:$0xf] %vm1113_vm10, %v5377_v53  ;;  %v5163_v35 = vrot.slane %v5161_v4, 5  ;;  %v5166_v63 = vrot.slane %v5164_v2, 6  ;;  %v5667_v57 = vpop.permute.xlu1 %5666 }
 0x257   : > { %v5170_v11 = vshrl.u32 %v8344_v32, 16  ;;  %v5173_v54 = vshll.u32 %v8344_v32, 16  ;;  %v8594_v26 = vld [vmem:[%s8925_s22 + $0x28] sm:$0xc]  ;;  %v8326_v58 = vrot.slane %v8313_v16, 9  ;;  %v4942_v52 = vrot.slane %v8314_v62, 5  ;;  %6675 = vrot.lane.b32.xlu1 %v6524_v48, %s8872_s25 }
 0x258   : > { %v8325_v43 = vrot.slane %v8311_v22, 9  ;;  %v4938_v51 = vrot.slane %v8312_v55, 5  ;;  %5415 = vst.msk [vmem:[#allocation3 + $0xc] sm:$0xf] %vm1113_vm10, %v5383_v49  ;;  %v6506_v50 = vsel %vm9084_vm9, %v6497_v7, %v6505_v5  ;;  %v5185_v60 = vor.u32 %v5184_v42, %v5181_v1  ;;  %v8592_v47 = vld [vmem:[%s8925_s22 + $0x20] sm:$0xc]  ;;  %v5665_v4 = vpop.permute.xlu0 %5664 }
 0x259   : > { %v5190_v0 = vrot.slane %v5188_v10, 5  ;;  %v5193_v37 = vrot.slane %v5191_v39, 6  ;;  %v6772_v31 = vsel %vm9171_vm12, %v8581_v19, %v6771_v30  ;;  %v11333_v8 = vld [vmem:[%s8925_s22 + $0x38] sm:$0xc]  ;;  %v11336_v12 = vld [vmem:[%s8925_s22 + $0x3c] sm:$0x3]  ;;  %v6768_v14 = vsel %vm9171_vm12, %v8580_v56, %v6767_v29  ;;  %6673 = vrot.lane.b32.xlu0 %v6506_v50, %s8872_s25 }
 0x25a   : > { %v6904_v27 = vshrl.u32 %v8594_v26, 16  ;;  %v6907_v13 = vshll.u32 %v8594_v26, 16  ;;  %5414 = vst.msk [vmem:[#allocation3 + $0x8] sm:$0xf] %vm1113_vm10, %v5381_v24  ;;  %v5167_v21 = vor.u32 %v5166_v63, %v5163_v35  ;;  %v5172_v6 = vrot.slane %v5170_v11, 5  ;;  %v5671_v1 = vpop.permute.xlu1 %5670 }
 0x25b   : > { %v5175_v25 = vrot.slane %v5173_v54, 6  ;;  %v8595_v17 = vld [vmem:[%s8925_s22 + $0x2c] sm:$0x7]  ;;  %v4943_v44 = vsel %vm9012_vm6, %v8326_v58, %v4942_v52  ;;  %v4939_v59 = vsel %vm9012_vm6, %v8325_v43, %v4938_v51  ;;  %v11348_v45 = vld [vmem:[%s8925_s22 + $0x30] sm:$0xc]  ;;  %v6886_v9 = vshrl.u32 %v8592_v47, 16  ;;  %6815 = vrot.lane.b32.xlu1 %v6772_v31, %s8873_s26 }
 0x25c   : > { %v11351_v41 = vld [vmem:[%s8925_s22 + $0x34] sm:$0x3]  ;;  %v6889_v3 = vshll.u32 %v8592_v47, 16  ;;  %v8349_v38 = vld [vmem:[%s8925_s22 + $0x70] sm:$0xe]  ;;  %v5186_v46 = vrot.slane %v5185_v60, 4  ;;  %v5194_v36 = vor.u32 %v5193_v37, %v5190_v0  ;;  %v5669_v63 = vpop.permute.xlu0 %5668 }
 0x25d   : > { %5701 = vst.msk [vmem:[#allocation3 + $0x4] sm:$0xf] %vm1405_vm11, %v5667_v57  ;;  %v8583_v34 = vrot.slane %v11333_v8, 10  ;;  %v6779_v16 = vrot.slane %v11336_v12, 6  ;;  %v8593_v62 = vld [vmem:[%s8925_s22 + $0x24] sm:$0x7]  ;;  %v5176_v22 = vor.u32 %v5175_v25, %v5172_v6  ;;  %6813 = vrot.lane.b32.xlu0 %v6768_v14, %s8873_s26 }
 0x25e   : > { %v6906_v2 = vrot.slane %v6904_v27, 6  ;;  %v6909_v18 = vrot.slane %v6907_v13, 7  ;;  %v6913_v23 = vshrl.u32 %v8595_v17, 16  ;;  %v6916_v7 = vshll.u32 %v8595_v17, 16  ;;  %v8347_v5 = vld [vmem:[%s8925_s22 + $0x68] sm:$0xe]  ;;  %v5811_v0 = vpop.permute.xlu1 %5810 }
 0x25f   : > { %5700 = vst.msk [vmem:[#allocation3] sm:$0xf] %vm1405_vm11, %v5665_v4  ;;  %v5168_v19 = vrot.slane %v5167_v21, 4  ;;  %v5215_v32 = vshrl.u32 %v8349_v38, 16  ;;  %v5218_v55 = vshll.u32 %v8349_v38, 16  ;;  %v6888_v42 = vrot.slane %v6886_v9, 6  ;;  %4966 = vrot.lane.b32.xlu1 %v4943_v44, %s8871_s24 }
 0x260   : > { %v6891_v10 = vrot.slane %v6889_v3, 7  ;;  %v6895_v39 = vshrl.u32 %v8593_v62, 16  ;;  %v6898_v53 = vshll.u32 %v8593_v62, 16  ;;  %v8350_v48 = vld [vmem:[%s8925_s22 + $0x74] sm:$0x3]  ;;  %v8582_v30 = vrot.slane %v11348_v45, 10  ;;  %v5809_v21 = vpop.permute.xlu0 %5808 }
 0x261   : > { %5703 = vst.msk [vmem:[#allocation3 + $0xc] sm:$0xf] %vm1405_vm11, %v5671_v1  ;;  %v6775_v56 = vrot.slane %v11351_v41, 6  ;;  %v5197_v29 = vshrl.u32 %v8347_v5, 16  ;;  %v5200_v35 = vshll.u32 %v8347_v5, 16  ;;  %v5195_v11 = vsel %vm9084_vm9, %v5186_v46, %v5194_v36  ;;  %4964 = vrot.lane.b32.xlu0 %v4939_v59, %s8871_s24 }
 0x262   : > { %v6910_v54 = vor.u32 %v6909_v18, %v6906_v2  ;;  %v6915_v26 = vrot.slane %v6913_v23, 6  ;;  %v6918_v49 = vrot.slane %v6916_v7, 7  ;;  %v8348_v58 = vld [vmem:[%s8925_s22 + $0x6c] sm:$0x3]  ;;  %5702 = vst.msk [vmem:[#allocation3 + $0x8] sm:$0xf] %vm1405_vm11, %v5669_v63  ;;  %v5177_v37 = vsel %vm9084_vm9, %v5168_v19, %v5176_v22  ;;  %v4246_v3 = vpop.permute.xlu1 %4245 }
 0x263   : > { %v5217_v52 = vrot.slane %v5215_v32, 5  ;;  %v5220_v43 = vrot.slane %v5218_v55, 6  ;;  %v5224_v51 = vshrl.u32 %v8350_v48, 16  ;;  %v5227_v50 = vshll.u32 %v8350_v48, 16  ;;  %v8598_v60 = vld [vmem:[%s8925_s22 + $0x38] sm:$0xc]  ;;  %5250 = vrot.lane.b32.xlu1 %v5195_v11, %s8872_s25 }
 0x264   : > { %v6892_v47 = vor.u32 %v6891_v10, %v6888_v42  ;;  %v6897_v24 = vrot.slane %v6895_v39, 6  ;;  %v6900_v31 = vrot.slane %v6898_v53, 7  ;;  %5845 = vst.msk [vmem:[#allocation3 + $0x4] sm:$0xf] %vm1553_vm14, %v5811_v0  ;;  %v5199_v8 = vrot.slane %v5197_v29, 5  ;;  %v4244_v5 = vpop.permute.xlu0 %4243 }
 0x265   : > { %v5202_v12 = vrot.slane %v5200_v35, 6  ;;  %v5206_v27 = vshrl.u32 %v8348_v58, 16  ;;  %v5209_v13 = vshll.u32 %v8348_v58, 16  ;;  %v8596_v14 = vld [vmem:[%s8925_s22 + $0x30] sm:$0xc]  ;;  %v6911_v6 = vrot.slane %v6910_v54, 4  ;;  %5248 = vrot.lane.b32.xlu0 %v5177_v37, %s8872_s25 }
 0x266   : > { %v6919_v25 = vor.u32 %v6918_v49, %v6915_v26  ;;  %v6940_v17 = vshrl.u32 %v8598_v60, 16  ;;  %v6943_v57 = vshll.u32 %v8598_v60, 16  ;;  %5844 = vst.msk [vmem:[#allocation3] sm:$0xf] %vm1553_vm14, %v5809_v21  ;;  %v6780_v44 = vsel %vm9171_vm12, %v8583_v34, %v6779_v16  ;;  %v8461_v9 = vld [vmem:[%s8925_s22 + $0x28] sm:$0xf] }
 0x267   : > { %v5221_v59 = vor.u32 %v5220_v43, %v5217_v52  ;;  %v5226_v45 = vrot.slane %v5224_v51, 5  ;;  %v5229_v41 = vrot.slane %v5227_v50, 6  ;;  %v6776_v38 = vsel %vm9171_vm12, %v8582_v30, %v6775_v56  ;;  %v8599_v36 = vld [vmem:[%s8925_s22 + $0x3c] sm:$0x7]  ;;  %4272 = vst.msk [vmem:[#allocation3 + $0x24] sm:$0xf] %vm1405_vm11, %v4246_v3  ;;  %6819 = vrot.lane.b32.xlu1 %v6780_v44, %s8873_s26  ;;  %v5815_v56 = vpop.permute.xlu1 %5814 }
 0x268   : > { %v6901_v46 = vor.u32 %v6900_v31, %v6897_v24  ;;  %v6922_v62 = vshrl.u32 %v8596_v14, 16  ;;  %v6925_v4 = vshll.u32 %v8596_v14, 16  ;;  %v6893_v34 = vrot.slane %v6892_v47, 4  ;;  %v8597_v23 = vld [vmem:[%s8925_s22 + $0x34] sm:$0x7]  ;;  %v5813_v51 = vpop.permute.xlu0 %5812 }
 0x269   : > { %v5203_v16 = vor.u32 %v5202_v12, %v5199_v8  ;;  %v5208_v2 = vrot.slane %v5206_v27, 5  ;;  %v5211_v18 = vrot.slane %v5209_v13, 6  ;;  %v8460_v7 = vld [vmem:[%s8925_s22 + $0x20] sm:$0xf]  ;;  %v6920_v19 = vsel %vm9253_vm0, %v6911_v6, %v6919_v25  ;;  %v11396_v32 = vld [vmem:[%s8925_s22 + $0x64] sm:$0x3]  ;;  %6817 = vrot.lane.b32.xlu0 %v6776_v38, %s8873_s26 }
 0x26a   : > { %v11393_v22 = vld [vmem:[%s8925_s22 + $0x60] sm:$0xc]  ;;  %v6942_v55 = vrot.slane %v6940_v17, 6  ;;  %v6945_v1 = vrot.slane %v6943_v57, 7  ;;  %4271 = vst.msk [vmem:[#allocation3 + $0x20] sm:$0xf] %vm1405_vm11, %v4244_v5  ;;  %v5230_v10 = vor.u32 %v5229_v41, %v5226_v45  ;;  %v6902_v54 = vsel %vm9253_vm0, %v6893_v34, %v6901_v46 }
 0x26b   : > { %v5222_v42 = vrot.slane %v5221_v59, 4  ;;  %v11400_v39 = vld [vmem:[%s8925_s22 + $0x58] sm:$0xc]  ;;  %v6949_v53 = vshrl.u32 %v8599_v36, 16  ;;  %v6952_v48 = vshll.u32 %v8599_v36, 16  ;;  %v6924_v29 = vrot.slane %v6922_v62, 6  ;;  %7103 = vrot.lane.b32.xlu1 %v6920_v19, %s8874_s27  ;;  %v4250_v13 = vpop.permute.xlu1 %4249 }
 0x26c   : > { %v5861_v30 = vld [vmem:[#allocation3 + $0x4] sm:$0xf]  ;;  %v6927_v35 = vrot.slane %v6925_v4, 7  ;;  %v6931_v63 = vshrl.u32 %v8597_v23, 16  ;;  %v6934_v11 = vshll.u32 %v8597_v23, 16  ;;  %v5204_v26 = vrot.slane %v5203_v16, 4 }
 0x26d   : > { %6034 = vst.msk [vmem:[#allocation3 + $0x4] sm:$0xf] %vm281_vm13, %v8461_v9  ;;  %v5212_v49 = vor.u32 %v5211_v18, %v5208_v2  ;;  %v8384_v58 = vrot.slane %v11393_v22, 10  ;;  %v8368_v52 = vld [vmem:[%s8925_s22 + $0x5c] sm:$0x3]  ;;  %v5366_v50 = vrot.slane %v11396_v32, 6  ;;  %v6946_v0 = vor.u32 %v6945_v1, %v6942_v55  ;;  %7101 = vrot.lane.b32.xlu0 %v6902_v54, %s8874_s27  ;;  %v4248_v9 = vpop.permute.xlu0 %4247 }
 0x26e   : > { %5847 = vst.msk [vmem:[#allocation3 + $0xc] sm:$0xf] %vm1553_vm14, %v5815_v56  ;;  %v5860_v43 = vld [vmem:[#allocation3] sm:$0xf]  ;;  %v8383_v60 = vrot.slane %v11400_v39, 10  ;;  %v5231_v24 = vsel %vm9084_vm9, %v5222_v42, %v5230_v10  ;;  %v6951_v31 = vrot.slane %v6949_v53, 6  ;;  %v6928_v21 = vor.u32 %v6927_v35, %v6924_v29 }
 0x26f   : > { %v8405_v37 = vld [vmem:[%s8925_s22 + $0x60] sm:$0xc]  ;;  %6033 = vst.msk [vmem:[#allocation3] sm:$0xf] %vm281_vm13, %v8460_v7  ;;  %v8448_v47 = vcombine.low %v5860_v43, %v5861_v30  ;;  %v6954_v8 = vrot.slane %v6952_v48, 7  ;;  %v5362_v14 = vrot.slane %v8368_v52, 6  ;;  %v5213_v57 = vsel %vm9084_vm9, %v5204_v26, %v5212_v49  ;;  %5254 = vrot.lane.b32.xlu1 %v5231_v24, %s8872_s25  ;;  %v4390_v19 = vpop.permute.xlu1 %4389 }
 0x270   : > { %5846 = vst.msk [vmem:[#allocation3 + $0x8] sm:$0xf] %vm1553_vm14, %v5813_v51  ;;  %v11418_v12 = vld [vmem:[%s8925_s22 + $0x28] sm:$0x8]  ;;  %v8403_v27 = vld [vmem:[%s8925_s22 + $0x58] sm:$0xc]  ;;  %v5367_v16 = vsel %vm9171_vm12, %v8384_v58, %v5366_v50 }
 0x271   : > { %v11422_v6 = vrot.slane %v6931_v63, 6  ;;  %v11424_v25 = vrot.slane %v6934_v11, 7  ;;  %v8463_v17 = vld [vmem:[%s8925_s22 + $0x38] sm:$0xf]  ;;  %8773 = vmatprep.mubr.msk.bf16.mxu1 %vm2906_vm2, %v8448_v47  ;;  %4274 = vst.msk [vmem:[#allocation3 + $0x2c] sm:$0xf] %vm1405_vm11, %v4250_v13  ;;  %v6955_v2 = vor.u32 %v6954_v8, %v6951_v31  ;;  %5252 = vrot.lane.b32.xlu0 %v5213_v57, %s8872_s25  ;;  %v5363_v22 = vsel %vm9171_vm12, %v8383_v60, %v5362_v14  ;;  %v4388_v29 = vpop.permute.xlu0 %4387 }
 0x272   : > { %v11432_v44 = vld [vmem:[%s8925_s22 + $0x2c] sm:$0x7]  ;;  %v5611_v59 = vshrl.u32 %v8405_v37, 16  ;;  %v5614_v45 = vshll.u32 %v8405_v37, 16  ;;  %v8462_v41 = vld [vmem:[%s8925_s22 + $0x30] sm:$0xf] }
 0x273   : > { %v6947_v3 = vrot.slane %v6946_v0, 4  ;;  %v8641_v38 = vrot.slane %v11418_v12, 11  ;;  %v11438_v46 = vld [vmem:[%s8925_s22 + $0x20] sm:$0x8]  ;;  %v11441_v36 = vld [vmem:[%s8925_s22 + $0x24] sm:$0x7]  ;;  %v6937_v55 = vor.u32 %v11424_v25, %v11422_v6  ;;  %5394 = vrot.lane.b32.xlu1 %v5367_v16, %s8873_s26  ;;  %v4394_v51 = vpop.permute.xlu1 %4393 }
 0x274   : > { %v8406_v62 = vld [vmem:[%s8925_s22 + $0x64] sm:$0x7]  ;;  %v5593_v4 = vshrl.u32 %v8403_v27, 16  ;;  %v5596_v34 = vshll.u32 %v8403_v27, 16  ;;  %4273 = vst.msk [vmem:[#allocation3 + $0x28] sm:$0xf] %vm1405_vm11, %v4248_v9 }
 0x275   : > { %v11448_v18 = vld [vmem:[%s8925_s22 + $0x70] sm:$0xc]  ;;  %v11451_v23 = vld [vmem:[%s8925_s22 + $0x74] sm:$0x3]  ;;  %v8404_v7 = vld [vmem:[%s8925_s22 + $0x5c] sm:$0x7]  ;;  %v6956_v49 = vsel %vm9253_vm0, %v6947_v3, %v6955_v2  ;;  %5392 = vrot.lane.b32.xlu0 %v5363_v22, %s8873_s26  ;;  %v4392_v14 = vpop.permute.xlu0 %4391 }
 0x276   : > { %v5863_v5 = vld [vmem:[#allocation3 + $0xc] sm:$0xf]  ;;  %v6929_v32 = vrot.slane %v6928_v21, 4  ;;  %v7203_v1 = vrot.slane %v11432_v44, 7  ;;  %v8371_v42 = vld [vmem:[%s8925_s22 + $0x68] sm:$0xc]  ;;  %v11506_v12 = vpop.f32.mrf.mxu1 }
 0x277   : > { %6036 = vst.msk [vmem:[#allocation3 + $0xc] sm:$0xf] %vm281_vm13, %v8463_v17  ;;  %v8372_v10 = vld [vmem:[%s8925_s22 + $0x6c] sm:$0x3]  ;;  %v5613_v39 = vrot.slane %v5611_v59, 6  ;;  %v5616_v53 = vrot.slane %v5614_v45, 7  ;;  %7107 = vrot.lane.b32.xlu1 %v6956_v49, %s8874_s27  ;;  %v4811_v9 = vpop.permute.xlu1 %4810 }
 0x278   : > { %4416 = vst.msk [vmem:[#allocation3 + $0x24] sm:$0xf] %vm1553_vm14, %v4390_v19  ;;  %v5620_v48 = vshrl.u32 %v8406_v62, 16  ;;  %v5623_v30 = vshll.u32 %v8406_v62, 16  ;;  %v5862_v56 = vld [vmem:[#allocation3 + $0x8] sm:$0xf]  ;;  %v6938_v47 = vsel %vm9253_vm0, %v6929_v32, %v6937_v55  ;;  %v7204_v44 = vsel %vm9357_vm5, %v8641_v38, %v7203_v1 }
 0x279   : > { %v5595_v35 = vrot.slane %v5593_v4, 6  ;;  %v5598_v63 = vrot.slane %v5596_v34, 7  ;;  %v5602_v11 = vshrl.u32 %v8404_v7, 16  ;;  %v5605_v54 = vshll.u32 %v8404_v7, 16  ;;  %6035 = vst.msk [vmem:[#allocation3 + $0x8] sm:$0xf] %vm281_vm13, %v8462_v41  ;;  %7105 = vrot.lane.b32.xlu0 %v6938_v47, %s8874_s27 }
 0x27a   : > { %4415 = vst.msk [vmem:[#allocation3 + $0x20] sm:$0xf] %vm1553_vm14, %v4388_v29  ;;  %v8449_v26 = vcombine.low %v5862_v56, %v5863_v5  ;;  %v8640_v58 = vrot.slane %v11438_v46, 11  ;;  %v7199_v52 = vrot.slane %v11441_v36, 7  ;;  %v8409_v43 = vld [vmem:[%s8925_s22 + $0x70] sm:$0xc]  ;;  %v5617_v24 = vor.u32 %v5616_v53, %v5613_v39  ;;  %v4809_v5 = vpop.permute.xlu0 %4808 }
 0x27b   : > { %v8386_v50 = vrot.slane %v11448_v18, 10  ;;  %v5374_v60 = vrot.slane %v11451_v23, 6  ;;  %v8385_v0 = vrot.slane %v8371_v42, 10  ;;  %v5370_v37 = vrot.slane %v8372_v10, 6  ;;  %4418 = vst.msk [vmem:[#allocation3 + $0x2c] sm:$0xf] %vm1553_vm14, %v4394_v51  ;;  %7247 = vrot.lane.b32.xlu1 %v7204_v44, %s8875_s28  ;;  %v11528_v10 = vpop.f32.mrf.mxu1  ;;  %v4815_v29 = vpop.permute.xlu1 %4814 }
 0x27c   : > { %8774 = vmatmul.mubr.msk.bf16.vlgmr.msra.gmra.mxu1 %vm2906_vm2, %v8449_v26  ;;  %v11479_v31 = vrot.slane %v5620_v48, 6  ;;  %v11481_v8 = vrot.slane %v5623_v30, 7  ;;  %v8407_v27 = vld [vmem:[%s8925_s22 + $0x68] sm:$0xc]  ;;  %v8264_v13 = vld [vmem:[%s8925_s22 + $0x60] sm:$0xf]  ;;  %v5599_v21 = vor.u32 %v5598_v63, %v5595_v35  ;;  %v7200_v38 = vsel %vm9357_vm5, %v8640_v58, %v7199_v52 }
 0x27d   : > { %v11486_v6 = vrot.slane %v5602_v11, 6  ;;  %v11488_v25 = vrot.slane %v5605_v54, 7  ;;  %v5647_v17 = vshrl.u32 %v8409_v43, 16  ;;  %v8263_v57 = vld [vmem:[%s8925_s22 + $0x58] sm:$0xf]  ;;  %v5650_v59 = vshll.u32 %v8409_v43, 16  ;;  %7245 = vrot.lane.b32.xlu0 %v7200_v38, %s8875_s28  ;;  %v11532_v26 = vpop.f32.mrf.mxu1 }
 0x27e   : > { %4417 = vst.msk [vmem:[#allocation3 + $0x28] sm:$0xf] %vm1553_vm14, %v4392_v14  ;;  %v8266_v41 = vld [vmem:[%s8925_s22 + $0x70] sm:$0xf]  ;;  %v11499_v3 = vld [vmem:[%s8925_s22 + $0x38] sm:$0x8]  ;;  %v5375_v34 = vsel %vm9171_vm12, %v8386_v50, %v5374_v60  ;;  %v5371_v16 = vsel %vm9171_vm12, %v8385_v0, %v5370_v37  ;;  %v5626_v19 = vor.u32 %v11481_v8, %v11479_v31  ;;  %v4813_v50 = vpop.permute.xlu0 %4812 }
 0x27f   : > { %v4432_v45 = vld [vmem:[#allocation3 + $0x24] sm:$0xf]  ;;  %v11502_v46 = vld [vmem:[%s8925_s22 + $0x3c] sm:$0x7]  ;;  %v8410_v36 = vld [vmem:[%s8925_s22 + $0x74] sm:$0x7]  ;;  %v5608_v32 = vor.u32 %v11488_v25, %v11486_v6  ;;  %5398 = vrot.lane.b32.xlu1 %v5375_v34, %s8873_s26  ;;  %v11546_v47 = vpop.f32.mrf.mxu1 }
 0x280   : > { %v5629_v62 = vshrl.u32 %v8407_v27, 16  ;;  %v5632_v4 = vshll.u32 %v8407_v27, 16  ;;  %4605 = vst.msk [vmem:[#allocation3 + $0x24] sm:$0xf] %vm281_vm13, %v8264_v13  ;;  %v5618_v2 = vrot.slane %v5617_v24, 4  ;;  %v5600_v22 = vrot.slane %v5599_v21, 4  ;;  %v4955_v13 = vpop.permute.xlu1 %4954 }
 0x281   : > { %4841 = vst.msk [vmem:[#allocation3 + $0x14] sm:$0xf] %vm525_vm1, %v4811_v9  ;;  %v11516_v18 = vld [vmem:[%s8925_s22 + $0x30] sm:$0x8]  ;;  %v8408_v23 = vld [vmem:[%s8925_s22 + $0x6c] sm:$0x7]  ;;  %5396 = vrot.lane.b32.xlu0 %v5371_v16, %s8873_s26  ;;  %v11557_v44 = vpop.f32.mrf.mxu1 }
 0x282   : > { %v4431_v7 = vld [vmem:[#allocation3 + $0x20] sm:$0xf]  ;;  %v8621_v55 = vld [vmem:[%s8925_s22 + $0x34] sm:$0x7]  ;;  %v5649_v1 = vrot.slane %v5647_v17, 6  ;;  %v5652_v53 = vrot.slane %v5650_v59, 7  ;;  %v5627_v60 = vsel %vm9253_vm0, %v5618_v2, %v5626_v19  ;;  %v5609_v14 = vsel %vm9253_vm0, %v5600_v22, %v5608_v32 }
 0x283   : > { %4604 = vst.msk [vmem:[#allocation3 + $0x20] sm:$0xf] %vm281_vm13, %v8263_v57  ;;  %v8265_v42 = vld [vmem:[%s8925_s22 + $0x68] sm:$0xf]  ;;  %v8247_v39 = vcombine.low %v4431_v7, %v4432_v45  ;;  %v5656_v48 = vshrl.u32 %v8410_v36, 16  ;;  %v5659_v30 = vshll.u32 %v8410_v36, 16  ;;  %5682 = vrot.lane.b32.xlu1 %v5627_v60, %s8874_s27  ;;  %v11569_v38 = vpop.f32.mrf.mxu1 }
 0x284   : > { %4840 = vst.msk [vmem:[#allocation3 + $0x10] sm:$0xf] %vm525_vm1, %v4809_v5  ;;  %v4434_v56 = vld [vmem:[#allocation3 + $0x2c] sm:$0xf]  ;;  %v5631_v35 = vrot.slane %v5629_v62, 6  ;;  %v5634_v63 = vrot.slane %v5632_v4, 7  ;;  %v5653_v31 = vor.u32 %v5652_v53, %v5649_v1  ;;  %v4959_v7 = vpop.permute.xlu1 %4958 }
 0x285   : > { %v5638_v11 = vshrl.u32 %v8408_v23, 16  ;;  %v5641_v54 = vshll.u32 %v8408_v23, 16  ;;  %4607 = vst.msk [vmem:[#allocation3 + $0x2c] sm:$0xf] %vm281_vm13, %v8266_v41  ;;  %8767 = vmatprep.mubr.msk.bf16.mxu0 %vm2906_vm2, %v8247_v39  ;;  %v8643_v49 = vrot.slane %v11499_v3, 11  ;;  %v7211_v58 = vrot.slane %v11502_v46, 7  ;;  %v4953_v46 = vpop.permute.xlu0 %4952  ;;  %5680 = vrot.lane.b32.xlu0 %v5609_v14, %s8874_s27  ;;  %v11576_v1 = vpop.f32.mrf.mxu1 }
 0x286   : > { %4843 = vst.msk [vmem:[#allocation3 + $0x1c] sm:$0xf] %vm525_vm1, %v4815_v29  ;;  %v8642_v52 = vrot.slane %v11516_v18, 11  ;;  %v7207_v43 = vrot.slane %v8621_v55, 7  ;;  %v4433_v51 = vld [vmem:[#allocation3 + $0x28] sm:$0xf]  ;;  %v5635_v21 = vor.u32 %v5634_v63, %v5631_v35 }
 0x287   : > { %v8482_v0 = vld [vmem:[%s8925_s22 + $0x48] sm:$0xf]  ;;  %v8480_v37 = vld [vmem:[%s8925_s22 + $0x40] sm:$0xf]  ;;  %4606 = vst.msk [vmem:[#allocation3 + $0x28] sm:$0xf] %vm281_vm13, %v8265_v42  ;;  %v8248_v24 = vcombine.low %v4433_v51, %v4434_v56  ;;  %v7212_v36 = vsel %vm9357_vm5, %v8643_v49, %v7211_v58 }
 0x288   : > { %4842 = vst.msk [vmem:[#allocation3 + $0x18] sm:$0xf] %vm525_vm1, %v4813_v50  ;;  %v5658_v8 = vrot.slane %v5656_v48, 6  ;;  %v5661_v27 = vrot.slane %v5659_v30, 7  ;;  %v5640_v6 = vrot.slane %v5638_v11, 6  ;;  %v5643_v25 = vrot.slane %v5641_v54, 7  ;;  %7251 = vrot.lane.b32.xlu1 %v7212_v36, %s8875_s28  ;;  %v11586_v54 = vpop.f32.mrf.mxu1  ;;  %v5243_v50 = vpop.permute.xlu1 %5242 }
 0x289   : > { %v11552_v17 = vld [vmem:[%s8925_s22 + $0x60] sm:$0x8]  ;;  %v11555_v57 = vld [vmem:[%s8925_s22 + $0x64] sm:$0x7]  ;;  %8768 = vmatmul.mubr.msk.bf16.gmra.mxu0 %vm2906_vm2, %v8248_v24  ;;  %4985 = vst.msk [vmem:[#allocation3 + $0x14] sm:$0xf] %vm673_vm7, %v4955_v13  ;;  %v7208_v62 = vsel %vm9357_vm5, %v8642_v52, %v7207_v43  ;;  %v4957_v56 = vpop.permute.xlu0 %4956 }
 0x28a   : > { %v6140_v59 = vshrl.u32 %v8482_v0, 16  ;;  %v6143_v45 = vshll.u32 %v8482_v0, 16  ;;  %v6126_v41 = vshrl.u32 %v8480_v37, 16  ;;  %v6129_v9 = vshll.u32 %v8480_v37, 16  ;;  %v8486_v3 = vld [vmem:[%s8925_s22 + $0x58] sm:$0xf]  ;;  %7249 = vrot.lane.b32.xlu0 %v7208_v62, %s8875_s28 }
 0x28b   : > { %v8427_v4 = vld [vmem:[%s8925_s22 + $0x58] sm:$0x8]  ;;  %4984 = vst.msk [vmem:[#allocation3 + $0x10] sm:$0xf] %vm673_vm7, %v4953_v46  ;;  %v5654_v34 = vrot.slane %v5653_v31, 4  ;;  %v5662_v16 = vor.u32 %v5661_v27, %v5658_v8  ;;  %v8444_v2 = vrot.slane %v11552_v17, 11  ;;  %v5644_v19 = vor.u32 %v5643_v25, %v5640_v6  ;;  %v11596_v31 = vpop.f32.mrf.mxu1 }
 0x28c   : > { %v5798_v18 = vrot.slane %v11555_v57, 7  ;;  %v8428_v23 = vld [vmem:[%s8925_s22 + $0x5c] sm:$0x7]  ;;  %v5636_v5 = vrot.slane %v5635_v21, 4  ;;  %v6168_v22 = vshrl.u32 %v8486_v3, 16  ;;  %v6171_v32 = vshll.u32 %v8486_v3, 16 }
 0x28d   : > { %v8484_v55 = vld [vmem:[%s8925_s22 + $0x50] sm:$0xf]  ;;  %4987 = vst.msk [vmem:[#allocation3 + $0x1c] sm:$0xf] %vm673_vm7, %v4959_v7  ;;  %v6142_v39 = vrot.slane %v6140_v59, 4  ;;  %v6145_v53 = vrot.slane %v6143_v45, 5  ;;  %v5663_v49 = vsel %vm9253_vm0, %v5654_v34, %v5662_v16  ;;  %v5241_v25 = vpop.permute.xlu0 %5240  ;;  %v11604_v45 = vpop.f32.mrf.mxu1 }
 0x28e   : > { %v11580_v42 = vld [vmem:[%s8925_s22 + $0x70] sm:$0x8]  ;;  %v6128_v48 = vrot.slane %v6126_v41, 4  ;;  %v6131_v30 = vrot.slane %v6129_v9, 5  ;;  %v8443_v29 = vrot.slane %v8427_v4, 11  ;;  %v5794_v35 = vrot.slane %v8428_v23, 7  ;;  %5686 = vrot.lane.b32.xlu1 %v5663_v49, %s8874_s27  ;;  %v5247_v4 = vpop.permute.xlu1 %5246 }
 0x28f   : > { %v8483_v63 = vld [vmem:[%s8925_s22 + $0x4c] sm:$0x1]  ;;  %v8481_v11 = vld [vmem:[%s8925_s22 + $0x44] sm:$0x1]  ;;  %4986 = vst.msk [vmem:[#allocation3 + $0x18] sm:$0xf] %vm673_vm7, %v4957_v56  ;;  %v5645_v60 = vsel %vm9253_vm0, %v5636_v5, %v5644_v19  ;;  %v6146_v27 = vor.u32 %v6145_v53, %v6142_v39  ;;  %v5799_v41 = vsel %vm9357_vm5, %v8444_v2, %v5798_v18  ;;  %v11613_v5 = vpop.f32.mrf.mxu1 }
 0x290   : > { %v8434_v58 = vld [vmem:[%s8925_s22 + $0x74] sm:$0x7]  ;;  %v8487_v52 = vld [vmem:[%s8925_s22 + $0x5c] sm:$0x1]  ;;  %v6154_v43 = vshrl.u32 %v8484_v55, 16  ;;  %v6157_v51 = vshll.u32 %v8484_v55, 16  ;;  %v6132_v14 = vor.u32 %v6131_v30, %v6128_v48  ;;  %v5795_v9 = vsel %vm9357_vm5, %v8443_v29, %v5794_v35  ;;  %5684 = vrot.lane.b32.xlu0 %v5645_v60, %s8874_s27 }
 0x291   : > { %v8431_v0 = vld [vmem:[%s8925_s22 + $0x68] sm:$0x8]  ;;  %v6170_v37 = vrot.slane %v6168_v22, 4  ;;  %v6173_v24 = vrot.slane %v6171_v32, 5  ;;  %5273 = vst.msk [vmem:[#allocation3 + $0x14] sm:$0xf] %vm965_vm8, %v5243_v50  ;;  %v5245_v32 = vpop.permute.xlu0 %5244  ;;  %v11628_v48 = vpop.f32.mrf.mxu1 }
 0x292   : > { %v8432_v8 = vld [vmem:[%s8925_s22 + $0x6c] sm:$0x7]  ;;  %v6149_v13 = vshll.u32 %v8483_v63, 16  ;;  %v6135_v21 = vshll.u32 %v8481_v11, 16  ;;  %v8485_v6 = vld [vmem:[%s8925_s22 + $0x54] sm:$0x1]  ;;  %5826 = vrot.lane.b32.xlu1 %v5799_v41, %s8875_s28  ;;  %v5387_v63 = vpop.permute.xlu1 %5386 }
 0x293   : > { %v8446_v17 = vrot.slane %v11580_v42, 11  ;;  %v5806_v57 = vrot.slane %v8434_v58, 7  ;;  %v6177_v59 = vshll.u32 %v8487_v52, 16  ;;  %5272 = vst.msk [vmem:[#allocation3 + $0x10] sm:$0xf] %vm965_vm8, %v5241_v25  ;;  %v6156_v3 = vrot.slane %v6154_v43, 4 }
 0x294   : > { %v6159_v46 = vrot.slane %v6157_v51, 5  ;;  %v8506_v36 = vld [vmem:[%s8925_s22 + $0x48] sm:$0xe]  ;;  %v8507_v62 = vld [vmem:[%s8925_s22 + $0x4c] sm:$0x1]  ;;  %v8445_v34 = vrot.slane %v8431_v0, 11  ;;  %v6174_v23 = vor.u32 %v6173_v24, %v6170_v37  ;;  %5824 = vrot.lane.b32.xlu0 %v5795_v9, %s8875_s28  ;;  %v8751_v51 = vpop.f32.mrf.mxu1 }
 0x295   : > { %v5802_v16 = vrot.slane %v8432_v8, 7  ;;  %v6163_v7 = vshll.u32 %v8485_v6, 16  ;;  %5275 = vst.msk [vmem:[#allocation3 + $0x1c] sm:$0xf] %vm965_vm8, %v5247_v4  ;;  %v6147_v2 = vrot.slane %v6146_v27, 4  ;;  %v6151_v18 = vrot.slane %v6149_v13, 5  ;;  %v5385_v13 = vpop.permute.xlu0 %5384 }
 0x296   : > { %v11616_v19 = vrot.slane %v6132_v14, 4  ;;  %v11618_v22 = vrot.slane %v6135_v21, 5  ;;  %v8525_v55 = vrot.slane %v8506_v36, 9  ;;  %v6355_v42 = vrot.slane %v8507_v62, 5  ;;  %v11622_v39 = vld [vmem:[%s8925_s22 + $0x40] sm:$0xe]  ;;  %v5391_v36 = vpop.permute.xlu1 %5390 }
 0x297   : > { %v11625_v53 = vld [vmem:[%s8925_s22 + $0x44] sm:$0x1]  ;;  %5274 = vst.msk [vmem:[#allocation3 + $0x18] sm:$0xf] %vm965_vm8, %v5245_v32  ;;  %v5807_v30 = vsel %vm9357_vm5, %v8446_v17, %v5806_v57  ;;  %v11632_v56 = vrot.slane %v6177_v59, 5  ;;  %v6160_v29 = vor.u32 %v6159_v46, %v6156_v3  ;;  %v5803_v11 = vsel %vm9357_vm5, %v8445_v34, %v5802_v16  ;;  %v3111_v57 = vpop.f32.mrf.mxu1 }
 0x298   : > { %v8542_v35 = vld [vmem:[%s8925_s22 + $0x48] sm:$0xe]  ;;  %v11638_v49 = vrot.slane %v6174_v23, 4  ;;  %v11640_v58 = vrot.slane %v6163_v7, 5  ;;  %v11643_v52 = vld [vmem:[%s8925_s22 + $0x58] sm:$0xe]  ;;  %v6152_v50 = vsel %vm8950_vm3, %v6147_v2, %v6151_v18  ;;  %v6138_v60 = vsel %vm8950_vm3, %v11616_v19, %v11618_v22  ;;  %5830 = vrot.lane.b32.xlu1 %v5807_v30, %s8875_s28  ;;  %5828 = vrot.lane.b32.xlu0 %v5803_v11, %s8875_s28 }
 0x299   : > { %v8540_v43 = vld [vmem:[%s8925_s22 + $0x40] sm:$0xe]  ;;  %5417 = vst.msk [vmem:[#allocation3 + $0x14] sm:$0xf] %vm1113_vm10, %v5387_v63  ;;  %v8524_v0 = vrot.slane %v11622_v39, 9  ;;  %v6351_v37 = vrot.slane %v11625_v53, 5  ;;  %v11662_v27 = vadd.f32 %v8751_v51, %v11506_v12  ;;  %v11667_v14 = vsel %vm9012_vm6, %v8525_v55, %v6355_v42  ;;  %v8752_v23 = vpop.f32.mrf.mxu1  ;;  %v5389_v32 = vpop.permute.xlu0 %5388 }
 0x29a   : > { %v11656_v24 = vld [vmem:[%s8925_s22 + $0x5c] sm:$0x1]  ;;  %v11659_v8 = vld [vmem:[%s8925_s22 + $0x50] sm:$0xe]  ;;  %v8543_v21 = vld [vmem:[%s8925_s22 + $0x4c] sm:$0x3]  ;;  %v11675_v46 = vadd.f32 %v3111_v57, %v11528_v10  ;;  %v6180_v62 = vsel %vm8950_vm3, %v11638_v49, %v11632_v56  ;;  %v11690_v22 = vadd.f32 %v8752_v23, %v11532_v26  ;;  %v5675_v26 = vpop.permute.xlu1 %5674 }
 0x29b   : > { %v6544_v6 = vshrl.u32 %v8542_v35, 16  ;;  %v6547_v25 = vshll.u32 %v8542_v35, 16  ;;  %v8546_v17 = vld [vmem:[%s8925_s22 + $0x58] sm:$0xe]  ;;  %5416 = vst.msk [vmem:[#allocation3 + $0x10] sm:$0xf] %vm1113_vm10, %v5385_v13 }
 0x29c   : > { %v6161_v59 = vrot.slane %v6160_v29, 4  ;;  %v8527_v12 = vrot.slane %v11643_v52, 9  ;;  %v8541_v41 = vld [vmem:[%s8925_s22 + $0x44] sm:$0x3]  ;;  %v6526_v9 = vshrl.u32 %v8540_v43, 16  ;;  %v6529_v3 = vshll.u32 %v8540_v43, 16  ;;  %6247 = vrot.lane.b32.xlu1 %v6152_v50, %s8870_s23  ;;  %v3114_v29 = vpop.f32.mrf.mxu1  ;;  %6245 = vrot.lane.b32.xlu0 %v6138_v60, %s8870_s23 }
 0x29d   : > { %v6363_v4 = vrot.slane %v11656_v24, 5  ;;  %v8526_v34 = vrot.slane %v11659_v8, 9  ;;  %v8544_v16 = vld [vmem:[%s8925_s22 + $0x50] sm:$0xe]  ;;  %5419 = vst.msk [vmem:[#allocation3 + $0x1c] sm:$0xf] %vm1113_vm10, %v5391_v36  ;;  %v11696_v43 = vadd.f32 %v3114_v29, %v11546_v47 }
 0x29e   : > { %v11687_v7 = vld [vmem:[%s8925_s22 + $0x54] sm:$0x1]  ;;  %v6553_v10 = vshrl.u32 %v8543_v21, 16  ;;  %v6556_v2 = vshll.u32 %v8543_v21, 16  ;;  %v6580_v18 = vshrl.u32 %v8546_v17, 16  ;;  %v6583_v19 = vshll.u32 %v8546_v17, 16 }
 0x29f   : > { %v6546_v55 = vrot.slane %v6544_v6, 5  ;;  %v6549_v42 = vrot.slane %v6547_v25, 6  ;;  %v6535_v30 = vshrl.u32 %v8541_v41, 16  ;;  %v8547_v56 = vld [vmem:[%s8925_s22 + $0x5c] sm:$0x3]  ;;  %v6528_v35 = vrot.slane %v6526_v9, 5  ;;  %v8755_v6 = vpop.f32.mrf.mxu1 }
 0x2a0   : > { %5418 = vst.msk [vmem:[#allocation3 + $0x18] sm:$0xf] %vm1113_vm10, %v5389_v32  ;;  %v6531_v63 = vrot.slane %v6529_v3, 6  ;;  %v6538_v11 = vshll.u32 %v8541_v41, 16  ;;  %v6562_v49 = vshrl.u32 %v8544_v16, 16  ;;  %v6166_v51 = vsel %vm8950_vm3, %v6161_v59, %v11640_v58  ;;  %v5673_v59 = vpop.permute.xlu0 %5672  ;;  %6251 = vrot.lane.b32.xlu1 %v6180_v62, %s8870_s23 }
 0x2a1   : > { %v6359_v50 = vrot.slane %v11687_v7, 5  ;;  %v6565_v13 = vshll.u32 %v8544_v16, 16  ;;  %v11706_v21 = vld [vmem:[%s12248_s1 + $0x10] sm:$0xf]  ;;  %5705 = vst.msk [vmem:[#allocation3 + $0x14] sm:$0xf] %vm1405_vm11, %v5675_v26  ;;  %v11713_v58 = vadd.f32 %v8755_v6, %v11557_v44  ;;  %v6550_v41 = vor.u32 %v6549_v42, %v6546_v55  ;;  %v3127_v36 = vpop.f32.mrf.mxu1  ;;  %6249 = vrot.lane.b32.xlu0 %v6166_v51, %s8870_s23  ;;  %v5679_v44 = vpop.permute.xlu1 %5678 }
 0x2a2   : > { %v6582_v47 = vrot.slane %v6580_v18, 5  ;;  %v6585_v25 = vrot.slane %v6583_v19, 6  ;;  %v6589_v17 = vshrl.u32 %v8547_v56, 16  ;;  %v6592_v60 = vshll.u32 %v8547_v56, 16  ;;  %v8545_v57 = vld [vmem:[%s8925_s22 + $0x54] sm:$0x3]  ;;  %8806 = vmatprep.subr.msk.bf16.mxu0 %vm2925_vm15, %v11706_v21 }
 0x2a3   : > { %v6555_v9 = vrot.slane %v6553_v10, 5  ;;  %v6558_v3 = vrot.slane %v6556_v2, 6  ;;  %5704 = vst.msk [vmem:[#allocation3 + $0x10] sm:$0xf] %vm1405_vm11, %v5673_v59  ;;  %v6532_v16 = vor.u32 %v6531_v63, %v6528_v35  ;;  %v6537_v23 = vrot.slane %v6535_v30, 5  ;;  %v8756_v10 = vpop.f32.mrf.mxu1 }
 0x2a4   : > { %v6540_v7 = vrot.slane %v6538_v11, 6  ;;  %v6564_v18 = vrot.slane %v6562_v49, 5  ;;  %v11718_v19 = vadd.f32 %v3127_v36, %v11569_v38  ;;  %v6567_v32 = vrot.slane %v6565_v13, 6  ;;  %5707 = vst.msk [vmem:[#allocation3 + $0x1c] sm:$0xf] %vm1405_vm11, %v5679_v44  ;;  %v5677_v29 = vpop.permute.xlu0 %5676  ;;  %6391 = vrot.lane.b32.xlu1 %v11667_v14, %s8871_s24 }
 0x2a5   : > { %v6571_v62 = vshrl.u32 %v8545_v57, 16  ;;  %v6574_v55 = vshll.u32 %v8545_v57, 16  ;;  %v6352_v38 = vsel %vm9012_vm6, %v8524_v0, %v6351_v37  ;;  %v6586_v2 = vor.u32 %v6585_v25, %v6582_v47  ;;  %v8566_v53 = vld [vmem:[%s8925_s22 + $0x48] sm:$0xc]  ;;  %v8567_v0 = vld [vmem:[%s8925_s22 + $0x4c] sm:$0x3]  ;;  %v5819_v52 = vpop.permute.xlu1 %5818 }
 0x2a6   : > { %v6591_v42 = vrot.slane %v6589_v17, 5  ;;  %v6594_v30 = vrot.slane %v6592_v60, 6  ;;  %v11729_v56 = vadd.f32 %v8756_v10, %v11576_v1  ;;  %v6364_v39 = vsel %vm9012_vm6, %v8527_v12, %v6363_v4  ;;  %5706 = vst.msk [vmem:[#allocation3 + $0x18] sm:$0xf] %vm1405_vm11, %v5677_v29  ;;  %v8602_v35 = vld [vmem:[%s8925_s22 + $0x48] sm:$0xc]  ;;  %6389 = vrot.lane.b32.xlu0 %v6352_v38, %s8871_s24 }
 0x2a7   : > { %v6360_v1 = vsel %vm9012_vm6, %v8526_v34, %v6359_v50  ;;  %v6551_v37 = vrot.slane %v6550_v41, 4  ;;  %v6559_v14 = vor.u32 %v6558_v3, %v6555_v9  ;;  %v6533_v24 = vrot.slane %v6532_v16, 4  ;;  %v8564_v49 = vld [vmem:[%s8925_s22 + $0x40] sm:$0xc]  ;;  %v8565_v26 = vld [vmem:[%s8925_s22 + $0x44] sm:$0x3] }
 0x2a8   : > { %v6541_v63 = vor.u32 %v6540_v7, %v6537_v23  ;;  %v6568_v12 = vor.u32 %v6567_v32, %v6564_v18  ;;  %v6573_v4 = vrot.slane %v6571_v62, 5  ;;  %v6576_v11 = vrot.slane %v6574_v55, 6  ;;  %5849 = vst.msk [vmem:[#allocation3 + $0x14] sm:$0xf] %vm1553_vm14, %v5819_v52  ;;  %v11752_v13 = vld [vmem:[%s8925_s22 + $0x58] sm:$0xc]  ;;  %v5817_v6 = vpop.permute.xlu0 %5816  ;;  %6395 = vrot.lane.b32.xlu1 %v6364_v39, %s8871_s24 }
 0x2a9   : > { %v6587_v8 = vrot.slane %v6586_v2, 4  ;;  %v6595_v34 = vor.u32 %v6594_v30, %v6591_v42  ;;  %v8585_v51 = vrot.slane %v8566_v53, 10  ;;  %v6787_v50 = vrot.slane %v8567_v0, 6  ;;  %v8600_v17 = vld [vmem:[%s8925_s22 + $0x40] sm:$0xc]  ;;  %v5823_v36 = vpop.permute.xlu1 %5822 }
 0x2aa   : > { %v6976_v47 = vshrl.u32 %v8602_v35, 16  ;;  %v6979_v25 = vshll.u32 %v8602_v35, 16  ;;  %5848 = vst.msk [vmem:[#allocation3 + $0x10] sm:$0xf] %vm1553_vm14, %v5817_v6  ;;  %v6560_v60 = vsel %vm9084_vm9, %v6551_v37, %v6559_v14  ;;  %v8584_v57 = vrot.slane %v8564_v49, 10  ;;  %6393 = vrot.lane.b32.xlu0 %v6360_v1, %s8871_s24 }
 0x2ab   : > { %v6783_v59 = vrot.slane %v8565_v26, 6  ;;  %v8603_v41 = vld [vmem:[%s8925_s22 + $0x4c] sm:$0x7]  ;;  %v7358_v9 = vsel %vm2925_vm15, %v11706_v21, 0  ;;  %v8465_v3 = vld [vmem:[%s8925_s22 + $0x48] sm:$0xf]  ;;  %v6542_v16 = vsel %vm9084_vm9, %v6533_v24, %v6541_v63  ;;  %v6577_v7 = vor.u32 %v6576_v11, %v6573_v4 }
 0x2ac   : > { %v6569_v23 = vrot.slane %v6568_v12, 4  ;;  %v11767_v18 = vld [vmem:[%s8925_s22 + $0x5c] sm:$0x3]  ;;  %v8587_v44 = vrot.slane %v11752_v13, 10  ;;  %v8606_v32 = vld [vmem:[%s8925_s22 + $0x58] sm:$0xc]  ;;  %8786 = vmatpush3.bf16.msra.mxu0 %v7358_v9  ;;  %v6596_v21 = vsel %vm9084_vm9, %v6587_v8, %v6595_v34  ;;  %v11776_v62 = vsel %vm9171_vm12, %v8585_v51, %v6787_v50  ;;  %v5821_v30 = vpop.permute.xlu0 %5820  ;;  %6679 = vrot.lane.b32.xlu1 %v6560_v60, %s8872_s25 }
 0x2ad   : > { %5851 = vst.msk [vmem:[#allocation3 + $0x1c] sm:$0xf] %vm1553_vm14, %v5823_v36  ;;  %v11779_v55 = vld [vmem:[%s8925_s22 + $0x50] sm:$0xc]  ;;  %v6958_v10 = vshrl.u32 %v8600_v17, 16  ;;  %v6961_v38 = vshll.u32 %v8600_v17, 16  ;;  %v6784_v37 = vsel %vm9171_vm12, %v8584_v57, %v6783_v59  ;;  %v6240_v4 = vpop.permute.xlu1 %6239 }
 0x2ae   : > { %v8604_v2 = vld [vmem:[%s8925_s22 + $0x50] sm:$0xc]  ;;  %v8464_v42 = vld [vmem:[%s8925_s22 + $0x40] sm:$0xf]  ;;  %v6978_v29 = vrot.slane %v6976_v47, 6  ;;  %v6981_v39 = vrot.slane %v6979_v25, 7  ;;  %6677 = vrot.lane.b32.xlu0 %v6542_v16, %s8872_s25  ;;  %v6578_v11 = vsel %vm9084_vm9, %v6569_v23, %v6577_v7 }
 0x2af   : > { %v6985_v53 = vshrl.u32 %v8603_v41, 16  ;;  %v6988_v0 = vshll.u32 %v8603_v41, 16  ;;  %v8601_v1 = vld [vmem:[%s8925_s22 + $0x44] sm:$0x7]  ;;  %5850 = vst.msk [vmem:[#allocation3 + $0x18] sm:$0xf] %vm1553_vm14, %v5821_v30 }
 0x2b0   : > { %v6795_v14 = vrot.slane %v11767_v18, 6  ;;  %v8607_v24 = vld [vmem:[%s8925_s22 + $0x5c] sm:$0x7]  ;;  %v7012_v35 = vshrl.u32 %v8606_v32, 16  ;;  %v7015_v52 = vshll.u32 %v8606_v32, 16  ;;  %v8586_v26 = vrot.slane %v11779_v55, 10  ;;  %v6238_v60 = vpop.permute.xlu0 %6237  ;;  %6683 = vrot.lane.b32.xlu1 %v6596_v21, %s8872_s25 }
 0x2b1   : > { %v5865_v63 = vld [vmem:[#allocation3 + $0x14] sm:$0xf]  ;;  %v8467_v12 = vld [vmem:[%s8925_s22 + $0x58] sm:$0xf]  ;;  %v6994_v8 = vshrl.u32 %v8604_v2, 16  ;;  %v6997_v34 = vshll.u32 %v8604_v2, 16  ;;  %v6982_v57 = vor.u32 %v6981_v39, %v6978_v29  ;;  %v6244_v32 = vpop.permute.xlu1 %6243 }
 0x2b2   : > { %v8569_v49 = vld [vmem:[%s8925_s22 + $0x54] sm:$0x3]  ;;  %6038 = vst.msk [vmem:[#allocation3 + $0x14] sm:$0xf] %vm281_vm13, %v8465_v3  ;;  %v6960_v51 = vrot.slane %v6958_v10, 6  ;;  %v6963_v50 = vrot.slane %v6961_v38, 7  ;;  %6681 = vrot.lane.b32.xlu0 %v6578_v11, %s8872_s25 }
 0x2b3   : > { %6274 = vst.msk [vmem:[#allocation3 + $0x4] sm:$0xf] %vm525_vm1, %v6240_v4  ;;  %v6967_v6 = vshrl.u32 %v8601_v1, 16  ;;  %v6970_v47 = vshll.u32 %v8601_v1, 16  ;;  %v8605_v25 = vld [vmem:[%s8925_s22 + $0x54] sm:$0x7] }
 0x2b4   : > { %v5864_v17 = vld [vmem:[#allocation3 + $0x10] sm:$0xf]  ;;  %v6987_v59 = vrot.slane %v6985_v53, 6  ;;  %v6990_v41 = vrot.slane %v6988_v0, 7  ;;  %v7021_v9 = vshrl.u32 %v8607_v24, 16  ;;  %v7014_v16 = vrot.slane %v7012_v35, 6  ;;  %v6242_v53 = vpop.permute.xlu0 %6241  ;;  %6823 = vrot.lane.b32.xlu1 %v11776_v62, %s8873_s26 }
 0x2b5   : > { %6037 = vst.msk [vmem:[#allocation3 + $0x10] sm:$0xf] %vm281_vm13, %v8464_v42  ;;  %v8466_v36 = vld [vmem:[%s8925_s22 + $0x50] sm:$0xf]  ;;  %v8450_v3 = vcombine.low %v5864_v17, %v5865_v63  ;;  %v7017_v23 = vrot.slane %v7015_v52, 7  ;;  %v7024_v7 = vshll.u32 %v8607_v24, 16  ;;  %v6964_v42 = vor.u32 %v6963_v50, %v6960_v51  ;;  %v6384_v62 = vpop.permute.xlu1 %6383 }
 0x2b6   : > { %6273 = vst.msk [vmem:[#allocation3] sm:$0xf] %vm525_vm1, %v6238_v60  ;;  %v5867_v18 = vld [vmem:[#allocation3 + $0x1c] sm:$0xf]  ;;  %v6996_v55 = vrot.slane %v6994_v8, 6  ;;  %v6999_v10 = vrot.slane %v6997_v34, 7  ;;  %v6796_v0 = vsel %vm9171_vm12, %v8587_v44, %v6795_v14  ;;  %v6991_v24 = vor.u32 %v6990_v41, %v6987_v59  ;;  %6821 = vrot.lane.b32.xlu0 %v6784_v37, %s8873_s26 }
 0x2b7   : > { %v7003_v21 = vshrl.u32 %v8605_v25, 16  ;;  %v7006_v38 = vshll.u32 %v8605_v25, 16  ;;  %6040 = vst.msk [vmem:[#allocation3 + $0x1c] sm:$0xf] %vm281_vm13, %v8467_v12  ;;  %8777 = vmatprep.mubr.msk.bf16.mxu1 %vm2906_vm2, %v8450_v3  ;;  %v6791_v2 = vrot.slane %v8569_v49, 6  ;;  %v6969_v30 = vrot.slane %v6967_v6, 6 }
 0x2b8   : > { %6276 = vst.msk [vmem:[#allocation3 + $0xc] sm:$0xf] %vm525_vm1, %v6244_v32  ;;  %v6972_v29 = vrot.slane %v6970_v47, 7  ;;  %v5866_v39 = vld [vmem:[#allocation3 + $0x18] sm:$0xf]  ;;  %v6983_v1 = vrot.slane %v6982_v57, 4  ;;  %v7018_v52 = vor.u32 %v7017_v23, %v7014_v16  ;;  %v7000_v13 = vor.u32 %v6999_v10, %v6996_v55  ;;  %v6382_v51 = vpop.permute.xlu0 %6381  ;;  %6827 = vrot.lane.b32.xlu1 %v6796_v0, %s8873_s26 }
 0x2b9   : > { %6039 = vst.msk [vmem:[#allocation3 + $0x18] sm:$0xf] %vm281_vm13, %v8466_v36  ;;  %v8451_v35 = vcombine.low %v5866_v39, %v5867_v18  ;;  %v7023_v63 = vrot.slane %v7021_v9, 6  ;;  %v7026_v12 = vrot.slane %v7024_v7, 7  ;;  %v8490_v4 = vld [vmem:[%s8925_s22 + $0x68] sm:$0xf]  ;;  %v6792_v14 = vsel %vm9171_vm12, %v8586_v26, %v6791_v2  ;;  %v4819_v41 = vpop.permute.xlu1 %4818 }
 0x2ba   : > { %6275 = vst.msk [vmem:[#allocation3 + $0x8] sm:$0xf] %vm525_vm1, %v6242_v53  ;;  %v7005_v11 = vrot.slane %v7003_v21, 6  ;;  %v7008_v49 = vrot.slane %v7006_v38, 7  ;;  %v8488_v44 = vld [vmem:[%s8925_s22 + $0x60] sm:$0xf]  ;;  %v6973_v34 = vor.u32 %v6972_v29, %v6969_v30  ;;  %v6992_v37 = vsel %vm9253_vm0, %v6983_v1, %v6991_v24  ;;  %6825 = vrot.lane.b32.xlu0 %v6792_v14, %s8873_s26 }
 0x2bb   : > { %8778 = vmatmul.mubr.msk.bf16.gmra.mxu1 %vm2906_vm2, %v8451_v35  ;;  %6418 = vst.msk [vmem:[#allocation3 + $0x4] sm:$0xf] %vm673_vm7, %v6384_v62  ;;  %v6965_v8 = vrot.slane %v6964_v42, 4  ;;  %v8626_v50 = vld [vmem:[%s8925_s22 + $0x48] sm:$0x8]  ;;  %v6196_v6 = vshrl.u32 %v8490_v4, 16  ;;  %v7027_v17 = vor.u32 %v7026_v12, %v7023_v63 }
 0x2bc   : > { %v6199_v47 = vshll.u32 %v8490_v4, 16  ;;  %v8494_v25 = vld [vmem:[%s8925_s22 + $0x78] sm:$0xf]  ;;  %6417 = vst.msk [vmem:[#allocation3] sm:$0xf] %vm673_vm7, %v6382_v51  ;;  %v7019_v26 = vrot.slane %v7018_v52, 4  ;;  %v7009_v36 = vor.u32 %v7008_v49, %v7005_v11  ;;  %v4817_v21 = vpop.permute.xlu0 %4816  ;;  %7111 = vrot.lane.b32.xlu1 %v6992_v37, %s8874_s27 }
 0x2bd   : > { %v8627_v60 = vld [vmem:[%s8925_s22 + $0x4c] sm:$0x7]  ;;  %v6182_v57 = vshrl.u32 %v8488_v44, 16  ;;  %v6185_v59 = vshll.u32 %v8488_v44, 16  ;;  %v7001_v9 = vrot.slane %v7000_v13, 4  ;;  %v6974_v23 = vsel %vm9253_vm0, %v6965_v8, %v6973_v34  ;;  %v6388_v35 = vpop.permute.xlu1 %6387 }
 0x2be   : > { %v8624_v3 = vld [vmem:[%s8925_s22 + $0x40] sm:$0x8]  ;;  %v8625_v16 = vld [vmem:[%s8925_s22 + $0x44] sm:$0x7]  ;;  %4845 = vst.msk [vmem:[#allocation3 + $0x24] sm:$0xf] %vm525_vm1, %v4819_v41  ;;  %v7028_v39 = vsel %vm9253_vm0, %v7019_v26, %v7027_v17  ;;  %7109 = vrot.lane.b32.xlu0 %v6974_v23, %s8874_s27 }
 0x2bf   : > { %v8630_v7 = vld [vmem:[%s8925_s22 + $0x58] sm:$0x8]  ;;  %v8631_v18 = vld [vmem:[%s8925_s22 + $0x5c] sm:$0x7]  ;;  %v8491_v32 = vld [vmem:[%s8925_s22 + $0x6c] sm:$0x1]  ;;  %v7010_v52 = vsel %vm9253_vm0, %v7001_v9, %v7009_v36 }
 0x2c0   : > { %v6224_v55 = vshrl.u32 %v8494_v25, 16  ;;  %v6227_v10 = vshll.u32 %v8494_v25, 16  ;;  %v8645_v38 = vrot.slane %v8626_v50, 11  ;;  %v7219_v2 = vrot.slane %v8627_v60, 7  ;;  %v8492_v29 = vld [vmem:[%s8925_s22 + $0x70] sm:$0xf]  ;;  %v6386_v8 = vpop.permute.xlu0 %6385  ;;  %7115 = vrot.lane.b32.xlu1 %v7028_v39, %s8874_s27 }
 0x2c1   : > { %v6198_v42 = vrot.slane %v6196_v6, 4  ;;  %v6201_v30 = vrot.slane %v6199_v47, 5  ;;  %4844 = vst.msk [vmem:[#allocation3 + $0x20] sm:$0xf] %vm525_vm1, %v4817_v21  ;;  %v8644_v53 = vrot.slane %v8624_v3, 11  ;;  %v6184_v1 = vrot.slane %v6182_v57, 4  ;;  %v6672_v17 = vpop.permute.xlu1 %6671 }
 0x2c2   : > { %v8628_v0 = vld [vmem:[%s8925_s22 + $0x50] sm:$0x8]  ;;  %v6187_v24 = vrot.slane %v6185_v59, 5  ;;  %v7215_v63 = vrot.slane %v8625_v16, 7  ;;  %v6205_v12 = vshll.u32 %v8491_v32, 16  ;;  %v6226_v11 = vrot.slane %v6224_v55, 4  ;;  %7113 = vrot.lane.b32.xlu0 %v7010_v52, %s8874_s27 }
 0x2c3   : > { %v8489_v4 = vld [vmem:[%s8925_s22 + $0x64] sm:$0x1]  ;;  %v8495_v62 = vld [vmem:[%s8925_s22 + $0x7c] sm:$0x1]  ;;  %6420 = vst.msk [vmem:[#allocation3 + $0xc] sm:$0xf] %vm673_vm7, %v6388_v35  ;;  %v6202_v37 = vor.u32 %v6201_v30, %v6198_v42  ;;  %v7220_v50 = vsel %vm9357_vm5, %v8645_v38, %v7219_v2 }
 0x2c4   : > { %v8629_v13 = vld [vmem:[%s8925_s22 + $0x54] sm:$0x7]  ;;  %v6229_v49 = vrot.slane %v6227_v10, 5  ;;  %v6210_v44 = vshrl.u32 %v8492_v29, 16  ;;  %v6213_v14 = vshll.u32 %v8492_v29, 16  ;;  %v8647_v34 = vrot.slane %v8630_v7, 11  ;;  %v6670_v16 = vpop.permute.xlu0 %6669  ;;  %7255 = vrot.lane.b32.xlu1 %v7220_v50, %s8875_s28 }
 0x2c5   : > { %v7227_v51 = vrot.slane %v8631_v18, 7  ;;  %6419 = vst.msk [vmem:[#allocation3 + $0x8] sm:$0xf] %vm673_vm7, %v6386_v8  ;;  %v6188_v6 = vor.u32 %v6187_v24, %v6184_v1  ;;  %v6191_v47 = vshll.u32 %v8489_v4, 16  ;;  %v6233_v25 = vshll.u32 %v8495_v62, 16  ;;  %v4823_v42 = vpop.permute.xlu1 %4822 }
 0x2c6   : > { %v8493_v26 = vld [vmem:[%s8925_s22 + $0x74] sm:$0x1]  ;;  %v7216_v60 = vsel %vm9357_vm5, %v8644_v53, %v7215_v63  ;;  %v8646_v57 = vrot.slane %v8628_v0, 11  ;;  %v7223_v59 = vrot.slane %v8629_v13, 7  ;;  %6706 = vst.msk [vmem:[#allocation3 + $0x4] sm:$0xf] %vm965_vm8, %v6672_v17  ;;  %v6230_v9 = vor.u32 %v6229_v49, %v6226_v11 }
 0x2c7   : > { %v6207_v41 = vrot.slane %v6205_v12, 5  ;;  %v6212_v36 = vrot.slane %v6210_v44, 4  ;;  %v6215_v3 = vrot.slane %v6213_v14, 5  ;;  %v6203_v23 = vrot.slane %v6202_v37, 4  ;;  %v8514_v18 = vld [vmem:[%s8925_s22 + $0x68] sm:$0xe]  ;;  %7253 = vrot.lane.b32.xlu0 %v7216_v60, %s8875_s28 }
 0x2c8   : > { %v6219_v7 = vshll.u32 %v8493_v26, 16  ;;  %v8515_v32 = vld [vmem:[%s8925_s22 + $0x6c] sm:$0x1]  ;;  %6705 = vst.msk [vmem:[#allocation3] sm:$0xf] %vm965_vm8, %v6670_v16  ;;  %v7228_v55 = vsel %vm9357_vm5, %v8647_v34, %v7227_v51  ;;  %v6189_v10 = vrot.slane %v6188_v6, 4  ;;  %v7224_v30 = vsel %vm9357_vm5, %v8646_v57, %v7223_v59  ;;  %v4821_v63 = vpop.permute.xlu0 %4820 }
 0x2c9   : > { %v6193_v21 = vrot.slane %v6191_v47, 5  ;;  %v11866_v38 = vrot.slane %v6233_v25, 5  ;;  %v8550_v2 = vld [vmem:[%s8925_s22 + $0x68] sm:$0xe]  ;;  %v11873_v29 = vld [vmem:[%s8925_s22 + $0x60] sm:$0xe]  ;;  %v6216_v1 = vor.u32 %v6215_v3, %v6212_v36  ;;  %7259 = vrot.lane.b32.xlu1 %v7228_v55, %s8875_s28  ;;  %v6208_v12 = vsel %vm8950_vm3, %v6203_v23, %v6207_v41  ;;  %v4963_v51 = vpop.permute.xlu1 %4962 }
 0x2ca   : > { %v11876_v39 = vld [vmem:[%s8925_s22 + $0x64] sm:$0x1]  ;;  %v8548_v53 = vld [vmem:[%s8925_s22 + $0x60] sm:$0xe]  ;;  %4847 = vst.msk [vmem:[#allocation3 + $0x2c] sm:$0xf] %vm525_vm1, %v4823_v42 }
 0x2cb   : > { %v6231_v0 = vrot.slane %v6230_v9, 4  ;;  %v8529_v24 = vrot.slane %v8514_v18, 9  ;;  %v6371_v35 = vrot.slane %v8515_v32, 5  ;;  %v8554_v52 = vld [vmem:[%s8925_s22 + $0x78] sm:$0xe]  ;;  %v6221_v4 = vrot.slane %v6219_v7, 5  ;;  %7257 = vrot.lane.b32.xlu0 %v7224_v30, %s8875_s28 }
 0x2cc   : > { %v11885_v62 = vld [vmem:[%s8925_s22 + $0x78] sm:$0xe]  ;;  %v6616_v13 = vshrl.u32 %v8550_v2, 16  ;;  %v6619_v11 = vshll.u32 %v8550_v2, 16  ;;  %4846 = vst.msk [vmem:[#allocation3 + $0x28] sm:$0xf] %vm525_vm1, %v4821_v63  ;;  %v6194_v37 = vsel %vm8950_vm3, %v6189_v10, %v6193_v21  ;;  %v4961_v9 = vpop.permute.xlu0 %4960 }
 0x2cd   : > { %v8528_v49 = vrot.slane %v11873_v29, 9  ;;  %v6367_v44 = vrot.slane %v11876_v39, 5  ;;  %v8551_v14 = vld [vmem:[%s8925_s22 + $0x6c] sm:$0x3]  ;;  %v6598_v8 = vshrl.u32 %v8548_v53, 16  ;;  %v6601_v34 = vshll.u32 %v8548_v53, 16  ;;  %6255 = vrot.lane.b32.xlu1 %v6208_v12, %s8870_s23 }
 0x2ce   : > { %v11895_v50 = vld [vmem:[%s8925_s22 + $0x7c] sm:$0x1]  ;;  %v8549_v6 = vld [vmem:[%s8925_s22 + $0x64] sm:$0x3]  ;;  %v6652_v47 = vshrl.u32 %v8554_v52, 16  ;;  %v6655_v25 = vshll.u32 %v8554_v52, 16  ;;  %v6236_v26 = vsel %vm8950_vm3, %v6231_v0, %v11866_v38  ;;  %v6372_v60 = vsel %vm9012_vm6, %v8529_v24, %v6371_v35  ;;  %v6676_v38 = vpop.permute.xlu1 %6675 }
 0x2cf   : > { %4989 = vst.msk [vmem:[#allocation3 + $0x24] sm:$0xf] %vm673_vm7, %v4963_v51  ;;  %v6217_v17 = vrot.slane %v6216_v1, 4  ;;  %v8531_v57 = vrot.slane %v11885_v62, 9  ;;  %v8516_v59 = vld [vmem:[%s8925_s22 + $0x70] sm:$0xe]  ;;  %6253 = vrot.lane.b32.xlu0 %v6194_v37, %s8870_s23  ;;  %v6368_v35 = vsel %vm9012_vm6, %v8528_v49, %v6367_v44 }
 0x2d0   : > { %v8555_v41 = vld [vmem:[%s8925_s22 + $0x7c] sm:$0x3]  ;;  %v6618_v36 = vrot.slane %v6616_v13, 5  ;;  %v6621_v3 = vrot.slane %v6619_v11, 6  ;;  %v6625_v16 = vshrl.u32 %v8551_v14, 16  ;;  %v6628_v23 = vshll.u32 %v8551_v14, 16  ;;  %v6674_v24 = vpop.permute.xlu0 %6673 }
 0x2d1   : > { %v8552_v7 = vld [vmem:[%s8925_s22 + $0x70] sm:$0xe]  ;;  %4988 = vst.msk [vmem:[#allocation3 + $0x20] sm:$0xf] %vm673_vm7, %v4961_v9  ;;  %v8517_v18 = vld [vmem:[%s8925_s22 + $0x74] sm:$0x1]  ;;  %v6222_v39 = vsel %vm8950_vm3, %v6217_v17, %v6221_v4  ;;  %6259 = vrot.lane.b32.xlu1 %v6236_v26, %s8870_s23 }
 0x2d2   : > { %v6600_v32 = vrot.slane %v6598_v8, 5  ;;  %v6603_v55 = vrot.slane %v6601_v34, 6  ;;  %v6607_v10 = vshrl.u32 %v8549_v6, 16  ;;  %v6610_v21 = vshll.u32 %v8549_v6, 16  ;;  %6708 = vst.msk [vmem:[#allocation3 + $0xc] sm:$0xf] %vm965_vm8, %v6676_v38  ;;  %v6816_v14 = vpop.permute.xlu1 %6815 }
 0x2d3   : > { %v6654_v2 = vrot.slane %v6652_v47, 5  ;;  %v6657_v42 = vrot.slane %v6655_v25, 6  ;;  %v6661_v30 = vshrl.u32 %v8555_v41, 16  ;;  %v6664_v29 = vshll.u32 %v8555_v41, 16  ;;  %v8553_v62 = vld [vmem:[%s8925_s22 + $0x74] sm:$0x3]  ;;  %6257 = vrot.lane.b32.xlu0 %v6222_v39, %s8870_s23 }
 0x2d4   : > { %v6379_v53 = vrot.slane %v11895_v50, 5  ;;  %v6634_v0 = vshrl.u32 %v8552_v7, 16  ;;  %v6637_v1 = vshll.u32 %v8552_v7, 16  ;;  %v8530_v52 = vrot.slane %v8516_v59, 9  ;;  %6707 = vst.msk [vmem:[#allocation3 + $0x8] sm:$0xf] %vm965_vm8, %v6674_v24  ;;  %v6814_v25 = vpop.permute.xlu0 %6813 }
 0x2d5   : > { %v6375_v63 = vrot.slane %v8517_v18, 5  ;;  %v6627_v12 = vrot.slane %v6625_v16, 5  ;;  %v6622_v13 = vor.u32 %v6621_v3, %v6618_v36  ;;  %v6630_v28 = vrot.slane %v6628_v23, 6  ;;  %6850 = vst.msk [vmem:[#allocation3 + $0x4] sm:$0xf] %vm1113_vm10, %v6816_v14  ;;  %6399 = vrot.lane.b32.xlu1 %v6372_v60, %s8871_s24 }
 0x2d6   : > { %v6609_v4 = vrot.slane %v6607_v10, 5  ;;  %v6612_v11 = vrot.slane %v6610_v21, 6  ;;  %v6604_v8 = vor.u32 %v6603_v55, %v6600_v32  ;;  %v6658_v34 = vor.u32 %v6657_v42, %v6654_v2  ;;  %v8574_v47 = vld [vmem:[%s8925_s22 + $0x68] sm:$0xc]  ;;  %v8575_v17 = vld [vmem:[%s8925_s22 + $0x6c] sm:$0x3]  ;;  %v4967_v23 = vpop.permute.xlu1 %4966 }
 0x2d7   : > { %v6663_v51 = vrot.slane %v6661_v30, 5  ;;  %v6666_v37 = vrot.slane %v6664_v29, 6  ;;  %v6636_v49 = vrot.slane %v6634_v0, 5  ;;  %v6639_v44 = vrot.slane %v6637_v1, 6  ;;  %6849 = vst.msk [vmem:[#allocation3] sm:$0xf] %vm1113_vm10, %v6814_v25  ;;  %6397 = vrot.lane.b32.xlu0 %v6368_v35, %s8871_s24 }
 0x2d8   : > { %v6643_v50 = vshrl.u32 %v8553_v62, 16  ;;  %v6646_v6 = vshll.u32 %v8553_v62, 16  ;;  %v6380_v26 = vsel %vm9012_vm6, %v8531_v57, %v6379_v53  ;;  %v6376_v59 = vsel %vm9012_vm6, %v8530_v52, %v6375_v63  ;;  %v8572_v3 = vld [vmem:[%s8925_s22 + $0x60] sm:$0xc]  ;;  %v8610_v16 = vld [vmem:[%s8925_s22 + $0x68] sm:$0xc]  ;;  %v4965_v2 = vpop.permute.xlu0 %4964 }
 0x2d9   : > { %v6623_v41 = vrot.slane %v6622_v13, 4  ;;  %v6631_v9 = vor.u32 %v6630_v28, %v6627_v12  ;;  %v6613_v36 = vor.u32 %v6612_v11, %v6609_v4  ;;  %v6605_v60 = vrot.slane %v6604_v8, 4  ;;  %v8573_v57 = vld [vmem:[%s8925_s22 + $0x64] sm:$0x3]  ;;  %4991 = vst.msk [vmem:[#allocation3 + $0x2c] sm:$0xf] %vm673_vm7, %v4967_v23  ;;  %6403 = vrot.lane.b32.xlu1 %v6380_v26, %s8871_s24 }
 0x2da   : > { %v6659_v7 = vrot.slane %v6658_v34, 4  ;;  %v6667_v18 = vor.u32 %v6666_v37, %v6663_v51  ;;  %v8589_v32 = vrot.slane %v8574_v47, 10  ;;  %v6640_v55 = vor.u32 %v6639_v44, %v6636_v49  ;;  %v8608_v38 = vld [vmem:[%s8925_s22 + $0x60] sm:$0xc]  ;;  %4990 = vst.msk [vmem:[#allocation3 + $0x28] sm:$0xf] %vm673_vm7, %v4965_v2  ;;  %v5251_v1 = vpop.permute.xlu1 %5250 }
 0x2db   : > { %v6645_v20 = vrot.slane %v6643_v50, 5  ;;  %v6648_v10 = vrot.slane %v6646_v6, 6  ;;  %v6803_v21 = vrot.slane %v8575_v17, 6  ;;  %v7048_v42 = vshrl.u32 %v8610_v16, 16  ;;  %v8611_v0 = vld [vmem:[%s8925_s22 + $0x6c] sm:$0x7]  ;;  %6401 = vrot.lane.b32.xlu0 %v6376_v59, %s8871_s24  ;;  %s12175_s24 = scalar_lea.vmem %s12251_s4, %s8807_s21 }
 0x2dc   : > { %v7051_v30 = vshll.u32 %v8610_v16, 16  ;;  %v6632_v29 = vsel %vm9084_vm9, %v6623_v41, %v6631_v9  ;;  %v8588_v39 = vrot.slane %v8572_v3, 10  ;;  %v6799_v53 = vrot.slane %v8573_v57, 6  ;;  %v11946_v35 = vld [vmem:[%s8925_s22 + $0x78] sm:$0xc]  ;;  %v5249_v8 = vpop.permute.xlu0 %5248 }
 0x2dd   : > { %v6614_v24 = vsel %vm9084_vm9, %v6605_v60, %v6613_v36  ;;  %v7030_v52 = vshrl.u32 %v8608_v38, 16  ;;  %v7033_v63 = vshll.u32 %v8608_v38, 16  ;;  %v8614_v12 = vld [vmem:[%s8925_s22 + $0x78] sm:$0xc]  ;;  %5277 = vst.msk [vmem:[#allocation3 + $0x24] sm:$0xf] %vm965_vm8, %v5251_v1  ;;  %v6668_v62 = vsel %vm9084_vm9, %v6659_v7, %v6667_v18  ;;  %6687 = vrot.lane.b32.xlu1 %v6632_v29, %s8872_s25 }
 0x2de   : > { %v6641_v13 = vrot.slane %v6640_v55, 4  ;;  %v6649_v28 = vor.u32 %v6648_v10, %v6645_v20  ;;  %v6804_v4 = vsel %vm9171_vm12, %v8589_v32, %v6803_v21  ;;  %v8579_v11 = vld [vmem:[%s8925_s22 + $0x7c] sm:$0x3]  ;;  %v8609_v14 = vld [vmem:[%s8925_s22 + $0x64] sm:$0x7]  ;;  %v7050_v34 = vrot.slane %v7048_v42, 6  ;;  %v6820_v17 = vpop.permute.xlu1 %6819 }
 0x2df   : > { %v7053_v51 = vrot.slane %v7051_v30, 7  ;;  %v7057_v37 = vshrl.u32 %v8611_v0, 16  ;;  %v7060_v49 = vshll.u32 %v8611_v0, 16  ;;  %v8612_v44 = vld [vmem:[%s8925_s22 + $0x70] sm:$0xc]  ;;  %v6800_v50 = vsel %vm9171_vm12, %v8588_v39, %v6799_v53  ;;  %6685 = vrot.lane.b32.xlu0 %v6614_v24, %s8872_s25 }
 0x2e0   : > { %5276 = vst.msk [vmem:[#allocation3 + $0x20] sm:$0xf] %vm965_vm8, %v5249_v8  ;;  %v8591_v6 = vrot.slane %v11946_v35, 10  ;;  %v8576_v47 = vld [vmem:[%s8925_s22 + $0x70] sm:$0xc]  ;;  %v7084_v25 = vshrl.u32 %v8614_v12, 16  ;;  %v6650_v16 = vsel %vm9084_vm9, %v6641_v13, %v6649_v28  ;;  %v6818_v32 = vpop.permute.xlu0 %6817 }
 0x2e1   : > { %v7087_v26 = vshll.u32 %v8614_v12, 16  ;;  %v7032_v59 = vrot.slane %v7030_v52, 6  ;;  %v7035_v41 = vrot.slane %v7033_v63, 7  ;;  %v7039_v9 = vshrl.u32 %v8609_v14, 16  ;;  %v8615_v3 = vld [vmem:[%s8925_s22 + $0x7c] sm:$0x7]  ;;  %6691 = vrot.lane.b32.xlu1 %v6668_v62, %s8872_s25 }
 0x2e2   : > { %v7042_v36 = vshll.u32 %v8609_v14, 16  ;;  %6852 = vst.msk [vmem:[#allocation3 + $0xc] sm:$0xf] %vm1113_vm10, %v6820_v17  ;;  %v6811_v23 = vrot.slane %v8579_v11, 6  ;;  %v8577_v60 = vld [vmem:[%s8925_s22 + $0x74] sm:$0x3]  ;;  %v7054_v55 = vor.u32 %v7053_v51, %v7050_v34  ;;  %v7104_v40 = vpop.permute.xlu1 %7103 }
 0x2e3   : > { %v7066_v7 = vshrl.u32 %v8612_v44, 16  ;;  %v7069_v18 = vshll.u32 %v8612_v44, 16  ;;  %v8590_v57 = vrot.slane %v8576_v47, 10  ;;  %v7059_v20 = vrot.slane %v7057_v37, 6  ;;  %v8613_v21 = vld [vmem:[%s8925_s22 + $0x74] sm:$0x7]  ;;  %6689 = vrot.lane.b32.xlu0 %v6650_v16, %s8872_s25 }
 0x2e4   : > { %v7062_v10 = vrot.slane %v7060_v49, 7  ;;  %6851 = vst.msk [vmem:[#allocation3 + $0x8] sm:$0xf] %vm1113_vm10, %v6818_v32  ;;  %v7086_v38 = vrot.slane %v7084_v25, 6  ;;  %v7089_v2 = vrot.slane %v7087_v26, 7  ;;  %v7093_v42 = vshrl.u32 %v8615_v3, 16  ;;  %v7102_v63 = vpop.permute.xlu0 %7101 }
 0x2e5   : > { %v7096_v30 = vshll.u32 %v8615_v3, 16  ;;  %v6807_v29 = vrot.slane %v8577_v60, 6  ;;  %v7036_v39 = vor.u32 %v7035_v41, %v7032_v59  ;;  %v7041_v53 = vrot.slane %v7039_v9, 6  ;;  %7138 = vst.msk [vmem:[#allocation3 + $0x4] sm:$0xf] %vm1405_vm11, %v7104_v40  ;;  %6831 = vrot.lane.b32.xlu1 %v6804_v4, %s8873_s26  ;;  %v11989_v59 = vpop.f32.mrf.mxu0 }
 0x2e6   : > { %v7044_v0 = vrot.slane %v7042_v36, 7  ;;  %v7068_v1 = vrot.slane %v7066_v7, 6  ;;  %v7071_v24 = vrot.slane %v7069_v18, 7  ;;  %v7075_v35 = vshrl.u32 %v8613_v21, 16  ;;  %7137 = vst.msk [vmem:[#allocation3] sm:$0xf] %vm1405_vm11, %v7102_v63  ;;  %v5255_v8 = vpop.permute.xlu1 %5254 }
 0x2e7   : > { %v7078_v52 = vshll.u32 %v8613_v21, 16  ;;  %v6812_v12 = vsel %vm9171_vm12, %v8591_v6, %v6811_v23  ;;  %v7063_v62 = vor.u32 %v7062_v10, %v7059_v20  ;;  %v7055_v13 = vrot.slane %v7054_v55, 4  ;;  %6829 = vrot.lane.b32.xlu0 %v6800_v50, %s8873_s26  ;;  %5279 = vst.msk [vmem:[#allocation3 + $0x2c] sm:$0xf] %vm965_vm8, %v5255_v8  ;;  %v8634_v26 = vld [vmem:[%s8925_s22 + $0x68] sm:$0x8]  ;;  %v12003_v20 = vpop.f32.mrf.mxu0 }
 0x2e8   : > { %v7090_v28 = vor.u32 %v7089_v2, %v7086_v38  ;;  %v7095_v11 = vrot.slane %v7093_v42, 6  ;;  %v7098_v14 = vrot.slane %v7096_v30, 7  ;;  %v6808_v34 = vsel %vm9171_vm12, %v8590_v57, %v6807_v29  ;;  %v5253_v6 = vpop.permute.xlu0 %5252  ;;  %v8635_v17 = vld [vmem:[%s8925_s22 + $0x6c] sm:$0x7]  ;;  %v8632_v16 = vld [vmem:[%s8925_s22 + $0x60] sm:$0x8] }
 0x2e9   : > { %v7045_v51 = vor.u32 %v7044_v0, %v7041_v53  ;;  %v7037_v4 = vrot.slane %v7036_v39, 4  ;;  %v7072_v37 = vor.u32 %v7071_v24, %v7068_v1  ;;  %v7077_v49 = vrot.slane %v7075_v35, 6  ;;  %6835 = vrot.lane.b32.xlu1 %v6812_v12, %s8873_s26  ;;  %5278 = vst.msk [vmem:[#allocation3 + $0x28] sm:$0xf] %vm965_vm8, %v5253_v6  ;;  %v8633_v23 = vld [vmem:[%s8925_s22 + $0x64] sm:$0x7]  ;;  %v12015_v0 = vpop.f32.mrf.mxu0 }
 0x2ea   : > { %v7080_v44 = vrot.slane %v7078_v52, 7  ;;  %v7064_v15 = vsel %vm9253_vm0, %v7055_v13, %v7063_v62  ;;  %v7091_v50 = vrot.slane %v7090_v28, 4  ;;  %v7099_v47 = vor.u32 %v7098_v14, %v7095_v11  ;;  %v5395_v25 = vpop.permute.xlu1 %5394  ;;  %v8638_v57 = vld [vmem:[%s8925_s22 + $0x78] sm:$0x8]  ;;  %v8639_v55 = vld [vmem:[%s8925_s22 + $0x7c] sm:$0x7] }
 0x2eb   : > { %6833 = vrot.lane.b32.xlu0 %v6808_v34, %s8873_s26  ;;  %5421 = vst.msk [vmem:[#allocation3 + $0x24] sm:$0xf] %vm1113_vm10, %v5395_v25  ;;  %v7046_v41 = vsel %vm9253_vm0, %v7037_v4, %v7045_v51  ;;  %v7073_v9 = vrot.slane %v7072_v37, 4  ;;  %v8649_v7 = vrot.slane %v8634_v26, 11  ;;  %v7235_v18 = vrot.slane %v8635_v17, 7  ;;  %v12025_v12 = vpop.f32.mrf.mxu0 }
 0x2ec   : > { %v7081_v36 = vor.u32 %v7080_v44, %v7077_v49  ;;  %v5393_v3 = vpop.permute.xlu0 %5392  ;;  %v7100_v60 = vsel %vm9253_vm0, %v7091_v50, %v7099_v47  ;;  %v8648_v21 = vrot.slane %v8632_v16, 11  ;;  %v7231_v38 = vrot.slane %v8633_v23, 7  ;;  %v8636_v42 = vld [vmem:[%s8925_s22 + $0x70] sm:$0x8]  ;;  %v8637_v30 = vld [vmem:[%s8925_s22 + $0x74] sm:$0x7] }
 0x2ed   : > { %7119 = vrot.lane.b32.xlu1 %v7064_v15, %s8874_s27  ;;  %5420 = vst.msk [vmem:[#allocation3 + $0x20] sm:$0xf] %vm1113_vm10, %v5393_v3  ;;  %v7236_v40 = vsel %vm9357_vm5, %v8649_v7, %v7235_v18  ;;  %v8651_v29 = vrot.slane %v8638_v57, 11  ;;  %v7243_v39 = vrot.slane %v8639_v55, 7  ;;  %v8650_v1 = vrot.slane %v8636_v42, 11 }
 0x2ee   : > { %v7108_v32 = vpop.permute.xlu1 %7107  ;;  %v7082_v10 = vsel %vm9253_vm0, %v7073_v9, %v7081_v36  ;;  %v7232_v33 = vsel %vm9357_vm5, %v8648_v21, %v7231_v38  ;;  %v7239_v24 = vrot.slane %v8637_v30, 7  ;;  %v8469_v36 = vld [vmem:[%s8925_s22 + $0x68] sm:$0xf]  ;;  %vm7459_vm3 = vcmask 48128  }
 0x2ef   : > { %7117 = vrot.lane.b32.xlu0 %v7046_v41, %s8874_s27  ;;  %7140 = vst.msk [vmem:[#allocation3 + $0xc] sm:$0xf] %vm1405_vm11, %v7108_v32  ;;  %v7244_v52 = vsel %vm9357_vm5, %v8651_v29, %v7243_v39  ;;  %v8471_v32 = vld [vmem:[%s8925_s22 + $0x78] sm:$0xf]  ;;  %vm7582_vm6 = vcmask 44032  }
 0x2f0   : > { %v7106_v2 = vpop.permute.xlu0 %7105  ;;  %v7240_v62 = vsel %vm9357_vm5, %v8650_v1, %v7239_v24 }
 0x2f1   : > { %7123 = vrot.lane.b32.xlu1 %v7100_v60, %s8874_s27  ;;  %7139 = vst.msk [vmem:[#allocation3 + $0x8] sm:$0xf] %vm1405_vm11, %v7106_v2  ;;  %v12031_v28 = vpop.f32.mrf.mxu0  ;;  %v8468_v60 = vld [vmem:[%s8925_s22 + $0x60] sm:$0xf] }
 0x2f2   : > { %v7248_v53 = vpop.permute.xlu1 %7247 }
 0x2f3   : > { %7121 = vrot.lane.b32.xlu0 %v7082_v10, %s8874_s27  ;;  %7282 = vst.msk [vmem:[#allocation3 + $0x4] sm:$0xf] %vm1553_vm14, %v7248_v53  ;;  %v12036_v34 = vpop.f32.mrf.mxu0  ;;  %v8470_v10 = vld [vmem:[%s8925_s22 + $0x70] sm:$0xf] }
 0x2f4   : > { %v7246_v35 = vpop.permute.xlu0 %7245 }
 0x2f5   : > { %7263 = vrot.lane.b32.xlu1 %v7236_v40, %s8875_s28  ;;  %7281 = vst.msk [vmem:[#allocation3] sm:$0xf] %vm1553_vm14, %v7246_v35  ;;  %v12041_v4 = vpop.f32.mrf.mxu0 }
 0x2f6   : > { %v5399_v63 = vpop.permute.xlu1 %5398 }
 0x2f7   : > { %7261 = vrot.lane.b32.xlu0 %v7232_v33, %s8875_s28  ;;  %5423 = vst.msk [vmem:[#allocation3 + $0x2c] sm:$0xf] %vm1113_vm10, %v5399_v63  ;;  %v12045_v44 = vpop.f32.mrf.mxu0 }
 0x2f8   : > { %v5397_v13 = vpop.permute.xlu0 %5396 }
 0x2f9   : > { %7267 = vrot.lane.b32.xlu1 %v7244_v52, %s8875_s28  ;;  %5422 = vst.msk [vmem:[#allocation3 + $0x28] sm:$0xf] %vm1113_vm10, %v5397_v13 }
 0x2fa   : > { %v5683_v11 = vpop.permute.xlu1 %5682 }
 0x2fb   : > { %7265 = vrot.lane.b32.xlu0 %v7240_v62, %s8875_s28  ;;  %5709 = vst.msk [vmem:[#allocation3 + $0x24] sm:$0xf] %vm1405_vm11, %v5683_v11 }
 0x2fc   : > { %v5681_v14 = vpop.permute.xlu0 %5680  ;;  %v8839_v8 = vld [vmem:[#allocation3] sm:$0xff]  }
 0x2fd   : > { %5708 = vst.msk [vmem:[#allocation3 + $0x20] sm:$0xf] %vm1405_vm11, %v5681_v14  ;;  %8787 = vmatprep.mubr.msk.bf16.mxu0 %vm2906_vm2, %v8839_v8 }
 0x2fe   : > { %v7252_v61 = vpop.permute.xlu1 %7251 }
 0x2ff   : > { %7284 = vst.msk [vmem:[#allocation3 + $0xc] sm:$0xf] %vm1553_vm14, %v7252_v61 }
 0x300   : > { %v7250_v51 = vpop.permute.xlu0 %7249 }
 0x301   : > { %7283 = vst.msk [vmem:[#allocation3 + $0x8] sm:$0xf] %vm1553_vm14, %v7250_v51 }
 0x302   : > { %v5687_v37 = vpop.permute.xlu1 %5686 }
 0x303   : > { %5711 = vst.msk [vmem:[#allocation3 + $0x2c] sm:$0xf] %vm1405_vm11, %v5687_v37 }
 0x304   : > { %v5685_v49 = vpop.permute.xlu0 %5684 }
 0x305   : > { %5710 = vst.msk [vmem:[#allocation3 + $0x28] sm:$0xf] %vm1405_vm11, %v5685_v49  ;;  %v8765_v15 = vpop.f32.mrf.mxu0 }
 0x306   : > { %v5827_v6 = vpop.permute.xlu1 %5826  ;;  %v12050_v50 = vadd.f32 %v8765_v15, %v11662_v27 }
 0x307   : > { %5853 = vst.msk [vmem:[#allocation3 + $0x24] sm:$0xf] %vm1553_vm14, %v5827_v6  ;;  %v4536_v26 = vpop.f32.mrf.mxu0 }
 0x308   : > { %v5825_v47 = vpop.permute.xlu0 %5824  ;;  %v8840_v25 = vld [vmem:[#allocation3 + $0x8] sm:$0xff]   ;;  %v12054_v17 = vadd.f32 %v4536_v26, %v11675_v46 }
 0x309   : > { %5852 = vst.msk [vmem:[#allocation3 + $0x20] sm:$0xf] %vm1553_vm14, %v5825_v47  ;;  %8788 = vmatmul.mubr.msk.bf16.vlgmr.msra.gmra.mxu0 %vm2906_vm2, %v8840_v25  ;;  %v8766_v9 = vpop.f32.mrf.mxu0 }
 0x30a   : > { %v5831_v41 = vpop.permute.xlu1 %5830  ;;  %v12060_v27 = vadd.f32 %v8766_v9, %v11690_v22 }
 0x30b   : > { %5855 = vst.msk [vmem:[#allocation3 + $0x2c] sm:$0xf] %vm1553_vm14, %v5831_v41  ;;  %v4539_v16 = vpop.f32.mrf.mxu0 }
 0x30c   : > { %v5829_v3 = vpop.permute.xlu0 %5828  ;;  %v12065_v46 = vadd.f32 %v4539_v16, %v11696_v43 }
 0x30d   : > { %5854 = vst.msk [vmem:[#allocation3 + $0x28] sm:$0xf] %vm1553_vm14, %v5829_v3 }
 0x30e   : > { %v5869_v23 = vld [vmem:[#allocation3 + $0x24] sm:$0xf]  ;;  %v6248_v7 = vpop.permute.xlu1 %6247 }
 0x30f   : > { %6042 = vst.msk [vmem:[#allocation3 + $0x24] sm:$0xf] %vm281_vm13, %v8469_v36 }
 0x310   : > { %6278 = vst.msk [vmem:[#allocation3 + $0x14] sm:$0xf] %vm525_vm1, %v6248_v7  ;;  %v5868_v18 = vld [vmem:[#allocation3 + $0x20] sm:$0xf]  ;;  %v6246_v57 = vpop.permute.xlu0 %6245 }
 0x311   : > { %6041 = vst.msk [vmem:[#allocation3 + $0x20] sm:$0xf] %vm281_vm13, %v8468_v60  ;;  %v8452_v22 = vcombine.low %v5868_v18, %v5869_v23 }
 0x312   : > { %6277 = vst.msk [vmem:[#allocation3 + $0x10] sm:$0xf] %vm525_vm1, %v6246_v57  ;;  %v5871_v55 = vld [vmem:[#allocation3 + $0x2c] sm:$0xf]  ;;  %v6252_v21 = vpop.permute.xlu1 %6251 }
 0x313   : > { %6044 = vst.msk [vmem:[#allocation3 + $0x2c] sm:$0xf] %vm281_vm13, %v8471_v32  ;;  %8781 = vmatprep.mubr.msk.bf16.mxu1 %vm2906_vm2, %v8452_v22 }
 0x314   : > { %6280 = vst.msk [vmem:[#allocation3 + $0x1c] sm:$0xf] %vm525_vm1, %v6252_v21  ;;  %v5870_v43 = vld [vmem:[#allocation3 + $0x28] sm:$0xf]  ;;  %v6250_v38 = vpop.permute.xlu0 %6249 }
 0x315   : > { %6043 = vst.msk [vmem:[#allocation3 + $0x28] sm:$0xf] %vm281_vm13, %v8470_v10  ;;  %v8453_v2 = vcombine.low %v5870_v43, %v5871_v55 }
 0x316   : > { %6279 = vst.msk [vmem:[#allocation3 + $0x18] sm:$0xf] %vm525_vm1, %v6250_v38  ;;  %v6392_v42 = vpop.permute.xlu1 %6391 }
 0x317   : > { %8782 = vmatmul.mubr.msk.bf16.gmra.mxu1 %vm2906_vm2, %v8453_v2  ;;  %6422 = vst.msk [vmem:[#allocation3 + $0x14] sm:$0xf] %vm673_vm7, %v6392_v42 }
 0x318   : > { %v6390_v30 = vpop.permute.xlu0 %6389 }
 0x319   : > { %6421 = vst.msk [vmem:[#allocation3 + $0x10] sm:$0xf] %vm673_vm7, %v6390_v30 }
 0x31a   : > { %v6396_v40 = vpop.permute.xlu1 %6395 }
 0x31b   : > { %6424 = vst.msk [vmem:[#allocation3 + $0x1c] sm:$0xf] %vm673_vm7, %v6396_v40 }
 0x31c   : > { %v6394_v29 = vpop.permute.xlu0 %6393 }
 0x31d   : > { %6423 = vst.msk [vmem:[#allocation3 + $0x18] sm:$0xf] %vm673_vm7, %v6394_v29 }
 0x31e   : > { %v6680_v39 = vpop.permute.xlu1 %6679 }
 0x31f   : > { %6710 = vst.msk [vmem:[#allocation3 + $0x14] sm:$0xf] %vm965_vm8, %v6680_v39 }
 0x320   : > { %v6678_v53 = vpop.permute.xlu0 %6677 }
 0x321   : > { %6709 = vst.msk [vmem:[#allocation3 + $0x10] sm:$0xf] %vm965_vm8, %v6678_v53 }
 0x322   : > { %v6684_v33 = vpop.permute.xlu1 %6683 }
 0x323   : > { %6712 = vst.msk [vmem:[#allocation3 + $0x1c] sm:$0xf] %vm965_vm8, %v6684_v33 }
 0x324   : > { %v6682_v1 = vpop.permute.xlu0 %6681 }
 0x325   : > { %6711 = vst.msk [vmem:[#allocation3 + $0x18] sm:$0xf] %vm965_vm8, %v6682_v1  ;;  %v12136_v1 = vpop.f32.mrf.mxu1 }
 0x326   : > { %v6824_v24 = vpop.permute.xlu1 %6823 }
 0x327   : > { %6854 = vst.msk [vmem:[#allocation3 + $0x14] sm:$0xf] %vm1113_vm10, %v6824_v24 }
 0x328   : > { %v6822_v35 = vpop.permute.xlu0 %6821 }
 0x329   : > { %6853 = vst.msk [vmem:[#allocation3 + $0x10] sm:$0xf] %vm1113_vm10, %v6822_v35 }
 0x32a   : > { %v6828_v52 = vpop.permute.xlu1 %6827 }
 0x32b   : > { %6856 = vst.msk [vmem:[#allocation3 + $0x1c] sm:$0xf] %vm1113_vm10, %v6828_v52  ;;  %v3104_v52 = vadd.f32 %v11596_v31, %v11989_v59 }
 0x32c   : > { %v6826_v63 = vpop.permute.xlu0 %6825 }
 0x32d   : > { %6855 = vst.msk [vmem:[#allocation3 + $0x18] sm:$0xf] %vm1113_vm10, %v6826_v63  ;;  %v3096_v63 = vadd.f32 %v11604_v45, %v12003_v20 }
 0x32e   : > { %v7112_v62 = vpop.permute.xlu1 %7111 }
 0x32f   : > { %7142 = vst.msk [vmem:[#allocation3 + $0x14] sm:$0xf] %vm1405_vm11, %v7112_v62  ;;  %v4569_v62 = vadd.f32 %v12031_v28, %v3104_v52 }
 0x330   : > { %v7110_v13 = vpop.permute.xlu0 %7109 }
 0x331   : > { %7141 = vst.msk [vmem:[#allocation3 + $0x10] sm:$0xf] %vm1405_vm11, %v7110_v13 }
 0x332   : > { %v7116_v11 = vpop.permute.xlu1 %7115 }
 0x333   : > { %7144 = vst.msk [vmem:[#allocation3 + $0x1c] sm:$0xf] %vm1405_vm11, %v7116_v11 }
 0x334   : > { %v7114_v14 = vpop.permute.xlu0 %7113 }
 0x335   : > { %7143 = vst.msk [vmem:[#allocation3 + $0x18] sm:$0xf] %vm1405_vm11, %v7114_v14  ;;  %v3107_v14 = vadd.f32 %v11613_v5, %v12015_v0 }
 0x336   : > { %v7256_v8 = vpop.permute.xlu1 %7255 }
 0x337   : > { %7286 = vst.msk [vmem:[#allocation3 + $0x14] sm:$0xf] %vm1553_vm14, %v7256_v8  ;;  %v4567_v8 = vadd.f32 %v12036_v34, %v3096_v63  ;;  %v4570_v31 = vadd.f32 %v12041_v4, %v3107_v14 }
 0x339   : > { %v7254_v61 = vpop.permute.xlu0 %7253 }
 0x33a   : > { %7285 = vst.msk [vmem:[#allocation3 + $0x10] sm:$0xf] %vm1553_vm14, %v7254_v61 }
 0x33b   : > { %v7260_v51 = vpop.permute.xlu1 %7259 }
 0x33c   : > { %7288 = vst.msk [vmem:[#allocation3 + $0x1c] sm:$0xf] %vm1553_vm14, %v7260_v51  ;;  %v8775_v24 = vpop.f32.mrf.mxu1 }
 0x33d   : > { %v7258_v37 = vpop.permute.xlu0 %7257  ;;  %v6006_v61 = vadd.f32 %v8775_v24, %v4569_v62 }
 0x33e   : > { %7287 = vst.msk [vmem:[#allocation3 + $0x18] sm:$0xf] %vm1553_vm14, %v7258_v37  ;;  %v5957_v35 = vpop.f32.mrf.mxu1  ;;  %v3099_v37 = vadd.f32 %v11628_v48, %v12025_v12  ;;  %v12158_v12 = vld [vmem:[%s12249_s2] ss:$0 sm:$0xff] }
 0x33f   : > { %v6256_v49 = vpop.permute.xlu1 %6255  ;;  %v6004_v59 = vadd.f32 %v5957_v35, %v4567_v8 }
 0x340   : > { %6282 = vst.msk [vmem:[#allocation3 + $0x24] sm:$0xf] %vm525_vm1, %v6256_v49  ;;  %v8776_v13 = vpop.f32.mrf.mxu1  ;;  %v4568_v49 = vadd.f32 %v12045_v44, %v3099_v37  ;;  %v12164_v44 = vld [vmem:[%s12250_s3] ss:$0 sm:$0xff] }
 0x341   : > { %v6254_v6 = vpop.permute.xlu0 %6253  ;;  %v8841_v15 = vld [vmem:[#allocation3 + $0x10] sm:$0xff]  }
 0x342   : > { %6281 = vst.msk [vmem:[#allocation3 + $0x20] sm:$0xf] %vm525_vm1, %v6254_v6  ;;  %8791 = vmatprep.mubr.msk.bf16.mxu0 %vm2906_vm2, %v8841_v15  ;;  %v5960_v20 = vpop.f32.mrf.mxu1  ;;  %v6007_v6 = vadd.f32 %v8776_v13, %v4570_v31 }
 0x343   : > { %v6260_v47 = vpop.permute.xlu1 %6259  ;;  %v6005_v34 = vadd.f32 %v5960_v20, %v4568_v49 }
 0x344   : > { %6284 = vst.msk [vmem:[#allocation3 + $0x2c] sm:$0xf] %vm525_vm1, %v6260_v47 }
 0x345   : > { %v6258_v25 = vpop.permute.xlu0 %6257  ;;  %v8842_v26 = vld [vmem:[#allocation3 + $0x18] sm:$0xff]  }
 0x346   : > { %6283 = vst.msk [vmem:[#allocation3 + $0x28] sm:$0xf] %vm525_vm1, %v6258_v25  ;;  %8792 = vmatmul.mubr.msk.bf16.gmra.mxu0 %vm2906_vm2, %v8842_v26 }
 0x347   : > { %v6400_v41 = vpop.permute.xlu1 %6399 }
 0x348   : > { %6426 = vst.msk [vmem:[#allocation3 + $0x24] sm:$0xf] %vm673_vm7, %v6400_v41 }
 0x349   : > { %v8769_v9 = vpop.f32.mrf.mxu0  ;;  %v6398_v3 = vpop.permute.xlu0 %6397 }
 0x34a   : > { %v12107_v36 = vadd.f32 %v8769_v9, %v11713_v58  ;;  %6425 = vst.msk [vmem:[#allocation3 + $0x20] sm:$0xf] %vm673_vm7, %v6398_v3 }
 0x34b   : > { %v4552_v16 = vpop.f32.mrf.mxu0  ;;  %v6404_v60 = vpop.permute.xlu1 %6403 }
 0x34c   : > { %v12111_v23 = vadd.f32 %v4552_v16, %v11718_v19  ;;  %6428 = vst.msk [vmem:[#allocation3 + $0x2c] sm:$0xf] %vm673_vm7, %v6404_v60 }
 0x34d   : > { %v8770_v7 = vpop.f32.mrf.mxu0  ;;  %v6402_v32 = vpop.permute.xlu0 %6401 }
 0x34e   : > { %v12115_v18 = vadd.f32 %v8770_v7, %v11729_v56  ;;  %6427 = vst.msk [vmem:[#allocation3 + $0x28] sm:$0xf] %vm673_vm7, %v6402_v32 }
 0x34f   : > { %v6688_v57 = vpop.permute.xlu1 %6687  ;;  %v12143_v11 = vpop.f32.mrf.mxu0 }
 0x350   : > { %6714 = vst.msk [vmem:[#allocation3 + $0x24] sm:$0xf] %vm965_vm8, %v6688_v57 }
 0x351   : > { %v6686_v58 = vpop.permute.xlu0 %6685 }
 0x352   : > { %6713 = vst.msk [vmem:[#allocation3 + $0x20] sm:$0xf] %vm965_vm8, %v6686_v58 }
 0x353   : > { %v6692_v22 = vpop.permute.xlu1 %6691 }
 0x354   : > { %6716 = vst.msk [vmem:[#allocation3 + $0x2c] sm:$0xf] %vm965_vm8, %v6692_v22 }
 0x355   : > { %v6690_v19 = vpop.permute.xlu0 %6689 }
 0x356   : > { %6715 = vst.msk [vmem:[#allocation3 + $0x28] sm:$0xf] %vm965_vm8, %v6690_v19 }
 0x357   : > { %v6832_v55 = vpop.permute.xlu1 %6831 }
 0x358   : > { %6858 = vst.msk [vmem:[#allocation3 + $0x24] sm:$0xf] %vm1113_vm10, %v6832_v55 }
 0x359   : > { %v6830_v56 = vpop.permute.xlu0 %6829 }
 0x35a   : > { %6857 = vst.msk [vmem:[#allocation3 + $0x20] sm:$0xf] %vm1113_vm10, %v6830_v56 }
 0x35b   : > { %v6836_v10 = vpop.permute.xlu1 %6835 }
 0x35c   : > { %6860 = vst.msk [vmem:[#allocation3 + $0x2c] sm:$0xf] %vm1113_vm10, %v6836_v10 }
 0x35d   : > { %v6834_v21 = vpop.permute.xlu0 %6833 }
 0x35e   : > { %6859 = vst.msk [vmem:[#allocation3 + $0x28] sm:$0xf] %vm1113_vm10, %v6834_v21 }
 0x35f   : > { %v7120_v43 = vpop.permute.xlu1 %7119 }
 0x360   : > { %7146 = vst.msk [vmem:[#allocation3 + $0x24] sm:$0xf] %vm1405_vm11, %v7120_v43 }
 0x361   : > { %v7118_v38 = vpop.permute.xlu0 %7117 }
 0x362   : > { %7145 = vst.msk [vmem:[#allocation3 + $0x20] sm:$0xf] %vm1405_vm11, %v7118_v38 }
 0x363   : > { %v7124_v2 = vpop.permute.xlu1 %7123 }
 0x364   : > { %7148 = vst.msk [vmem:[#allocation3 + $0x2c] sm:$0xf] %vm1405_vm11, %v7124_v2 }
 0x365   : > { %v7122_v42 = vpop.permute.xlu0 %7121 }
 0x366   : > { %7147 = vst.msk [vmem:[#allocation3 + $0x28] sm:$0xf] %vm1405_vm11, %v7122_v42 }
 0x367   : > { %v7264_v30 = vpop.permute.xlu1 %7263 }
 0x368   : > { %7290 = vst.msk [vmem:[#allocation3 + $0x24] sm:$0xf] %vm1553_vm14, %v7264_v30 }
 0x369   : > { %v7262_v40 = vpop.permute.xlu0 %7261 }
 0x36a   : > { %7289 = vst.msk [vmem:[#allocation3 + $0x20] sm:$0xf] %vm1553_vm14, %v7262_v40 }
 0x36b   : > { %v7268_v29 = vpop.permute.xlu1 %7267 }
 0x36c   : > { %7292 = vst.msk [vmem:[#allocation3 + $0x2c] sm:$0xf] %vm1553_vm14, %v7268_v29 }
 0x36d   : > { %v7266_v39 = vpop.permute.xlu0 %7265 }
 0x36e   : > { %7291 = vst.msk [vmem:[#allocation3 + $0x28] sm:$0xf] %vm1553_vm14, %v7266_v39 }
 0x371   : > { %v8843_v53 = vld [vmem:[#allocation3 + $0x20] sm:$0xff]  }
 0x372   : > { %8795 = vmatprep.mubr.msk.bf16.mxu0 %vm2906_vm2, %v8843_v53 }
 0x375   : > { %v8844_v33 = vld [vmem:[#allocation3 + $0x28] sm:$0xff]  }
 0x376   : > { %8796 = vmatmul.mubr.msk.bf16.gmra.mxu0 %vm2906_vm2, %v8844_v33 }
 0x37b   : > { %v8779_v2 = vpop.f32.mrf.mxu1 }
 0x37c   : > { %v6010_v40 = vadd.f32 %v8779_v2, %v12050_v50 }
 0x37d   : > { %v5973_v42 = vpop.f32.mrf.mxu1 }
 0x37e   : > { %v6008_v39 = vadd.f32 %v5973_v42, %v12054_v17 }
 0x37f   : > { %v8780_v30 = vpop.f32.mrf.mxu1 }
 0x380   : > { %v6011_v35 = vadd.f32 %v8780_v30, %v12060_v27 }
 0x381   : > { %v5976_v33 = vpop.f32.mrf.mxu1 }
 0x382   : > { %v6009_v62 = vadd.f32 %v5976_v33, %v12065_v46 }
 0x3c9   : > { %v8789_v51 = vpop.f32.mrf.mxu0 }
 0x3ca   : > { %v7443_v45 = vadd.f32 %v8789_v51, %v6006_v61 }
 0x3cb   : > { %v7394_v28 = vpop.f32.mrf.mxu0 }
 0x3cc   : > { %7462 = vst.msk [vmem:[#allocation2 + $0x10] sm:$0xff] %vm7459_vm3, %v7443_v45  ;;  %v7441_v5 = vadd.f32 %v7394_v28, %v6004_v59 }
 0x3cd   : > { %v8790_v0 = vpop.f32.mrf.mxu0 }
 0x3ce   : > { %7460 = vst.msk [vmem:[#allocation2] sm:$0xff] %vm7459_vm3, %v7441_v5  ;;  %v7444_v15 = vadd.f32 %v8790_v0, %v6007_v6 }
 0x3cf   : > { %v7397_v47 = vpop.f32.mrf.mxu0 }
 0x3d0   : > { %7463 = vst.msk [vmem:[#allocation2 + $0x18] sm:$0xff] %vm7459_vm3, %v7444_v15  ;;  %v7442_v48 = vadd.f32 %v7397_v47, %v6005_v34 }
 0x3d2   : > { %7461 = vst.msk [vmem:[#allocation2 + $0x8] sm:$0xff] %vm7459_vm3, %v7442_v48 }
 0x3d3   : > { %v7474_v4 = vld [vmem:[#allocation2 + $0x10] sm:$0xff] }
 0x3d4   : > { %v7493_v25 = vmul.f32 %v12158_v12, %v7474_v4 }
 0x3d5   : > { %v7472_v26 = vld [vmem:[#allocation2] sm:$0xff] }
 0x3d6   : > { %v7512_v41 = vadd.f32 %v12164_v44, %v7493_v25  ;;  %v7491_v9 = vmul.f32 %v12158_v12, %v7472_v26 }
 0x3d7   : > { %v7475_v3 = vld [vmem:[#allocation2 + $0x18] sm:$0xff]  ;;  %v8783_v4 = vpop.f32.mrf.mxu1 }
 0x3d8   : > { %v7524_v16 = vmax.f32 %v7512_v41, 0.0  ;;  %v7510_v60 = vadd.f32 %v12164_v44, %v7491_v9  ;;  %v7494_v7 = vmul.f32 %v12158_v12, %v7475_v3  ;;  %v6014_v41 = vadd.f32 %v8783_v4, %v12107_v36 }
 0x3d9   : > { %v7473_v32 = vld [vmem:[#allocation2 + $0x8] sm:$0xff]  ;;  %v5989_v25 = vpop.f32.mrf.mxu1  ;;  %v3131_v3 = vadd.f32 %v12136_v1, %v11586_v54 }
 0x3da   : > { %v8684_v57 = vpack.c.bf16 %v7524_v16, %v7524_v16  ;;  %v7522_v58 = vmax.f32 %v7510_v60, 0.0  ;;  %v7513_v22 = vadd.f32 %v12164_v44, %v7494_v7  ;;  %v7492_v19 = vmul.f32 %v12158_v12, %v7473_v32 }
 0x3db   : > { %v8784_v26 = vpop.f32.mrf.mxu1  ;;  %v6012_v16 = vadd.f32 %v5989_v25, %v12111_v23 }
 0x3dc   : > { %7585 = vst.msk [vmem:[%s12175_s24 + $0x8] sm:$0xf] %vm7582_vm6, %v8684_v57  ;;  %v8682_v55 = vpack.c.bf16 %v7522_v58, %v7522_v58  ;;  %v7525_v56 = vmax.f32 %v7513_v22, 0.0  ;;  %v7511_v10 = vadd.f32 %v12164_v44, %v7492_v19  ;;  %v4576_v57 = vadd.f32 %v12143_v11, %v3131_v3 }
 0x3dd   : > { %v5992_v7 = vpop.f32.mrf.mxu1  ;;  %v6015_v58 = vadd.f32 %v8784_v26, %v12115_v18 }
 0x3de   : > { %7583 = vst.msk [vmem:[%s12175_s24] sm:$0xf] %vm7582_vm6, %v8682_v55  ;;  %v8685_v21 = vpack.c.bf16 %v7525_v56, %v7525_v56  ;;  %v7523_v43 = vmax.f32 %v7511_v10, 0.0  ;;  %v6013_v55 = vadd.f32 %v5992_v7, %v4576_v57 }
 0x3e0   : > { %7586 = vst.msk [vmem:[%s12175_s24 + $0xc] sm:$0xf] %vm7582_vm6, %v8685_v21  ;;  %v8683_v38 = vpack.c.bf16 %v7523_v43, %v7523_v43 }
 0x3e2   : > { %7584 = vst.msk [vmem:[%s12175_s24 + $0x4] sm:$0xf] %vm7582_vm6, %v8683_v38 }
 0x406   : > { %v8793_v29 = vpop.f32.mrf.mxu0 }
 0x407   : > { %v7447_v53 = vadd.f32 %v8793_v29, %v6010_v40 }
 0x408   : > { %v7410_v24 = vpop.f32.mrf.mxu0 }
 0x409   : > { %7466 = vst.msk [vmem:[#allocation2 + $0x30] sm:$0xff] %vm7459_vm3, %v7447_v53  ;;  %v7445_v52 = vadd.f32 %v7410_v24, %v6008_v39 }
 0x40a   : > { %v8794_v63 = vpop.f32.mrf.mxu0 }
 0x40b   : > { %7464 = vst.msk [vmem:[#allocation2 + $0x20] sm:$0xff] %vm7459_vm3, %v7445_v52  ;;  %v7448_v13 = vadd.f32 %v8794_v63, %v6011_v35 }
 0x40c   : > { %v7413_v14 = vpop.f32.mrf.mxu0 }
 0x40d   : > { %7467 = vst.msk [vmem:[#allocation2 + $0x38] sm:$0xff] %vm7459_vm3, %v7448_v13  ;;  %v7446_v50 = vadd.f32 %v7413_v14, %v6009_v62 }
 0x40f   : > { %7465 = vst.msk [vmem:[#allocation2 + $0x28] sm:$0xff] %vm7459_vm3, %v7446_v50 }
 0x410   : > { %v7478_v17 = vld [vmem:[#allocation2 + $0x30] sm:$0xff] }
 0x411   : > { %v7497_v8 = vmul.f32 %v12158_v12, %v7478_v17 }
 0x412   : > { %v7476_v27 = vld [vmem:[#allocation2 + $0x20] sm:$0xff] }
 0x413   : > { %v7516_v61 = vadd.f32 %v12164_v44, %v7497_v8  ;;  %v7495_v51 = vmul.f32 %v12158_v12, %v7476_v27 }
 0x414   : > { %v7479_v46 = vld [vmem:[#allocation2 + $0x38] sm:$0xff] }
 0x415   : > { %v7528_v37 = vmax.f32 %v7516_v61, 0.0  ;;  %v7514_v31 = vadd.f32 %v12164_v44, %v7495_v51  ;;  %v7498_v59 = vmul.f32 %v12158_v12, %v7479_v46 }
 0x416   : > { %v7477_v45 = vld [vmem:[#allocation2 + $0x28] sm:$0xff] }
 0x417   : > { %v8688_v20 = vpack.c.bf16 %v7528_v37, %v7528_v37  ;;  %v7526_v28 = vmax.f32 %v7514_v31, 0.0  ;;  %v7517_v49 = vadd.f32 %v12164_v44, %v7498_v59  ;;  %v7496_v6 = vmul.f32 %v12158_v12, %v7477_v45 }
 0x419   : > { %7589 = vst.msk [vmem:[%s12175_s24 + $0x18] sm:$0xf] %vm7582_vm6, %v8688_v20  ;;  %v8686_v5 = vpack.c.bf16 %v7526_v28, %v7526_v28  ;;  %v7529_v0 = vmax.f32 %v7517_v49, 0.0  ;;  %v7515_v34 = vadd.f32 %v12164_v44, %v7496_v6 }
 0x41b   : > { %7587 = vst.msk [vmem:[%s12175_s24 + $0x10] sm:$0xf] %vm7582_vm6, %v8686_v5  ;;  %v8689_v15 = vpack.c.bf16 %v7529_v0, %v7529_v0  ;;  %v7527_v47 = vmax.f32 %v7515_v34, 0.0 }
 0x41d   : > { %7590 = vst.msk [vmem:[%s12175_s24 + $0x1c] sm:$0xf] %vm7582_vm6, %v8689_v15  ;;  %v8687_v48 = vpack.c.bf16 %v7527_v47, %v7527_v47 }
 0x41f   : > { %7588 = vst.msk [vmem:[%s12175_s24 + $0x14] sm:$0xf] %vm7582_vm6, %v8687_v48 }
 0x436   : > { %v8797_v9 = vpop.f32.mrf.mxu0 }
 0x437   : > { %v7451_v60 = vadd.f32 %v8797_v9, %v6014_v41 }
 0x438   : > { %v7426_v32 = vpop.f32.mrf.mxu0 }
 0x439   : > { %7470 = vst.msk [vmem:[#allocation2 + $0x50] sm:$0xff] %vm7459_vm3, %v7451_v60  ;;  %v7449_v22 = vadd.f32 %v7426_v32, %v6012_v16 }
 0x43a   : > { %v8798_v19 = vpop.f32.mrf.mxu0 }
 0x43b   : > { %7468 = vst.msk [vmem:[#allocation2 + $0x40] sm:$0xff] %vm7459_vm3, %v7449_v22  ;;  %v7452_v36 = vadd.f32 %v8798_v19, %v6015_v58 }
 0x43c   : > { %v7429_v56 = vpop.f32.mrf.mxu0 }
 0x43d   : > { %7471 = vst.msk [vmem:[#allocation2 + $0x58] sm:$0xff] %vm7459_vm3, %v7452_v36  ;;  %v7450_v54 = vadd.f32 %v7429_v56, %v6013_v55 }
 0x43f   : > { %7469 = vst.msk [vmem:[#allocation2 + $0x48] sm:$0xff] %vm7459_vm3, %v7450_v54 }
 0x440   : > { %v7482_v23 = vld [vmem:[#allocation2 + $0x50] sm:$0xff] }
 0x441   : > { %v7501_v1 = vmul.f32 %v12158_v12, %v7482_v23 }
 0x442   : > { %v7480_v11 = vld [vmem:[#allocation2 + $0x40] sm:$0xff] }
 0x443   : > { %v7520_v18 = vadd.f32 %v12164_v44, %v7501_v1  ;;  %v7499_v10 = vmul.f32 %v12158_v12, %v7480_v11 }
 0x444   : > { %v7483_v21 = vld [vmem:[#allocation2 + $0x58] sm:$0xff] }
 0x445   : > { %v7532_v43 = vmax.f32 %v7520_v18, 0.0  ;;  %v7518_v38 = vadd.f32 %v12164_v44, %v7499_v10  ;;  %v7502_v2 = vmul.f32 %v12158_v12, %v7483_v21 }
 0x446   : > { %v7481_v42 = vld [vmem:[#allocation2 + $0x48] sm:$0xff] }
 0x447   : > { %v8692_v30 = vpack.c.bf16 %v7532_v43, %v7532_v43  ;;  %v7530_v40 = vmax.f32 %v7518_v38, 0.0  ;;  %v7521_v29 = vadd.f32 %v12164_v44, %v7502_v2  ;;  %v7500_v39 = vmul.f32 %v12158_v12, %v7481_v42 }
 0x449   : > { %7593 = vst.msk [vmem:[%s12175_s24 + $0x28] sm:$0xf] %vm7582_vm6, %v8692_v30  ;;  %v8690_v53 = vpack.c.bf16 %v7530_v40, %v7530_v40  ;;  %v7533_v33 = vmax.f32 %v7521_v29, 0.0  ;;  %v7519_v24 = vadd.f32 %v12164_v44, %v7500_v39 }
 0x44b   : > { %7591 = vst.msk [vmem:[%s12175_s24 + $0x20] sm:$0xf] %vm7582_vm6, %v8690_v53  ;;  %v8693_v35 = vpack.c.bf16 %v7533_v33, %v7533_v33  ;;  %v7531_v52 = vmax.f32 %v7519_v24, 0.0 }
 0x44d   : > { %7594 = vst.msk [vmem:[%s12175_s24 + $0x2c] sm:$0xf] %vm7582_vm6, %v8693_v35  ;;  %v8691_v63 = vpack.c.bf16 %v7531_v52, %v7531_v52 }
 0x44f   : > { %7592 = vst.msk [vmem:[%s12175_s24 + $0x24] sm:$0xf] %vm7582_vm6, %v8691_v63 }
 0x450 PF: > { %s14_s17 = sadd.s32 1, %s8867_s17   ;;  %s12264_s15 = smov %s8863_s16 }
 0x451   : > { %p11_p5 = scmp.ge.s32.totalorder %s14_s17, 6   ;;  %s12265_s16 = smov %s12267_s18 }
 0x453   :  { %13 = sbr.rel (!%p11_p5) target bundleno = 2 (0x2), region = 84 }

</bundles_post_ra>
